<compile_context>
chip_gen: v5e
topology: v5e:2x2
jax: 0.10.0
libtpu: 0.0.40
codegen_flags: <defaults>
</compile_context>

<pallas_src>
import jax
import jax.numpy as jnp
from jax import lax
from jax.experimental import pallas as pl
from jax.experimental.pallas import tpu as pltpu

# ----------------------------- config (small, lane-dense) -----------------------------
VOCAB = 1000
BATCH = 2
SEQ = 128
HIDDEN = 256
NUM_HEADS = 2
HEAD_DIM = HIDDEN // NUM_HEADS            # 128 -> full-lane per-head slices
INTERMEDIATE = 1024
NUM_LAYERS = 4
NUM_LABELS = 2
LABELS_PAD = 128                          # lane-dense logits slab (sliced to 2 outside)
LN_EPS = 1e-5
MASK_MIN = -1e9
PAD_IDX = 1                               # RoBERTa padding_idx for position ids


# ----------------------------- in-kernel helpers -----------------------------
def _layernorm(t, gamma, beta, eps=LN_EPS):
    mu = jnp.mean(t, axis=-1, keepdims=True)
    var = jnp.mean((t - mu) ** 2, axis=-1, keepdims=True)
    return (t - mu) * lax.rsqrt(var + eps) * gamma + beta


def _linear(x_f32, w_bf16, b_f32):
    # MXU inputs in bf16, f32 accumulation; bias add / downstream math in f32.
    return jnp.dot(x_f32.astype(jnp.bfloat16), w_bf16,
                   preferred_element_type=jnp.float32) + b_f32


# ----------------------------- fused encoder + head kernel -----------------------------
def roberta_fused_kernel(
    x0_ref, mask_ref,
    wqkv_ref, bqkv_ref, wo_ref, bo_ref, ln1g_ref, ln1b_ref,
    w1_ref, b1_ref, w2_ref, b2_ref, ln2g_ref, ln2b_ref,
    wd_ref, bd_ref, wp_ref, bp_ref,
    logits_ref,
    act_ref, ctx_ref,
):
    l = pl.program_id(1)                     # layer axis ("arbitrary")

    @pl.when(l == 0)
    def _():
        act_ref[...] = x0_ref[0]             # load embeddings for this batch element

    x = act_ref[...]                         # (S, H) f32 residual stream

    # ---------------- self-attention ----------------
    # Fused QKV projection; 1/sqrt(head_dim) is folded into the Q weights at init.
    qkv = _linear(x, wqkv_ref[0], bqkv_ref[0])            # (S, 3H) f32

    # Hoisted mask broadcast: materialize the (S, S) additive bias once,
    # reused by every head (no per-head broadcast_in_dim).
    mask_full = jnp.broadcast_to(mask_ref[0], (SEQ, SEQ))  # (S, S)

    for h in range(NUM_HEADS):               # static; 128-lane-aligned head slices
        o = h * HEAD_DIM
        qh = qkv[:, o:o + HEAD_DIM].astype(jnp.bfloat16)
        kh = qkv[:, HIDDEN + o:HIDDEN + o + HEAD_DIM].astype(jnp.bfloat16)
        vh = qkv[:, 2 * HIDDEN + o:2 * HIDDEN + o + HEAD_DIM].astype(jnp.bfloat16)

        s = lax.dot_general(qh, kh, (((1,), (1,)), ((), ())),
                            preferred_element_type=jnp.float32)        # (S, S)
        s = s + mask_full
        s = s - jnp.max(s, axis=-1, keepdims=True)
        p = jnp.exp(s)
        p = p * pl.reciprocal(jnp.sum(p, axis=-1, keepdims=True), approx=True)

        # Write head output directly into a lane-aligned slice of the VMEM scratch
        # (no lane-axis concatenate).
        ctx_ref[:, o:o + HEAD_DIM] = jnp.dot(
            p.astype(jnp.bfloat16), vh, preferred_element_type=jnp.float32)

    attn = _linear(ctx_ref[...], wo_ref[0], bo_ref[0])     # (S, H)
    x1 = _layernorm(x + attn, ln1g_ref[0], ln1b_ref[0])

    # ---------------- FFN ----------------
    # TODO(synk): HF RoBERTa uses exact (erf) GELU; tanh approximation used here.
    h1 = jax.nn.gelu(_linear(x1, w1_ref[0], b1_ref[0]), approximate=True)
    ffn = _linear(h1, w2_ref[0], b2_ref[0])
    y = _layernorm(x1 + ffn, ln2g_ref[0], ln2b_ref[0])
    act_ref[...] = y                                        # carry to next layer

    # ---------------- classifier head (fused into final layer step) ----------------
    @pl.when(l == pl.num_programs(1) - 1)
    def _():
        pooled = y[0:1, :]                                  # <s> token hidden, (1, H)
        hd = jnp.tanh(_linear(pooled, wd_ref[...], bd_ref[...]))
        logits_ref[0] = _linear(hd, wp_ref[...], bp_ref[...])   # (1, LABELS_PAD)


def _build_fused_call():
    per_layer = lambda b, l: (l, 0, 0)        # stacked per-layer weights
    per_batch = lambda b, l: (b, 0, 0)        # activations / mask / logits
    shared2d = lambda b, l: (0, 0)            # classifier-head weights

    in_specs = [
        pl.BlockSpec((1, SEQ, HIDDEN), per_batch),              # x0 (embeddings)
        pl.BlockSpec((1, 1, SEQ), per_batch),                   # mask bias
        pl.BlockSpec((1, HIDDEN, 3 * HIDDEN), per_layer),       # wqkv
        pl.BlockSpec((1, 1, 3 * HIDDEN), per_layer),            # bqkv
        pl.BlockSpec((1, HIDDEN, HIDDEN), per_layer),           # wo
        pl.BlockSpec((1, 1, HIDDEN), per_layer),                # bo
        pl.BlockSpec((1, 1, HIDDEN), per_layer),                # ln1g
        pl.BlockSpec((1, 1, HIDDEN), per_layer),                # ln1b
        pl.BlockSpec((1, HIDDEN, INTERMEDIATE), per_layer),     # w1
        pl.BlockSpec((1, 1, INTERMEDIATE), per_layer),          # b1
        pl.BlockSpec((1, INTERMEDIATE, HIDDEN), per_layer),     # w2
        pl.BlockSpec((1, 1, HIDDEN), per_layer),                # b2
        pl.BlockSpec((1, 1, HIDDEN), per_layer),                # ln2g
        pl.BlockSpec((1, 1, HIDDEN), per_layer),                # ln2b
        pl.BlockSpec((HIDDEN, HIDDEN), shared2d),               # wd
        pl.BlockSpec((1, HIDDEN), shared2d),                    # bd
        pl.BlockSpec((HIDDEN, LABELS_PAD), shared2d),           # wp
        pl.BlockSpec((1, LABELS_PAD), shared2d),                # bp
    ]
    out_spec = pl.BlockSpec((1, 1, LABELS_PAD), per_batch)

    return pl.pallas_call(
        roberta_fused_kernel,
        out_shape=jax.ShapeDtypeStruct((BATCH, 1, LABELS_PAD), jnp.float32),
        grid=(BATCH, NUM_LAYERS),
        in_specs=in_specs,
        out_specs=out_spec,
        scratch_shapes=[
            pltpu.VMEM((SEQ, HIDDEN), jnp.float32),   # resident activations across layers
            pltpu.VMEM((SEQ, HIDDEN), jnp.float32),   # attention context (per-head slices)
        ],
        compiler_params=pltpu.CompilerParams(
            dimension_semantics=("parallel", "arbitrary"),
            vmem_limit_bytes=32 * 1024 * 1024,
        ),
    )


_fused_call = _build_fused_call()


# ----------------------------- parameter init (deterministic) -----------------------------
def init_params(key):
    keys = jax.random.split(key, 10)

    def normal(k, shape):
        return 0.02 * jax.random.normal(k, shape, dtype=jnp.float32)

    inv_sqrt_d = 1.0 / jnp.sqrt(jnp.float32(HEAD_DIM))

    wqkv = normal(keys[0], (NUM_LAYERS, HIDDEN, 3 * HIDDEN))
    # Fold 1/sqrt(head_dim) into the Q projection (zero runtime scaling in-kernel).
    wqkv = wqkv.at[:, :, :HIDDEN].multiply(inv_sqrt_d)

    wp_small = normal(keys[7], (HIDDEN, NUM_LABELS))
    wp = jnp.zeros((HIDDEN, LABELS_PAD), jnp.float32).at[:, :NUM_LABELS].set(wp_small)

    params = {
        # embeddings (f32; glue code in the wrapper)
        'word_emb': normal(keys[1], (VOCAB, HIDDEN)),
        'pos_emb': normal(keys[2], (SEQ + PAD_IDX + 1, HIDDEN)),
        'type_emb': normal(keys[3], (1, HIDDEN)),
        'emb_ln_g': jnp.ones((1, HIDDEN), jnp.float32),
        'emb_ln_b': jnp.zeros((1, HIDDEN), jnp.float32),
        # stacked per-layer weights (matmul weights in bf16, bias/LN in f32)
        'wqkv': wqkv.astype(jnp.bfloat16),
        'bqkv': jnp.zeros((NUM_LAYERS, 1, 3 * HIDDEN), jnp.float32),
        'wo': normal(keys[4], (NUM_LAYERS, HIDDEN, HIDDEN)).astype(jnp.bfloat16),
        'bo': jnp.zeros((NUM_LAYERS, 1, HIDDEN), jnp.float32),
        'ln1g': jnp.ones((NUM_LAYERS, 1, HIDDEN), jnp.float32),
        'ln1b': jnp.zeros((NUM_LAYERS, 1, HIDDEN), jnp.float32),
        'w1': normal(keys[5], (NUM_LAYERS, HIDDEN, INTERMEDIATE)).astype(jnp.bfloat16),
        'b1': jnp.zeros((NUM_LAYERS, 1, INTERMEDIATE), jnp.float32),
        'w2': normal(keys[6], (NUM_LAYERS, INTERMEDIATE, HIDDEN)).astype(jnp.bfloat16),
        'b2': jnp.zeros((NUM_LAYERS, 1, HIDDEN), jnp.float32),
        'ln2g': jnp.ones((NUM_LAYERS, 1, HIDDEN), jnp.float32),
        'ln2b': jnp.zeros((NUM_LAYERS, 1, HIDDEN), jnp.float32),
        # classification head
        'wd': normal(keys[8], (HIDDEN, HIDDEN)).astype(jnp.bfloat16),
        'bd': jnp.zeros((1, HIDDEN), jnp.float32),
        'wp': wp.astype(jnp.bfloat16),
        'bp': jnp.zeros((1, LABELS_PAD), jnp.float32),
    }
    return params


# ----------------------------- forward (matches module semantics) -----------------------------
@jax.jit
def forward(params, input_ids, attention_mask):
    # Glue: embedding gathers + embedding LayerNorm in plain JAX.
    amask = attention_mask.astype(jnp.int32)
    # RoBERTa-style position ids: padding_idx + running index over non-pad tokens.
    pos_ids = jnp.cumsum(amask, axis=1) * amask + PAD_IDX
    word = params['word_emb'][input_ids]                    # (B, S, H)
    pos = params['pos_emb'][pos_ids]                        # (B, S, H)
    typ = params['type_emb'][None, :, :]                    # (1, 1, H)
    emb = word + pos + typ
    mu = jnp.mean(emb, axis=-1, keepdims=True)
    var = jnp.mean((emb - mu) ** 2, axis=-1, keepdims=True)
    x0 = (emb - mu) * lax.rsqrt(var + LN_EPS) * params['emb_ln_g'] + params['emb_ln_b']

    # Additive attention-mask bias: (1 - mask) * very_negative  (HF semantics), (B, 1, S).
    mask_bias = ((1.0 - attention_mask.astype(jnp.float32)) * MASK_MIN)[:, None, :]

    logits_pad = _fused_call(
        x0, mask_bias,
        params['wqkv'], params['bqkv'], params['wo'], params['bo'],
        params['ln1g'], params['ln1b'],
        params['w1'], params['b1'], params['w2'], params['b2'],
        params['ln2g'], params['ln2b'],
        params['wd'], params['bd'], params['wp'], params['bp'],
    )                                                       # (B, 1, LABELS_PAD)
    return logits_pad[:, 0, :NUM_LABELS]                    # (B, NUM_LABELS)


# ----------------------------- main -----------------------------
if __name__ == "__main__":
    key = jax.random.PRNGKey(0)
    k_params, k_ids = jax.random.split(key)

    params = init_params(k_params)
    input_ids = jax.random.randint(k_ids, (BATCH, SEQ), 0, VOCAB, dtype=jnp.int32)
    attention_mask = jnp.ones((BATCH, SEQ), dtype=jnp.int32)
    attention_mask = attention_mask.at[1, SEQ - 16:].set(0)   # pad last 16 tokens of row 1

    logits = forward(params, input_ids, attention_mask)
    jax.block_until_ready(logits)
    assert logits.shape == (BATCH, NUM_LABELS)
    assert bool(jnp.all(jnp.isfinite(logits)))
    print("KERNEL_OK")
</pallas_src>

<mosaic_0001>
module attributes {stable_mosaic.version = 11 : i64} {
  func.func @roberta_fused_kernel(%arg0: i32, %arg1: i32, %arg2: memref<1x128x256xf32, #tpu.memory_space<vmem>>, %arg3: memref<1x1x128xf32, #tpu.memory_space<vmem>>, %arg4: memref<1x256x768xbf16, #tpu.memory_space<vmem>>, %arg5: memref<1x1x768xf32, #tpu.memory_space<vmem>>, %arg6: memref<1x256x256xbf16, #tpu.memory_space<vmem>>, %arg7: memref<1x1x256xf32, #tpu.memory_space<vmem>>, %arg8: memref<1x1x256xf32, #tpu.memory_space<vmem>>, %arg9: memref<1x1x256xf32, #tpu.memory_space<vmem>>, %arg10: memref<1x256x1024xbf16, #tpu.memory_space<vmem>>, %arg11: memref<1x1x1024xf32, #tpu.memory_space<vmem>>, %arg12: memref<1x1024x256xbf16, #tpu.memory_space<vmem>>, %arg13: memref<1x1x256xf32, #tpu.memory_space<vmem>>, %arg14: memref<1x1x256xf32, #tpu.memory_space<vmem>>, %arg15: memref<1x1x256xf32, #tpu.memory_space<vmem>>, %arg16: memref<256x256xbf16, #tpu.memory_space<vmem>>, %arg17: memref<1x256xf32, #tpu.memory_space<vmem>>, %arg18: memref<256x128xbf16, #tpu.memory_space<vmem>>, %arg19: memref<1x128xf32, #tpu.memory_space<vmem>>, %arg20: memref<1x1x128xf32, #tpu.memory_space<vmem>>, %arg21: memref<128x256xf32, #tpu.memory_space<vmem>>, %arg22: memref<128x256xf32, #tpu.memory_space<vmem>>) attributes {dimension_semantics = [#tpu.dimension_semantics<parallel>, #tpu.dimension_semantics<arbitrary>], iteration_bounds = array<i64: 2, 4>, scalar_prefetch = 0 : i64, scratch_operands = 2 : i64, tpu.core_type = #tpu.core_type<tc>, window_params = [{transform_indices = @transform_0, window_bounds = array<i64: 1, 128, 256>}, {transform_indices = @transform_1, window_bounds = array<i64: 1, 1, 128>}, {transform_indices = @transform_2, window_bounds = array<i64: 1, 256, 768>}, {transform_indices = @transform_3, window_bounds = array<i64: 1, 1, 768>}, {transform_indices = @transform_4, window_bounds = array<i64: 1, 256, 256>}, {transform_indices = @transform_5, window_bounds = array<i64: 1, 1, 256>}, {transform_indices = @transform_6, window_bounds = array<i64: 1, 1, 256>}, {transform_indices = @transform_7, window_bounds = array<i64: 1, 1, 256>}, {transform_indices = @transform_8, window_bounds = array<i64: 1, 256, 1024>}, {transform_indices = @transform_9, window_bounds = array<i64: 1, 1, 1024>}, {transform_indices = @transform_10, window_bounds = array<i64: 1, 1024, 256>}, {transform_indices = @transform_11, window_bounds = array<i64: 1, 1, 256>}, {transform_indices = @transform_12, window_bounds = array<i64: 1, 1, 256>}, {transform_indices = @transform_13, window_bounds = array<i64: 1, 1, 256>}, {pipeline_mode = #tpu.pipeline_mode<synchronous>, transform_indices = @transform_14, window_bounds = array<i64: 256, 256>}, {pipeline_mode = #tpu.pipeline_mode<synchronous>, transform_indices = @transform_15, window_bounds = array<i64: 1, 256>}, {pipeline_mode = #tpu.pipeline_mode<synchronous>, transform_indices = @transform_16, window_bounds = array<i64: 256, 128>}, {pipeline_mode = #tpu.pipeline_mode<synchronous>, transform_indices = @transform_17, window_bounds = array<i64: 1, 128>}, {transform_indices = @transform_18, window_bounds = array<i64: 1, 1, 128>}]} {
    %c0_i32 = arith.constant 0 : i32
    %0 = arith.cmpi eq, %arg1, %c0_i32 : i32
    %1 = arith.extui %0 : i1 to i32
    %c0_i32_0 = arith.constant 0 : i32
    %2 = arith.cmpi ne, %1, %c0_i32_0 : i32
    scf.if %2 {
      %c0_74 = arith.constant 0 : index
      %c0_75 = arith.constant 0 : index
      %c0_76 = arith.constant 0 : index
      %154 = vector.load %arg2[%c0_74, %c0_75, %c0_76] : memref<1x128x256xf32, #tpu.memory_space<vmem>>, vector<1x128x256xf32>
      %155 = vector.shape_cast %154 : vector<1x128x256xf32> to vector<128x256xf32>
      %c0_77 = arith.constant 0 : index
      %c0_78 = arith.constant 0 : index
      %156 = vector.load %arg21[%c0_77, %c0_78] : memref<128x256xf32, #tpu.memory_space<vmem>>, vector<128x256xf32>
      tpu.vector_store %arg21[%c0_77, %c0_78], %155 {strides = array<i32>} : memref<128x256xf32, #tpu.memory_space<vmem>>, vector<128x256xf32>,
    } else {
    }
    %c0 = arith.constant 0 : index
    %c0_1 = arith.constant 0 : index
    %3 = vector.load %arg21[%c0, %c0_1] : memref<128x256xf32, #tpu.memory_space<vmem>>, vector<128x256xf32>
    %c0_2 = arith.constant 0 : index
    %c0_3 = arith.constant 0 : index
    %c0_4 = arith.constant 0 : index
    %4 = vector.load %arg4[%c0_2, %c0_3, %c0_4] : memref<1x256x768xbf16, #tpu.memory_space<vmem>>, vector<1x256x768xbf16>
    %5 = vector.shape_cast %4 : vector<1x256x768xbf16> to vector<256x768xbf16>
    %c0_5 = arith.constant 0 : index
    %c0_6 = arith.constant 0 : index
    %c0_7 = arith.constant 0 : index
    %6 = vector.load %arg5[%c0_5, %c0_6, %c0_7] : memref<1x1x768xf32, #tpu.memory_space<vmem>>, vector<1x1x768xf32>
    %7 = vector.shape_cast %6 : vector<1x1x768xf32> to vector<1x768xf32>
    %8 = arith.truncf %3 : vector<128x256xf32> to vector<128x256xbf16>
    %cst = arith.constant dense<0.000000e+00> : vector<128x768xf32>
    %9 = tpu.matmul %8, %5, %cst {dimension_numbers = #tpu.dot_dimension_numbers<[1], [0], [0], [1], [0, 0, 1, 1], [], []>} : vector<128x256xbf16>, vector<256x768xbf16>, vector<128x768xf32> -> vector<128x768xf32>
    %10 = vector.broadcast %7 : vector<1x768xf32> to vector<128x768xf32>
    %11 = arith.addf %9, %10 : vector<128x768xf32>
    %c0_8 = arith.constant 0 : index
    %c0_9 = arith.constant 0 : index
    %c0_10 = arith.constant 0 : index
    %12 = vector.load %arg3[%c0_8, %c0_9, %c0_10] : memref<1x1x128xf32, #tpu.memory_space<vmem>>, vector<1x1x128xf32>
    %13 = vector.shape_cast %12 : vector<1x1x128xf32> to vector<1x128xf32>
    %14 = vector.shape_cast %13 : vector<1x128xf32> to vector<1x128xf32>
    %15 = vector.broadcast %14 : vector<1x128xf32> to vector<128x128xf32>
    %16 = vector.extract_strided_slice %11 {offsets = [0, 0], sizes = [128, 128], strides = [1, 1]} : vector<128x768xf32> to vector<128x128xf32>
    %17 = arith.truncf %16 : vector<128x128xf32> to vector<128x128xbf16>
    %18 = vector.extract_strided_slice %11 {offsets = [0, 256], sizes = [128, 128], strides = [1, 1]} : vector<128x768xf32> to vector<128x128xf32>
    %19 = arith.truncf %18 : vector<128x128xf32> to vector<128x128xbf16>
    %20 = vector.extract_strided_slice %11 {offsets = [0, 512], sizes = [128, 128], strides = [1, 1]} : vector<128x768xf32> to vector<128x128xf32>
    %21 = arith.truncf %20 : vector<128x128xf32> to vector<128x128xbf16>
    %cst_11 = arith.constant dense<0.000000e+00> : vector<128x128xf32>
    %22 = tpu.matmul %17, %19, %cst_11 {dimension_numbers = #tpu.dot_dimension_numbers<[1], [1], [0], [0], [0, 0, 1, 0], [], []>} : vector<128x128xbf16>, vector<128x128xbf16>, vector<128x128xf32> -> vector<128x128xf32>
    %23 = arith.addf %22, %15 : vector<128x128xf32>
    %cst_12 = arith.constant dense<0xFF800000> : vector<128xf32>
    %24 = vector.multi_reduction <maximumf>, %23, %cst_12 [1] : vector<128x128xf32> to vector<128xf32>
    %25 = vector.shape_cast %24 : vector<128xf32> to vector<128x1xf32>
    %26 = vector.broadcast %25 : vector<128x1xf32> to vector<128x128xf32>
    %27 = arith.subf %23, %26 : vector<128x128xf32>
    %28 = math.exp %27 : vector<128x128xf32>
    %cst_13 = arith.constant dense<0.000000e+00> : vector<128xf32>
    %29 = vector.multi_reduction <add>, %28, %cst_13 [1] : vector<128x128xf32> to vector<128xf32>
    %30 = vector.shape_cast %29 : vector<128xf32> to vector<128x1xf32>
    %31 = tpu.reciprocal %30 {approx = true} : vector<128x1xf32> -> vector<128x1xf32>
    %32 = vector.broadcast %31 : vector<128x1xf32> to vector<128x128xf32>
    %33 = arith.mulf %28, %32 : vector<128x128xf32>
    %34 = arith.truncf %33 : vector<128x128xf32> to vector<128x128xbf16>
    %cst_14 = arith.constant dense<0.000000e+00> : vector<128x128xf32>
    %35 = tpu.matmul %34, %21, %cst_14 {dimension_numbers = #tpu.dot_dimension_numbers<[1], [0], [0], [1], [0, 0, 1, 1], [], []>} : vector<128x128xbf16>, vector<128x128xbf16>, vector<128x128xf32> -> vector<128x128xf32>
    %c0_15 = arith.constant 0 : index
    %c0_16 = arith.constant 0 : index
    %36 = vector.load %arg22[%c0_15, %c0_16] : memref<128x256xf32, #tpu.memory_space<vmem>>, vector<128x128xf32>
    tpu.vector_store %arg22[%c0_15, %c0_16], %35 {strides = array<i32>} : memref<128x256xf32, #tpu.memory_space<vmem>>, vector<128x128xf32>,
    %37 = vector.extract_strided_slice %11 {offsets = [0, 128], sizes = [128, 128], strides = [1, 1]} : vector<128x768xf32> to vector<128x128xf32>
    %38 = arith.truncf %37 : vector<128x128xf32> to vector<128x128xbf16>
    %39 = vector.extract_strided_slice %11 {offsets = [0, 384], sizes = [128, 128], strides = [1, 1]} : vector<128x768xf32> to vector<128x128xf32>
    %40 = arith.truncf %39 : vector<128x128xf32> to vector<128x128xbf16>
    %41 = vector.extract_strided_slice %11 {offsets = [0, 640], sizes = [128, 128], strides = [1, 1]} : vector<128x768xf32> to vector<128x128xf32>
    %42 = arith.truncf %41 : vector<128x128xf32> to vector<128x128xbf16>
    %cst_17 = arith.constant dense<0.000000e+00> : vector<128x128xf32>
    %43 = tpu.matmul %38, %40, %cst_17 {dimension_numbers = #tpu.dot_dimension_numbers<[1], [1], [0], [0], [0, 0, 1, 0], [], []>} : vector<128x128xbf16>, vector<128x128xbf16>, vector<128x128xf32> -> vector<128x128xf32>
    %44 = arith.addf %43, %15 : vector<128x128xf32>
    %cst_18 = arith.constant dense<0xFF800000> : vector<128xf32>
    %45 = vector.multi_reduction <maximumf>, %44, %cst_18 [1] : vector<128x128xf32> to vector<128xf32>
    %46 = vector.shape_cast %45 : vector<128xf32> to vector<128x1xf32>
    %47 = vector.broadcast %46 : vector<128x1xf32> to vector<128x128xf32>
    %48 = arith.subf %44, %47 : vector<128x128xf32>
    %49 = math.exp %48 : vector<128x128xf32>
    %cst_19 = arith.constant dense<0.000000e+00> : vector<128xf32>
    %50 = vector.multi_reduction <add>, %49, %cst_19 [1] : vector<128x128xf32> to vector<128xf32>
    %51 = vector.shape_cast %50 : vector<128xf32> to vector<128x1xf32>
    %52 = tpu.reciprocal %51 {approx = true} : vector<128x1xf32> -> vector<128x1xf32>
    %53 = vector.broadcast %52 : vector<128x1xf32> to vector<128x128xf32>
    %54 = arith.mulf %49, %53 : vector<128x128xf32>
    %55 = arith.truncf %54 : vector<128x128xf32> to vector<128x128xbf16>
    %cst_20 = arith.constant dense<0.000000e+00> : vector<128x128xf32>
    %56 = tpu.matmul %55, %42, %cst_20 {dimension_numbers = #tpu.dot_dimension_numbers<[1], [0], [0], [1], [0, 0, 1, 1], [], []>} : vector<128x128xbf16>, vector<128x128xbf16>, vector<128x128xf32> -> vector<128x128xf32>
    %c0_21 = arith.constant 0 : index
    %c128 = arith.constant 128 : index
    %57 = vector.load %arg22[%c0_21, %c128] : memref<128x256xf32, #tpu.memory_space<vmem>>, vector<128x128xf32>
    tpu.vector_store %arg22[%c0_21, %c128], %56 {strides = array<i32>} : memref<128x256xf32, #tpu.memory_space<vmem>>, vector<128x128xf32>,
    %c0_22 = arith.constant 0 : index
    %c0_23 = arith.constant 0 : index
    %58 = vector.load %arg22[%c0_22, %c0_23] : memref<128x256xf32, #tpu.memory_space<vmem>>, vector<128x256xf32>
    %c0_24 = arith.constant 0 : index
    %c0_25 = arith.constant 0 : index
    %c0_26 = arith.constant 0 : index
    %59 = vector.load %arg6[%c0_24, %c0_25, %c0_26] : memref<1x256x256xbf16, #tpu.memory_space<vmem>>, vector<1x256x256xbf16>
    %60 = vector.shape_cast %59 : vector<1x256x256xbf16> to vector<256x256xbf16>
    %c0_27 = arith.constant 0 : index
    %c0_28 = arith.constant 0 : index
    %c0_29 = arith.constant 0 : index
    %61 = vector.load %arg7[%c0_27, %c0_28, %c0_29] : memref<1x1x256xf32, #tpu.memory_space<vmem>>, vector<1x1x256xf32>
    %62 = vector.shape_cast %61 : vector<1x1x256xf32> to vector<1x256xf32>
    %63 = arith.truncf %58 : vector<128x256xf32> to vector<128x256xbf16>
    %cst_30 = arith.constant dense<0.000000e+00> : vector<128x256xf32>
    %64 = tpu.matmul %63, %60, %cst_30 {dimension_numbers = #tpu.dot_dimension_numbers<[1], [0], [0], [1], [0, 0, 1, 1], [], []>} : vector<128x256xbf16>, vector<256x256xbf16>, vector<128x256xf32> -> vector<128x256xf32>
    %65 = vector.broadcast %62 : vector<1x256xf32> to vector<128x256xf32>
    %66 = arith.addf %64, %65 : vector<128x256xf32>
    %67 = arith.addf %3, %66 : vector<128x256xf32>
    %c0_31 = arith.constant 0 : index
    %c0_32 = arith.constant 0 : index
    %c0_33 = arith.constant 0 : index
    %68 = vector.load %arg8[%c0_31, %c0_32, %c0_33] : memref<1x1x256xf32, #tpu.memory_space<vmem>>, vector<1x1x256xf32>
    %69 = vector.shape_cast %68 : vector<1x1x256xf32> to vector<1x256xf32>
    %c0_34 = arith.constant 0 : index
    %c0_35 = arith.constant 0 : index
    %c0_36 = arith.constant 0 : index
    %70 = vector.load %arg9[%c0_34, %c0_35, %c0_36] : memref<1x1x256xf32, #tpu.memory_space<vmem>>, vector<1x1x256xf32>
    %71 = vector.shape_cast %70 : vector<1x1x256xf32> to vector<1x256xf32>
    %cst_37 = arith.constant dense<0.000000e+00> : vector<128xf32>
    %72 = vector.multi_reduction <add>, %67, %cst_37 [1] : vector<128x256xf32> to vector<128xf32>
    %73 = vector.shape_cast %72 : vector<128xf32> to vector<128x1xf32>
    %cst_38 = arith.constant 2.560000e+02 : f32
    %74 = vector.broadcast %cst_38 : f32 to vector<128x1xf32>
    %75 = arith.divf %73, %74 : vector<128x1xf32>
    %76 = vector.broadcast %75 : vector<128x1xf32> to vector<128x256xf32>
    %77 = arith.subf %67, %76 : vector<128x256xf32>
    %78 = arith.mulf %77, %77 : vector<128x256xf32>
    %cst_39 = arith.constant dense<0.000000e+00> : vector<128xf32>
    %79 = vector.multi_reduction <add>, %78, %cst_39 [1] : vector<128x256xf32> to vector<128xf32>
    %80 = vector.shape_cast %79 : vector<128xf32> to vector<128x1xf32>
    %cst_40 = arith.constant 2.560000e+02 : f32
    %81 = vector.broadcast %cst_40 : f32 to vector<128x1xf32>
    %82 = arith.divf %80, %81 : vector<128x1xf32>
    %83 = vector.broadcast %75 : vector<128x1xf32> to vector<128x256xf32>
    %84 = arith.subf %67, %83 : vector<128x256xf32>
    %cst_41 = arith.constant 9.99999974E-6 : f32
    %85 = vector.broadcast %cst_41 : f32 to vector<128x1xf32>
    %86 = arith.addf %82, %85 : vector<128x1xf32>
    %87 = math.rsqrt %86 : vector<128x1xf32>
    %88 = vector.broadcast %87 : vector<128x1xf32> to vector<128x256xf32>
    %89 = arith.mulf %84, %88 : vector<128x256xf32>
    %90 = vector.broadcast %69 : vector<1x256xf32> to vector<128x256xf32>
    %91 = arith.mulf %89, %90 : vector<128x256xf32>
    %92 = vector.broadcast %71 : vector<1x256xf32> to vector<128x256xf32>
    %93 = arith.addf %91, %92 : vector<128x256xf32>
    %c0_42 = arith.constant 0 : index
    %c0_43 = arith.constant 0 : index
    %c0_44 = arith.constant 0 : index
    %94 = vector.load %arg10[%c0_42, %c0_43, %c0_44] : memref<1x256x1024xbf16, #tpu.memory_space<vmem>>, vector<1x256x1024xbf16>
    %95 = vector.shape_cast %94 : vector<1x256x1024xbf16> to vector<256x1024xbf16>
    %c0_45 = arith.constant 0 : index
    %c0_46 = arith.constant 0 : index
    %c0_47 = arith.constant 0 : index
    %96 = vector.load %arg11[%c0_45, %c0_46, %c0_47] : memref<1x1x1024xf32, #tpu.memory_space<vmem>>, vector<1x1x1024xf32>
    %97 = vector.shape_cast %96 : vector<1x1x1024xf32> to vector<1x1024xf32>
    %98 = arith.truncf %93 : vector<128x256xf32> to vector<128x256xbf16>
    %cst_48 = arith.constant dense<0.000000e+00> : vector<128x1024xf32>
    %99 = tpu.matmul %98, %95, %cst_48 {dimension_numbers = #tpu.dot_dimension_numbers<[1], [0], [0], [1], [0, 0, 1, 1], [], []>} : vector<128x256xbf16>, vector<256x1024xbf16>, vector<128x1024xf32> -> vector<128x1024xf32>
    %100 = vector.broadcast %97 : vector<1x1024xf32> to vector<128x1024xf32>
    %101 = arith.addf %99, %100 : vector<128x1024xf32>
    %102 = arith.mulf %101, %101 : vector<128x1024xf32>
    %103 = arith.mulf %101, %102 : vector<128x1024xf32>
    %cst_49 = arith.constant 4.471500e-02 : f32
    %104 = vector.broadcast %cst_49 : f32 to vector<128x1024xf32>
    %105 = arith.mulf %104, %103 : vector<128x1024xf32>
    %106 = arith.addf %101, %105 : vector<128x1024xf32>
    %cst_50 = arith.constant 0.797884583 : f32
    %107 = vector.broadcast %cst_50 : f32 to vector<128x1024xf32>
    %108 = arith.mulf %107, %106 : vector<128x1024xf32>
    %109 = math.tanh %108 : vector<128x1024xf32>
    %cst_51 = arith.constant 1.000000e+00 : f32
    %110 = vector.broadcast %cst_51 : f32 to vector<128x1024xf32>
    %111 = arith.addf %110, %109 : vector<128x1024xf32>
    %cst_52 = arith.constant 5.000000e-01 : f32
    %112 = vector.broadcast %cst_52 : f32 to vector<128x1024xf32>
    %113 = arith.mulf %112, %111 : vector<128x1024xf32>
    %114 = arith.mulf %101, %113 : vector<128x1024xf32>
    %c0_53 = arith.constant 0 : index
    %c0_54 = arith.constant 0 : index
    %c0_55 = arith.constant 0 : index
    %115 = vector.load %arg12[%c0_53, %c0_54, %c0_55] : memref<1x1024x256xbf16, #tpu.memory_space<vmem>>, vector<1x1024x256xbf16>
    %116 = vector.shape_cast %115 : vector<1x1024x256xbf16> to vector<1024x256xbf16>
    %c0_56 = arith.constant 0 : index
    %c0_57 = arith.constant 0 : index
    %c0_58 = arith.constant 0 : index
    %117 = vector.load %arg13[%c0_56, %c0_57, %c0_58] : memref<1x1x256xf32, #tpu.memory_space<vmem>>, vector<1x1x256xf32>
    %118 = vector.shape_cast %117 : vector<1x1x256xf32> to vector<1x256xf32>
    %119 = arith.truncf %114 : vector<128x1024xf32> to vector<128x1024xbf16>
    %cst_59 = arith.constant dense<0.000000e+00> : vector<128x256xf32>
    %120 = tpu.matmul %119, %116, %cst_59 {dimension_numbers = #tpu.dot_dimension_numbers<[1], [0], [0], [1], [0, 0, 1, 1], [], []>} : vector<128x1024xbf16>, vector<1024x256xbf16>, vector<128x256xf32> -> vector<128x256xf32>
    %121 = vector.broadcast %118 : vector<1x256xf32> to vector<128x256xf32>
    %122 = arith.addf %120, %121 : vector<128x256xf32>
    %123 = arith.addf %93, %122 : vector<128x256xf32>
    %c0_60 = arith.constant 0 : index
    %c0_61 = arith.constant 0 : index
    %c0_62 = arith.constant 0 : index
    %124 = vector.load %arg14[%c0_60, %c0_61, %c0_62] : memref<1x1x256xf32, #tpu.memory_space<vmem>>, vector<1x1x256xf32>
    %125 = vector.shape_cast %124 : vector<1x1x256xf32> to vector<1x256xf32>
    %c0_63 = arith.constant 0 : index
    %c0_64 = arith.constant 0 : index
    %c0_65 = arith.constant 0 : index
    %126 = vector.load %arg15[%c0_63, %c0_64, %c0_65] : memref<1x1x256xf32, #tpu.memory_space<vmem>>, vector<1x1x256xf32>
    %127 = vector.shape_cast %126 : vector<1x1x256xf32> to vector<1x256xf32>
    %cst_66 = arith.constant dense<0.000000e+00> : vector<128xf32>
    %128 = vector.multi_reduction <add>, %123, %cst_66 [1] : vector<128x256xf32> to vector<128xf32>
    %129 = vector.shape_cast %128 : vector<128xf32> to vector<128x1xf32>
    %cst_67 = arith.constant 2.560000e+02 : f32
    %130 = vector.broadcast %cst_67 : f32 to vector<128x1xf32>
    %131 = arith.divf %129, %130 : vector<128x1xf32>
    %132 = vector.broadcast %131 : vector<128x1xf32> to vector<128x256xf32>
    %133 = arith.subf %123, %132 : vector<128x256xf32>
    %134 = arith.mulf %133, %133 : vector<128x256xf32>
    %cst_68 = arith.constant dense<0.000000e+00> : vector<128xf32>
    %135 = vector.multi_reduction <add>, %134, %cst_68 [1] : vector<128x256xf32> to vector<128xf32>
    %136 = vector.shape_cast %135 : vector<128xf32> to vector<128x1xf32>
    %cst_69 = arith.constant 2.560000e+02 : f32
    %137 = vector.broadcast %cst_69 : f32 to vector<128x1xf32>
    %138 = arith.divf %136, %137 : vector<128x1xf32>
    %139 = vector.broadcast %131 : vector<128x1xf32> to vector<128x256xf32>
    %140 = arith.subf %123, %139 : vector<128x256xf32>
    %cst_70 = arith.constant 9.99999974E-6 : f32
    %141 = vector.broadcast %cst_70 : f32 to vector<128x1xf32>
    %142 = arith.addf %138, %141 : vector<128x1xf32>
    %143 = math.rsqrt %142 : vector<128x1xf32>
    %144 = vector.broadcast %143 : vector<128x1xf32> to vector<128x256xf32>
    %145 = arith.mulf %140, %144 : vector<128x256xf32>
    %146 = vector.broadcast %125 : vector<1x256xf32> to vector<128x256xf32>
    %147 = arith.mulf %145, %146 : vector<128x256xf32>
    %148 = vector.broadcast %127 : vector<1x256xf32> to vector<128x256xf32>
    %149 = arith.addf %147, %148 : vector<128x256xf32>
    %c0_71 = arith.constant 0 : index
    %c0_72 = arith.constant 0 : index
    %150 = vector.load %arg21[%c0_71, %c0_72] : memref<128x256xf32, #tpu.memory_space<vmem>>, vector<128x256xf32>
    tpu.vector_store %arg21[%c0_71, %c0_72], %149 {strides = array<i32>} : memref<128x256xf32, #tpu.memory_space<vmem>>, vector<128x256xf32>,
    %c3_i32 = arith.constant 3 : i32
    %151 = arith.cmpi eq, %arg1, %c3_i32 : i32
    %152 = arith.extui %151 : i1 to i32
    %c0_i32_73 = arith.constant 0 : i32
    %153 = arith.cmpi ne, %152, %c0_i32_73 : i32
    scf.if %153 {
      %154 = vector.extract_strided_slice %149 {offsets = [0, 0], sizes = [1, 256], strides = [1, 1]} : vector<128x256xf32> to vector<1x256xf32>
      %c0_74 = arith.constant 0 : index
      %c0_75 = arith.constant 0 : index
      %155 = vector.load %arg16[%c0_74, %c0_75] : memref<256x256xbf16, #tpu.memory_space<vmem>>, vector<256x256xbf16>
      %c0_76 = arith.constant 0 : index
      %c0_77 = arith.constant 0 : index
      %156 = vector.load %arg17[%c0_76, %c0_77] : memref<1x256xf32, #tpu.memory_space<vmem>>, vector<1x256xf32>
      %157 = arith.truncf %154 : vector<1x256xf32> to vector<1x256xbf16>
      %cst_78 = arith.constant dense<0.000000e+00> : vector<1x256xf32>
      %158 = tpu.matmul %157, %155, %cst_78 {dimension_numbers = #tpu.dot_dimension_numbers<[1], [0], [0], [1], [0, 0, 1, 1], [], []>} : vector<1x256xbf16>, vector<256x256xbf16>, vector<1x256xf32> -> vector<1x256xf32>
      %159 = arith.addf %158, %156 : vector<1x256xf32>
      %160 = math.tanh %159 : vector<1x256xf32>
      %c0_79 = arith.constant 0 : index
      %c0_80 = arith.constant 0 : index
      %161 = vector.load %arg18[%c0_79, %c0_80] : memref<256x128xbf16, #tpu.memory_space<vmem>>, vector<256x128xbf16>
      %c0_81 = arith.constant 0 : index
      %c0_82 = arith.constant 0 : index
      %162 = vector.load %arg19[%c0_81, %c0_82] : memref<1x128xf32, #tpu.memory_space<vmem>>, vector<1x128xf32>
      %163 = arith.truncf %160 : vector<1x256xf32> to vector<1x256xbf16>
      %cst_83 = arith.constant dense<0.000000e+00> : vector<1x128xf32>
      %164 = tpu.matmul %163, %161, %cst_83 {dimension_numbers = #tpu.dot_dimension_numbers<[1], [0], [0], [1], [0, 0, 1, 1], [], []>} : vector<1x256xbf16>, vector<256x128xbf16>, vector<1x128xf32> -> vector<1x128xf32>
      %165 = arith.addf %164, %162 : vector<1x128xf32>
      %c0_84 = arith.constant 0 : index
      %c0_85 = arith.constant 0 : index
      %c0_86 = arith.constant 0 : index
      %166 = vector.load %arg20[%c0_84, %c0_85, %c0_86] : memref<1x1x128xf32, #tpu.memory_space<vmem>>, vector<1x1x128xf32>
      %167 = vector.shape_cast %166 : vector<1x1x128xf32> to vector<1x128xf32>
      %168 = vector.shape_cast %165 : vector<1x128xf32> to vector<1x1x128xf32>
      tpu.vector_store %arg20[%c0_84, %c0_85, %c0_86], %168 {strides = array<i32>} : memref<1x1x128xf32, #tpu.memory_space<vmem>>, vector<1x1x128xf32>,
    } else {
    }
    return
  }
  func.func @transform_0(%arg0: i32, %arg1: i32) -> (i32, i32, i32) {
    %c0_i32 = arith.constant 0 : i32
    %c0_i32_0 = arith.constant 0 : i32
    %c0_i32_1 = arith.constant 0 : i32
    return %arg0, %c0_i32, %c0_i32_0 : i32, i32, i32
  }
  func.func @transform_1(%arg0: i32, %arg1: i32) -> (i32, i32, i32) {
    %c0_i32 = arith.constant 0 : i32
    %c0_i32_0 = arith.constant 0 : i32
    %c0_i32_1 = arith.constant 0 : i32
    return %arg0, %c0_i32, %c0_i32_0 : i32, i32, i32
  }
  func.func @transform_2(%arg0: i32, %arg1: i32) -> (i32, i32, i32) {
    %c0_i32 = arith.constant 0 : i32
    %c0_i32_0 = arith.constant 0 : i32
    %c0_i32_1 = arith.constant 0 : i32
    return %arg1, %c0_i32, %c0_i32_0 : i32, i32, i32
  }
  func.func @transform_3(%arg0: i32, %arg1: i32) -> (i32, i32, i32) {
    %c0_i32 = arith.constant 0 : i32
    %c0_i32_0 = arith.constant 0 : i32
    %c0_i32_1 = arith.constant 0 : i32
    return %arg1, %c0_i32, %c0_i32_0 : i32, i32, i32
  }
  func.func @transform_4(%arg0: i32, %arg1: i32) -> (i32, i32, i32) {
    %c0_i32 = arith.constant 0 : i32
    %c0_i32_0 = arith.constant 0 : i32
    %c0_i32_1 = arith.constant 0 : i32
    return %arg1, %c0_i32, %c0_i32_0 : i32, i32, i32
  }
  func.func @transform_5(%arg0: i32, %arg1: i32) -> (i32, i32, i32) {
    %c0_i32 = arith.constant 0 : i32
    %c0_i32_0 = arith.constant 0 : i32
    %c0_i32_1 = arith.constant 0 : i32
    return %arg1, %c0_i32, %c0_i32_0 : i32, i32, i32
  }
  func.func @transform_6(%arg0: i32, %arg1: i32) -> (i32, i32, i32) {
    %c0_i32 = arith.constant 0 : i32
    %c0_i32_0 = arith.constant 0 : i32
    %c0_i32_1 = arith.constant 0 : i32
    return %arg1, %c0_i32, %c0_i32_0 : i32, i32, i32
  }
  func.func @transform_7(%arg0: i32, %arg1: i32) -> (i32, i32, i32) {
    %c0_i32 = arith.constant 0 : i32
    %c0_i32_0 = arith.constant 0 : i32
    %c0_i32_1 = arith.constant 0 : i32
    return %arg1, %c0_i32, %c0_i32_0 : i32, i32, i32
  }
  func.func @transform_8(%arg0: i32, %arg1: i32) -> (i32, i32, i32) {
    %c0_i32 = arith.constant 0 : i32
    %c0_i32_0 = arith.constant 0 : i32
    %c0_i32_1 = arith.constant 0 : i32
    return %arg1, %c0_i32, %c0_i32_0 : i32, i32, i32
  }
  func.func @transform_9(%arg0: i32, %arg1: i32) -> (i32, i32, i32) {
    %c0_i32 = arith.constant 0 : i32
    %c0_i32_0 = arith.constant 0 : i32
    %c0_i32_1 = arith.constant 0 : i32
    return %arg1, %c0_i32, %c0_i32_0 : i32, i32, i32
  }
  func.func @transform_10(%arg0: i32, %arg1: i32) -> (i32, i32, i32) {
    %c0_i32 = arith.constant 0 : i32
    %c0_i32_0 = arith.constant 0 : i32
    %c0_i32_1 = arith.constant 0 : i32
    return %arg1, %c0_i32, %c0_i32_0 : i32, i32, i32
  }
  func.func @transform_11(%arg0: i32, %arg1: i32) -> (i32, i32, i32) {
    %c0_i32 = arith.constant 0 : i32
    %c0_i32_0 = arith.constant 0 : i32
    %c0_i32_1 = arith.constant 0 : i32
    return %arg1, %c0_i32, %c0_i32_0 : i32, i32, i32
  }
  func.func @transform_12(%arg0: i32, %arg1: i32) -> (i32, i32, i32) {
    %c0_i32 = arith.constant 0 : i32
    %c0_i32_0 = arith.constant 0 : i32
    %c0_i32_1 = arith.constant 0 : i32
    return %arg1, %c0_i32, %c0_i32_0 : i32, i32, i32
  }
  func.func @transform_13(%arg0: i32, %arg1: i32) -> (i32, i32, i32) {
    %c0_i32 = arith.constant 0 : i32
    %c0_i32_0 = arith.constant 0 : i32
    %c0_i32_1 = arith.constant 0 : i32
    return %arg1, %c0_i32, %c0_i32_0 : i32, i32, i32
  }
  func.func @transform_14(%arg0: i32, %arg1: i32) -> (i32, i32) {
    %c0_i32 = arith.constant 0 : i32
    %c0_i32_0 = arith.constant 0 : i32
    %c0_i32_1 = arith.constant 0 : i32
    return %c0_i32, %c0_i32_0 : i32, i32
  }
  func.func @transform_15(%arg0: i32, %arg1: i32) -> (i32, i32) {
    %c0_i32 = arith.constant 0 : i32
    %c0_i32_0 = arith.constant 0 : i32
    %c0_i32_1 = arith.constant 0 : i32
    return %c0_i32, %c0_i32_0 : i32, i32
  }
  func.func @transform_16(%arg0: i32, %arg1: i32) -> (i32, i32) {
    %c0_i32 = arith.constant 0 : i32
    %c0_i32_0 = arith.constant 0 : i32
    %c0_i32_1 = arith.constant 0 : i32
    return %c0_i32, %c0_i32_0 : i32, i32
  }
  func.func @transform_17(%arg0: i32, %arg1: i32) -> (i32, i32) {
    %c0_i32 = arith.constant 0 : i32
    %c0_i32_0 = arith.constant 0 : i32
    %c0_i32_1 = arith.constant 0 : i32
    return %c0_i32, %c0_i32_0 : i32, i32
  }
  func.func @transform_18(%arg0: i32, %arg1: i32) -> (i32, i32, i32) {
    %c0_i32 = arith.constant 0 : i32
    %c0_i32_0 = arith.constant 0 : i32
    %c0_i32_1 = arith.constant 0 : i32
    return %arg0, %c0_i32, %c0_i32_0 : i32, i32, i32
  }
}

</mosaic_0001>

<bundles_post_ra>
// kernel: forward.1
= control target key start
LH: loop header
LB: loop body
LE: loop exit
PB: predicated region body
PF: predicated region fallthrough
CT: control target
= control target key end

     0   :  { %s17083_s0 = inlined_call_operand.vmem [shape: f32[2,128,256], index: 0, kind: input, shape index: {}]   ;;  %s17084_s1 = inlined_call_operand.vmem [shape: f32[2,1,128], index: 1, kind: input, shape index: {}]   ;;  %s17085_s2 = inlined_call_operand.vmem [shape: bf16[4,256,768], index: 2, kind: input, shape index: {}]   ;;  %s17086_s3 = inlined_call_operand.vmem [shape: f32[4,1,768], index: 3, kind: input, shape index: {}]   ;;  %s17087_s4 = inlined_call_operand.vmem [shape: bf16[4,256,256], index: 4, kind: input, shape index: {}]   ;;  %s17088_s5 = inlined_call_operand.vmem [shape: f32[4,1,256], index: 5, kind: input, shape index: {}]   ;;  %s17089_s6 = inlined_call_operand.vmem [shape: f32[4,1,256], index: 6, kind: input, shape index: {}]   ;;  %s17090_s7 = inlined_call_operand.vmem [shape: f32[4,1,256], index: 7, kind: input, shape index: {}]   ;;  %s17091_s8 = inlined_call_operand.vmem [shape: bf16[4,256,1024], index: 8, kind: input, shape index: {}]   ;;  %s17092_s9 = inlined_call_operand.vmem [shape: f32[4,1,1024], index: 9, kind: input, shape index: {}]   ;;  %s17093_s10 = inlined_call_operand.vmem [shape: bf16[4,1024,256], index: 10, kind: input, shape index: {}]   ;;  %s17094_s11 = inlined_call_operand.vmem [shape: f32[4,1,256], index: 11, kind: input, shape index: {}]   ;;  %s17095_s12 = inlined_call_operand.vmem [shape: f32[4,1,256], index: 12, kind: input, shape index: {}]   ;;  %s17096_s13 = inlined_call_operand.vmem [shape: f32[4,1,256], index: 13, kind: input, shape index: {}]   ;;  %s17097_s14 = inlined_call_operand.vmem [shape: bf16[256,256], index: 14, kind: input, shape index: {}]   ;;  %s17098_s15 = inlined_call_operand.vmem [shape: f32[1,256], index: 15, kind: input, shape index: {}]   ;;  %s17099_s16 = inlined_call_operand.vmem [shape: bf16[256,128], index: 16, kind: input, shape index: {}]   ;;  %s17100_s17 = inlined_call_operand.vmem [shape: f32[1,128], index: 17, kind: input, shape index: {}]   ;;  %s17101_s18 = inlined_call_operand.hbm [shape: f32[2,1,128], index: 18, kind: output, shape index: {}]  }
   0x1   :  { %17233 = sst [smem:[#allocation94_spill]] %s17083_s0 }
   0x2   :  { %17234 = sst [smem:[#allocation95_spill]] %s17084_s1 }
   0x3   :  { %17235 = sst [smem:[#allocation96_spill]] %s17085_s2 }
   0x4   :  { %17236 = sst [smem:[#allocation97_spill]] %s17086_s3 }
   0x5   :  { %17237 = sst [smem:[#allocation98_spill]] %s17087_s4 }
   0x6   :  { %17238 = sst [smem:[#allocation99_spill]] %s17090_s7 }
   0x7   :  { %17239 = sst [smem:[#allocation100_spill]] %s17091_s8 }
   0x8   :  { %17240 = sst [smem:[#allocation101_spill]] %s17092_s9 }
   0x9   :  { %17241 = sst [smem:[#allocation102_spill]] %s17095_s12 }
   0xa   :  { %17242 = sst [smem:[#allocation103_spill]] %s17096_s13 }
   0xb   :  { %17243 = sst [smem:[#allocation104_spill]] %s17097_s14 }
   0xc   :  { %17244 = sst [smem:[#allocation105_spill]] %s17098_s15 }
   0xd   :  { %17245 = sst [smem:[#allocation106_spill]] %s17099_s16 }
   0xe   :  { %17246 = sst [smem:[#allocation107_spill]] %s17100_s17 }
   0xf   :  { %17247 = sst [smem:[#allocation108_spill]] %s17101_s18 }
  0x10   :  { %23 = vsyncpa [#allocation5], 0 }
  0x11   :  { %25 = vsyncpa [#allocation5 + $0x1], 0  ;;  %s12144_s27 = smov 0   ;;  %s12146_s28 = smov 0  }
  0x12   :  { %s12148_s29 = smov 0   ;;  %s12150_s30 = smov 0  }
  0x13   :  { %s12152_s0 = smov 0   ;;  %s12154_s19 = smov 0  }
  0x14   :  { %s12156_s1 = smov 0   ;;  %s12158_s20 = smov 0  }
  0x15 LB: > { %17248 = sst [smem:[#allocation7_spill]] %s12018_s27  ;;  %s9198_s21 = sadd.s32 4294967295, %s12046_s20   ;;  %s12046_s20 = sphi %s12158_s20, %s31_s20   ;;  %s12042_s1 = sphi %s12156_s1, %s17598_s1   ;;  %s12038_s19 = sphi %s12154_s19, %s17594_s19   ;;  %s12034_s0 = sphi %s12152_s0, %s17593_s0   ;;  %s12030_s30 = sphi %s12150_s30, %s17592_s30   ;;  %s12026_s29 = sphi %s12148_s29, %s17591_s29   ;;  %s12022_s28 = sphi %s12146_s28, %s17597_s28   ;;  %s12018_s27 = sphi %s12144_s27, %s17596_s27  }
  0x16   : > { %17249 = sst [smem:[#allocation8_spill]] %s12026_s29  ;;  %s9199_s22 = sadd.s32 4294967294, %s12046_s20  }
  0x17   : > { %17250 = sst [smem:[#allocation9_spill]] %s12030_s30  ;;  %s40_s2 = sadd.s32 1, %s12038_s19 }
  0x18   : > { %17251 = sst [smem:[#allocation10_spill]] %s12034_s0  ;;  %p41_p0 = scmp.ge.s32.totalorder %s40_s2, 4 }
  0x19   : > { %17252 = sst [smem:[#allocation11_spill]] %s12038_s19  ;;  %s43_s23 = sadd.s32 1, %s12042_s1 }
  0x1a   : > { %17253 = sst [smem:[#allocation12_spill]] %s12042_s1  ;;  %p508_p1 = scmp.ne.s32.totalorder %s12026_s29, %s12022_s28 }
  0x1b   : > { %17254 = sst [smem:[#allocation13_spill]] %s12046_s20  ;;  %p509_p2 = scmp.eq.s32.totalorder %s9198_s21, 7 }
  0x1c   : > { %s17600_s2 = smov (%p41_p0, %s40_s2), 0  ;;  %s17602_s23 = smov (!%p41_p0, %s43_s23), %s12042_s1 }
  0x1d   : > { %17255 = sst [smem:[#allocation14_spill]] %s17600_s2  ;;  %p12193_p3 = por %p509_p2, %p508_p1 }
  0x1e   : > { %p514_p4 = scmp.ne.s32.totalorder %s12022_s28, %s12018_s27  ;;  %p45_p5 = scmp.ge.s32.totalorder %s17602_s23, 2 }
  0x1f   : > { %s17256_s24 = scalar_select %p12193_p3, 1, 0 }
  0x20   : > { %p515_p6 = scmp.eq.s32.totalorder %s9199_s22, 7  ;;  %p9202_p7 = scmp.ge.s32.totalorder %s12046_s20, 1 }
  0x21   : > { %17257 = sst [smem:[#allocation15_spill]] %s17256_s24  ;;  %p647_p8 = scmp.lt.s32.totalorder %s12046_s20, 9 }
  0x22   : > { %s17604_s23 = smov (%p45_p5, %s17602_s23), 0  ;;  %p12203_p9 = por %p515_p6, %p514_p4 }
  0x23   : > { %17258 = sst [smem:[#allocation16_spill]] %s17604_s23  ;;  %p648_p10 = pnand %p9202_p7, %p647_p8 }
  0x24   : > { %s17259_s25 = scalar_select %p12203_p9, 1, 0 }
  0x25   : > { %s495_s26 = ssub.s32 %s12042_s1, %s17604_s23  ;;  %s498_s21 = sadd.s32 1, %s12026_s29 }
  0x26   : > { %17260 = sst [smem:[#allocation17_spill]] %s17259_s25  ;;  %p496_p11 = scmp.eq.s32.totalorder %s495_s26, 0 }
  0x27   : > { %651 = sbr.rel (%p648_p10) target bundleno = 3438 (0xd6e), region = 92 }
  0x28   : > { %s12211_s2 = scalar_select %p496_p11, %s12026_s29, %s498_s21  }
  0x2a   : > { %17261 = sst [smem:[#allocation18_spill]] %s12211_s2 }
  0x2c   : > { %p755_p12 = scmp.lt.s32.totalorder %s12034_s0, 1  ;;  %p763_p13 = scmp.lt.s32.totalorder %s12030_s30, 3 }
  0x2d   : > { %s17263_s20 = sld [smem:[#allocation94_spill]] }
  0x2e   : > { %s12217_s19 = scalar_select %p755_p12, %s12034_s0, 1 }
  0x2f   : > { %s764_s25 = scalar_select %p763_p13, %s12030_s30, 3 }
  0x30   : > { %s10951_s27 = sshll.u32 %s12217_s19, 8  ;;  %s17264_s0 = sld [smem:[#allocation96_spill]] }
  0x31   : > { %s11387_s18 = smul.u32 768, %s764_s25  ;;  %s10952_s22 = sshll.u32 %s764_s25, 8 }
  0x32   : > { %s11388_s17 = smul.u32 6, %s764_s25  ;;  %s17265_s4 = sld [smem:[#allocation98_spill]] }
  0x33   : > { %s12228_s24 = scalar_lea.vmem %s17263_s20, %s10951_s27  ;;  %s17266_s3 = sld [smem:[#allocation97_spill]] }
  0x34   : > { %s12245_s27 = sshll.u32 %s764_s25, 1  ;;  %s17268_s8 = sld [smem:[#allocation100_spill]] }
  0x35   : > { %s9213_s20 = sshll.u32 %s764_s25, 3  ;;  %s17269_s9 = sld [smem:[#allocation101_spill]] }
  0x36   : > { %s12233_s14 = scalar_lea.vmem %s17264_s0, %s11387_s18  ;;  %s12278_s0 = scalar_lea.vmem %s17094_s11, %s12245_s27 }
  0x37   : > { %s17270_s1 = sld [smem:[#allocation102_spill]] }
  0x38   : > { %s12238_s12 = scalar_lea.vmem %s17265_s4, %s10952_s22  ;;  %s10953_s22 = sshll.u32 %s764_s25, 10 }
  0x39   : > { %s12243_s29 = scalar_lea.vmem %s17266_s3, %s11388_s17  ;;  %s12272_s13 = scalar_lea.vmem %s17093_s10, %s10953_s22 }
  0x3a   : > { %s12262_s23 = scalar_lea.vmem %s17268_s8, %s10953_s22  ;;  %s17271_s7 = sld [smem:[#allocation103_spill]] }
  0x3b   : > { %s12267_s3 = scalar_lea.vmem %s17269_s9, %s9213_s20  ;;  %s17272_s20 = sand.u32 1, %s12022_s28  }
  0x3c   : > { %s12290_s2 = scalar_lea.vmem [#allocation4], %s17272_s20  ;;  %s17273_s9 = sld [smem:[#allocation9_spill]] }
  0x3d   : > { %s810_s18 = scalar_lea.vmem %s17270_s1, %s12245_s27 }
  0x40   : > { %s814_s21 = scalar_lea.vmem %s17271_s7, %s12245_s27 }
  0x42   : > { %p9219_p0 = scmp.ne.s32.totalorder %s17273_s9, 0 }
  0x44   : > { %818 = sbr.rel (%p9219_p0) target bundleno = 106 (0x6a), region = 96 }
  0x49   : > { %v819_v0 = vld [vmem:[%s12228_s24] sm:$0xff]  ;;  %v820_v1 = vld [vmem:[%s12228_s24 + $0x8] sm:$0xff]  ;;  %v821_v2 = vld [vmem:[%s12228_s24 + $0x10] sm:$0xff] }
  0x4a   : > { %851 = vst [vmem:[#allocation2 + $0xb0] sm:$0xff] %v819_v0  ;;  %v822_v3 = vld [vmem:[%s12228_s24 + $0x18] sm:$0xff]  ;;  %v823_v4 = vld [vmem:[%s12228_s24 + $0x20] sm:$0xff]  ;;  %v824_v5 = vld [vmem:[%s12228_s24 + $0x28] sm:$0xff] }
  0x4b   : > { %852 = vst [vmem:[#allocation2] sm:$0xff] %v820_v1  ;;  %v825_v6 = vld [vmem:[%s12228_s24 + $0x30] sm:$0xff]  ;;  %v826_v7 = vld [vmem:[%s12228_s24 + $0x38] sm:$0xff]  ;;  %v827_v8 = vld [vmem:[%s12228_s24 + $0x40] sm:$0xff] }
  0x4c   : > { %853 = vst [vmem:[#allocation2 + $0xd8] sm:$0xff] %v821_v2  ;;  %v828_v9 = vld [vmem:[%s12228_s24 + $0x48] sm:$0xff]  ;;  %v829_v10 = vld [vmem:[%s12228_s24 + $0x50] sm:$0xff]  ;;  %v830_v11 = vld [vmem:[%s12228_s24 + $0x58] sm:$0xff] }
  0x4d   : > { %854 = vst [vmem:[#allocation2 + $0x18] sm:$0xff] %v822_v3  ;;  %v831_v12 = vld [vmem:[%s12228_s24 + $0x60] sm:$0xff]  ;;  %v832_v13 = vld [vmem:[%s12228_s24 + $0x68] sm:$0xff]  ;;  %v833_v14 = vld [vmem:[%s12228_s24 + $0x70] sm:$0xff] }
  0x4e   : > { %855 = vst [vmem:[#allocation2 + $0x50] sm:$0xff] %v823_v4  ;;  %v834_v15 = vld [vmem:[%s12228_s24 + $0x78] sm:$0xff]  ;;  %v835_v16 = vld [vmem:[%s12228_s24 + $0x80] sm:$0xff]  ;;  %v836_v17 = vld [vmem:[%s12228_s24 + $0x88] sm:$0xff] }
  0x4f   : > { %856 = vst [vmem:[#allocation2 + $0x68] sm:$0xff] %v824_v5  ;;  %v837_v18 = vld [vmem:[%s12228_s24 + $0x90] sm:$0xff]  ;;  %v838_v19 = vld [vmem:[%s12228_s24 + $0x98] sm:$0xff]  ;;  %v839_v20 = vld [vmem:[%s12228_s24 + $0xa0] sm:$0xff] }
  0x50   : > { %857 = vst [vmem:[#allocation2 + $0x30] sm:$0xff] %v825_v6  ;;  %v840_v21 = vld [vmem:[%s12228_s24 + $0xa8] sm:$0xff]  ;;  %v841_v22 = vld [vmem:[%s12228_s24 + $0xb0] sm:$0xff]  ;;  %v842_v23 = vld [vmem:[%s12228_s24 + $0xb8] sm:$0xff] }
  0x51   : > { %858 = vst [vmem:[#allocation2 + $0x48] sm:$0xff] %v826_v7  ;;  %v843_v24 = vld [vmem:[%s12228_s24 + $0xc0] sm:$0xff]  ;;  %v844_v25 = vld [vmem:[%s12228_s24 + $0xc8] sm:$0xff]  ;;  %v845_v26 = vld [vmem:[%s12228_s24 + $0xd0] sm:$0xff] }
  0x52   : > { %859 = vst [vmem:[#allocation2 + $0x80] sm:$0xff] %v827_v8  ;;  %v846_v27 = vld [vmem:[%s12228_s24 + $0xd8] sm:$0xff]  ;;  %v847_v28 = vld [vmem:[%s12228_s24 + $0xe0] sm:$0xff]  ;;  %v848_v29 = vld [vmem:[%s12228_s24 + $0xe8] sm:$0xff] }
  0x53   : > { %860 = vst [vmem:[#allocation2 + $0x88] sm:$0xff] %v828_v9  ;;  %v849_v30 = vld [vmem:[%s12228_s24 + $0xf0] sm:$0xff]  ;;  %v850_v31 = vld [vmem:[%s12228_s24 + $0xf8] sm:$0xff] }
  0x54   : > { %861 = vst [vmem:[#allocation2 + $0xe8] sm:$0xff] %v829_v10 }
  0x55   : > { %862 = vst [vmem:[#allocation2 + $0xb8] sm:$0xff] %v830_v11 }
  0x56   : > { %863 = vst [vmem:[#allocation2 + $0x60] sm:$0xff] %v831_v12 }
  0x57   : > { %864 = vst [vmem:[#allocation2 + $0xf0] sm:$0xff] %v832_v13 }
  0x58   : > { %865 = vst [vmem:[#allocation2 + $0x8] sm:$0xff] %v833_v14 }
  0x59   : > { %866 = vst [vmem:[#allocation2 + $0x78] sm:$0xff] %v834_v15 }
  0x5a   : > { %867 = vst [vmem:[#allocation2 + $0x38] sm:$0xff] %v835_v16 }
  0x5b   : > { %868 = vst [vmem:[#allocation2 + $0x58] sm:$0xff] %v836_v17 }
  0x5c   : > { %869 = vst [vmem:[#allocation2 + $0x40] sm:$0xff] %v837_v18 }
  0x5d   : > { %870 = vst [vmem:[#allocation2 + $0xc8] sm:$0xff] %v838_v19 }
  0x5e   : > { %871 = vst [vmem:[#allocation2 + $0xe0] sm:$0xff] %v839_v20 }
  0x5f   : > { %872 = vst [vmem:[#allocation2 + $0x90] sm:$0xff] %v840_v21 }
  0x60   : > { %873 = vst [vmem:[#allocation2 + $0x70] sm:$0xff] %v841_v22 }
  0x61   : > { %874 = vst [vmem:[#allocation2 + $0xc0] sm:$0xff] %v842_v23 }
  0x62   : > { %875 = vst [vmem:[#allocation2 + $0xa8] sm:$0xff] %v843_v24 }
  0x63   : > { %876 = vst [vmem:[#allocation2 + $0xd0] sm:$0xff] %v844_v25 }
  0x64   : > { %877 = vst [vmem:[#allocation2 + $0x10] sm:$0xff] %v845_v26 }
  0x65   : > { %878 = vst [vmem:[#allocation2 + $0x28] sm:$0xff] %v846_v27 }
  0x66   : > { %879 = vst [vmem:[#allocation2 + $0xa0] sm:$0xff] %v847_v28 }
  0x67   : > { %880 = vst [vmem:[#allocation2 + $0xf8] sm:$0xff] %v848_v29 }
  0x68   : > { %881 = vst [vmem:[#allocation2 + $0x20] sm:$0xff] %v849_v30 }
  0x69   : > { %882 = vst [vmem:[#allocation2 + $0x98] sm:$0xff] %v850_v31 }
  0x6a PF: > { %v9390_v32 = vld [vmem:[%s12233_s14 + $0x150] sm:$0xf]  ;;  %v11000_v33 = vld [vmem:[%s12233_s14 + $0x164] sm:$0xf0]  ;;  %v10997_v37 = vld [vmem:[%s12233_s14 + $0x154] sm:$0xf]  ;;  %s17366_s15 = scalar_lea.vmem %s17089_s6, %s12245_s27 }
  0x6b   : > { %v9582_v34 = vld [vmem:[%s12233_s14 + $0x2d0] sm:$0xf]  ;;  %v9391_v35 = vor.u32 %v11000_v33, %v9390_v32  ;;  %v11048_v36 = vld [vmem:[%s12233_s14 + $0x2e4] sm:$0xf0]  ;;  %v9392_v38 = vld [vmem:[%s12233_s14 + $0x168] sm:$0xf0] }
  0x6c   : > { %v9583_v39 = vor.u32 %v11048_v36, %v9582_v34  ;;  %v9395_v40 = vor.u32 %v10997_v37, %v9392_v38  ;;  %v11045_v41 = vld [vmem:[%s12233_s14 + $0x2d4] sm:$0xf]  ;;  %v9584_v42 = vld [vmem:[%s12233_s14 + $0x2e8] sm:$0xf0]  ;;  %v9366_v43 = vld [vmem:[%s12233_s14 + $0x120] sm:$0xf] }
  0x6d   : > { %1521 = vmatpush.bf16.msra.mxu0 %v9391_v35  ;;  %v9587_v44 = vor.u32 %v11045_v41, %v9584_v42  ;;  %v10994_v45 = vld [vmem:[%s12233_s14 + $0x134] sm:$0xf0]  ;;  %v9558_v46 = vld [vmem:[%s12233_s14 + $0x2a0] sm:$0xf]  ;;  %v10991_v50 = vld [vmem:[%s12233_s14 + $0x124] sm:$0xf] }
  0x6e   : > { %v11042_v47 = vld [vmem:[%s12233_s14 + $0x2b4] sm:$0xf0]  ;;  %1570 = vmatpush.bf16.msra.mxu1 %v9583_v39  ;;  %1619 = vmatpush.bf16.msra.mxu2 %v9395_v40  ;;  %v9367_v48 = vor.u32 %v10994_v45, %v9366_v43  ;;  %v9368_v51 = vld [vmem:[%s12233_s14 + $0x138] sm:$0xf0]  ;;  %v11039_v52 = vld [vmem:[%s12233_s14 + $0x2a4] sm:$0xf] }
  0x6f   : > { %v9559_v49 = vor.u32 %v11042_v47, %v9558_v46  ;;  %1668 = vmatpush.bf16.msra.mxu3 %v9587_v44  ;;  %v9371_v53 = vor.u32 %v10991_v50, %v9368_v51  ;;  %v9560_v54 = vld [vmem:[%s12233_s14 + $0x2b8] sm:$0xf0]  ;;  %v9342_v55 = vld [vmem:[%s12233_s14 + $0xf0] sm:$0xf]  ;;  %v10988_v56 = vld [vmem:[%s12233_s14 + $0x104] sm:$0xf0] }
  0x70   : > { %v9563_v57 = vor.u32 %v11039_v52, %v9560_v54  ;;  %v9534_v58 = vld [vmem:[%s12233_s14 + $0x270] sm:$0xf]  ;;  %v11036_v59 = vld [vmem:[%s12233_s14 + $0x284] sm:$0xf0]  ;;  %v10985_v60 = vld [vmem:[%s12233_s14 + $0xf4] sm:$0xf]  ;;  %v9343_v61 = vor.u32 %v10988_v56, %v9342_v55 }
  0x71   : > { %1522 = vmatpush.bf16.msra.mxu0 %v9367_v48  ;;  %v9344_v62 = vld [vmem:[%s12233_s14 + $0x108] sm:$0xf0]  ;;  %v11033_v63 = vld [vmem:[%s12233_s14 + $0x274] sm:$0xf]  ;;  %v9535_v1 = vor.u32 %v11036_v59, %v9534_v58  ;;  %v9318_v3 = vld [vmem:[%s12233_s14 + $0xc0] sm:$0xf] }
  0x72   : > { %v9536_v0 = vld [vmem:[%s12233_s14 + $0x288] sm:$0xf0]  ;;  %1571 = vmatpush.bf16.msra.mxu1 %v9559_v49  ;;  %1620 = vmatpush.bf16.msra.mxu2 %v9371_v53  ;;  %v9347_v2 = vor.u32 %v10985_v60, %v9344_v62  ;;  %v10982_v4 = vld [vmem:[%s12233_s14 + $0xd4] sm:$0xf0]  ;;  %v9510_v5 = vld [vmem:[%s12233_s14 + $0x240] sm:$0xf] }
  0x73   : > { %1669 = vmatpush.bf16.msra.mxu3 %v9563_v57  ;;  %v9539_v6 = vor.u32 %v11033_v63, %v9536_v0  ;;  %v11030_v7 = vld [vmem:[%s12233_s14 + $0x254] sm:$0xf0]  ;;  %v10979_v8 = vld [vmem:[%s12233_s14 + $0xc4] sm:$0xf]  ;;  %v9320_v9 = vld [vmem:[%s12233_s14 + $0xd8] sm:$0xf0]  ;;  %v9319_v12 = vor.u32 %v10982_v4, %v9318_v3 }
  0x74   : > { %v11027_v10 = vld [vmem:[%s12233_s14 + $0x244] sm:$0xf]  ;;  %v9512_v11 = vld [vmem:[%s12233_s14 + $0x258] sm:$0xf0]  ;;  %v9511_v13 = vor.u32 %v11030_v7, %v9510_v5  ;;  %v9323_v14 = vor.u32 %v10979_v8, %v9320_v9  ;;  %v9294_v15 = vld [vmem:[%s12233_s14 + $0x90] sm:$0xf] }
  0x75   : > { %1523 = vmatpush.bf16.msra.mxu0 %v9343_v61  ;;  %v10976_v16 = vld [vmem:[%s12233_s14 + $0xa4] sm:$0xf0]  ;;  %v9486_v17 = vld [vmem:[%s12233_s14 + $0x210] sm:$0xf]  ;;  %v9515_v18 = vor.u32 %v11027_v10, %v9512_v11  ;;  %v10973_v20 = vld [vmem:[%s12233_s14 + $0x94] sm:$0xf] }
  0x76   : > { %1572 = vmatpush.bf16.msra.mxu1 %v9535_v1  ;;  %1621 = vmatpush.bf16.msra.mxu2 %v9347_v2  ;;  %v11024_v19 = vld [vmem:[%s12233_s14 + $0x224] sm:$0xf0]  ;;  %v9296_v21 = vld [vmem:[%s12233_s14 + $0xa8] sm:$0xf0]  ;;  %v11021_v22 = vld [vmem:[%s12233_s14 + $0x214] sm:$0xf]  ;;  %v9295_v24 = vor.u32 %v10976_v16, %v9294_v15 }
  0x77   : > { %1670 = vmatpush.bf16.msra.mxu3 %v9539_v6  ;;  %v9488_v23 = vld [vmem:[%s12233_s14 + $0x228] sm:$0xf0]  ;;  %v9487_v25 = vor.u32 %v11024_v19, %v9486_v17  ;;  %v9299_v26 = vor.u32 %v10973_v20, %v9296_v21  ;;  %v9270_v27 = vld [vmem:[%s12233_s14 + $0x60] sm:$0xf]  ;;  %v10970_v28 = vld [vmem:[%s12233_s14 + $0x74] sm:$0xf0] }
  0x78   : > { %v9462_v29 = vld [vmem:[%s12233_s14 + $0x1e0] sm:$0xf]  ;;  %v9491_v30 = vor.u32 %v11021_v22, %v9488_v23  ;;  %v11018_v31 = vld [vmem:[%s12233_s14 + $0x1f4] sm:$0xf0]  ;;  %v10967_v32 = vld [vmem:[%s12233_s14 + $0x64] sm:$0xf]  ;;  %v9271_v36 = vor.u32 %v10970_v28, %v9270_v27 }
  0x79   : > { %1524 = vmatpush.bf16.msra.mxu0 %v9319_v12  ;;  %v9272_v33 = vld [vmem:[%s12233_s14 + $0x78] sm:$0xf0]  ;;  %v11015_v34 = vld [vmem:[%s12233_s14 + $0x1e4] sm:$0xf]  ;;  %v9463_v37 = vor.u32 %v11018_v31, %v9462_v29  ;;  %v9246_v39 = vld [vmem:[%s12233_s14 + $0x30] sm:$0xf] }
  0x7a   : > { %1573 = vmatpush.bf16.msra.mxu1 %v9511_v13  ;;  %1622 = vmatpush.bf16.msra.mxu2 %v9323_v14  ;;  %v9464_v35 = vld [vmem:[%s12233_s14 + $0x1f8] sm:$0xf0]  ;;  %v9275_v38 = vor.u32 %v10967_v32, %v9272_v33  ;;  %v10964_v40 = vld [vmem:[%s12233_s14 + $0x44] sm:$0xf0]  ;;  %v9438_v41 = vld [vmem:[%s12233_s14 + $0x1b0] sm:$0xf] }
  0x7b   : > { %1671 = vmatpush.bf16.msra.mxu3 %v9515_v18  ;;  %v9467_v42 = vor.u32 %v11015_v34, %v9464_v35  ;;  %v11012_v43 = vld [vmem:[%s12233_s14 + $0x1c4] sm:$0xf0]  ;;  %v10961_v44 = vld [vmem:[%s12233_s14 + $0x34] sm:$0xf]  ;;  %v9248_v45 = vld [vmem:[%s12233_s14 + $0x48] sm:$0xf0]  ;;  %v9247_v48 = vor.u32 %v10964_v40, %v9246_v39 }
  0x7c   : > { %v11009_v46 = vld [vmem:[%s12233_s14 + $0x1b4] sm:$0xf]  ;;  %v9440_v47 = vld [vmem:[%s12233_s14 + $0x1c8] sm:$0xf0]  ;;  %v9222_v49 = vld [vmem:[%s12233_s14] sm:$0xf]  ;;  %v9439_v50 = vor.u32 %v11012_v43, %v9438_v41  ;;  %v9251_v51 = vor.u32 %v10961_v44, %v9248_v45 }
  0x7d   : > { %1525 = vmatpush.bf16.msra.mxu0 %v9295_v24  ;;  %v10958_v52 = vld [vmem:[%s12233_s14 + $0x14] sm:$0xf0]  ;;  %v9414_v53 = vld [vmem:[%s12233_s14 + $0x180] sm:$0xf]  ;;  %v9443_v54 = vor.u32 %v11009_v46, %v9440_v47  ;;  %v10955_v56 = vld [vmem:[%s12233_s14 + $0x4] sm:$0xf] }
  0x7e   : > { %1574 = vmatpush.bf16.msra.mxu1 %v9487_v25  ;;  %1623 = vmatpush.bf16.msra.mxu2 %v9299_v26  ;;  %v11006_v55 = vld [vmem:[%s12233_s14 + $0x194] sm:$0xf0]  ;;  %v9224_v57 = vld [vmem:[%s12233_s14 + $0x18] sm:$0xf0]  ;;  %v11003_v58 = vld [vmem:[%s12233_s14 + $0x184] sm:$0xf]  ;;  %v9223_v60 = vor.u32 %v10958_v52, %v9222_v49 }
  0x7f   : > { %1672 = vmatpush.bf16.msra.mxu3 %v9491_v30  ;;  %v9416_v59 = vld [vmem:[%s12233_s14 + $0x198] sm:$0xf0]  ;;  %v883_v61 = vld [vmem:[#allocation2 + $0xb0] sm:$0xff]  ;;  %v9415_v63 = vor.u32 %v11006_v55, %v9414_v53  ;;  %v9227_v0 = vor.u32 %v10955_v56, %v9224_v57  ;;  %v884_v1 = vld [vmem:[#allocation2] sm:$0xff]  ;;  %s17362_s8 = sld [smem:[#allocation95_spill]] }
  0x80   : > { %v885_v62 = vld [vmem:[#allocation2 + $0xd8] sm:$0xff]  ;;  %v9419_v3 = vor.u32 %v11003_v58, %v9416_v59  ;;  %v887_v6 = vld [vmem:[#allocation2 + $0x50] sm:$0xff]  ;;  %v888_v8 = vld [vmem:[#allocation2 + $0x68] sm:$0xff]  ;;  %s17367_s16 = sld [smem:[#allocation99_spill]] }
  0x81   : > { %1526 = vmatpush.bf16.msra.mxu0 %v9271_v36  ;;  %v886_v2 = vld [vmem:[#allocation2 + $0x18] sm:$0xff]  ;;  %v12389_v4 = vpack.c.bf16 %v885_v62, %v883_v61  ;;  %v889_v7 = vld [vmem:[#allocation2 + $0x30] sm:$0xff]  ;;  %v890_v9 = vld [vmem:[#allocation2 + $0x48] sm:$0xff] }
  0x82   : > { %1575 = vmatpush.bf16.msra.mxu1 %v9463_v37  ;;  %1624 = vmatpush.bf16.msra.mxu2 %v9275_v38  ;;  %v12391_v5 = vpack.c.bf16 %v886_v2, %v884_v1  ;;  %v12397_v10 = vpack.c.bf16 %v889_v7, %v887_v6  ;;  %v12399_v11 = vpack.c.bf16 %v890_v9, %v888_v8  ;;  %v891_v12 = vld [vmem:[#allocation2 + $0x80] sm:$0xff]  ;;  %v893_v13 = vld [vmem:[#allocation2 + $0xe8] sm:$0xff]  ;;  %v894_v15 = vld [vmem:[#allocation2 + $0xb8] sm:$0xff] }
  0x83   : > { %1673 = vmatpush.bf16.msra.mxu3 %v9467_v42  ;;  %v892_v14 = vld [vmem:[#allocation2 + $0x88] sm:$0xff]  ;;  %v12405_v16 = vpack.c.bf16 %v893_v13, %v891_v12  ;;  %v10998_v18 = vld [vmem:[%s12233_s14 + $0x15c] sm:$0xf]  ;;  %v9400_v19 = vld [vmem:[%s12233_s14 + $0x170] sm:$0xf0] }
  0x84   : > { %v12407_v17 = vpack.c.bf16 %v894_v15, %v892_v14  ;;  %v11046_v20 = vld [vmem:[%s12233_s14 + $0x2dc] sm:$0xf]  ;;  %v9403_v21 = vor.u32 %v10998_v18, %v9400_v19  ;;  %v9592_v22 = vld [vmem:[%s12233_s14 + $0x2f0] sm:$0xf0]  ;;  %v9398_v23 = vld [vmem:[%s12233_s14 + $0x158] sm:$0xf] }
  0x85   : > { %1527 = vmatpush.bf16.msra.mxu0 %v9247_v48  ;;  %v11001_v24 = vld [vmem:[%s12233_s14 + $0x16c] sm:$0xf0]  ;;  %v9595_v25 = vor.u32 %v11046_v20, %v9592_v22  ;;  %v9590_v27 = vld [vmem:[%s12233_s14 + $0x2d8] sm:$0xf]  ;;  %v895_v30 = vld [vmem:[#allocation2 + $0x60] sm:$0xff]  ;;  %s17363_s9 = scalar_lea.vmem %s17362_s8, %s12217_s19  ;;  %s17364_s19 = scalar_lea.vmem %s17088_s5, %s12245_s27 }
  0x86   : > { %1576 = vmatpush.bf16.msra.mxu1 %v9439_v50  ;;  %1625 = vmatpush.bf16.msra.mxu2 %v9251_v51  ;;  %v9399_v26 = vor.u32 %v11001_v24, %v9398_v23  ;;  %v11049_v28 = vld [vmem:[%s12233_s14 + $0x2ec] sm:$0xf0]  ;;  %v897_v31 = vld [vmem:[#allocation2 + $0x8] sm:$0xff]  ;;  %v898_v33 = vld [vmem:[#allocation2 + $0x78] sm:$0xff]  ;;  %s17368_s30 = scalar_lea.vmem %s17367_s16, %s12245_s27  ;;  %s17578_s27 = sld [smem:[#allocation9_spill]] }
  0x87   : > { %1674 = vmatpush.bf16.msra.mxu3 %v9443_v54  ;;  %v9591_v29 = vor.u32 %v11049_v28, %v9590_v27  ;;  %v896_v32 = vld [vmem:[#allocation2 + $0xf0] sm:$0xff]  ;;  %v12421_v34 = vpack.c.bf16 %v897_v31, %v895_v30  ;;  %v10992_v36 = vld [vmem:[%s12233_s14 + $0x12c] sm:$0xf]  ;;  %v9376_v37 = vld [vmem:[%s12233_s14 + $0x140] sm:$0xf0] }
  0x88   : > { %v12423_v35 = vpack.c.bf16 %v898_v33, %v896_v32  ;;  %v11040_v38 = vld [vmem:[%s12233_s14 + $0x2ac] sm:$0xf]  ;;  %v9379_v39 = vor.u32 %v10992_v36, %v9376_v37  ;;  %v9568_v40 = vld [vmem:[%s12233_s14 + $0x2c0] sm:$0xf0]  ;;  %v9374_v41 = vld [vmem:[%s12233_s14 + $0x128] sm:$0xf] }
  0x89   : > { %1528 = vmatpush.bf16.msra.mxu0 %v9223_v60  ;;  %v10995_v42 = vld [vmem:[%s12233_s14 + $0x13c] sm:$0xf0]  ;;  %v9571_v43 = vor.u32 %v11040_v38, %v9568_v40  ;;  %v9566_v45 = vld [vmem:[%s12233_s14 + $0x2a8] sm:$0xf]  ;;  %v899_v48 = vld [vmem:[#allocation2 + $0x38] sm:$0xff] }
  0x8a   : > { %1577 = vmatpush.bf16.msra.mxu1 %v9415_v63  ;;  %1626 = vmatpush.bf16.msra.mxu2 %v9227_v0  ;;  %v9375_v44 = vor.u32 %v10995_v42, %v9374_v41  ;;  %v11043_v46 = vld [vmem:[%s12233_s14 + $0x2bc] sm:$0xf0]  ;;  %v900_v50 = vld [vmem:[#allocation2 + $0x58] sm:$0xff]  ;;  %v902_v51 = vld [vmem:[#allocation2 + $0xc8] sm:$0xff] }
  0x8b   : > { %1675 = vmatpush.bf16.msra.mxu3 %v9419_v3  ;;  %v9567_v47 = vor.u32 %v11043_v46, %v9566_v45  ;;  %v901_v49 = vld [vmem:[#allocation2 + $0x40] sm:$0xff]  ;;  %v12439_v53 = vpack.c.bf16 %v902_v51, %v900_v50  ;;  %v10986_v54 = vld [vmem:[%s12233_s14 + $0xfc] sm:$0xf]  ;;  %v9352_v55 = vld [vmem:[%s12233_s14 + $0x110] sm:$0xf0] }
  0x8c   : > { %1529 = vmatmul.bf16.vlgmr.msra.gmra.mxu0 %v12389_v4  ;;  %v12437_v52 = vpack.c.bf16 %v901_v49, %v899_v48  ;;  %v11034_v56 = vld [vmem:[%s12233_s14 + $0x27c] sm:$0xf]  ;;  %v9355_v57 = vor.u32 %v10986_v54, %v9352_v55  ;;  %v9544_v58 = vld [vmem:[%s12233_s14 + $0x290] sm:$0xf0]  ;;  %v9350_v59 = vld [vmem:[%s12233_s14 + $0xf8] sm:$0xf] }
  0x8d   : > { %1578 = vmatmul.bf16.vlgmr.msra.gmra.mxu1 %v12391_v5  ;;  %1627 = vmatmul.bf16.vlgmr.msra.gmra.mxu2 %v12389_v4  ;;  %v10989_v60 = vld [vmem:[%s12233_s14 + $0x10c] sm:$0xf0]  ;;  %v9547_v61 = vor.u32 %v11034_v56, %v9544_v58  ;;  %v9542_v63 = vld [vmem:[%s12233_s14 + $0x278] sm:$0xf]  ;;  %v9326_v1 = vld [vmem:[%s12233_s14 + $0xc8] sm:$0xf] }
  0x8e   : > { %1676 = vmatmul.bf16.vlgmr.msra.gmra.mxu3 %v12391_v5  ;;  %1815 = vmatpush.bf16.msrb.mxu2 %v9403_v21  ;;  %v9351_v62 = vor.u32 %v10989_v60, %v9350_v59  ;;  %v11037_v0 = vld [vmem:[%s12233_s14 + $0x28c] sm:$0xf0]  ;;  %v10983_v3 = vld [vmem:[%s12233_s14 + $0xdc] sm:$0xf0]  ;;  %v9518_v6 = vld [vmem:[%s12233_s14 + $0x248] sm:$0xf] }
  0x8f   : > { %1864 = vmatpush.bf16.msrb.mxu3 %v9595_v25  ;;  %1717 = vmatpush.bf16.msrb.mxu0 %v9399_v26  ;;  %v9543_v2 = vor.u32 %v11037_v0, %v9542_v63  ;;  %v11031_v7 = vld [vmem:[%s12233_s14 + $0x25c] sm:$0xf0]  ;;  %v9327_v8 = vor.u32 %v10983_v3, %v9326_v1  ;;  %v10980_v9 = vld [vmem:[%s12233_s14 + $0xcc] sm:$0xf]  ;;  %v9328_v12 = vld [vmem:[%s12233_s14 + $0xe0] sm:$0xf0] }
  0x90   : > { %1766 = vmatpush.bf16.msrb.mxu1 %v9591_v29  ;;  %v11028_v13 = vld [vmem:[%s12233_s14 + $0x24c] sm:$0xf]  ;;  %v9519_v14 = vor.u32 %v11031_v7, %v9518_v6  ;;  %v9331_v15 = vor.u32 %v10980_v9, %v9328_v12  ;;  %v9520_v18 = vld [vmem:[%s12233_s14 + $0x260] sm:$0xf0]  ;;  %v905_v21 = vld [vmem:[#allocation2 + $0x70] sm:$0xff]  ;;  %p10756_p1 = scmp.ne.s32.totalorder %s17578_s27, 3 }
  0x91   : > { %v9523_v19 = vor.u32 %v11028_v13, %v9520_v18  ;;  %v903_v20 = vld [vmem:[#allocation2 + $0xe0] sm:$0xff]  ;;  %v904_v22 = vld [vmem:[#allocation2 + $0x90] sm:$0xff]  ;;  %v9302_v26 = vld [vmem:[%s12233_s14 + $0x98] sm:$0xf]  ;;  %s17580_s24 = sld [smem:[#allocation106_spill]] (!%p10756_p1) }
  0x92   : > { %1816 = vmatpush.bf16.msrb.mxu2 %v9379_v39  ;;  %v906_v23 = vld [vmem:[#allocation2 + $0xc0] sm:$0xff]  ;;  %v12461_v24 = vpack.c.bf16 %v905_v21, %v903_v20  ;;  %v10977_v27 = vld [vmem:[%s12233_s14 + $0xac] sm:$0xf0]  ;;  %v9494_v28 = vld [vmem:[%s12233_s14 + $0x218] sm:$0xf]  ;;  %s17582_s27 = sld [smem:[#allocation107_spill]] (!%p10756_p1) }
  0x93   : > { %1865 = vmatpush.bf16.msrb.mxu3 %v9571_v43  ;;  %1718 = vmatpush.bf16.msrb.mxu0 %v9375_v44  ;;  %v12463_v25 = vpack.c.bf16 %v906_v23, %v904_v22  ;;  %v9303_v29 = vor.u32 %v10977_v27, %v9302_v26  ;;  %v11025_v30 = vld [vmem:[%s12233_s14 + $0x22c] sm:$0xf0]  ;;  %v10974_v31 = vld [vmem:[%s12233_s14 + $0x9c] sm:$0xf]  ;;  %v9304_v32 = vld [vmem:[%s12233_s14 + $0xb0] sm:$0xf0] }
  0x94   : > { %1767 = vmatpush.bf16.msrb.mxu1 %v9567_v47  ;;  %v9495_v33 = vor.u32 %v11025_v30, %v9494_v28  ;;  %v9307_v36 = vor.u32 %v10974_v31, %v9304_v32  ;;  %v11022_v37 = vld [vmem:[%s12233_s14 + $0x21c] sm:$0xf]  ;;  %v9496_v38 = vld [vmem:[%s12233_s14 + $0x230] sm:$0xf0]  ;;  %v9278_v39 = vld [vmem:[%s12233_s14 + $0x68] sm:$0xf] }
  0x95   : > { %v9499_v40 = vor.u32 %v11022_v37, %v9496_v38  ;;  %v10971_v41 = vld [vmem:[%s12233_s14 + $0x7c] sm:$0xf0]  ;;  %v9470_v42 = vld [vmem:[%s12233_s14 + $0x1e8] sm:$0xf]  ;;  %v10968_v46 = vld [vmem:[%s12233_s14 + $0x6c] sm:$0xf] }
  0x96   : > { %1817 = vmatpush.bf16.msrb.mxu2 %v9355_v57  ;;  %v11019_v43 = vld [vmem:[%s12233_s14 + $0x1fc] sm:$0xf0]  ;;  %v9279_v44 = vor.u32 %v10971_v41, %v9278_v39  ;;  %v9280_v47 = vld [vmem:[%s12233_s14 + $0x80] sm:$0xf0]  ;;  %v11016_v48 = vld [vmem:[%s12233_s14 + $0x1ec] sm:$0xf] }
  0x97   : > { %1866 = vmatpush.bf16.msrb.mxu3 %v9547_v61  ;;  %1719 = vmatpush.bf16.msrb.mxu0 %v9351_v62  ;;  %v9471_v45 = vor.u32 %v11019_v43, %v9470_v42  ;;  %v9283_v49 = vor.u32 %v10968_v46, %v9280_v47  ;;  %v9472_v50 = vld [vmem:[%s12233_s14 + $0x200] sm:$0xf0]  ;;  %v9254_v51 = vld [vmem:[%s12233_s14 + $0x38] sm:$0xf]  ;;  %v10965_v54 = vld [vmem:[%s12233_s14 + $0x4c] sm:$0xf0] }
  0x98   : > { %1768 = vmatpush.bf16.msrb.mxu1 %v9543_v2  ;;  %v9475_v55 = vor.u32 %v11016_v48, %v9472_v50  ;;  %v9446_v56 = vld [vmem:[%s12233_s14 + $0x1b8] sm:$0xf]  ;;  %v11013_v57 = vld [vmem:[%s12233_s14 + $0x1cc] sm:$0xf0]  ;;  %v10962_v58 = vld [vmem:[%s12233_s14 + $0x3c] sm:$0xf]  ;;  %v9255_v59 = vor.u32 %v10965_v54, %v9254_v51 }
  0x99   : > { %v9256_v60 = vld [vmem:[%s12233_s14 + $0x50] sm:$0xf0]  ;;  %v11010_v61 = vld [vmem:[%s12233_s14 + $0x1bc] sm:$0xf]  ;;  %v9447_v63 = vor.u32 %v11013_v57, %v9446_v56  ;;  %v907_v1 = vld [vmem:[#allocation2 + $0xa8] sm:$0xff] }
  0x9a   : > { %1818 = vmatpush.bf16.msrb.mxu2 %v9331_v15  ;;  %v9448_v62 = vld [vmem:[%s12233_s14 + $0x1d0] sm:$0xf0]  ;;  %v9259_v0 = vor.u32 %v10962_v58, %v9256_v60  ;;  %v910_v7 = vld [vmem:[#allocation2 + $0x28] sm:$0xff]  ;;  %v10959_v12 = vld [vmem:[%s12233_s14 + $0x1c] sm:$0xf0] }
  0x9b   : > { %1720 = vmatpush.bf16.msrb.mxu0 %v9327_v8  ;;  %1867 = vmatpush.bf16.msrb.mxu3 %v9523_v19  ;;  %v909_v2 = vld [vmem:[#allocation2 + $0x10] sm:$0xff]  ;;  %v9451_v3 = vor.u32 %v11010_v61, %v9448_v62  ;;  %v9230_v9 = vld [vmem:[%s12233_s14 + $0x8] sm:$0xf]  ;;  %v11007_v18 = vld [vmem:[%s12233_s14 + $0x19c] sm:$0xf0] }
  0x9c   : > { %1534 = vmatmul.bf16.gmra.mxu0 %v12397_v10  ;;  %1769 = vmatpush.bf16.msrb.mxu1 %v9519_v14  ;;  %v908_v6 = vld [vmem:[#allocation2 + $0xd0] sm:$0xff]  ;;  %v12493_v8 = vpack.c.bf16 %v909_v2, %v907_v1  ;;  %v9422_v13 = vld [vmem:[%s12233_s14 + $0x188] sm:$0xf]  ;;  %v9231_v15 = vor.u32 %v10959_v12, %v9230_v9  ;;  %v10956_v19 = vld [vmem:[%s12233_s14 + $0xc] sm:$0xf] }
  0x9d   : > { %1583 = vmatmul.bf16.gmra.mxu1 %v12399_v11  ;;  %1632 = vmatmul.bf16.gmra.mxu2 %v12397_v10  ;;  %v12498_v14 = vpack.c.bf16 %v910_v7, %v908_v6  ;;  %v9232_v20 = vld [vmem:[%s12233_s14 + $0x20] sm:$0xf0]  ;;  %v9423_v21 = vor.u32 %v11007_v18, %v9422_v13  ;;  %v11004_v23 = vld [vmem:[%s12233_s14 + $0x18c] sm:$0xf]  ;;  %v912_v30 = vld [vmem:[#allocation2 + $0xf8] sm:$0xff] }
  0x9e   : > { %1681 = vmatmul.bf16.gmra.mxu3 %v12399_v11  ;;  %1819 = vmatpush.bf16.msrb.mxu2 %v9307_v36  ;;  %v9235_v22 = vor.u32 %v10956_v19, %v9232_v20  ;;  %v9424_v26 = vld [vmem:[%s12233_s14 + $0x1a0] sm:$0xf0]  ;;  %v914_v31 = vld [vmem:[#allocation2 + $0x98] sm:$0xff] }
  0x9f   : > { %1721 = vmatpush.bf16.msrb.mxu0 %v9303_v29  ;;  %1868 = vmatpush.bf16.msrb.mxu3 %v9499_v40  ;;  %v9427_v27 = vor.u32 %v11004_v23, %v9424_v26  ;;  %v911_v28 = vld [vmem:[#allocation2 + $0xa0] sm:$0xff]  ;;  %v11008_v26 = vld [vmem:[%s12233_s14 + $0x1a4] sm:$0xf0] }
  0xa0   : > { %1770 = vmatpush.bf16.msrb.mxu1 %v9495_v33  ;;  %v913_v29 = vld [vmem:[#allocation2 + $0x20] sm:$0xff]  ;;  %v12511_v33 = vpack.c.bf16 %v914_v31, %v912_v30 }
  0xa1   : > { %v12509_v32 = vpack.c.bf16 %v913_v29, %v911_v28  ;;  %v12518_v36 = vld [vmem:[%s12243_s29] sm:$0x3f] }
  0xa2   : > { %1820 = vmatpush.bf16.msrb.mxu2 %v9283_v49  ;;  %v12521_v37 = vperm.slane %v12518_v36, 0  ;;  %v12530_v42 = vperm.slane %v12518_v36, 1 }
  0xa3   : > { %1722 = vmatpush.bf16.msrb.mxu0 %v9279_v44  ;;  %1869 = vmatpush.bf16.msrb.mxu3 %v9475_v55 }
  0xa4   : > { %1771 = vmatpush.bf16.msrb.mxu1 %v9471_v45 }
  0xa6   : > { %1821 = vmatpush.bf16.msrb.mxu2 %v9259_v0 }
  0xa7   : > { %1723 = vmatpush.bf16.msrb.mxu0 %v9255_v59  ;;  %1870 = vmatpush.bf16.msrb.mxu3 %v9451_v3 }
  0xa8   : > { %1772 = vmatpush.bf16.msrb.mxu1 %v9447_v63 }
  0xaa   : > { %1822 = vmatpush.bf16.msrb.mxu2 %v9235_v22 }
  0xab   : > { %1724 = vmatpush.bf16.msrb.mxu0 %v9231_v15  ;;  %1871 = vmatpush.bf16.msrb.mxu3 %v9427_v27 }
  0xac   : > { %1539 = vmatmul.bf16.gmra.mxu0 %v12405_v16  ;;  %1773 = vmatpush.bf16.msrb.mxu1 %v9423_v21 }
  0xad   : > { %1588 = vmatmul.bf16.gmra.mxu1 %v12407_v17  ;;  %1637 = vmatmul.bf16.gmra.mxu2 %v12405_v16 }
  0xae   : > { %1686 = vmatmul.bf16.gmra.mxu3 %v12407_v17 }
  0xbc   : > { %1544 = vmatmul.bf16.gmra.mxu0 %v12421_v34 }
  0xbd   : > { %1593 = vmatmul.bf16.gmra.mxu1 %v12423_v35  ;;  %1642 = vmatmul.bf16.gmra.mxu2 %v12421_v34 }
  0xbe   : > { %1691 = vmatmul.bf16.gmra.mxu3 %v12423_v35 }
  0xcc   : > { %1549 = vmatmul.bf16.gmra.mxu0 %v12437_v52 }
  0xcd   : > { %1598 = vmatmul.bf16.gmra.mxu1 %v12439_v53  ;;  %1647 = vmatmul.bf16.gmra.mxu2 %v12437_v52 }
  0xce   : > { %1696 = vmatmul.bf16.gmra.mxu3 %v12439_v53 }
  0xdc   : > { %1554 = vmatmul.bf16.gmra.mxu0 %v12461_v24 }
  0xdd   : > { %1603 = vmatmul.bf16.gmra.mxu1 %v12463_v25  ;;  %1652 = vmatmul.bf16.gmra.mxu2 %v12461_v24 }
  0xde   : > { %1701 = vmatmul.bf16.gmra.mxu3 %v12463_v25 }
  0xec   : > { %1559 = vmatmul.bf16.gmra.mxu0 %v12493_v8 }
  0xed   : > { %1608 = vmatmul.bf16.gmra.mxu1 %v12498_v14  ;;  %1657 = vmatmul.bf16.gmra.mxu2 %v12493_v8 }
  0xee   : > { %1706 = vmatmul.bf16.gmra.mxu3 %v12498_v14 }
  0xfc   : > { %1564 = vmatmul.bf16.gmra.mxu0 %v12509_v32 }
  0xfd   : > { %1613 = vmatmul.bf16.gmra.mxu1 %v12511_v33  ;;  %1662 = vmatmul.bf16.gmra.mxu2 %v12509_v32 }
  0xfe   : > { %1711 = vmatmul.bf16.gmra.mxu3 %v12511_v33 }
 0x109   : > { %v1530_v38 = vpop.f32.mrf.mxu0 }
 0x10a   : > { %v1531_v39 = vadd.f32 %v1530_v38, %v12521_v37  ;;  %v1579_v40 = vpop.f32.mrf.mxu1 }
 0x10c   : > { %v12524_v41 = vadd.f32 %v1579_v40, %v1531_v39  ;;  %1725 = vmatmul.bf16.vlgmr.msrb.gmra.mxu0 %v12389_v4 }
 0x10d   : > { %1774 = vmatmul.bf16.vlgmr.msrb.gmra.mxu1 %v12391_v5  ;;  %1823 = vmatmul.bf16.vlgmr.msrb.gmra.mxu2 %v12389_v4 }
 0x10e   : > { %1872 = vmatmul.bf16.vlgmr.msrb.gmra.mxu3 %v12391_v5 }
 0x110   : > { %v1628_v43 = vpop.f32.mrf.mxu2 }
 0x111   : > { %v1629_v44 = vadd.f32 %v1628_v43, %v12530_v42  ;;  %v1677_v45 = vpop.f32.mrf.mxu3  ;;  %v1532_v46 = vpop.f32.mrf.mxu0  ;;  %v9240_v43 = vld [vmem:[%s12233_s14 + $0x28] sm:$0xf0] }
 0x112   : > { %v1533_v47 = vadd.f32 %v1532_v46, %v12521_v37  ;;  %v1581_v48 = vpop.f32.mrf.mxu1 }
 0x113   : > { %v12535_v49 = vadd.f32 %v1677_v45, %v1629_v44 }
 0x114   : > { %v12537_v50 = vadd.f32 %v1581_v48, %v1533_v47 }
 0x118   : > { %v1630_v54 = vpop.f32.mrf.mxu2 }
 0x119   : > { %v1631_v55 = vadd.f32 %v1630_v54, %v12530_v42  ;;  %v1679_v56 = vpop.f32.mrf.mxu3  ;;  %v1535_v57 = vpop.f32.mrf.mxu0 }
 0x11a   : > { %v1536_v58 = vadd.f32 %v1535_v57, %v12521_v37  ;;  %v1584_v59 = vpop.f32.mrf.mxu1 }
 0x11b   : > { %v12543_v60 = vadd.f32 %v1679_v56, %v1631_v55 }
 0x11c   : > { %v12545_v61 = vadd.f32 %v1584_v59, %v1536_v58  ;;  %1730 = vmatmul.bf16.gmra.mxu0 %v12397_v10 }
 0x11d   : > { %1779 = vmatmul.bf16.gmra.mxu1 %v12399_v11  ;;  %1828 = vmatmul.bf16.gmra.mxu2 %v12397_v10 }
 0x11e   : > { %17274 = vst [vmem:[#allocation19_spill] sm:$0xff] %v12545_v61  ;;  %1877 = vmatmul.bf16.gmra.mxu3 %v12399_v11 }
 0x120   : > { %v1633_v63 = vpop.f32.mrf.mxu2 }
 0x121   : > { %v1634_v0 = vadd.f32 %v1633_v63, %v12530_v42  ;;  %v1682_v1 = vpop.f32.mrf.mxu3  ;;  %v1537_v2 = vpop.f32.mrf.mxu0 }
 0x122   : > { %v1538_v3 = vadd.f32 %v1537_v2, %v12521_v37  ;;  %v1586_v6 = vpop.f32.mrf.mxu1 }
 0x123   : > { %v12555_v7 = vadd.f32 %v1682_v1, %v1634_v0 }
 0x124   : > { %v12557_v9 = vadd.f32 %v1586_v6, %v1538_v3 }
 0x125   : > { %17275 = vst [vmem:[#allocation20_spill] sm:$0xff] %v12555_v7 }
 0x126   : > { %17276 = vst [vmem:[#allocation21_spill] sm:$0xff] %v12557_v9 }
 0x128   : > { %v1635_v13 = vpop.f32.mrf.mxu2 }
 0x129   : > { %v1636_v15 = vadd.f32 %v1635_v13, %v12530_v42  ;;  %v1684_v18 = vpop.f32.mrf.mxu3  ;;  %v1540_v19 = vpop.f32.mrf.mxu0  ;;  %v9288_v13 = vld [vmem:[%s12233_s14 + $0x88] sm:$0xf0] }
 0x12a   : > { %v1541_v20 = vadd.f32 %v1540_v19, %v12521_v37  ;;  %v1589_v21 = vpop.f32.mrf.mxu1 }
 0x12b   : > { %v12563_v22 = vadd.f32 %v1684_v18, %v1636_v15 }
 0x12c   : > { %v12565_v23 = vadd.f32 %v1589_v21, %v1541_v20  ;;  %1735 = vmatmul.bf16.gmra.mxu0 %v12405_v16 }
 0x12d   : > { %17277 = vst [vmem:[#allocation22_spill] sm:$0xff] %v12563_v22  ;;  %1784 = vmatmul.bf16.gmra.mxu1 %v12407_v17  ;;  %1833 = vmatmul.bf16.gmra.mxu2 %v12405_v16 }
 0x12e   : > { %17278 = vst [vmem:[#allocation23_spill] sm:$0xff] %v12565_v23  ;;  %1882 = vmatmul.bf16.gmra.mxu3 %v12407_v17 }
 0x130   : > { %v1638_v27 = vpop.f32.mrf.mxu2 }
 0x131   : > { %v1639_v28 = vadd.f32 %v1638_v27, %v12530_v42  ;;  %v1687_v29 = vpop.f32.mrf.mxu3  ;;  %v1542_v30 = vpop.f32.mrf.mxu0 }
 0x132   : > { %v1543_v31 = vadd.f32 %v1542_v30, %v12521_v37  ;;  %v1591_v38 = vpop.f32.mrf.mxu1  ;;  %v9406_v30 = vld [vmem:[%s12233_s14 + $0x160] sm:$0xf] }
 0x133   : > { %v12575_v39 = vadd.f32 %v1687_v29, %v1639_v28 }
 0x134   : > { %v12577_v40 = vadd.f32 %v1591_v38, %v1543_v31  ;;  %v11002_v31 = vld [vmem:[%s12233_s14 + $0x174] sm:$0xf0]  ;;  %v10999_v38 = vld [vmem:[%s12233_s14 + $0x164] sm:$0xf] }
 0x135   : > { %17279 = vst [vmem:[#allocation24_spill] sm:$0xff] %v12575_v39 }
 0x136   : > { %17280 = vst [vmem:[#allocation25_spill] sm:$0xff] %v12577_v40  ;;  %v12880_v40 = vperm.slane %v12518_v36, 4 }
 0x138   : > { %v1640_v44 = vpop.f32.mrf.mxu2 }
 0x139   : > { %v1641_v45 = vadd.f32 %v1640_v44, %v12530_v42  ;;  %v1689_v46 = vpop.f32.mrf.mxu3  ;;  %v1545_v47 = vpop.f32.mrf.mxu0  ;;  %v9528_v44 = vld [vmem:[%s12233_s14 + $0x268] sm:$0xf0] }
 0x13a   : > { %v1546_v48 = vadd.f32 %v1545_v47, %v12521_v37  ;;  %v1594_v54 = vpop.f32.mrf.mxu1 }
 0x13b   : > { %v12583_v55 = vadd.f32 %v1689_v46, %v1641_v45  ;;  %v9407_v45 = vor.u32 %v11002_v31, %v9406_v30  ;;  %v9408_v46 = vld [vmem:[%s12233_s14 + $0x178] sm:$0xf0]  ;;  %v9384_v30 = vld [vmem:[%s12233_s14 + $0x148] sm:$0xf0] }
 0x13c   : > { %v12585_v56 = vadd.f32 %v1594_v54, %v1546_v48  ;;  %1740 = vmatmul.bf16.gmra.mxu0 %v12421_v34  ;;  %v9411_v47 = vor.u32 %v10999_v38, %v9408_v46  ;;  %v9598_v48 = vld [vmem:[%s12233_s14 + $0x2e0] sm:$0xf]  ;;  %v11050_v54 = vld [vmem:[%s12233_s14 + $0x2f4] sm:$0xf0]  ;;  %v9574_v46 = vld [vmem:[%s12233_s14 + $0x2b0] sm:$0xf] }
 0x13d   : > { %17281 = vst [vmem:[#allocation26_spill] sm:$0xff] %v12583_v55  ;;  %1789 = vmatmul.bf16.gmra.mxu1 %v12423_v35  ;;  %1838 = vmatmul.bf16.gmra.mxu2 %v12421_v34 }
 0x13e   : > { %17282 = vst [vmem:[#allocation27_spill] sm:$0xff] %v12585_v56  ;;  %1887 = vmatmul.bf16.gmra.mxu3 %v12423_v35  ;;  %1913 = vmatpush.bf16.msra.mxu0 %v9407_v45 }
 0x13f   : > { %2011 = vmatpush.bf16.msra.mxu2 %v9411_v47  ;;  %v11044_v47 = vld [vmem:[%s12233_s14 + $0x2c4] sm:$0xf0] }
 0x140   : > { %v1643_v58 = vpop.f32.mrf.mxu2 }
 0x141   : > { %v1644_v59 = vadd.f32 %v1643_v58, %v12530_v42  ;;  %v1692_v63 = vpop.f32.mrf.mxu3  ;;  %v1547_v0 = vpop.f32.mrf.mxu0  ;;  %v11047_v58 = vld [vmem:[%s12233_s14 + $0x2e4] sm:$0xf] }
 0x142   : > { %v1548_v1 = vadd.f32 %v1547_v0, %v12521_v37  ;;  %v1596_v2 = vpop.f32.mrf.mxu1 }
 0x143   : > { %v12595_v3 = vadd.f32 %v1692_v63, %v1644_v59  ;;  %v9599_v59 = vor.u32 %v11050_v54, %v9598_v48  ;;  %v9600_v63 = vld [vmem:[%s12233_s14 + $0x2f8] sm:$0xf0]  ;;  %v11041_v48 = vld [vmem:[%s12233_s14 + $0x2b4] sm:$0xf] }
 0x144   : > { %v12597_v6 = vadd.f32 %v1596_v2, %v1548_v1  ;;  %v9603_v1 = vor.u32 %v11047_v58, %v9600_v63  ;;  %v9382_v2 = vld [vmem:[%s12233_s14 + $0x130] sm:$0xf]  ;;  %v9575_v58 = vor.u32 %v11044_v47, %v9574_v46 }
 0x145   : > { %17283 = vst [vmem:[#allocation28_spill] sm:$0xff] %v12595_v3  ;;  %1962 = vmatpush.bf16.msra.mxu1 %v9599_v59  ;;  %v9576_v59 = vld [vmem:[%s12233_s14 + $0x2c8] sm:$0xf0] }
 0x146   : > { %17284 = vst [vmem:[#allocation29_spill] sm:$0xff] %v12597_v6  ;;  %2060 = vmatpush.bf16.msra.mxu3 %v9603_v1  ;;  %v10990_v1 = vld [vmem:[%s12233_s14 + $0x114] sm:$0xf0] }
 0x148   : > { %v1645_v15 = vpop.f32.mrf.mxu2 }
 0x149   : > { %v1646_v18 = vadd.f32 %v1645_v15, %v12530_v42  ;;  %v1694_v19 = vpop.f32.mrf.mxu3  ;;  %v1550_v20 = vpop.f32.mrf.mxu0  ;;  %v10996_v15 = vld [vmem:[%s12233_s14 + $0x144] sm:$0xf0]  ;;  %1963 = vmatpush.bf16.msra.mxu1 %v9575_v58 }
 0x14a   : > { %v1551_v21 = vadd.f32 %v1550_v20, %v12521_v37  ;;  %v1599_v27 = vpop.f32.mrf.mxu1  ;;  %v10984_v58 = vld [vmem:[%s12233_s14 + $0xe4] sm:$0xf0] }
 0x14b   : > { %v12603_v28 = vadd.f32 %v1694_v19, %v1646_v18  ;;  %v10993_v18 = vld [vmem:[%s12233_s14 + $0x134] sm:$0xf] }
 0x14c   : > { %v12605_v29 = vadd.f32 %v1599_v27, %v1551_v21  ;;  %1745 = vmatmul.bf16.gmra.mxu0 %v12437_v52  ;;  %v9383_v27 = vor.u32 %v10996_v15, %v9382_v2  ;;  %v9387_v45 = vor.u32 %v10993_v18, %v9384_v30  ;;  %v9358_v2 = vld [vmem:[%s12233_s14 + $0x100] sm:$0xf]  ;;  %v10987_v15 = vld [vmem:[%s12233_s14 + $0x104] sm:$0xf]  ;;  %v11038_v30 = vld [vmem:[%s12233_s14 + $0x294] sm:$0xf0] }
 0x14d   : > { %17285 = vst [vmem:[#allocation30_spill] sm:$0xff] %v12603_v28  ;;  %1794 = vmatmul.bf16.gmra.mxu1 %v12439_v53  ;;  %1843 = vmatmul.bf16.gmra.mxu2 %v12437_v52  ;;  %v9359_v18 = vor.u32 %v10990_v1, %v9358_v2 }
 0x14e   : > { %17286 = vst [vmem:[#allocation31_spill] sm:$0xff] %v12605_v29  ;;  %1892 = vmatmul.bf16.gmra.mxu3 %v12439_v53  ;;  %1914 = vmatpush.bf16.msra.mxu0 %v9383_v27  ;;  %v9550_v27 = vld [vmem:[%s12233_s14 + $0x280] sm:$0xf] }
 0x14f   : > { %2012 = vmatpush.bf16.msra.mxu2 %v9387_v45  ;;  %v9552_v45 = vld [vmem:[%s12233_s14 + $0x298] sm:$0xf0] }
 0x150   : > { %v1648_v0 = vpop.f32.mrf.mxu2 }
 0x151   : > { %v1649_v19 = vadd.f32 %v1648_v0, %v12530_v42  ;;  %v1697_v20 = vpop.f32.mrf.mxu3  ;;  %v1552_v21 = vpop.f32.mrf.mxu0  ;;  %v9579_v0 = vor.u32 %v11041_v48, %v9576_v59  ;;  %v9334_v48 = vld [vmem:[%s12233_s14 + $0xd0] sm:$0xf]  ;;  %v10981_v59 = vld [vmem:[%s12233_s14 + $0xd4] sm:$0xf] }
 0x152   : > { %v1553_v31 = vadd.f32 %v1552_v21, %v12521_v37  ;;  %v1601_v38 = vpop.f32.mrf.mxu1  ;;  %1915 = vmatpush.bf16.msra.mxu0 %v9359_v18 }
 0x153   : > { %v12630_v54 = vadd.f32 %v1697_v20, %v1649_v19  ;;  %v9360_v19 = vld [vmem:[%s12233_s14 + $0x118] sm:$0xf0]  ;;  %2061 = vmatpush.bf16.msra.mxu3 %v9579_v0 }
 0x154   : > { %v12633_v63 = vadd.f32 %v1601_v38, %v1553_v31  ;;  %v9363_v21 = vor.u32 %v10987_v15, %v9360_v19  ;;  %v11035_v31 = vld [vmem:[%s12233_s14 + $0x284] sm:$0xf]  ;;  %v9551_v38 = vor.u32 %v11038_v30, %v9550_v27  ;;  %v9335_v15 = vor.u32 %v10984_v58, %v9334_v48  ;;  %v9336_v19 = vld [vmem:[%s12233_s14 + $0xe8] sm:$0xf0]  ;;  %v9526_v30 = vld [vmem:[%s12233_s14 + $0x250] sm:$0xf] }
 0x155   : > { %17287 = vst [vmem:[#allocation32_spill] sm:$0xff] %v12630_v54  ;;  %v9555_v47 = vor.u32 %v11035_v31, %v9552_v45  ;;  %v11032_v31 = vld [vmem:[%s12233_s14 + $0x264] sm:$0xf0]  ;;  %v11029_v45 = vld [vmem:[%s12233_s14 + $0x254] sm:$0xf] }
 0x156   : > { %17288 = vst [vmem:[#allocation33_spill] sm:$0xff] %v12633_v63  ;;  %2013 = vmatpush.bf16.msra.mxu2 %v9363_v21  ;;  %1964 = vmatpush.bf16.msra.mxu1 %v9551_v38  ;;  %v9339_v21 = vor.u32 %v10981_v59, %v9336_v19  ;;  %v9531_v48 = vor.u32 %v11029_v45, %v9528_v44  ;;  %v10978_v58 = vld [vmem:[%s12233_s14 + $0xb4] sm:$0xf0]  ;;  %v10975_v59 = vld [vmem:[%s12233_s14 + $0xa4] sm:$0xf] }
 0x157   : > { %2062 = vmatpush.bf16.msra.mxu3 %v9555_v47  ;;  %1916 = vmatpush.bf16.msra.mxu0 %v9335_v15  ;;  %v9310_v47 = vld [vmem:[%s12233_s14 + $0xa0] sm:$0xf]  ;;  %v11026_v19 = vld [vmem:[%s12233_s14 + $0x234] sm:$0xf0]  ;;  %v9286_v45 = vld [vmem:[%s12233_s14 + $0x70] sm:$0xf] }
 0x158   : > { %v1650_v46 = vpop.f32.mrf.mxu2  ;;  %v9502_v15 = vld [vmem:[%s12233_s14 + $0x220] sm:$0xf] }
 0x159   : > { %v1651_v2 = vadd.f32 %v1650_v46, %v12530_v42  ;;  %v1699_v0 = vpop.f32.mrf.mxu3  ;;  %v1555_v1 = vpop.f32.mrf.mxu0  ;;  %v9527_v46 = vor.u32 %v11032_v31, %v9526_v30 }
 0x15a   : > { %v1556_v18 = vadd.f32 %v1555_v1, %v12521_v37  ;;  %v1604_v27 = vpop.f32.mrf.mxu1  ;;  %2014 = vmatpush.bf16.msra.mxu2 %v9339_v21  ;;  %v9312_v1 = vld [vmem:[%s12233_s14 + $0xb8] sm:$0xf0] }
 0x15b   : > { %v12654_v20 = vadd.f32 %v1699_v0, %v1651_v2  ;;  %v9311_v0 = vor.u32 %v10978_v58, %v9310_v47  ;;  %1965 = vmatpush.bf16.msra.mxu1 %v9527_v46  ;;  %v9315_v44 = vor.u32 %v10975_v59, %v9312_v1  ;;  %2063 = vmatpush.bf16.msra.mxu3 %v9531_v48  ;;  %v9504_v21 = vld [vmem:[%s12233_s14 + $0x238] sm:$0xf0]  ;;  %v10972_v47 = vld [vmem:[%s12233_s14 + $0x84] sm:$0xf0]  ;;  %v10969_v58 = vld [vmem:[%s12233_s14 + $0x74] sm:$0xf] }
 0x15c   : > { %v12657_v38 = vadd.f32 %v1604_v27, %v1556_v18  ;;  %1750 = vmatmul.bf16.gmra.mxu0 %v12461_v24  ;;  %v11023_v18 = vld [vmem:[%s12233_s14 + $0x224] sm:$0xf]  ;;  %v9503_v27 = vor.u32 %v11026_v19, %v9502_v15  ;;  %v9287_v2 = vor.u32 %v10972_v47, %v9286_v45  ;;  %v9478_v15 = vld [vmem:[%s12233_s14 + $0x1f0] sm:$0xf]  ;;  %v11020_v19 = vld [vmem:[%s12233_s14 + $0x204] sm:$0xf0] }
 0x15d   : > { %17289 = vst [vmem:[#allocation34_spill] sm:$0xff] %v12654_v20  ;;  %1799 = vmatmul.bf16.gmra.mxu1 %v12463_v25  ;;  %1848 = vmatmul.bf16.gmra.mxu2 %v12461_v24  ;;  %v9507_v31 = vor.u32 %v11023_v18, %v9504_v21  ;;  %v11017_v18 = vld [vmem:[%s12233_s14 + $0x1f4] sm:$0xf]  ;;  %v9480_v45 = vld [vmem:[%s12233_s14 + $0x208] sm:$0xf0] }
 0x15e   : > { %17290 = vst [vmem:[#allocation35_spill] sm:$0xff] %v12657_v38  ;;  %1897 = vmatmul.bf16.gmra.mxu3 %v12463_v25  ;;  %1917 = vmatpush.bf16.msra.mxu0 %v9311_v0 }
 0x15f   : > { %2015 = vmatpush.bf16.msra.mxu2 %v9315_v44  ;;  %1966 = vmatpush.bf16.msra.mxu1 %v9503_v27  ;;  %v9291_v44 = vor.u32 %v10969_v58, %v9288_v13  ;;  %v9262_v27 = vld [vmem:[%s12233_s14 + $0x40] sm:$0xf]  ;;  %v10966_v13 = vld [vmem:[%s12233_s14 + $0x54] sm:$0xf0]  ;;  %v10963_v58 = vld [vmem:[%s12233_s14 + $0x44] sm:$0xf] }
 0x160   : > { %v1653_v30 = vpop.f32.mrf.mxu2  ;;  %2064 = vmatpush.bf16.msra.mxu3 %v9507_v31  ;;  %v9263_v57 = vor.u32 %v10966_v13, %v9262_v27  ;;  %v10960_v27 = vld [vmem:[%s12233_s14 + $0x24] sm:$0xf0]  ;;  %v10957_v13 = vld [vmem:[%s12233_s14 + $0x14] sm:$0xf] }
 0x161   : > { %v1654_v46 = vadd.f32 %v1653_v30, %v12530_v42  ;;  %v1702_v59 = vpop.f32.mrf.mxu3  ;;  %v1557_v1 = vpop.f32.mrf.mxu0  ;;  %v9479_v30 = vor.u32 %v11020_v19, %v9478_v15  ;;  %v11014_v15 = vld [vmem:[%s12233_s14 + $0x1d4] sm:$0xf0] }
 0x162   : > { %v1558_v48 = vadd.f32 %v1557_v1, %v12521_v37  ;;  %v1606_v0 = vpop.f32.mrf.mxu1  ;;  %1918 = vmatpush.bf16.msra.mxu0 %v9287_v2  ;;  %v9483_v1 = vor.u32 %v11017_v18, %v9480_v45  ;;  %v9238_v45 = vld [vmem:[%s12233_s14 + $0x10] sm:$0xf] }
 0x163   : > { %v12682_v21 = vadd.f32 %v1702_v59, %v1654_v46  ;;  %2016 = vmatpush.bf16.msra.mxu2 %v9291_v44  ;;  %v9264_v46 = vld [vmem:[%s12233_s14 + $0x58] sm:$0xf0]  ;;  %1967 = vmatpush.bf16.msra.mxu1 %v9479_v30  ;;  %v9454_v59 = vld [vmem:[%s12233_s14 + $0x1c0] sm:$0xf]  ;;  %v9239_v31 = vor.u32 %v10960_v27, %v9238_v45 }
 0x164   : > { %v12685_v47 = vadd.f32 %v1606_v0, %v1558_v48  ;;  %v9267_v2 = vor.u32 %v10963_v58, %v9264_v46  ;;  %v11011_v48 = vld [vmem:[%s12233_s14 + $0x1c4] sm:$0xf]  ;;  %2065 = vmatpush.bf16.msra.mxu3 %v9483_v1  ;;  %v9455_v0 = vor.u32 %v11014_v15, %v9454_v59  ;;  %v9456_v44 = vld [vmem:[%s12233_s14 + $0x1d8] sm:$0xf0]  ;;  %v9243_v59 = vor.u32 %v10957_v13, %v9240_v43  ;;  %v9430_v15 = vld [vmem:[%s12233_s14 + $0x190] sm:$0xf] }
 0x165   : > { %17291 = vst [vmem:[#allocation36_spill] sm:$0xff] %v12682_v21  ;;  %v9459_v18 = vor.u32 %v11011_v48, %v9456_v44  ;;  %v9431_v48 = vor.u32 %v11008_v26, %v9430_v15  ;;  %v9432_v44 = vld [vmem:[%s12233_s14 + $0x1a8] sm:$0xf0] }
 0x166   : > { %17292 = vst [vmem:[#allocation37_spill] sm:$0xff] %v12685_v47  ;;  %1919 = vmatpush.bf16.msra.mxu0 %v9263_v57 }
 0x167   : > { %2017 = vmatpush.bf16.msra.mxu2 %v9267_v2  ;;  %1968 = vmatpush.bf16.msra.mxu1 %v9455_v0  ;;  %v11005_v2 = vld [vmem:[%s12233_s14 + $0x194] sm:$0xf] }
 0x168   : > { %v1655_v19 = vpop.f32.mrf.mxu2  ;;  %2066 = vmatpush.bf16.msra.mxu3 %v9459_v18  ;;  %v9435_v45 = vor.u32 %v11005_v2, %v9432_v44 }
 0x169   : > { %v1656_v30 = vadd.f32 %v1655_v19, %v12530_v42  ;;  %v1704_v58 = vpop.f32.mrf.mxu3  ;;  %v1560_v46 = vpop.f32.mrf.mxu0 }
 0x16a   : > { %v1561_v57 = vadd.f32 %v1560_v46, %v12521_v37  ;;  %v1609_v1 = vpop.f32.mrf.mxu1  ;;  %1920 = vmatpush.bf16.msra.mxu0 %v9239_v31 }
 0x16b   : > { %v12706_v12 = vadd.f32 %v1704_v58, %v1656_v30  ;;  %2018 = vmatpush.bf16.msra.mxu2 %v9243_v59  ;;  %1969 = vmatpush.bf16.msra.mxu1 %v9431_v48 }
 0x16c   : > { %v12709_v19 = vadd.f32 %v1609_v1, %v1561_v57  ;;  %1755 = vmatmul.bf16.gmra.mxu0 %v12493_v8  ;;  %2067 = vmatpush.bf16.msra.mxu3 %v9435_v45 }
 0x16d   : > { %17293 = vst [vmem:[#allocation38_spill] sm:$0xff] %v12706_v12  ;;  %1804 = vmatmul.bf16.gmra.mxu1 %v12498_v14  ;;  %1853 = vmatmul.bf16.gmra.mxu2 %v12493_v8 }
 0x16e   : > { %17294 = vst [vmem:[#allocation39_spill] sm:$0xff] %v12709_v19  ;;  %1902 = vmatmul.bf16.gmra.mxu3 %v12498_v14 }
 0x170   : > { %v1658_v43 = vpop.f32.mrf.mxu2 }
 0x171   : > { %v1659_v26 = vadd.f32 %v1658_v43, %v12530_v42  ;;  %v1707_v31 = vpop.f32.mrf.mxu3  ;;  %v1562_v0 = vpop.f32.mrf.mxu0 }
 0x172   : > { %v1563_v18 = vadd.f32 %v1562_v0, %v12521_v37  ;;  %v1611_v13 = vpop.f32.mrf.mxu1 }
 0x173   : > { %v12719_v30 = vadd.f32 %v1707_v31, %v1659_v26 }
 0x174   : > { %v12721_v58 = vadd.f32 %v1611_v13, %v1563_v18 }
 0x175   : > { %17295 = vst [vmem:[#allocation40_spill] sm:$0xff] %v12719_v30 }
 0x176   : > { %17296 = vst [vmem:[#allocation41_spill] sm:$0xff] %v12721_v58 }
 0x178   : > { %v1660_v57 = vpop.f32.mrf.mxu2 }
 0x179   : > { %v1661_v1 = vadd.f32 %v1660_v57, %v12530_v42  ;;  %v1709_v59 = vpop.f32.mrf.mxu3  ;;  %v1565_v15 = vpop.f32.mrf.mxu0 }
 0x17a   : > { %v1566_v2 = vadd.f32 %v1565_v15, %v12521_v37  ;;  %v1614_v48 = vpop.f32.mrf.mxu1 }
 0x17b   : > { %v12727_v44 = vadd.f32 %v1709_v59, %v1661_v1 }
 0x17c   : > { %v12729_v45 = vadd.f32 %v1614_v48, %v1566_v2  ;;  %1760 = vmatmul.bf16.gmra.mxu0 %v12509_v32  ;;  %v12746_v2 = vperm.slane %v12518_v36, 2 }
 0x17d   : > { %17297 = vst [vmem:[#allocation42_spill] sm:$0xff] %v12727_v44  ;;  %1809 = vmatmul.bf16.gmra.mxu1 %v12511_v33  ;;  %1858 = vmatmul.bf16.gmra.mxu2 %v12509_v32 }
 0x17e   : > { %17298 = vst [vmem:[#allocation43_spill] sm:$0xff] %v12729_v45  ;;  %1907 = vmatmul.bf16.gmra.mxu3 %v12511_v33 }
 0x180   : > { %v1663_v26 = vpop.f32.mrf.mxu2 }
 0x181   : > { %v1664_v31 = vadd.f32 %v1663_v26, %v12530_v42  ;;  %v1712_v0 = vpop.f32.mrf.mxu3  ;;  %v1567_v18 = vpop.f32.mrf.mxu0 }
 0x182   : > { %v1568_v13 = vadd.f32 %v1567_v18, %v12521_v37  ;;  %v1616_v57 = vpop.f32.mrf.mxu1 }
 0x183   : > { %v12739_v1 = vadd.f32 %v1712_v0, %v1664_v31 }
 0x184   : > { %v12741_v59 = vadd.f32 %v1616_v57, %v1568_v13 }
 0x185   : > { %17299 = vst [vmem:[#allocation44_spill] sm:$0xff] %v12739_v1 }
 0x186   : > { %17300 = vst [vmem:[#allocation45_spill] sm:$0xff] %v12741_v59 }
 0x188   : > { %v1665_v48 = vpop.f32.mrf.mxu2 }
 0x189   : > { %v1666_v43 = vadd.f32 %v1665_v48, %v12530_v42  ;;  %v1714_v46 = vpop.f32.mrf.mxu3  ;;  %v1726_v26 = vpop.f32.mrf.mxu0  ;;  %v12760_v42 = vperm.slane %v12518_v36, 3 }
 0x18a   : > { %v1727_v27 = vadd.f32 %v1726_v26, %v12746_v2  ;;  %v1775_v62 = vpop.f32.mrf.mxu1 }
 0x18b   : > { %v12750_v37 = vadd.f32 %v1714_v46, %v1666_v43 }
 0x18c   : > { %v12752_v31 = vadd.f32 %v1775_v62, %v1727_v27  ;;  %1921 = vmatmul.bf16.vlgmr.msra.gmra.mxu0 %v12389_v4 }
 0x18d   : > { %17301 = vst [vmem:[#allocation46_spill] sm:$0xff] %v12750_v37  ;;  %2019 = vmatmul.bf16.vlgmr.msra.gmra.mxu2 %v12389_v4  ;;  %1970 = vmatmul.bf16.vlgmr.msra.gmra.mxu1 %v12391_v5 }
 0x18e   : > { %2068 = vmatmul.bf16.vlgmr.msra.gmra.mxu3 %v12391_v5 }
 0x190   : > { %v1824_v18 = vpop.f32.mrf.mxu2 }
 0x191   : > { %v1825_v46 = vadd.f32 %v1824_v18, %v12760_v42  ;;  %v1873_v43 = vpop.f32.mrf.mxu3  ;;  %v1728_v62 = vpop.f32.mrf.mxu0 }
 0x192   : > { %v1729_v27 = vadd.f32 %v1728_v62, %v12746_v2  ;;  %v1777_v13 = vpop.f32.mrf.mxu1 }
 0x193   : > { %v12765_v57 = vadd.f32 %v1873_v43, %v1825_v46 }
 0x194   : > { %v12767_v48 = vadd.f32 %v1777_v13, %v1729_v27 }
 0x198   : > { %v1826_v26 = vpop.f32.mrf.mxu2 }
 0x199   : > { %v1827_v0 = vadd.f32 %v1826_v26, %v12760_v42  ;;  %v1875_v15 = vpop.f32.mrf.mxu3  ;;  %v1731_v5 = vpop.f32.mrf.mxu0 }
 0x19a   : > { %v1732_v51 = vadd.f32 %v1731_v5, %v12746_v2  ;;  %v1780_v18 = vpop.f32.mrf.mxu1 }
 0x19b   : > { %v12773_v1 = vadd.f32 %v1875_v15, %v1827_v0 }
 0x19c   : > { %v12775_v37 = vadd.f32 %v1780_v18, %v1732_v51  ;;  %1926 = vmatmul.bf16.gmra.mxu0 %v12397_v10 }
 0x19d   : > { %2024 = vmatmul.bf16.gmra.mxu2 %v12397_v10  ;;  %1975 = vmatmul.bf16.gmra.mxu1 %v12399_v11 }
 0x19e   : > { %2073 = vmatmul.bf16.gmra.mxu3 %v12399_v11 }
 0x1a0   : > { %v1829_v43 = vpop.f32.mrf.mxu2 }
 0x1a1   : > { %v1830_v62 = vadd.f32 %v1829_v43, %v12760_v42  ;;  %v1878_v27 = vpop.f32.mrf.mxu3  ;;  %v1733_v13 = vpop.f32.mrf.mxu0 }
 0x1a2   : > { %v1734_v15 = vadd.f32 %v1733_v13, %v12746_v2  ;;  %v1782_v51 = vpop.f32.mrf.mxu1 }
 0x1a3   : > { %v12785_v0 = vadd.f32 %v1878_v27, %v1830_v62 }
 0x1a4   : > { %v12787_v26 = vadd.f32 %v1782_v51, %v1734_v15 }
 0x1a8   : > { %v1831_v10 = vpop.f32.mrf.mxu2 }
 0x1a9   : > { %v1832_v18 = vadd.f32 %v1831_v10, %v12760_v42  ;;  %v1880_v46 = vpop.f32.mrf.mxu3  ;;  %v1736_v11 = vpop.f32.mrf.mxu0 }
 0x1aa   : > { %v1737_v4 = vadd.f32 %v1736_v11, %v12746_v2  ;;  %v1785_v43 = vpop.f32.mrf.mxu1 }
 0x1ab   : > { %v12793_v45 = vadd.f32 %v1880_v46, %v1832_v18 }
 0x1ac   : > { %v12795_v59 = vadd.f32 %v1785_v43, %v1737_v4  ;;  %1931 = vmatmul.bf16.gmra.mxu0 %v12405_v16 }
 0x1ad   : > { %2029 = vmatmul.bf16.gmra.mxu2 %v12405_v16  ;;  %1980 = vmatmul.bf16.gmra.mxu1 %v12407_v17 }
 0x1ae   : > { %2078 = vmatmul.bf16.gmra.mxu3 %v12407_v17 }
 0x1b0   : > { %v1834_v27 = vpop.f32.mrf.mxu2 }
 0x1b1   : > { %v1835_v13 = vadd.f32 %v1834_v27, %v12760_v42  ;;  %v1883_v15 = vpop.f32.mrf.mxu3  ;;  %v1738_v51 = vpop.f32.mrf.mxu0 }
 0x1b2   : > { %v1739_v46 = vadd.f32 %v1738_v51, %v12746_v2  ;;  %v1787_v4 = vpop.f32.mrf.mxu1 }
 0x1b3   : > { %v12805_v10 = vadd.f32 %v1883_v15, %v1835_v13 }
 0x1b4   : > { %v12807_v18 = vadd.f32 %v1787_v4, %v1739_v46 }
 0x1b8   : > { %v1836_v16 = vpop.f32.mrf.mxu2 }
 0x1b9   : > { %v1837_v43 = vadd.f32 %v1836_v16, %v12760_v42  ;;  %v1885_v62 = vpop.f32.mrf.mxu3  ;;  %v1741_v17 = vpop.f32.mrf.mxu0 }
 0x1ba   : > { %v1742_v5 = vadd.f32 %v1741_v17, %v12746_v2  ;;  %v1790_v27 = vpop.f32.mrf.mxu1 }
 0x1bb   : > { %v12813_v30 = vadd.f32 %v1885_v62, %v1837_v43 }
 0x1bc   : > { %v12815_v44 = vadd.f32 %v1790_v27, %v1742_v5  ;;  %1936 = vmatmul.bf16.gmra.mxu0 %v12421_v34 }
 0x1bd   : > { %2034 = vmatmul.bf16.gmra.mxu2 %v12421_v34  ;;  %1985 = vmatmul.bf16.gmra.mxu1 %v12423_v35 }
 0x1be   : > { %2083 = vmatmul.bf16.gmra.mxu3 %v12423_v35 }
 0x1c0   : > { %v1839_v15 = vpop.f32.mrf.mxu2 }
 0x1c1   : > { %v1840_v51 = vadd.f32 %v1839_v15, %v12760_v42  ;;  %v1888_v46 = vpop.f32.mrf.mxu3  ;;  %v1743_v4 = vpop.f32.mrf.mxu0 }
 0x1c2   : > { %v1744_v62 = vadd.f32 %v1743_v4, %v12746_v2  ;;  %v1792_v5 = vpop.f32.mrf.mxu1 }
 0x1c3   : > { %v12825_v16 = vadd.f32 %v1888_v46, %v1840_v51 }
 0x1c4   : > { %v12827_v43 = vadd.f32 %v1792_v5, %v1744_v62 }
 0x1c8   : > { %v1841_v34 = vpop.f32.mrf.mxu2 }
 0x1c9   : > { %v1842_v27 = vadd.f32 %v1841_v34, %v12760_v42  ;;  %v1890_v13 = vpop.f32.mrf.mxu3  ;;  %v1746_v35 = vpop.f32.mrf.mxu0 }
 0x1ca   : > { %v1747_v11 = vadd.f32 %v1746_v35, %v12746_v2  ;;  %v1795_v15 = vpop.f32.mrf.mxu1 }
 0x1cb   : > { %v12833_v19 = vadd.f32 %v1890_v13, %v1842_v27 }
 0x1cc   : > { %v12835_v58 = vadd.f32 %v1795_v15, %v1747_v11  ;;  %1941 = vmatmul.bf16.gmra.mxu0 %v12437_v52 }
 0x1cd   : > { %2039 = vmatmul.bf16.gmra.mxu2 %v12437_v52  ;;  %1990 = vmatmul.bf16.gmra.mxu1 %v12439_v53 }
 0x1ce   : > { %2088 = vmatmul.bf16.gmra.mxu3 %v12439_v53 }
 0x1d0   : > { %v1844_v46 = vpop.f32.mrf.mxu2 }
 0x1d1   : > { %v1845_v4 = vadd.f32 %v1844_v46, %v12760_v42  ;;  %v1893_v62 = vpop.f32.mrf.mxu3  ;;  %v12844_v5 = vpop.f32.mrf.mxu0 }
 0x1d2   : > { %v12846_v13 = vpop.f32.mrf.mxu1 }
 0x1d3   : > { %v12848_v11 = vadd.f32 %v1893_v62, %v1845_v4 }
 0x1d8   : > { %v12850_v34 = vpop.f32.mrf.mxu2 }
 0x1d9   : > { %v12852_v27 = vpop.f32.mrf.mxu3  ;;  %v1751_v35 = vpop.f32.mrf.mxu0 }
 0x1da   : > { %v12854_v52 = vpop.f32.mrf.mxu1 }
 0x1dc   : > { %1946 = vmatmul.bf16.gmra.mxu0 %v12461_v24 }
 0x1dd   : > { %2044 = vmatmul.bf16.gmra.mxu2 %v12461_v24  ;;  %1995 = vmatmul.bf16.gmra.mxu1 %v12463_v25 }
 0x1de   : > { %2093 = vmatmul.bf16.gmra.mxu3 %v12463_v25 }
 0x1e0   : > { %v12860_v53 = vpop.f32.mrf.mxu2 }
 0x1e1   : > { %v12862_v15 = vpop.f32.mrf.mxu3  ;;  %v1753_v46 = vpop.f32.mrf.mxu0 }
 0x1e2   : > { %v1802_v4 = vpop.f32.mrf.mxu1 }
 0x1e8   : > { %v12864_v62 = vpop.f32.mrf.mxu2 }
 0x1e9   : > { %v12866_v51 = vpop.f32.mrf.mxu3  ;;  %v1756_v17 = vpop.f32.mrf.mxu0 }
 0x1ea   : > { %v1805_v21 = vpop.f32.mrf.mxu1 }
 0x1ec   : > { %1951 = vmatmul.bf16.gmra.mxu0 %v12493_v8 }
 0x1ed   : > { %2049 = vmatmul.bf16.gmra.mxu2 %v12493_v8  ;;  %2000 = vmatmul.bf16.gmra.mxu1 %v12498_v14 }
 0x1ee   : > { %2098 = vmatmul.bf16.gmra.mxu3 %v12498_v14 }
 0x1f0   : > { %v1854_v24 = vpop.f32.mrf.mxu2 }
 0x1f1   : > { %v1903_v25 = vpop.f32.mrf.mxu3  ;;  %v1758_v12 = vpop.f32.mrf.mxu0  ;;  %v1855_v9 = vadd.f32 %v1854_v24, %v12760_v42  ;;  %v1852_v24 = vadd.f32 %v12864_v62, %v12760_v42 }
 0x1f2   : > { %v1807_v38 = vpop.f32.mrf.mxu1  ;;  %v1759_v55 = vadd.f32 %v1758_v12, %v12746_v2 }
 0x1f8   : > { %v1856_v47 = vpop.f32.mrf.mxu2 }
 0x1f9   : > { %v1905_v54 = vpop.f32.mrf.mxu3  ;;  %v1761_v20 = vpop.f32.mrf.mxu0 }
 0x1fa   : > { %v1810_v29 = vpop.f32.mrf.mxu1  ;;  %v1762_v8 = vadd.f32 %v1761_v20, %v12746_v2 }
 0x1fc   : > { %1956 = vmatmul.bf16.gmra.mxu0 %v12509_v32  ;;  %v1811_v6 = vadd.f32 %v1810_v29, %v1762_v8  ;;  %v1857_v8 = vadd.f32 %v1856_v47, %v12760_v42 }
 0x1fd   : > { %2054 = vmatmul.bf16.gmra.mxu2 %v12509_v32  ;;  %2005 = vmatmul.bf16.gmra.mxu1 %v12511_v33 }
 0x1fe   : > { %2103 = vmatmul.bf16.gmra.mxu3 %v12511_v33  ;;  %v1757_v33 = vadd.f32 %v1756_v17, %v12746_v2  ;;  %v12890_v17 = vperm.slane %v12518_v36, 5  ;;  %v1904_v36 = vadd.f32 %v1903_v25, %v1855_v9  ;;  %v1901_v9 = vadd.f32 %v12866_v51, %v1852_v24 }
 0x1ff   : > { %v17309_v24 = vpack.c.bf16 %v12813_v30, %v12805_v10  ;;  %v17312_v10 = vpack.c.bf16 %v12767_v48, %v12752_v31 }
 0x200   : > { %v1859_v63 = vpop.f32.mrf.mxu2 }
 0x201   : > { %v1908_v14 = vpop.f32.mrf.mxu3  ;;  %v1763_v3 = vpop.f32.mrf.mxu0  ;;  %v1860_v32 = vadd.f32 %v1859_v63, %v12760_v42 }
 0x202   : > { %v1764_v28 = vadd.f32 %v1763_v3, %v12746_v2  ;;  %v1812_v56 = vpop.f32.mrf.mxu1  ;;  %v1808_v3 = vadd.f32 %v1807_v38, %v1759_v55 }
 0x204   : > { %v1813_v39 = vadd.f32 %v1812_v56, %v1764_v28  ;;  %v1909_v28 = vadd.f32 %v1908_v14, %v1860_v32 }
 0x206   : > { %v2128_v23 = vpack.c.bf16 %v1813_v39, %v1811_v6  ;;  %v1806_v39 = vadd.f32 %v1805_v21, %v1757_v33 }
 0x208   : > { %v1861_v7 = vpop.f32.mrf.mxu2  ;;  %2137 = vmatpush.bf16.xpose.msrb.mxu0 %v2128_v23  ;;  %v1754_v23 = vadd.f32 %v1753_v46, %v12746_v2 }
 0x209   : > { %v1862_v20 = vadd.f32 %v1861_v7, %v12760_v42  ;;  %v1910_v22 = vpop.f32.mrf.mxu3  ;;  %v1922_v61 = vpop.f32.mrf.mxu0  ;;  %v2127_v7 = vpack.c.bf16 %v1808_v3, %v1806_v39  ;;  %v1850_v3 = vadd.f32 %v12860_v53, %v12760_v42  ;;  %v1847_v53 = vadd.f32 %v12850_v34, %v12760_v42 }
 0x20a   : > { %v1923_v29 = vadd.f32 %v1922_v61, %v12880_v40  ;;  %v1971_v56 = vpop.f32.mrf.mxu1  ;;  %v1752_v61 = vadd.f32 %v1751_v35, %v12746_v2  ;;  %v1803_v14 = vadd.f32 %v1802_v4, %v1754_v23 }
 0x20b   : > { %v1911_v12 = vadd.f32 %v1910_v22, %v1862_v20  ;;  %v1906_v22 = vadd.f32 %v1905_v54, %v1857_v8  ;;  %v1749_v54 = vadd.f32 %v12844_v5, %v12746_v2  ;;  %v1899_v2 = vadd.f32 %v12862_v15, %v1850_v3 }
 0x20c   : > { %v12886_v6 = vadd.f32 %v1971_v56, %v1923_v29  ;;  %v1801_v46 = vadd.f32 %v12854_v52, %v1752_v61  ;;  %v1896_v39 = vadd.f32 %v12852_v27, %v1847_v53  ;;  %v17311_v3 = vpack.c.bf16 %v12793_v45, %v12785_v0 }
 0x20d   : > { %v2418_v63 = vpack.c.bf16 %v1911_v12, %v1909_v28  ;;  %v2417_v35 = vpack.c.bf16 %v1906_v22, %v1904_v36  ;;  %v1798_v52 = vadd.f32 %v12846_v13, %v1749_v54  ;;  %v2416_v28 = vpack.c.bf16 %v1901_v9, %v1899_v2 }
 0x20e   : > { %17302 = vst [vmem:[#allocation47_spill] sm:$0xff] %v12886_v6  ;;  %v2126_v20 = vpack.c.bf16 %v1803_v14, %v1801_v46  ;;  %v17314_v45 = vpack.c.bf16 %v12537_v50, %v12524_v41 }
 0x20f   : > { %2427 = vmatpush.bf16.xpose.msrb.mxu2 %v2418_v63  ;;  %v2125_v12 = vpack.c.bf16 %v1798_v52, %v12835_v58  ;;  %v17306_v58 = vpack.c.bf16 %v12827_v43, %v12815_v44 }
 0x210   : > { %v2020_v55 = vpop.f32.mrf.mxu2  ;;  %2138 = vmatpush.bf16.xpose.msrb.mxu0 %v2127_v7  ;;  %v2415_v7 = vpack.c.bf16 %v1896_v39, %v12848_v11  ;;  %v17316_v39 = vld [vmem:[#allocation21_spill] sm:$0xff] }
 0x211   : > { %v2021_v38 = vadd.f32 %v2020_v55, %v12890_v17  ;;  %v12896_v21 = vpop.f32.mrf.mxu0  ;;  %v2069_v47 = vpop.f32.mrf.mxu3 }
 0x212   : > { %v12898_v32 = vpop.f32.mrf.mxu1 }
 0x213   : > { %v12900_v33 = vadd.f32 %v2069_v47, %v2021_v38  ;;  %v17307_v38 = vpack.c.bf16 %v12833_v19, %v12825_v16  ;;  %v17308_v47 = vpack.c.bf16 %v12807_v18, %v12795_v59  ;;  %v17310_v16 = vpack.c.bf16 %v12787_v26, %v12775_v37 }
 0x215   : > { %17303 = vst [vmem:[#allocation48_spill] sm:$0xff] %v12900_v33 }
 0x217   : > { %2428 = vmatpush.bf16.xpose.msrb.mxu2 %v2417_v35 }
 0x218   : > { %v12909_v4 = vpop.f32.mrf.mxu2  ;;  %2139 = vmatpush.bf16.xpose.msrb.mxu0 %v2126_v20 }
 0x219   : > { %v1927_v25 = vpop.f32.mrf.mxu0  ;;  %v12912_v29 = vpop.f32.mrf.mxu3 }
 0x21a   : > { %17304 = vst [vmem:[#allocation49_spill] sm:$0xff] %v12912_v29  ;;  %v1928_v62 = vadd.f32 %v1927_v25, %v12880_v40  ;;  %v1976_v56 = vpop.f32.mrf.mxu1  ;;  %v17335_v29 = vld [vmem:[#allocation31_spill] sm:$0xff] }
 0x21c   : > { %v12917_v5 = vadd.f32 %v1976_v56, %v1928_v62  ;;  %v17313_v62 = vpack.c.bf16 %v12773_v1, %v12765_v57 }
 0x21f   : > { %2429 = vmatpush.bf16.xpose.msrb.mxu2 %v2416_v28  ;;  %v17315_v28 = vpack.c.bf16 %v12543_v60, %v12535_v49  ;;  %v17319_v60 = vld [vmem:[#allocation22_spill] sm:$0xff] }
 0x220   : > { %v2025_v51 = vpop.f32.mrf.mxu2  ;;  %2140 = vmatpush.bf16.xpose.msrb.mxu0 %v2125_v12 }
 0x221   : > { %v2026_v13 = vadd.f32 %v2025_v51, %v12890_v17  ;;  %v12924_v8 = vpop.f32.mrf.mxu0  ;;  %v2074_v63 = vpop.f32.mrf.mxu3 }
 0x222   : > { %v12926_v23 = vpop.f32.mrf.mxu1 }
 0x223   : > { %v12928_v15 = vadd.f32 %v2074_v63, %v2026_v13  ;;  %v17317_v13 = vld [vmem:[#allocation19_spill] sm:$0xff] }
 0x224   : > { %v17318_v63 = vpack.c.bf16 %v17316_v39, %v17317_v13 }
 0x225   : > { %17305 = vst [vmem:[#allocation50_spill] sm:$0xff] %v12928_v15 }
 0x227   : > { %2430 = vmatpush.bf16.xpose.msrb.mxu2 %v2415_v7 }
 0x228   : > { %v12931_v42 = vpop.f32.mrf.mxu2  ;;  %2141 = vmatpush.bf16.xpose.msrb.mxu0 %v17306_v58 }
 0x229   : > { %v1932_v34 = vpop.f32.mrf.mxu0  ;;  %v12936_v27 = vpop.f32.mrf.mxu3 }
 0x22a   : > { %v1933_v61 = vadd.f32 %v1932_v34, %v12880_v40  ;;  %v1981_v55 = vpop.f32.mrf.mxu1 }
 0x22c   : > { %v12939_v22 = vadd.f32 %v1981_v55, %v1933_v61  ;;  %v17320_v61 = vld [vmem:[#allocation20_spill] sm:$0xff] }
 0x22d   : > { %v17321_v55 = vpack.c.bf16 %v17319_v60, %v17320_v61  ;;  %v17332_v60 = vld [vmem:[#allocation28_spill] sm:$0xff] }
 0x22f   : > { %2431 = vmatpush.bf16.xpose.msrb.mxu2 %v17307_v38 }
 0x230   : > { %v2030_v11 = vpop.f32.mrf.mxu2  ;;  %2142 = vmatpush.bf16.xpose.msrb.mxu0 %v17308_v47 }
 0x231   : > { %v2031_v44 = vadd.f32 %v2030_v11, %v12890_v17  ;;  %v12948_v43 = vpop.f32.mrf.mxu0  ;;  %v2079_v14 = vpop.f32.mrf.mxu3 }
 0x232   : > { %v12950_v36 = vpop.f32.mrf.mxu1 }
 0x233   : > { %v12952_v46 = vadd.f32 %v2079_v14, %v2031_v44  ;;  %v17322_v14 = vld [vmem:[#allocation25_spill] sm:$0xff] }
 0x237   : > { %2432 = vmatpush.bf16.xpose.msrb.mxu2 %v17309_v24  ;;  %v17323_v24 = vld [vmem:[#allocation23_spill] sm:$0xff] }
 0x238   : > { %v12957_v19 = vpop.f32.mrf.mxu2  ;;  %2143 = vmatpush.bf16.xpose.msrb.mxu0 %v17310_v16  ;;  %v17324_v16 = vpack.c.bf16 %v17322_v14, %v17323_v24 }
 0x239   : > { %v1937_v59 = vpop.f32.mrf.mxu0  ;;  %v12962_v18 = vpop.f32.mrf.mxu3 }
 0x23a   : > { %v1938_v35 = vadd.f32 %v1937_v59, %v12880_v40  ;;  %v1986_v54 = vpop.f32.mrf.mxu1 }
 0x23c   : > { %v12965_v20 = vadd.f32 %v1986_v54, %v1938_v35 }
 0x23f   : > { %2433 = vmatpush.bf16.xpose.msrb.mxu2 %v17311_v3 }
 0x240   : > { %v2035_v30 = vpop.f32.mrf.mxu2  ;;  %2144 = vmatpush.bf16.xpose.msrb.mxu0 %v17312_v10  ;;  %v17326_v10 = vld [vmem:[#allocation24_spill] sm:$0xff] }
 0x241   : > { %v2036_v37 = vadd.f32 %v2035_v30, %v12890_v17  ;;  %v12974_v26 = vpop.f32.mrf.mxu0  ;;  %v2084_v9 = vpop.f32.mrf.mxu3  ;;  %v17325_v30 = vld [vmem:[#allocation26_spill] sm:$0xff] }
 0x242   : > { %v12976_v25 = vpop.f32.mrf.mxu1 }
 0x243   : > { %v12978_v52 = vadd.f32 %v2084_v9, %v2036_v37  ;;  %v17327_v37 = vpack.c.bf16 %v17325_v30, %v17326_v10 }
 0x247   : > { %2434 = vmatpush.bf16.xpose.msrb.mxu2 %v17313_v62  ;;  %2145 = vmatmul.bf16.vlgmr.msrb.gmra.mxu0 %v17314_v45 }
 0x248   : > { %v12986_v0 = vpop.f32.mrf.mxu2 }
 0x249   : > { %v1942_v31 = vpop.f32.mrf.mxu0  ;;  %v12988_v48 = vpop.f32.mrf.mxu3 }
 0x24a   : > { %v1943_v56 = vadd.f32 %v1942_v31, %v12880_v40  ;;  %v1991_v2 = vpop.f32.mrf.mxu1 }
 0x24c   : > { %v12991_v53 = vadd.f32 %v1991_v2, %v1943_v56  ;;  %v17328_v56 = vld [vmem:[#allocation29_spill] sm:$0xff]  ;;  %v17329_v2 = vld [vmem:[#allocation27_spill] sm:$0xff] }
 0x24e   : > { %2435 = vmatmul.bf16.vlgmr.msrb.gmra.mxu2 %v17315_v28  ;;  %v17330_v28 = vpack.c.bf16 %v17328_v56, %v17329_v2 }
 0x250   : > { %v2040_v1 = vpop.f32.mrf.mxu2 }
 0x251   : > { %v2041_v57 = vadd.f32 %v2040_v1, %v12890_v17  ;;  %v1944_v12 = vpop.f32.mrf.mxu0  ;;  %v2089_v41 = vpop.f32.mrf.mxu3 }
 0x252   : > { %v12997_v50 = vpop.f32.mrf.mxu1 }
 0x253   : > { %v12999_v51 = vadd.f32 %v2089_v41, %v2041_v57 }
 0x257   : > { %2150 = vmatmul.bf16.gmra.mxu0 %v17318_v63  ;;  %v17331_v63 = vld [vmem:[#allocation30_spill] sm:$0xff] }
 0x258   : > { %v13004_v7 = vpop.f32.mrf.mxu2  ;;  %v17333_v61 = vpack.c.bf16 %v17331_v63, %v17332_v60 }
 0x259   : > { %v1947_v58 = vpop.f32.mrf.mxu0  ;;  %v13006_v34 = vpop.f32.mrf.mxu3 }
 0x25a   : > { %v1996_v49 = vpop.f32.mrf.mxu1  ;;  %v1948_v2 = vadd.f32 %v1947_v58, %v12880_v40 }
 0x25e   : > { %2440 = vmatmul.bf16.gmra.mxu2 %v17321_v55 }
 0x260   : > { %v2045_v38 = vpop.f32.mrf.mxu2 }
 0x261   : > { %v1949_v11 = vpop.f32.mrf.mxu0  ;;  %v2094_v47 = vpop.f32.mrf.mxu3 }
 0x262   : > { %v1998_v44 = vpop.f32.mrf.mxu1 }
 0x267   : > { %2155 = vmatmul.bf16.gmra.mxu0 %v17324_v16 }
 0x268   : > { %v2047_v59 = vpop.f32.mrf.mxu2 }
 0x269   : > { %v1952_v35 = vpop.f32.mrf.mxu0  ;;  %v2096_v54 = vpop.f32.mrf.mxu3 }
 0x26a   : > { %v2001_v3 = vpop.f32.mrf.mxu1  ;;  %v1953_v55 = vadd.f32 %v1952_v35, %v12880_v40 }
 0x26e   : > { %2445 = vmatmul.bf16.gmra.mxu2 %v17327_v37 }
 0x270   : > { %v2050_v9 = vpop.f32.mrf.mxu2 }
 0x271   : > { %v1954_v62 = vpop.f32.mrf.mxu0  ;;  %v2099_v45 = vpop.f32.mrf.mxu3  ;;  %v2051_v35 = vadd.f32 %v2050_v9, %v12890_v17  ;;  %v2048_v9 = vadd.f32 %v2047_v59, %v12890_v17  ;;  %v2043_v59 = vadd.f32 %v13004_v7, %v12890_v17 }
 0x272   : > { %v2003_v31 = vpop.f32.mrf.mxu1  ;;  %v1955_v14 = vadd.f32 %v1954_v62, %v12880_v40 }
 0x274   : > { %v2004_v33 = vadd.f32 %v2003_v31, %v1955_v14 }
 0x277   : > { %2160 = vmatmul.bf16.gmra.mxu0 %v17330_v28  ;;  %v1950_v28 = vadd.f32 %v1949_v11, %v12880_v40 }
 0x278   : > { %v2052_v1 = vpop.f32.mrf.mxu2 }
 0x279   : > { %v1957_v57 = vpop.f32.mrf.mxu0  ;;  %v2101_v41 = vpop.f32.mrf.mxu3  ;;  %v2053_v62 = vadd.f32 %v2052_v1, %v12890_v17  ;;  %v2100_v1 = vadd.f32 %v2099_v45, %v2051_v35  ;;  %v17344_v35 = vld [vmem:[#allocation36_spill] sm:$0xff] }
 0x27a   : > { %v2006_v39 = vpop.f32.mrf.mxu1  ;;  %v1958_v13 = vadd.f32 %v1957_v57, %v12880_v40  ;;  %v2002_v57 = vadd.f32 %v2001_v3, %v1953_v55  ;;  %v1945_v55 = vadd.f32 %v1944_v12, %v12880_v40 }
 0x27b   : > { %v2102_v14 = vadd.f32 %v2101_v41, %v2053_v62  ;;  %v1930_v41 = vadd.f32 %v12924_v8, %v12880_v40  ;;  %v1925_v8 = vadd.f32 %v12896_v21, %v12880_v40  ;;  %v2023_v21 = vadd.f32 %v12909_v4, %v12890_v17  ;;  %v17354_v4 = vld [vmem:[#allocation40_spill] sm:$0xff] }
 0x27c   : > { %v2007_v10 = vadd.f32 %v2006_v39, %v1958_v13  ;;  %v1997_v13 = vadd.f32 %v1996_v49, %v1948_v2  ;;  %v2135_v6 = vpack.c.bf16 %v2004_v33, %v2002_v57  ;;  %v1940_v33 = vadd.f32 %v12974_v26, %v12880_v40 }
 0x27d   : > { %v2028_v57 = vadd.f32 %v12931_v42, %v12890_v17 }
 0x27e   : > { %2450 = vmatmul.bf16.gmra.mxu2 %v17333_v61  ;;  %v17334_v61 = vld [vmem:[#allocation33_spill] sm:$0xff]  ;;  %v1989_v45 = vadd.f32 %v12976_v25, %v1940_v33  ;;  %v17341_v25 = vld [vmem:[#allocation35_spill] sm:$0xff] }
 0x27f   : > { %v17336_v39 = vpack.c.bf16 %v17334_v61, %v17335_v29  ;;  %v17349_v61 = vld [vmem:[#allocation41_spill] sm:$0xff] }
 0x280   : > { %v2055_v24 = vpop.f32.mrf.mxu2  ;;  %v2132_v2 = vpack.c.bf16 %v1989_v45, %v12965_v20 }
 0x281   : > { %v1959_v16 = vpop.f32.mrf.mxu0  ;;  %v2104_v30 = vpop.f32.mrf.mxu3  ;;  %v2056_v63 = vadd.f32 %v2055_v24, %v12890_v17 }
 0x282   : > { %v1960_v37 = vadd.f32 %v1959_v16, %v12880_v40  ;;  %v2008_v56 = vpop.f32.mrf.mxu1  ;;  %v1999_v16 = vadd.f32 %v1998_v44, %v1950_v28  ;;  %v1994_v44 = vadd.f32 %v12997_v50, %v1945_v55  ;;  %v17360_v55 = vld [vmem:[#allocation44_spill] sm:$0xff] }
 0x283   : > { %v2105_v11 = vadd.f32 %v2104_v30, %v2056_v63  ;;  %v17337_v30 = vld [vmem:[#allocation34_spill] sm:$0xff] }
 0x284   : > { %v2009_v15 = vadd.f32 %v2008_v56, %v1960_v37  ;;  %v2134_v29 = vpack.c.bf16 %v1999_v16, %v1997_v13  ;;  %v2097_v56 = vadd.f32 %v2096_v54, %v2048_v9  ;;  %v2133_v26 = vpack.c.bf16 %v1994_v44, %v12991_v53  ;;  %v17352_v16 = vld [vmem:[#allocation48_spill] sm:$0xff]  ;;  %v13103_v9 = vld [vmem:[%s17363_s9] ss:$0 sm:$0xff] }
 0x285   : > { %v2092_v54 = vadd.f32 %v13006_v34, %v2043_v59  ;;  %v2033_v53 = vadd.f32 %v12957_v19, %v12890_v17 }
 0x286   : > { %v2136_v60 = vpack.c.bf16 %v2009_v15, %v2007_v10  ;;  %v2046_v15 = vadd.f32 %v2045_v38, %v12890_v17  ;;  %v17338_v10 = vld [vmem:[#allocation32_spill] sm:$0xff]  ;;  %v2425_v38 = vpack.c.bf16 %v2102_v14, %v2100_v1 }
 0x287   : > { %2165 = vmatmul.bf16.gmra.mxu0 %v17336_v39  ;;  %v17339_v37 = vpack.c.bf16 %v17337_v30, %v17338_v10  ;;  %v2423_v34 = vpack.c.bf16 %v2092_v54, %v12999_v51  ;;  %v2082_v63 = vadd.f32 %v12962_v18, %v2033_v53  ;;  %v17350_v39 = vld [vmem:[#allocation39_spill] sm:$0xff] }
 0x288   : > { %v2057_v58 = vpop.f32.mrf.mxu2  ;;  %2338 = vmatpush.bf16.msrb.mxu1 %v2136_v60  ;;  %v2095_v12 = vadd.f32 %v2094_v47, %v2046_v15  ;;  %v2038_v47 = vadd.f32 %v12986_v0, %v12890_v17  ;;  %v17343_v60 = vld [vmem:[#allocation38_spill] sm:$0xff]  ;;  %v17351_v13 = vpack.c.bf16 %v17349_v61, %v17350_v39 }
 0x289   : > { %v2058_v3 = vadd.f32 %v2057_v58, %v12890_v17  ;;  %v2106_v31 = vpop.f32.mrf.mxu3  ;;  %v2421_v42 = vpack.c.bf16 %v2082_v63, %v12952_v46  ;;  %v17353_v17 = vld [vmem:[#allocation42_spill] sm:$0xff]  ;;  %v17356_v46 = vld [vmem:[#allocation45_spill] sm:$0xff] }
 0x28a   : > { %v2424_v50 = vpack.c.bf16 %v2097_v56, %v2095_v12  ;;  %v2087_v0 = vadd.f32 %v12988_v48, %v2038_v47  ;;  %v1974_v48 = vadd.f32 %v12898_v32, %v1925_v8  ;;  %v17347_v32 = vld [vmem:[#allocation49_spill] sm:$0xff] }
 0x28b   : > { %v2107_v24 = vadd.f32 %v2106_v31, %v2058_v3  ;;  %v17359_v31 = vld [vmem:[#allocation46_spill] sm:$0xff] }
 0x28c   : > { %2339 = vmatpush.bf16.msrb.mxu1 %v2135_v6  ;;  %v1935_v6 = vadd.f32 %v12948_v43, %v12880_v40  ;;  %v17340_v43 = vld [vmem:[#allocation37_spill] sm:$0xff]  ;;  %v2422_v19 = vpack.c.bf16 %v2087_v0, %v12978_v52  ;;  %v17345_v40 = vpack.c.bf16 %v17343_v60, %v17344_v35  ;;  %v17348_v52 = vld [vmem:[#allocation50_spill] sm:$0xff]  ;;  %v17361_v15 = vpack.c.bf16 %v17359_v31, %v17360_v55 }
 0x28d   : > { %v2426_v49 = vpack.c.bf16 %v2107_v24, %v2105_v11  ;;  %v17342_v28 = vpack.c.bf16 %v17340_v43, %v17341_v25  ;;  %v17357_v11 = vld [vmem:[#allocation43_spill] sm:$0xff] }
 0x28e   : > { %2455 = vmatmul.bf16.gmra.mxu2 %v17339_v37  ;;  %v1984_v7 = vadd.f32 %v12950_v36, %v1935_v6  ;;  %v1979_v36 = vadd.f32 %v12926_v23, %v1930_v41  ;;  %v2077_v23 = vadd.f32 %v12936_v27, %v2028_v57  ;;  %v17355_v27 = vpack.c.bf16 %v17353_v17, %v17354_v4 }
 0x28f   : > { %2628 = vmatpush.bf16.msrb.mxu3 %v2426_v49  ;;  %v17358_v3 = vpack.c.bf16 %v17356_v46, %v17357_v11 }
 0x290   : > { %2340 = vmatpush.bf16.msrb.mxu1 %v2134_v29  ;;  %v2131_v20 = vpack.c.bf16 %v1984_v7, %v12939_v22  ;;  %v2130_v51 = vpack.c.bf16 %v1979_v36, %v12917_v5  ;;  %v17346_v22 = vld [vmem:[#allocation47_spill] sm:$0xff]  ;;  %v2072_v5 = vadd.f32 %v17347_v32, %v2023_v21  ;;  %v2420_v62 = vpack.c.bf16 %v2077_v23, %v17348_v52 }
 0x291   : > { %v2129_v18 = vpack.c.bf16 %v1974_v48, %v17346_v22 }
 0x292   : > { %v2419_v58 = vpack.c.bf16 %v2072_v5, %v17352_v16 }
 0x293   : > { %2629 = vmatpush.bf16.msrb.mxu3 %v2425_v38 }
 0x294   : > { %2341 = vmatpush.bf16.msrb.mxu1 %v2133_v26 }
 0x297   : > { %2630 = vmatpush.bf16.msrb.mxu3 %v2424_v50  ;;  %2170 = vmatmul.bf16.gmra.mxu0 %v17342_v28 }
 0x298   : > { %2342 = vmatpush.bf16.msrb.mxu1 %v2132_v2 }
 0x29b   : > { %2631 = vmatpush.bf16.msrb.mxu3 %v2423_v34 }
 0x29c   : > { %2343 = vmatpush.bf16.msrb.mxu1 %v2131_v20 }
 0x29e   : > { %2460 = vmatmul.bf16.gmra.mxu2 %v17345_v40 }
 0x29f   : > { %2632 = vmatpush.bf16.msrb.mxu3 %v2422_v19 }
 0x2a0   : > { %2344 = vmatpush.bf16.msrb.mxu1 %v2130_v51 }
 0x2a3   : > { %2633 = vmatpush.bf16.msrb.mxu3 %v2421_v42 }
 0x2a4   : > { %2345 = vmatpush.bf16.msrb.mxu1 %v2129_v18 }
 0x2a7   : > { %2634 = vmatpush.bf16.msrb.mxu3 %v2420_v62  ;;  %2175 = vmatmul.bf16.gmra.mxu0 %v17351_v13 }
 0x2ab   : > { %2635 = vmatpush.bf16.msrb.mxu3 %v2419_v58 }
 0x2ae   : > { %2465 = vmatmul.bf16.gmra.mxu2 %v17355_v27 }
 0x2b7   : > { %2180 = vmatmul.bf16.gmra.mxu0 %v17358_v3 }
 0x2be   : > { %2470 = vmatmul.bf16.gmra.mxu2 %v17361_v15 }
 0x2c4   : > { %v2146_v1 = vpop.f32.mrf.mxu0 }
 0x2c5   : > { %v13106_v14 = vadd.f32 %v13103_v9, %v2146_v1 }
 0x2c7   : > { %2186 = vmax.xlane.f32.xlu1 %v13106_v14 }
 0x2cc   : > { %v2148_v24 = vpop.f32.mrf.mxu0 }
 0x2cd   : > { %v13110_v29 = vadd.f32 %v13103_v9, %v2148_v24 }
 0x2cf   : > { %2188 = vmax.xlane.f32.xlu1 %v13110_v29 }
 0x2d1   : > { %v2436_v49 = vpop.f32.mrf.mxu2 }
 0x2d2   : > { %v13114_v33 = vadd.f32 %v13103_v9, %v2436_v49 }
 0x2d4   : > { %2476 = vmax.xlane.f32.xlu0 %v13114_v33  ;;  %v2151_v44 = vpop.f32.mrf.mxu0 }
 0x2d5   : > { %v13118_v10 = vadd.f32 %v13103_v9, %v2151_v44 }
 0x2d9   : > { %v2438_v30 = vpop.f32.mrf.mxu2 }
 0x2da   : > { %v13129_v59 = vadd.f32 %v13103_v9, %v2438_v30 }
 0x2dc   : > { %2190 = vmax.xlane.f32.xlu0 %v13118_v10  ;;  %v2153_v37 = vpop.f32.mrf.mxu0 }
 0x2dd   : > { %v13122_v12 = vadd.f32 %v13103_v9, %v2153_v37 }
 0x2df   : > { %2192 = vmax.xlane.f32.xlu1 %v13122_v12 }
 0x2e1   : > { %v2441_v56 = vpop.f32.mrf.mxu2 }
 0x2e2   : > { %v13126_v38 = vadd.f32 %v13103_v9, %v2441_v56 }
 0x2e4   : > { %2480 = vmax.xlane.f32.xlu2 %v13126_v38  ;;  %2478 = vmax.xlane.f32.xlu0 %v13129_v59  ;;  %v2156_v6 = vpop.f32.mrf.mxu0 }
 0x2e5   : > { %v13134_v45 = vadd.f32 %v13103_v9, %v2156_v6 }
 0x2e7   : > { %2194 = vmax.xlane.f32.xlu1 %v13134_v45 }
 0x2e9   : > { %v2443_v26 = vpop.f32.mrf.mxu2 }
 0x2ea   : > { %v13138_v50 = vadd.f32 %v13103_v9, %v2443_v26 }
 0x2ec   : > { %2482 = vmax.xlane.f32.xlu2 %v13138_v50  ;;  %v2158_v47 = vpop.f32.mrf.mxu0 }
 0x2ed   : > { %v13142_v41 = vadd.f32 %v13103_v9, %v2158_v47 }
 0x2f1   : > { %v2446_v54 = vpop.f32.mrf.mxu2 }
 0x2f2   : > { %v13150_v25 = vadd.f32 %v13103_v9, %v2446_v54 }
 0x2f4   : > { %2196 = vmax.xlane.f32.xlu2 %v13142_v41  ;;  %v2161_v7 = vpop.f32.mrf.mxu0 }
 0x2f5   : > { %v13146_v2 = vadd.f32 %v13103_v9, %v2161_v7 }
 0x2f7   : > { %2198 = vmax.xlane.f32.xlu1 %v13146_v2 }
 0x2f9   : > { %v2448_v43 = vpop.f32.mrf.mxu2 }
 0x2fa   : > { %v13153_v28 = vadd.f32 %v13103_v9, %v2448_v43 }
 0x2fc   : > { %2484 = vmax.xlane.f32.xlu2 %v13150_v25  ;;  %2486 = vmax.xlane.f32.xlu0 %v13153_v28  ;;  %v2163_v53 = vpop.f32.mrf.mxu0 }
 0x2fd   : > { %v13161_v8 = vadd.f32 %v13103_v9, %v2163_v53 }
 0x301   : > { %v2451_v0 = vpop.f32.mrf.mxu2 }
 0x302   : > { %v13158_v34 = vadd.f32 %v13103_v9, %v2451_v0 }
 0x304   : > { %2200 = vmax.xlane.f32.xlu2 %v13161_v8  ;;  %2488 = vmax.xlane.f32.xlu0 %v13158_v34  ;;  %v2166_v36 = vpop.f32.mrf.mxu0 }
 0x305   : > { %v13166_v57 = vadd.f32 %v13103_v9, %v2166_v36 }
 0x309   : > { %v2453_v20 = vpop.f32.mrf.mxu2 }
 0x30a   : > { %v13169_v63 = vadd.f32 %v13103_v9, %v2453_v20 }
 0x30c   : > { %2202 = vmax.xlane.f32.xlu0 %v13166_v57  ;;  %2490 = vmax.xlane.f32.xlu1 %v13169_v63  ;;  %v2168_v19 = vpop.f32.mrf.mxu0 }
 0x30d   : > { %v13177_v60 = vadd.f32 %v13103_v9, %v2168_v19 }
 0x311   : > { %v2456_v48 = vpop.f32.mrf.mxu2 }
 0x312   : > { %v13174_v51 = vadd.f32 %v13103_v9, %v2456_v48 }
 0x314   : > { %2492 = vmax.xlane.f32.xlu2 %v13174_v51  ;;  %2204 = vmax.xlane.f32.xlu1 %v13177_v60  ;;  %v2171_v37 = vpop.f32.mrf.mxu0 }
 0x315   : > { %v13232_v36 = vadd.f32 %v13103_v9, %v2171_v37 }
 0x319   : > { %v2458_v35 = vpop.f32.mrf.mxu2 }
 0x31a   : > { %v13182_v40 = vadd.f32 %v13103_v9, %v2458_v35 }
 0x31c   : > { %2494 = vmax.xlane.f32.xlu0 %v13182_v40  ;;  %v2173_v54 = vpop.f32.mrf.mxu0 }
 0x31d   : > { %v13235_v48 = vadd.f32 %v13103_v9, %v2173_v54 }
 0x321   : > { %v2461_v21 = vpop.f32.mrf.mxu2 }
 0x322   : > { %v13186_v23 = vadd.f32 %v13103_v9, %v2461_v21 }
 0x324   : > { %2496 = vmax.xlane.f32.xlu1 %v13186_v23  ;;  %v2176_v35 = vpop.f32.mrf.mxu0 }
 0x329   : > { %v2463_v42 = vpop.f32.mrf.mxu2 }
 0x32a   : > { %v13190_v22 = vadd.f32 %v13103_v9, %v2463_v42 }
 0x32c   : > { %2498 = vmax.xlane.f32.xlu2 %v13190_v22 }
 0x33a   : > { %v2187_v18 = vpop.xlane.xlu1 %2186 }
 0x33b   : > { %v2218_v32 = vsub.f32 %v13106_v14, %v2187_v18 }
 0x33d   : > { %v2234_v5 = vmul.f32 1.442695, %v2218_v32 }
 0x33f   : > { %11462 = vpow2.f32 %v2234_v5 }
 0x342   : > { %v2189_v52 = vpop.xlane.xlu1 %2188 }
 0x343   : > { %v2219_v62 = vsub.f32 %v13110_v29, %v2189_v52 }
 0x345   : > { %v13195_v61 = vpop.eup %11462  ;;  %v2236_v39 = vmul.f32 1.442695, %v2219_v62 }
 0x346   : > { %2266 = vadd.xlane.f32.xlu0 %v13195_v61 }
 0x347   : > { %11464 = vpow2.f32 %v2236_v39  ;;  %v2477_v13 = vpop.xlane.xlu0 %2476  ;;  %v2178_v39 = vpop.f32.mrf.mxu0 }
 0x348   : > { %v2508_v16 = vsub.f32 %v13114_v33, %v2477_v13 }
 0x34a   : > { %v2524_v58 = vmul.f32 1.442695, %v2508_v16 }
 0x34c   : > { %11466 = vpow2.f32 %v2524_v58 }
 0x34d   : > { %v13199_v17 = vpop.eup %11464 }
 0x34e   : > { %2268 = vadd.xlane.f32.xlu1 %v13199_v17 }
 0x34f   : > { %v2191_v4 = vpop.xlane.xlu0 %2190 }
 0x350   : > { %v2220_v27 = vsub.f32 %v13118_v10, %v2191_v4 }
 0x352   : > { %v13203_v46 = vpop.eup %11466  ;;  %v2238_v11 = vmul.f32 1.442695, %v2220_v27  ;;  %v2193_v3 = vpop.xlane.xlu1 %2192  ;;  %v13253_v27 = vadd.f32 %v13103_v9, %v2178_v39 }
 0x353   : > { %2556 = vadd.xlane.f32.xlu2 %v13203_v46  ;;  %v2221_v44 = vsub.f32 %v13122_v12, %v2193_v3 }
 0x354   : > { %11468 = vpow2.f32 %v2238_v11 }
 0x357   : > { %v2481_v31 = vpop.xlane.xlu2 %2480  ;;  %v2479_v55 = vpop.xlane.xlu0 %2478 }
 0x358   : > { %v2510_v15 = vsub.f32 %v13126_v38, %v2481_v31  ;;  %v2509_v1 = vsub.f32 %v13129_v59, %v2479_v55  ;;  %v2240_v38 = vmul.f32 1.442695, %v2221_v44 }
 0x35a   : > { %v13208_v14 = vpop.eup %11468  ;;  %v2528_v24 = vmul.f32 1.442695, %v2510_v15  ;;  %v2526_v29 = vmul.f32 1.442695, %v2509_v1  ;;  %v2195_v49 = vpop.xlane.xlu1 %2194 }
 0x35b   : > { %2270 = vadd.xlane.f32.xlu2 %v13208_v14  ;;  %v2222_v33 = vsub.f32 %v13134_v45, %v2195_v49 }
 0x35c   : > { %11470 = vpow2.f32 %v2528_v24 }
 0x35d   : > { %11472 = vpow2.f32 %v2526_v29  ;;  %v2242_v30 = vmul.f32 1.442695, %v2222_v33  ;;  %v13268_v29 = vadd.f32 %v13103_v9, %v2176_v35 }
 0x35f   : > { %v2483_v10 = vpop.xlane.xlu2 %2482  ;;  %11474 = vpow2.f32 %v2242_v30 }
 0x360   : > { %v2511_v56 = vsub.f32 %v13138_v50, %v2483_v10 }
 0x362   : > { %v13214_v59 = vpop.eup %11470  ;;  %v2530_v6 = vmul.f32 1.442695, %v2511_v56 }
 0x363   : > { %v13216_v26 = vpop.eup %11472  ;;  %2560 = vadd.xlane.f32.xlu1 %v13214_v59 }
 0x364   : > { %11476 = vpow2.f32 %v2530_v6  ;;  %2558 = vadd.xlane.f32.xlu0 %v13216_v26 }
 0x365   : > { %11478 = vpow2.f32 %v2240_v38  ;;  %v13220_v45 = vpop.eup %11474 }
 0x367   : > { %v2197_v12 = vpop.xlane.xlu2 %2196 }
 0x368   : > { %v2223_v7 = vsub.f32 %v13142_v41, %v2197_v12  ;;  %v2466_v41 = vpop.f32.mrf.mxu2 }
 0x369   : > { %v13243_v32 = vadd.f32 %v13103_v9, %v2466_v41 }
 0x36a   : > { %v13222_v47 = vpop.eup %11476  ;;  %v2244_v53 = vmul.f32 1.442695, %v2223_v7  ;;  %v2199_v5 = vpop.xlane.xlu1 %2198 }
 0x36b   : > { %v13224_v50 = vpop.eup %11478  ;;  %2562 = vadd.xlane.f32.xlu2 %v13222_v47  ;;  %2274 = vadd.xlane.f32.xlu1 %v13220_v45 }
 0x36c   : > { %2272 = vadd.xlane.f32.xlu0 %v13224_v50  ;;  %11480 = vpow2.f32 %v2244_v53 }
 0x36f   : > { %v2487_v43 = vpop.xlane.xlu0 %2486  ;;  %v2485_v20 = vpop.xlane.xlu2 %2484 }
 0x370   : > { %v2513_v0 = vsub.f32 %v13153_v28, %v2487_v43  ;;  %v2512_v21 = vsub.f32 %v13150_v25, %v2485_v20  ;;  %v2224_v25 = vsub.f32 %v13146_v2, %v2199_v5  ;;  %v2468_v13 = vpop.f32.mrf.mxu2 }
 0x371   : > { %v13256_v3 = vadd.f32 %v13103_v9, %v2468_v13 }
 0x372   : > { %v2534_v19 = vmul.f32 1.442695, %v2513_v0  ;;  %v2532_v42 = vmul.f32 1.442695, %v2512_v21  ;;  %v13240_v18 = vpop.eup %11480  ;;  %v2246_v58 = vmul.f32 1.442695, %v2224_v25 }
 0x373   : > { %2206 = vmax.xlane.f32.xlu2 %v13232_v36 }
 0x374   : > { %2208 = vmax.xlane.f32.xlu0 %v13235_v48  ;;  %11482 = vpow2.f32 %v2534_v19 }
 0x375   : > { %11484 = vpow2.f32 %v2532_v42 }
 0x377   : > { %v2489_v28 = vpop.xlane.xlu0 %2488  ;;  %v2201_v4 = vpop.xlane.xlu2 %2200 }
 0x378   : > { %v2514_v62 = vsub.f32 %v13158_v34, %v2489_v28  ;;  %v2225_v31 = vsub.f32 %v13161_v8, %v2201_v4  ;;  %v2471_v8 = vpop.f32.mrf.mxu2 }
 0x379   : > { %v13278_v10 = vadd.f32 %v13103_v9, %v2471_v8 }
 0x37a   : > { %v13245_v52 = vpop.eup %11482  ;;  %v2536_v16 = vmul.f32 1.442695, %v2514_v62  ;;  %v2248_v15 = vmul.f32 1.442695, %v2225_v31 }
 0x37b   : > { %2276 = vadd.xlane.f32.xlu2 %v13240_v18  ;;  %2566 = vadd.xlane.f32.xlu1 %v13245_v52  ;;  %v13258_v34 = vpop.eup %11484 }
 0x37c   : > { %2500 = vmax.xlane.f32.xlu0 %v13243_v32  ;;  %11486 = vpow2.f32 %v2536_v16 }
 0x37d   : > { %11488 = vpow2.f32 %v2246_v58 }
 0x37e   : > { %11490 = vpow2.f32 %v2248_v15 }
 0x37f   : > { %v2491_v11 = vpop.xlane.xlu1 %2490  ;;  %v2203_v55 = vpop.xlane.xlu0 %2202 }
 0x380   : > { %v2515_v2 = vsub.f32 %v13169_v63, %v2491_v11  ;;  %v2226_v54 = vsub.f32 %v13166_v57, %v2203_v55 }
 0x382   : > { %v2538_v1 = vmul.f32 1.442695, %v2515_v2  ;;  %v13265_v24 = vpop.eup %11486  ;;  %v2250_v7 = vmul.f32 1.442695, %v2226_v54 }
 0x383   : > { %2212 = vmax.xlane.f32.xlu2 %v13253_v27  ;;  %2502 = vmax.xlane.f32.xlu1 %v13256_v3  ;;  %v13270_v33 = vpop.eup %11488 }
 0x384   : > { %2564 = vadd.xlane.f32.xlu0 %v13258_v34  ;;  %11492 = vpow2.f32 %v2538_v1  ;;  %v13280_v56 = vpop.eup %11490 }
 0x387   : > { %v2493_v49 = vpop.xlane.xlu2 %2492  ;;  %v2205_v38 = vpop.xlane.xlu1 %2204 }
 0x388   : > { %v2516_v63 = vsub.f32 %v13174_v51, %v2493_v49  ;;  %v2181_v51 = vpop.f32.mrf.mxu0  ;;  %v2227_v19 = vsub.f32 %v13177_v60, %v2205_v38 }
 0x389   : > { %v13304_v62 = vadd.f32 %v13103_v9, %v2181_v51 }
 0x38a   : > { %v2540_v37 = vmul.f32 1.442695, %v2516_v63  ;;  %v13282_v12 = vpop.eup %11492  ;;  %v2252_v41 = vmul.f32 1.442695, %v2227_v19 }
 0x38b   : > { %2568 = vadd.xlane.f32.xlu2 %v13265_v24  ;;  %2210 = vmax.xlane.f32.xlu1 %v13268_v29 }
 0x38c   : > { %2278 = vadd.xlane.f32.xlu0 %v13270_v33 }
 0x38f   : > { %v2495_v44 = vpop.xlane.xlu0 %2494 }
 0x390   : > { %v2517_v30 = vsub.f32 %v13182_v40, %v2495_v44  ;;  %v2473_v40 = vpop.f32.mrf.mxu2  ;;  %v2183_v35 = vpop.f32.mrf.mxu0 }
 0x391   : > { %v13291_v0 = vadd.f32 %v13103_v9, %v2473_v40  ;;  %v13307_v25 = vadd.f32 %v13103_v9, %v2183_v35 }
 0x392   : > { %v2542_v6 = vmul.f32 1.442695, %v2517_v30 }
 0x393   : > { %2504 = vmax.xlane.f32.xlu2 %v13278_v10  ;;  %2280 = vadd.xlane.f32.xlu1 %v13280_v56 }
 0x394   : > { %11494 = vpow2.f32 %v2542_v6  ;;  %2570 = vadd.xlane.f32.xlu0 %v13282_v12 }
 0x395   : > { %11496 = vpow2.f32 %v2540_v37 }
 0x396   : > { %11498 = vpow2.f32 %v2250_v7 }
 0x397   : > { %v2497_v53 = vpop.xlane.xlu1 %2496  ;;  %11500 = vpow2.f32 %v2252_v41 }
 0x398   : > { %v2518_v57 = vsub.f32 %v13186_v23, %v2497_v53 }
 0x39a   : > { %v13288_v43 = vpop.eup %11494  ;;  %v2544_v28 = vmul.f32 1.442695, %v2518_v57 }
 0x39b   : > { %v13293_v20 = vpop.eup %11496  ;;  %2574 = vadd.xlane.f32.xlu2 %v13288_v43 }
 0x39c   : > { %2572 = vadd.xlane.f32.xlu1 %v13293_v20  ;;  %2506 = vmax.xlane.f32.xlu0 %v13291_v0  ;;  %v13301_v5 = vpop.eup %11498 }
 0x39d   : > { %v13312_v23 = vpop.eup %11500 }
 0x39f   : > { %v2499_v21 = vpop.xlane.xlu2 %2498 }
 0x3a0   : > { %v2519_v42 = vsub.f32 %v13190_v22, %v2499_v21 }
 0x3a2   : > { %v2546_v60 = vmul.f32 1.442695, %v2519_v42 }
 0x3a3   : > { %2282 = vadd.xlane.f32.xlu2 %v13301_v5 }
 0x3a4   : > { %11502 = vpow2.f32 %v2546_v60  ;;  %2216 = vmax.xlane.f32.xlu1 %v13307_v25  ;;  %2214 = vmax.xlane.f32.xlu0 %v13304_v62 }
 0x3a5   : > { %11504 = vpow2.f32 %v2544_v28 }
 0x3aa   : > { %v13314_v22 = vpop.eup %11502 }
 0x3ab   : > { %v13316_v39 = vpop.eup %11504  ;;  %2578 = vadd.xlane.f32.xlu2 %v13314_v22 }
 0x3ac   : > { %2284 = vadd.xlane.f32.xlu0 %v13312_v23  ;;  %2576 = vadd.xlane.f32.xlu1 %v13316_v39 }
 0x3b9   : > { %v2267_v9 = vpop.xlane.xlu0 %2266 }
 0x3ba   : > { %11506 = vrcp.f32 %v2267_v9 }
 0x3c0   : > { %v11507_v16 = vpop.eup %11506 }
 0x3c1   : > { %v2269_v13 = vpop.xlane.xlu1 %2268  ;;  %v2314_v4 = vmul.f32 %v11507_v16, %v13195_v61 }
 0x3c2   : > { %11508 = vrcp.f32 %v2269_v13 }
 0x3c6   : > { %v2557_v2 = vpop.xlane.xlu2 %2556 }
 0x3c7   : > { %11510 = vrcp.f32 %v2557_v2 }
 0x3c8   : > { %v11509_v58 = vpop.eup %11508 }
 0x3c9   : > { %v2315_v11 = vmul.f32 %v11509_v58, %v13199_v17 }
 0x3cb   : > { %v2330_v31 = vpack.c.bf16 %v2315_v11, %v2314_v4 }
 0x3cd   : > { %2346 = vmatmul.bf16.vlgmr.msrb.gmra.mxu1 %v2330_v31  ;;  %v11511_v1 = vpop.eup %11510 }
 0x3ce   : > { %v2271_v55 = vpop.xlane.xlu2 %2270  ;;  %v2604_v44 = vmul.f32 %v11511_v1, %v13203_v46 }
 0x3d6   : > { %v2561_v49 = vpop.xlane.xlu1 %2560 }
 0x3d7   : > { %v2559_v15 = vpop.xlane.xlu0 %2558 }
 0x3d8   : > { %11512 = vrcp.f32 %v2559_v15 }
 0x3d9   : > { %11514 = vrcp.f32 %v2271_v55 }
 0x3de   : > { %v11513_v8 = vpop.eup %11512  ;;  %v2563_v63 = vpop.xlane.xlu2 %2562 }
 0x3df   : > { %v2605_v30 = vmul.f32 %v11513_v8, %v13216_v26  ;;  %v2273_v37 = vpop.xlane.xlu0 %2272  ;;  %v11515_v17 = vpop.eup %11514 }
 0x3e0   : > { %11516 = vrcp.f32 %v2273_v37  ;;  %v2275_v54 = vpop.xlane.xlu1 %2274  ;;  %v2316_v7 = vmul.f32 %v11515_v17, %v13208_v14 }
 0x3e1   : > { %v2620_v61 = vpack.c.bf16 %v2605_v30, %v2604_v44  ;;  %11518 = vrcp.f32 %v2563_v63 }
 0x3e2   : > { %11520 = vrcp.f32 %v2561_v49 }
 0x3e3   : > { %2636 = vmatmul.bf16.vlgmr.msrb.gmra.mxu3 %v2620_v61 }
 0x3e6   : > { %v11517_v38 = vpop.eup %11516  ;;  %v2207_v6 = vpop.xlane.xlu2 %2206 }
 0x3e7   : > { %v2228_v51 = vsub.f32 %v13232_v36, %v2207_v6  ;;  %v2209_v40 = vpop.xlane.xlu0 %2208  ;;  %v2317_v53 = vmul.f32 %v11517_v38, %v13224_v50  ;;  %v11519_v57 = vpop.eup %11518 }
 0x3e8   : > { %v2229_v46 = vsub.f32 %v13235_v48, %v2209_v40  ;;  %v11521_v41 = vpop.eup %11520  ;;  %v2607_v21 = vmul.f32 %v11519_v57, %v13222_v47 }
 0x3e9   : > { %v2254_v26 = vmul.f32 1.442695, %v2228_v51  ;;  %v2331_v19 = vpack.c.bf16 %v2317_v53, %v2316_v7  ;;  %v2606_v14 = vmul.f32 %v11521_v41, %v13214_v59 }
 0x3ea   : > { %v2256_v35 = vmul.f32 1.442695, %v2229_v46 }
 0x3eb   : > { %11522 = vpow2.f32 %v2254_v26  ;;  %2351 = vmatmul.bf16.gmra.mxu1 %v2331_v19  ;;  %v2621_v60 = vpack.c.bf16 %v2607_v21, %v2606_v14 }
 0x3ec   : > { %11524 = vpow2.f32 %v2256_v35 }
 0x3ed   : > { %11526 = vrcp.f32 %v2275_v54 }
 0x3ee   : > { %v2277_v42 = vpop.xlane.xlu2 %2276  ;;  %v2567_v28 = vpop.xlane.xlu1 %2566 }
 0x3ef   : > { %11528 = vrcp.f32 %v2277_v42  ;;  %v2501_v36 = vpop.xlane.xlu0 %2500 }
 0x3f0   : > { %v2520_v50 = vsub.f32 %v13243_v32, %v2501_v36 }
 0x3f1   : > { %v13332_v48 = vpop.eup %11522 }
 0x3f2   : > { %v13334_v9 = vpop.eup %11524  ;;  %v2548_v13 = vmul.f32 1.442695, %v2520_v50  ;;  %2286 = vadd.xlane.f32.xlu0 %v13332_v48  ;;  %v9664_v50 = vld [vmem:[%s12238_s12 + $0x78] sm:$0xf0] }
 0x3f3   : > { %v11527_v16 = vpop.eup %11526  ;;  %2288 = vadd.xlane.f32.xlu1 %v13334_v9  ;;  %2641 = vmatmul.bf16.gmra.mxu3 %v2621_v60  ;;  %v9654_v60 = vld [vmem:[%s12238_s12 + $0x60] sm:$0xf] }
 0x3f4   : > { %11530 = vpow2.f32 %v2548_v13  ;;  %v2318_v59 = vmul.f32 %v11527_v16, %v13220_v45  ;;  %v11064_v13 = vld [vmem:[%s12238_s12 + $0x64] sm:$0xf0] }
 0x3f5   : > { %v11529_v47 = vpop.eup %11528  ;;  %11532 = vrcp.f32 %v2567_v28 }
 0x3f6   : > { %v2213_v58 = vpop.xlane.xlu2 %2212  ;;  %v2319_v32 = vmul.f32 %v11529_v47, %v13240_v18  ;;  %v2503_v31 = vpop.xlane.xlu1 %2502  ;;  %v11063_v47 = vld [vmem:[%s12238_s12 + $0x64] sm:$0xf] }
 0x3f7   : > { %v2231_v4 = vsub.f32 %v13253_v27, %v2213_v58  ;;  %v2565_v11 = vpop.xlane.xlu0 %2564  ;;  %v2521_v2 = vsub.f32 %v13256_v3, %v2503_v31  ;;  %v9656_v58 = vld [vmem:[%s12238_s12 + $0x68] sm:$0xf0] }
 0x3f8   : > { %11534 = vrcp.f32 %v2565_v11  ;;  %v2332_v55 = vpack.c.bf16 %v2319_v32, %v2318_v59  ;;  %v9655_v32 = vor.u32 %v11064_v13, %v9654_v60  ;;  %v9659_v31 = vor.u32 %v11063_v47, %v9656_v58  ;;  %v9624_v13 = vld [vmem:[%s12238_s12 + $0x28] sm:$0xf0]  ;;  %v11054_v47 = vld [vmem:[%s12238_s12 + $0x14] sm:$0xf0] }
 0x3f9   : > { %v2260_v15 = vmul.f32 1.442695, %v2231_v4  ;;  %v2550_v49 = vmul.f32 1.442695, %v2521_v2  ;;  %v9646_v2 = vld [vmem:[%s12238_s12 + $0x50] sm:$0xf] }
 0x3fa   : > { %v13342_v1 = vpop.eup %11530 }
 0x3fb   : > { %11536 = vpow2.f32 %v2260_v15  ;;  %2580 = vadd.xlane.f32.xlu2 %v13342_v1  ;;  %2356 = vmatmul.bf16.gmra.mxu1 %v2332_v55  ;;  %v11533_v8 = vpop.eup %11532  ;;  %v11062_v55 = vld [vmem:[%s12238_s12 + $0x54] sm:$0xf0] }
 0x3fc   : > { %11538 = vpow2.f32 %v2550_v49  ;;  %v2609_v30 = vmul.f32 %v11533_v8, %v13245_v52 }
 0x3fe   : > { %v11535_v45 = vpop.eup %11534  ;;  %v2569_v18 = vpop.xlane.xlu2 %2568 }
 0x3ff   : > { %v2279_v63 = vpop.xlane.xlu0 %2278  ;;  %v2211_v27 = vpop.xlane.xlu1 %2210  ;;  %v2608_v44 = vmul.f32 %v11535_v45, %v13258_v34  ;;  %v11061_v45 = vld [vmem:[%s12238_s12 + $0x54] sm:$0xf] }
 0x400   : > { %v2230_v3 = vsub.f32 %v13268_v29, %v2211_v27 }
 0x401   : > { %v13348_v37 = vpop.eup %11536  ;;  %v2622_v61 = vpack.c.bf16 %v2609_v30, %v2608_v44 }
 0x402   : > { %v13350_v17 = vpop.eup %11538  ;;  %v2258_v38 = vmul.f32 1.442695, %v2230_v3  ;;  %v9647_v3 = vor.u32 %v11062_v55, %v9646_v2  ;;  %v9606_v2 = vld [vmem:[%s12238_s12] sm:$0xf]  ;;  %v11052_v55 = vld [vmem:[%s12238_s12 + $0x4] sm:$0xf0] }
 0x403   : > { %2292 = vadd.xlane.f32.xlu2 %v13348_v37  ;;  %2646 = vmatmul.bf16.gmra.mxu3 %v2622_v61 }
 0x404   : > { %11540 = vpow2.f32 %v2258_v38  ;;  %2582 = vadd.xlane.f32.xlu0 %v13350_v17  ;;  %v11060_v38 = vld [vmem:[%s12238_s12 + $0x44] sm:$0xf0] }
 0x405   : > { %11542 = vrcp.f32 %v2569_v18  ;;  %v9648_v18 = vld [vmem:[%s12238_s12 + $0x58] sm:$0xf0] }
 0x406   : > { %v2505_v6 = vpop.xlane.xlu2 %2504  ;;  %11544 = vrcp.f32 %v2279_v63  ;;  %v9651_v61 = vor.u32 %v11061_v45, %v9648_v18  ;;  %v9728_v45 = vld [vmem:[%s12238_s12 + $0xf8] sm:$0xf0] }
 0x407   : > { %v2522_v34 = vsub.f32 %v13278_v10, %v2505_v6  ;;  %v2571_v52 = vpop.xlane.xlu0 %2570  ;;  %v2281_v54 = vpop.xlane.xlu1 %2280 }
 0x408   : > { %11546 = vrcp.f32 %v2571_v52  ;;  %v9640_v52 = vld [vmem:[%s12238_s12 + $0x48] sm:$0xf0] }
 0x409   : > { %v2552_v29 = vmul.f32 1.442695, %v2522_v34  ;;  %11548 = vrcp.f32 %v2281_v54  ;;  %v11059_v34 = vld [vmem:[%s12238_s12 + $0x44] sm:$0xf] }
 0x40a   : > { %v13355_v51 = vpop.eup %11540 }
 0x40b   : > { %11550 = vpow2.f32 %v2552_v29  ;;  %2290 = vadd.xlane.f32.xlu1 %v13355_v51  ;;  %v11543_v40 = vpop.eup %11542 }
 0x40c   : > { %v11545_v7 = vpop.eup %11544  ;;  %v2610_v10 = vmul.f32 %v11543_v40, %v13265_v24  ;;  %v9630_v40 = vld [vmem:[%s12238_s12 + $0x30] sm:$0xf] }
 0x40d   : > { %v2320_v21 = vmul.f32 %v11545_v7, %v13270_v33  ;;  %v11065_v33 = vld [vmem:[%s12238_s12 + $0x74] sm:$0xf]  ;;  %v11058_v7 = vld [vmem:[%s12238_s12 + $0x34] sm:$0xf0] }
 0x40e   : > { %v11547_v53 = vpop.eup %11546  ;;  %v2575_v46 = vpop.xlane.xlu2 %2574  ;;  %v9667_v16 = vor.u32 %v11065_v33, %v9664_v50  ;;  %v9622_v33 = vld [vmem:[%s12238_s12 + $0x20] sm:$0xf]  ;;  %v11055_v50 = vld [vmem:[%s12238_s12 + $0x24] sm:$0xf] }
 0x40f   : > { %v11549_v26 = vpop.eup %11548  ;;  %v2507_v19 = vpop.xlane.xlu0 %2506  ;;  %v2611_v35 = vmul.f32 %v11547_v53, %v13282_v12  ;;  %11552 = vrcp.f32 %v2575_v46  ;;  %v9662_v12 = vld [vmem:[%s12238_s12 + $0x70] sm:$0xf]  ;;  %v9643_v46 = vor.u32 %v11059_v34, %v9640_v52  ;;  %v9627_v58 = vor.u32 %v11055_v50, %v9624_v13  ;;  %v9718_v34 = vld [vmem:[%s12238_s12 + $0xe0] sm:$0xf]  ;;  %v11080_v52 = vld [vmem:[%s12238_s12 + $0xe4] sm:$0xf0] }
 0x410   : > { %v2573_v57 = vpop.xlane.xlu1 %2572  ;;  %v2523_v41 = vsub.f32 %v13291_v0, %v2507_v19  ;;  %v2321_v42 = vmul.f32 %v11549_v26, %v13280_v56  ;;  %v11066_v0 = vld [vmem:[%s12238_s12 + $0x74] sm:$0xf0]  ;;  %3037 = vmatpush.bf16.msra.mxu2 %v9667_v16  ;;  %v9614_v16 = vld [vmem:[%s12238_s12 + $0x10] sm:$0xf]  ;;  %v11073_v50 = vld [vmem:[%s12238_s12 + $0xb4] sm:$0xf] }
 0x411   : > { %v13363_v36 = vpop.eup %11550  ;;  %v2623_v28 = vpack.c.bf16 %v2611_v35, %v2610_v10  ;;  %11554 = vrcp.f32 %v2573_v57  ;;  %v9663_v56 = vor.u32 %v11066_v0, %v9662_v12  ;;  %v11057_v57 = vld [vmem:[%s12238_s12 + $0x34] sm:$0xf] }
 0x412   : > { %v2554_v14 = vmul.f32 1.442695, %v2523_v41  ;;  %2584 = vadd.xlane.f32.xlu0 %v13363_v36  ;;  %v2333_v24 = vpack.c.bf16 %v2321_v42, %v2320_v21 }
 0x413   : > { %2651 = vmatmul.bf16.gmra.mxu3 %v2623_v28  ;;  %2939 = vmatpush.bf16.msra.mxu0 %v9663_v56  ;;  %v11056_v56 = vld [vmem:[%s12238_s12 + $0x24] sm:$0xf0] }
 0x414   : > { %11556 = vpow2.f32 %v2554_v14  ;;  %2361 = vmatmul.bf16.gmra.mxu1 %v2333_v24  ;;  %3038 = vmatpush.bf16.msra.mxu2 %v9659_v31  ;;  %v9623_v60 = vor.u32 %v11056_v56, %v9622_v33 }
 0x415   : > { %v11553_v15 = vpop.eup %11552 }
 0x416   : > { %v2283_v59 = vpop.xlane.xlu2 %2282  ;;  %v2613_v6 = vmul.f32 %v11553_v15, %v13288_v43  ;;  %v9631_v43 = vor.u32 %v11058_v7, %v9630_v40  ;;  %v11051_v15 = vld [vmem:[%s12238_s12 + $0x4] sm:$0xf] }
 0x417   : > { %v2215_v4 = vpop.xlane.xlu0 %2214  ;;  %v11555_v63 = vpop.eup %11554  ;;  %2940 = vmatpush.bf16.msra.mxu0 %v9655_v32 }
 0x418   : > { %v2217_v11 = vpop.xlane.xlu1 %2216  ;;  %v2232_v49 = vsub.f32 %v13304_v62, %v2215_v4  ;;  %v9638_v62 = vld [vmem:[%s12238_s12 + $0x40] sm:$0xf]  ;;  %3039 = vmatpush.bf16.msra.mxu2 %v9651_v61  ;;  %v9615_v4 = vor.u32 %v11054_v47, %v9614_v16  ;;  %v11082_v61 = vld [vmem:[%s12238_s12 + $0xf4] sm:$0xf0] }
 0x419   : > { %v2233_v8 = vsub.f32 %v13307_v25, %v2217_v11  ;;  %v2612_v25 = vmul.f32 %v11555_v63, %v13293_v20  ;;  %v9639_v54 = vor.u32 %v11060_v38, %v9638_v62  ;;  %v9632_v20 = vld [vmem:[%s12238_s12 + $0x38] sm:$0xf0]  ;;  %v11079_v38 = vld [vmem:[%s12238_s12 + $0xe4] sm:$0xf] }
 0x41a   : > { %v13380_v27 = vpop.eup %11556  ;;  %v2262_v44 = vmul.f32 1.442695, %v2232_v49  ;;  %v9635_v21 = vor.u32 %v11057_v57, %v9632_v20  ;;  %v9607_v49 = vor.u32 %v11052_v55, %v9606_v2 }
 0x41b   : > { %v2264_v30 = vmul.f32 1.442695, %v2233_v8  ;;  %2586 = vadd.xlane.f32.xlu1 %v13380_v27  ;;  %2941 = vmatpush.bf16.msra.mxu0 %v9647_v3  ;;  %v2624_v19 = vpack.c.bf16 %v2613_v6, %v2612_v25  ;;  %v9608_v8 = vld [vmem:[%s12238_s12 + $0x8] sm:$0xf0]  ;;  %v9726_v3 = vld [vmem:[%s12238_s12 + $0xf0] sm:$0xf] }
 0x41c   : > { %11558 = vpow2.f32 %v2262_v44  ;;  %3040 = vmatpush.bf16.msra.mxu2 %v9643_v46  ;;  %v9727_v62 = vor.u32 %v11082_v61, %v9726_v3  ;;  %v9720_v25 = vld [vmem:[%s12238_s12 + $0xe8] sm:$0xf0]  ;;  %v9712_v46 = vld [vmem:[%s12238_s12 + $0xd8] sm:$0xf0]  ;;  %v11072_v3 = vld [vmem:[%s12238_s12 + $0xa4] sm:$0xf0] }
 0x41d   : > { %11560 = vpow2.f32 %v2264_v30  ;;  %v9723_v6 = vor.u32 %v11079_v38, %v9720_v25  ;;  %v11067_v61 = vld [vmem:[%s12238_s12 + $0x84] sm:$0xf] }
 0x41e   : > { %11562 = vrcp.f32 %v2283_v59  ;;  %v2579_v53 = vpop.xlane.xlu2 %2578  ;;  %v9616_v59 = vld [vmem:[%s12238_s12 + $0x18] sm:$0xf0]  ;;  %2988 = vmatpush.bf16.msra.mxu1 %v9727_v62 }
 0x41f   : > { %v2285_v29 = vpop.xlane.xlu0 %2284  ;;  %2942 = vmatpush.bf16.msra.mxu0 %v9639_v54  ;;  %v9719_v54 = vor.u32 %v11080_v52, %v9718_v34 }
 0x420   : > { %11564 = vrcp.f32 %v2285_v29  ;;  %v2577_v26 = vpop.xlane.xlu1 %2576  ;;  %3041 = vmatpush.bf16.msra.mxu2 %v9635_v21 }
 0x421   : > { %11566 = vrcp.f32 %v2579_v53  ;;  %v11077_v53 = vld [vmem:[%s12238_s12 + $0xd4] sm:$0xf] }
 0x422   : > { %v13393_v10 = vpop.eup %11558  ;;  %11568 = vrcp.f32 %v2577_v26  ;;  %2989 = vmatpush.bf16.msra.mxu1 %v9719_v54  ;;  %v9715_v26 = vor.u32 %v11077_v53, %v9712_v46  ;;  %v9670_v46 = vld [vmem:[%s12238_s12 + $0x80] sm:$0xf] }
 0x423   : > { %v13395_v35 = vpop.eup %11560  ;;  %2294 = vadd.xlane.f32.xlu2 %v13393_v10  ;;  %2656 = vmatmul.bf16.gmra.mxu3 %v2624_v19 }
 0x424   : > { %v11563_v41 = vpop.eup %11562  ;;  %2296 = vadd.xlane.f32.xlu0 %v13395_v35  ;;  %2943 = vmatpush.bf16.msra.mxu0 %v9631_v43 }
 0x425   : > { %v2322_v28 = vmul.f32 %v11563_v41, %v13301_v5  ;;  %v11053_v5 = vld [vmem:[%s12238_s12 + $0x14] sm:$0xf]  ;;  %3042 = vmatpush.bf16.msra.mxu2 %v9627_v58  ;;  %v9702_v58 = vld [vmem:[%s12238_s12 + $0xc0] sm:$0xf] }
 0x426   : > { %v11565_v42 = vpop.eup %11564  ;;  %v9619_v11 = vor.u32 %v11053_v5, %v9616_v59  ;;  %v11076_v5 = vld [vmem:[%s12238_s12 + $0xc4] sm:$0xf0]  ;;  %v11071_v59 = vld [vmem:[%s12238_s12 + $0xa4] sm:$0xf] }
 0x427   : > { %v2323_v14 = vmul.f32 %v11565_v42, %v13312_v23  ;;  %v11567_v24 = vpop.eup %11566 }
 0x428   : > { %v11569_v0 = vpop.eup %11568  ;;  %v2615_v32 = vmul.f32 %v11567_v24, %v13314_v22  ;;  %2944 = vmatpush.bf16.msra.mxu0 %v9623_v60  ;;  %v11081_v22 = vld [vmem:[%s12238_s12 + $0xf4] sm:$0xf]  ;;  %v11078_v24 = vld [vmem:[%s12238_s12 + $0xd4] sm:$0xf0]  ;;  %v9696_v60 = vld [vmem:[%s12238_s12 + $0xb8] sm:$0xf0] }
 0x429   : > { %v2334_v12 = vpack.c.bf16 %v2323_v14, %v2322_v28  ;;  %v2614_v23 = vmul.f32 %v11569_v0, %v13316_v39  ;;  %3043 = vmatpush.bf16.msra.mxu2 %v9619_v11  ;;  %v9611_v39 = vor.u32 %v11051_v15, %v9608_v8  ;;  %v9731_v18 = vor.u32 %v11081_v22, %v9728_v45  ;;  %v9710_v14 = vld [vmem:[%s12238_s12 + $0xd0] sm:$0xf]  ;;  %v11075_v0 = vld [vmem:[%s12238_s12 + $0xc4] sm:$0xf]  ;;  %v9688_v11 = vld [vmem:[%s12238_s12 + $0xa8] sm:$0xf0] }
 0x42a   : > { %v9699_v16 = vor.u32 %v11073_v50, %v9696_v60  ;;  %v9691_v55 = vor.u32 %v11071_v59, %v9688_v11  ;;  %v11074_v22 = vld [vmem:[%s12238_s12 + $0xb4] sm:$0xf0]  ;;  %v11069_v45 = vld [vmem:[%s12238_s12 + $0x94] sm:$0xf] }
 0x42b   : > { %2366 = vmatmul.bf16.gmra.mxu1 %v2334_v12  ;;  %v2625_v31 = vpack.c.bf16 %v2615_v32, %v2614_v23  ;;  %3086 = vmatpush.bf16.msra.mxu3 %v9731_v18  ;;  %v9711_v12 = vor.u32 %v11078_v24, %v9710_v14 }
 0x42c   : > { %2945 = vmatpush.bf16.msra.mxu0 %v9615_v4  ;;  %v9703_v4 = vor.u32 %v11076_v5, %v9702_v58 }
 0x42d   : > { %3044 = vmatpush.bf16.msra.mxu2 %v9611_v39  ;;  %2990 = vmatpush.bf16.msra.mxu1 %v9711_v12  ;;  %v9694_v39 = vld [vmem:[%s12238_s12 + $0xb0] sm:$0xf] }
 0x42e   : > { %v9695_v18 = vor.u32 %v11074_v22, %v9694_v39 }
 0x42f   : > { %3087 = vmatpush.bf16.msra.mxu3 %v9723_v6  ;;  %v9672_v6 = vld [vmem:[%s12238_s12 + $0x88] sm:$0xf0] }
 0x430   : > { %2946 = vmatpush.bf16.msra.mxu0 %v9607_v49  ;;  %v9675_v34 = vor.u32 %v11067_v61, %v9672_v6 }
 0x431   : > { %2991 = vmatpush.bf16.msra.mxu1 %v9703_v4 }
 0x433   : > { %2661 = vmatmul.bf16.gmra.mxu3 %v2625_v31 }
 0x434   : > { %3088 = vmatpush.bf16.msra.mxu3 %v9715_v26 }
 0x435   : > { %2992 = vmatpush.bf16.msra.mxu1 %v9695_v18 }
 0x44a   : > { %v2347_v63 = vpop.f32.mrf.mxu1 }
 0x452   : > { %v2349_v44 = vpop.f32.mrf.mxu1 }
 0x453   : > { %v2758_v30 = vpack.c.bf16 %v2349_v44, %v2347_v63  ;;  %v9680_v63 = vld [vmem:[%s12238_s12 + $0x98] sm:$0xf0] }
 0x455   : > { %2947 = vmatmul.bf16.vlgmr.msra.gmra.mxu0 %v2758_v30  ;;  %3045 = vmatmul.bf16.vlgmr.msra.gmra.mxu2 %v2758_v30  ;;  %v9686_v30 = vld [vmem:[%s12238_s12 + $0xa0] sm:$0xf] }
 0x456   : > { %v9687_v25 = vor.u32 %v11072_v3, %v9686_v30 }
 0x458   : > { %2993 = vmatpush.bf16.msra.mxu1 %v9687_v25 }
 0x465   : > { %v2287_v29 = vpop.xlane.xlu0 %2286 }
 0x466   : > { %11570 = vrcp.f32 %v2287_v29  ;;  %v2289_v40 = vpop.xlane.xlu1 %2288  ;;  %v2637_v52 = vpop.f32.mrf.mxu3  ;;  %v9678_v29 = vld [vmem:[%s12238_s12 + $0x90] sm:$0xf] }
 0x467   : > { %11572 = vrcp.f32 %v2289_v40  ;;  %v11070_v40 = vld [vmem:[%s12238_s12 + $0x94] sm:$0xf0] }
 0x468   : > { %v2352_v7 = vpop.f32.mrf.mxu1  ;;  %v9679_v53 = vor.u32 %v11070_v40, %v9678_v29 }
 0x46a   : > { %2994 = vmatpush.bf16.msra.mxu1 %v9679_v53 }
 0x46c   : > { %v11571_v19 = vpop.eup %11570 }
 0x46d   : > { %v11573_v57 = vpop.eup %11572  ;;  %v2324_v20 = vmul.f32 %v11571_v19, %v13332_v48  ;;  %v9704_v48 = vld [vmem:[%s12238_s12 + $0xc8] sm:$0xf0] }
 0x46e   : > { %v2325_v43 = vmul.f32 %v11573_v57, %v13334_v9  ;;  %v2581_v41 = vpop.xlane.xlu2 %2580  ;;  %v9707_v9 = vor.u32 %v11075_v0, %v9704_v48  ;;  %v2639_v57 = vpop.f32.mrf.mxu3 }
 0x46f   : > { %11574 = vrcp.f32 %v2581_v41 }
 0x470   : > { %v2354_v21 = vpop.f32.mrf.mxu1  ;;  %v2335_v42 = vpack.c.bf16 %v2325_v43, %v2324_v20  ;;  %3089 = vmatpush.bf16.msra.mxu3 %v9707_v9 }
 0x471   : > { %v2760_v28 = vpack.c.bf16 %v2354_v21, %v2352_v7 }
 0x472   : > { %2371 = vmatmul.bf16.gmra.mxu1 %v2335_v42 }
 0x473   : > { %2952 = vmatmul.bf16.gmra.mxu0 %v2760_v28  ;;  %3050 = vmatmul.bf16.gmra.mxu2 %v2760_v28 }
 0x474   : > { %3090 = vmatpush.bf16.msra.mxu3 %v9699_v16 }
 0x475   : > { %v11575_v47 = vpop.eup %11574 }
 0x476   : > { %v2293_v13 = vpop.xlane.xlu2 %2292  ;;  %v2616_v31 = vmul.f32 %v11575_v47, %v13342_v1  ;;  %v9683_v1 = vor.u32 %v11069_v45, %v9680_v63  ;;  %v2642_v0 = vpop.f32.mrf.mxu3 }
 0x477   : > { %v2583_v33 = vpop.xlane.xlu0 %2582 }
 0x478   : > { %11576 = vrcp.f32 %v2583_v33  ;;  %v2357_v56 = vpop.f32.mrf.mxu1  ;;  %3091 = vmatpush.bf16.msra.mxu3 %v9691_v55 }
 0x479   : > { %11578 = vrcp.f32 %v2293_v13 }
 0x47c   : > { %3092 = vmatpush.bf16.msra.mxu3 %v9683_v1 }
 0x47e   : > { %v11577_v23 = vpop.eup %11576  ;;  %v2291_v32 = vpop.xlane.xlu1 %2290 }
 0x47f   : > { %11580 = vrcp.f32 %v2291_v32  ;;  %v2617_v2 = vmul.f32 %v11577_v23, %v13350_v17  ;;  %v11579_v44 = vpop.eup %11578 }
 0x480   : > { %v2359_v15 = vpop.f32.mrf.mxu1  ;;  %v2327_v38 = vmul.f32 %v11579_v44, %v13348_v37  ;;  %3093 = vmatpush.bf16.msra.mxu3 %v9675_v34 }
 0x481   : > { %v2762_v49 = vpack.c.bf16 %v2359_v15, %v2357_v56  ;;  %v2626_v8 = vpack.c.bf16 %v2617_v2, %v2616_v31 }
 0x483   : > { %2666 = vmatmul.bf16.gmra.mxu3 %v2626_v8  ;;  %2957 = vmatmul.bf16.gmra.mxu0 %v2762_v49 }
 0x484   : > { %3055 = vmatmul.bf16.gmra.mxu2 %v2762_v49 }
 0x485   : > { %v11581_v17 = vpop.eup %11580  ;;  %v2585_v7 = vpop.xlane.xlu0 %2584 }
 0x486   : > { %v2326_v62 = vmul.f32 %v11581_v17, %v13355_v51  ;;  %11582 = vrcp.f32 %v2585_v7  ;;  %v11068_v51 = vld [vmem:[%s12238_s12 + $0x84] sm:$0xf0] }
 0x487   : > { %v9671_v19 = vor.u32 %v11068_v51, %v9670_v46 }
 0x488   : > { %v2336_v54 = vpack.c.bf16 %v2327_v38, %v2326_v62  ;;  %v2757_v38 = vld [vmem:[%s17364_s19] sm:$0x3] }
 0x489   : > { %2995 = vmatpush.bf16.msra.mxu1 %v9671_v19  ;;  %v13462_v6 = vperm.slane %v2757_v38, 1 }
 0x48a   : > { %2376 = vmatmul.bf16.gmra.mxu1 %v2336_v54  ;;  %v13464_v54 = vperm.slane %v2757_v38, 0 }
 0x48c   : > { %v11583_v20 = vpop.eup %11582 }
 0x48d   : > { %v2618_v21 = vmul.f32 %v11583_v20, %v13363_v36  ;;  %v2644_v36 = vpop.f32.mrf.mxu3  ;;  %v11913_v20 = vld [vmem:[#allocation2 + $0xb0] sm:$0xff] }
 0x48e   : > { %v2587_v26 = vpop.xlane.xlu1 %2586  ;;  %v2761_v58 = vpack.c.bf16 %v2644_v36, %v2642_v0 }
 0x48f   : > { %11584 = vrcp.f32 %v2587_v26 }
 0x491   : > { %v2362_v37 = vpop.f32.mrf.mxu1 }
 0x495   : > { %v11585_v43 = vpop.eup %11584  ;;  %v2647_v13 = vpop.f32.mrf.mxu3 }
 0x496   : > { %v2295_v41 = vpop.xlane.xlu2 %2294  ;;  %v2619_v42 = vmul.f32 %v11585_v43, %v13380_v27  ;;  %v2759_v27 = vpack.c.bf16 %v2639_v57, %v2637_v52 }
 0x497   : > { %11586 = vrcp.f32 %v2295_v41  ;;  %v2297_v28 = vpop.xlane.xlu0 %2296 }
 0x498   : > { %11588 = vrcp.f32 %v2297_v28  ;;  %v2627_v14 = vpack.c.bf16 %v2619_v42, %v2618_v21 }
 0x499   : > { %v2364_v24 = vpop.f32.mrf.mxu1 }
 0x49a   : > { %v2764_v12 = vpack.c.bf16 %v2364_v24, %v2362_v37  ;;  %2671 = vmatmul.bf16.gmra.mxu3 %v2627_v14  ;;  %v11912_v37 = vld [vmem:[#allocation2] sm:$0xff] }
 0x49c   : > { %2962 = vmatmul.bf16.gmra.mxu0 %v2764_v12  ;;  %3060 = vmatmul.bf16.gmra.mxu2 %v2764_v12 }
 0x49d   : > { %v11587_v48 = vpop.eup %11586  ;;  %v2649_v5 = vpop.f32.mrf.mxu3 }
 0x49e   : > { %v11589_v9 = vpop.eup %11588  ;;  %v2328_v33 = vmul.f32 %v11587_v48, %v13393_v10  ;;  %v2763_v10 = vpack.c.bf16 %v2649_v5, %v2647_v13  ;;  %v11914_v48 = vld [vmem:[#allocation2 + $0xd8] sm:$0xff] }
 0x49f   : > { %v2329_v56 = vmul.f32 %v11589_v9, %v13395_v35 }
 0x4a1   : > { %v2337_v50 = vpack.c.bf16 %v2329_v56, %v2328_v33  ;;  %v11915_v33 = vld [vmem:[#allocation2 + $0x18] sm:$0xff] }
 0x4a3   : > { %2381 = vmatmul.bf16.gmra.mxu1 %v2337_v50 }
 0x4a5   : > { %v2652_v59 = vpop.f32.mrf.mxu3 }
 0x4a8   : > { %v2367_v60 = vpop.f32.mrf.mxu1 }
 0x4aa   : > { %3094 = vmatmul.bf16.vlgmr.msra.gmra.mxu3 %v2759_v27 }
 0x4ad   : > { %v2654_v35 = vpop.f32.mrf.mxu3 }
 0x4ae   : > { %v2765_v23 = vpack.c.bf16 %v2654_v35, %v2652_v59  ;;  %v11916_v59 = vld [vmem:[#allocation2 + $0x68] sm:$0xff]  ;;  %v11917_v35 = vld [vmem:[#allocation2 + $0x50] sm:$0xff] }
 0x4b0   : > { %v2369_v16 = vpop.f32.mrf.mxu1 }
 0x4b1   : > { %v2766_v47 = vpack.c.bf16 %v2369_v16, %v2367_v60 }
 0x4b3   : > { %2996 = vmatmul.bf16.vlgmr.msra.gmra.mxu1 %v2759_v27  ;;  %2967 = vmatmul.bf16.gmra.mxu0 %v2766_v47 }
 0x4b4   : > { %3065 = vmatmul.bf16.gmra.mxu2 %v2766_v47 }
 0x4b5   : > { %v2657_v32 = vpop.f32.mrf.mxu3 }
 0x4ba   : > { %3099 = vmatmul.bf16.gmra.mxu3 %v2761_v58 }
 0x4bd   : > { %v2659_v4 = vpop.f32.mrf.mxu3 }
 0x4be   : > { %v2767_v11 = vpack.c.bf16 %v2659_v4, %v2657_v32 }
 0x4c3   : > { %3001 = vmatmul.bf16.gmra.mxu1 %v2761_v58 }
 0x4c5   : > { %v2662_v31 = vpop.f32.mrf.mxu3 }
 0x4ca   : > { %3104 = vmatmul.bf16.gmra.mxu3 %v2763_v10 }
 0x4cd   : > { %v2664_v55 = vpop.f32.mrf.mxu3 }
 0x4ce   : > { %v2769_v8 = vpack.c.bf16 %v2664_v55, %v2662_v31 }
 0x4d2   : > { %v2948_v3 = vpop.f32.mrf.mxu0 }
 0x4d3   : > { %3006 = vmatmul.bf16.gmra.mxu1 %v2763_v10  ;;  %v2949_v53 = vadd.f32 %v2948_v3, %v13464_v54 }
 0x4d8   : > { %v3046_v17 = vpop.f32.mrf.mxu2 }
 0x4d9   : > { %v3047_v40 = vadd.f32 %v3046_v17, %v13462_v6 }
 0x4da   : > { %3109 = vmatmul.bf16.gmra.mxu3 %v2765_v23  ;;  %v2950_v29 = vpop.f32.mrf.mxu0 }
 0x4db   : > { %v2951_v14 = vadd.f32 %v2950_v29, %v13464_v54 }
 0x4e0   : > { %v3048_v52 = vpop.f32.mrf.mxu2 }
 0x4e1   : > { %v3049_v21 = vadd.f32 %v3048_v52, %v13462_v6  ;;  %v11921_v52 = vld [vmem:[#allocation2 + $0x80] sm:$0xff] }
 0x4e3   : > { %3011 = vmatmul.bf16.gmra.mxu1 %v2765_v23 }
 0x4ea   : > { %3114 = vmatmul.bf16.gmra.mxu3 %v2767_v11 }
 0x4ef   : > { %v2372_v2 = vpop.f32.mrf.mxu1 }
 0x4f0   : > { %v2953_v41 = vpop.f32.mrf.mxu0 }
 0x4f1   : > { %v2954_v16 = vadd.f32 %v2953_v41, %v13464_v54  ;;  %v11922_v41 = vld [vmem:[#allocation2 + $0xe8] sm:$0xff] }
 0x4f3   : > { %3016 = vmatmul.bf16.gmra.mxu1 %v2767_v11 }
 0x4f6   : > { %v3051_v19 = vpop.f32.mrf.mxu2 }
 0x4f7   : > { %v2374_v15 = vpop.f32.mrf.mxu1  ;;  %v3052_v36 = vadd.f32 %v3051_v19, %v13462_v6 }
 0x4f8   : > { %v2768_v49 = vpack.c.bf16 %v2374_v15, %v2372_v2  ;;  %v2955_v13 = vpop.f32.mrf.mxu0 }
 0x4f9   : > { %v2956_v2 = vadd.f32 %v2955_v13, %v13464_v54  ;;  %v11925_v13 = vld [vmem:[#allocation2 + $0x60] sm:$0xff] }
 0x4fa   : > { %2972 = vmatmul.bf16.gmra.mxu0 %v2768_v49  ;;  %3070 = vmatmul.bf16.gmra.mxu2 %v2768_v49 }
 0x4fb   : > { %3119 = vmatmul.bf16.gmra.mxu3 %v2769_v8 }
 0x4fe   : > { %v3053_v50 = vpop.f32.mrf.mxu2 }
 0x4ff   : > { %v3054_v32 = vadd.f32 %v3053_v50, %v13462_v6 }
 0x500   : > { %v2958_v15 = vpop.f32.mrf.mxu0 }
 0x501   : > { %v2959_v17 = vadd.f32 %v2958_v15, %v13464_v54  ;;  %v11927_v15 = vld [vmem:[#allocation2 + $0x78] sm:$0xff] }
 0x503   : > { %3021 = vmatmul.bf16.gmra.mxu1 %v2769_v8 }
 0x506   : > { %v2667_v39 = vpop.f32.mrf.mxu3 }
 0x507   : > { %v2377_v22 = vpop.f32.mrf.mxu1  ;;  %v3056_v31 = vpop.f32.mrf.mxu2 }
 0x508   : > { %v2960_v38 = vpop.f32.mrf.mxu0 }
 0x50e   : > { %v2669_v45 = vpop.f32.mrf.mxu3 }
 0x50f   : > { %v2771_v18 = vpack.c.bf16 %v2669_v45, %v2667_v39  ;;  %v2379_v63 = vpop.f32.mrf.mxu1  ;;  %v11918_v39 = vld [vmem:[#allocation2 + $0x30] sm:$0xff]  ;;  %v11919_v45 = vld [vmem:[#allocation2 + $0x48] sm:$0xff]  ;;  %v3058_v3 = vpop.f32.mrf.mxu2 }
 0x510   : > { %v2770_v44 = vpack.c.bf16 %v2379_v63, %v2377_v22  ;;  %v3057_v63 = vadd.f32 %v3056_v31, %v13462_v6 }
 0x511   : > { %3124 = vmatmul.bf16.gmra.mxu3 %v2771_v18 }
 0x512   : > { %2977 = vmatmul.bf16.gmra.mxu0 %v2770_v44  ;;  %3075 = vmatmul.bf16.gmra.mxu2 %v2770_v44 }
 0x513   : > { %3026 = vmatmul.bf16.gmra.mxu1 %v2771_v18 }
 0x51d   : > { %v2672_v1 = vpop.f32.mrf.mxu3 }
 0x520   : > { %v2382_v30 = vpop.f32.mrf.mxu1 }
 0x525   : > { %v2674_v61 = vpop.f32.mrf.mxu3 }
 0x526   : > { %v2773_v62 = vpack.c.bf16 %v2674_v61, %v2672_v1 }
 0x528   : > { %v2384_v25 = vpop.f32.mrf.mxu1  ;;  %3031 = vmatmul.bf16.gmra.mxu1 %v2773_v62  ;;  %3129 = vmatmul.bf16.gmra.mxu3 %v2773_v62 }
 0x529   : > { %v2772_v34 = vpack.c.bf16 %v2384_v25, %v2382_v30  ;;  %v11920_v25 = vld [vmem:[#allocation2 + $0x88] sm:$0xff] }
 0x52b   : > { %2982 = vmatmul.bf16.gmra.mxu0 %v2772_v34  ;;  %3080 = vmatmul.bf16.gmra.mxu2 %v2772_v34 }
 0x52d   : > { %v3095_v7 = vpop.f32.mrf.mxu3 }
 0x52e   : > { %v3096_v46 = vadd.f32 %v3095_v7, %v3047_v40  ;;  %v3059_v40 = vadd.f32 %v3058_v3, %v13462_v6  ;;  %v11928_v3 = vld [vmem:[#allocation2 + $0x58] sm:$0xff] }
 0x530   : > { %v2997_v51 = vpop.f32.mrf.mxu1  ;;  %v13468_v57 = vadd.f32 %v11912_v37, %v3096_v46  ;;  %v2961_v46 = vadd.f32 %v2960_v38, %v13464_v54 }
 0x531   : > { %v2998_v26 = vadd.f32 %v2997_v51, %v2949_v53 }
 0x533   : > { %v13470_v43 = vadd.f32 %v11913_v20, %v2998_v26  ;;  %v3061_v26 = vpop.f32.mrf.mxu2  ;;  %v2963_v20 = vpop.f32.mrf.mxu0 }
 0x535   : > { %v3097_v42 = vpop.f32.mrf.mxu3  ;;  %v3169_v28 = vadd.f32 %v13468_v57, %v13470_v43 }
 0x536   : > { %v3098_v24 = vadd.f32 %v3097_v42, %v3049_v21  ;;  %v11923_v42 = vld [vmem:[#allocation2 + $0xb8] sm:$0xff] }
 0x537   : > { %3170 = vadd.xlane.f32.xlu1 %v3169_v28 }
 0x538   : > { %v2999_v12 = vpop.f32.mrf.mxu1  ;;  %v13478_v56 = vadd.f32 %v11915_v33, %v3098_v24 }
 0x539   : > { %v3000_v0 = vadd.f32 %v2999_v12, %v2951_v14  ;;  %v3062_v14 = vadd.f32 %v3061_v26, %v13462_v6 }
 0x53b   : > { %v13476_v9 = vadd.f32 %v11914_v48, %v3000_v0  ;;  %v2964_v0 = vadd.f32 %v2963_v20, %v13464_v54 }
 0x53d   : > { %v3100_v27 = vpop.f32.mrf.mxu3  ;;  %v3172_v60 = vadd.f32 %v13478_v56, %v13476_v9 }
 0x53e   : > { %v3101_v47 = vadd.f32 %v3100_v27, %v3052_v36  ;;  %v3063_v36 = vpop.f32.mrf.mxu2  ;;  %v11924_v27 = vld [vmem:[#allocation2 + $0xf0] sm:$0xff] }
 0x53f   : > { %3173 = vadd.xlane.f32.xlu2 %v3172_v60 }
 0x540   : > { %v3002_v58 = vpop.f32.mrf.mxu1  ;;  %v13484_v10 = vadd.f32 %v11916_v59, %v3101_v47  ;;  %v2965_v47 = vpop.f32.mrf.mxu0 }
 0x541   : > { %v3003_v5 = vadd.f32 %v3002_v58, %v2954_v16  ;;  %v3064_v58 = vadd.f32 %v3063_v36, %v13462_v6 }
 0x543   : > { %v13486_v23 = vadd.f32 %v11917_v35, %v3003_v5  ;;  %v2966_v35 = vadd.f32 %v2965_v47, %v13464_v54 }
 0x545   : > { %v3102_v4 = vpop.f32.mrf.mxu3  ;;  %v3175_v11 = vadd.f32 %v13484_v10, %v13486_v23 }
 0x546   : > { %v3103_v55 = vadd.f32 %v3102_v4, %v3054_v32  ;;  %v3066_v31 = vpop.f32.mrf.mxu2 }
 0x547   : > { %3176 = vadd.xlane.f32.xlu0 %v3175_v11 }
 0x548   : > { %v3004_v49 = vpop.f32.mrf.mxu1  ;;  %v13494_v18 = vadd.f32 %v11919_v45, %v3103_v55 }
 0x549   : > { %v3005_v8 = vadd.f32 %v3004_v49, %v2956_v2  ;;  %v11926_v2 = vld [vmem:[#allocation2 + $0x8] sm:$0xff] }
 0x54b   : > { %v13492_v22 = vadd.f32 %v11918_v39, %v3005_v8  ;;  %v2968_v8 = vpop.f32.mrf.mxu0  ;;  %v3067_v39 = vadd.f32 %v3066_v31, %v13462_v6 }
 0x54d   : > { %v3105_v44 = vpop.f32.mrf.mxu3  ;;  %v3178_v1 = vadd.f32 %v13494_v18, %v13492_v22 }
 0x54e   : > { %v3106_v30 = vadd.f32 %v3105_v44, %v3057_v63  ;;  %v2969_v44 = vadd.f32 %v2968_v8, %v13464_v54 }
 0x54f   : > { %3179 = vadd.xlane.f32.xlu1 %v3178_v1 }
 0x550   : > { %v3007_v61 = vpop.f32.mrf.mxu1  ;;  %v13500_v34 = vadd.f32 %v11920_v25, %v3106_v30 }
 0x551   : > { %v3008_v62 = vadd.f32 %v3007_v61, %v2959_v17 }
 0x553   : > { %v13502_v29 = vadd.f32 %v11921_v52, %v3008_v62  ;;  %v11929_v62 = vld [vmem:[#allocation2 + $0x38] sm:$0xff]  ;;  %v12048_v52 = vmov 256.0  }
 0x554   : > { %11590 = vrcp.f32 %v12048_v52 }
 0x555   : > { %v3107_v7 = vpop.f32.mrf.mxu3  ;;  %v3181_v53 = vadd.f32 %v13500_v34, %v13502_v29 }
 0x556   : > { %v3108_v51 = vadd.f32 %v3107_v7, %v3059_v40 }
 0x557   : > { %3182 = vadd.xlane.f32.xlu2 %v3181_v53 }
 0x558   : > { %v3009_v19 = vpop.f32.mrf.mxu1  ;;  %v13510_v28 = vadd.f32 %v11923_v42, %v3108_v51  ;;  %v3068_v51 = vpop.f32.mrf.mxu2 }
 0x559   : > { %v3010_v37 = vadd.f32 %v3009_v19, %v2961_v46  ;;  %v2970_v19 = vpop.f32.mrf.mxu0 }
 0x55a   : > { %v11591_v40 = vpop.eup %11590 }
 0x55b   : > { %v13508_v21 = vadd.f32 %v11922_v41, %v3010_v37  ;;  %v3218_v7 = vmul.f32 256.0, %v11591_v40  ;;  %vm3222_vm0 = vweird.f32 %v11591_v40 }
 0x55d   : > { %v3110_v24 = vpop.f32.mrf.mxu3  ;;  %v3184_v12 = vadd.f32 %v13510_v28, %v13508_v21  ;;  %v3219_v53 = vsub.f32 1.0, %v3218_v7 }
 0x55e   : > { %v3111_v48 = vadd.f32 %v3110_v24, %v3062_v14 }
 0x55f   : > { %3185 = vadd.xlane.f32.xlu0 %v3184_v12  ;;  %v3220_v46 = vmul.f32 %v11591_v40, %v3219_v53  ;;  %v11933_v53 = vld [vmem:[#allocation2 + $0xe0] sm:$0xff] }
 0x560   : > { %v3012_v33 = vpop.f32.mrf.mxu1  ;;  %v13516_v60 = vadd.f32 %v11924_v27, %v3111_v48  ;;  %v3069_v27 = vadd.f32 %v3068_v51, %v13462_v6 }
 0x561   : > { %v3013_v50 = vadd.f32 %v3012_v33, %v2964_v0  ;;  %v3221_v26 = vadd.f32 %v11591_v40, %v3220_v46  ;;  %v2971_v33 = vadd.f32 %v2970_v19, %v13464_v54 }
 0x563   : > { %v13518_v16 = vadd.f32 %v11925_v13, %v3013_v50  ;;  %v13538_v41 = vsel %vm3222_vm0, %v11591_v40, %v3221_v26  ;;  %v11932_v40 = vld [vmem:[#allocation2 + $0x90] sm:$0xff] }
 0x564   : > { %17365 = vst [vmem:[#allocation21_spill] sm:$0xff] %v13538_v41 }
 0x565   : > { %v3112_v5 = vpop.f32.mrf.mxu3  ;;  %v3187_v59 = vadd.f32 %v13516_v60, %v13518_v16 }
 0x566   : > { %v3113_v32 = vadd.f32 %v3112_v5, %v3064_v58 }
 0x567   : > { %3188 = vadd.xlane.f32.xlu1 %v3187_v59 }
 0x568   : > { %v3014_v4 = vpop.f32.mrf.mxu1  ;;  %v13526_v49 = vadd.f32 %v11927_v15, %v3113_v32 }
 0x569   : > { %v3015_v11 = vadd.f32 %v3014_v4, %v2966_v35 }
 0x56b   : > { %v13524_v55 = vadd.f32 %v11926_v2, %v3015_v11  ;;  %v11930_v11 = vld [vmem:[#allocation2 + $0x40] sm:$0xff] }
 0x56d   : > { %v3115_v45 = vpop.f32.mrf.mxu3  ;;  %v3190_v63 = vadd.f32 %v13526_v49, %v13524_v55 }
 0x56e   : > { %v3116_v1 = vadd.f32 %v3115_v45, %v3067_v39  ;;  %v11931_v45 = vld [vmem:[#allocation2 + $0xc8] sm:$0xff] }
 0x56f   : > { %3191 = vadd.xlane.f32.xlu2 %v3190_v63 }
 0x570   : > { %v3017_v17 = vpop.f32.mrf.mxu1  ;;  %v13532_v61 = vadd.f32 %v11928_v3, %v3116_v1 }
 0x571   : > { %v3018_v30 = vadd.f32 %v3017_v17, %v2969_v44 }
 0x573   : > { %v13534_v38 = vadd.f32 %v11929_v62, %v3018_v30 }
 0x575   : > { %v3193_v25 = vadd.f32 %v13532_v61, %v13534_v38  ;;  %v3117_v37 = vpop.f32.mrf.mxu3 }
 0x576   : > { %v3118_v59 = vadd.f32 %v3117_v37, %v3069_v27  ;;  %v11934_v27 = vld [vmem:[#allocation2 + $0xc0] sm:$0xff] }
 0x577   : > { %3194 = vadd.xlane.f32.xlu2 %v3193_v25  ;;  %v2973_v48 = vpop.f32.mrf.mxu0 }
 0x578   : > { %v3019_v20 = vpop.f32.mrf.mxu1  ;;  %v2974_v15 = vadd.f32 %v2973_v48, %v13464_v54  ;;  %v13568_v63 = vadd.f32 %v11931_v45, %v3118_v59 }
 0x579   : > { %v3020_v13 = vadd.f32 %v3019_v20, %v2971_v33 }
 0x57b   : > { %v13561_v31 = vadd.f32 %v11930_v11, %v3020_v13 }
 0x57d   : > { %v3071_v24 = vpop.f32.mrf.mxu2  ;;  %v3196_v17 = vadd.f32 %v13568_v63, %v13561_v31 }
 0x57e   : > { %v3120_v47 = vpop.f32.mrf.mxu3  ;;  %v3072_v35 = vadd.f32 %v3071_v24, %v13462_v6 }
 0x580   : > { %v3022_v5 = vpop.f32.mrf.mxu1  ;;  %v3121_v44 = vadd.f32 %v3120_v47, %v3072_v35 }
 0x581   : > { %v3023_v1 = vadd.f32 %v3022_v5, %v2974_v15 }
 0x582   : > { %v13574_v7 = vadd.f32 %v11932_v40, %v3121_v44 }
 0x583   : > { %v13576_v46 = vadd.f32 %v11933_v53, %v3023_v1 }
 0x585   : > { %v3073_v2 = vpop.f32.mrf.mxu2 }
 0x586   : > { %v3074_v62 = vadd.f32 %v3073_v2, %v13462_v6  ;;  %v3122_v25 = vpop.f32.mrf.mxu3 }
 0x588   : > { %v3024_v52 = vpop.f32.mrf.mxu1 }
 0x595   : > { %v3076_v19 = vpop.f32.mrf.mxu2 }
 0x596   : > { %v3077_v47 = vadd.f32 %v3076_v19, %v13462_v6 }
 0x59d   : > { %v3078_v15 = vpop.f32.mrf.mxu2 }
 0x59e   : > { %v3079_v1 = vadd.f32 %v3078_v15, %v13462_v6 }
 0x5aa   : > { %v3171_v42 = vpop.xlane.xlu1 %3170 }
 0x5ab   : > { %v3224_v14 = vmul.f32 %v13538_v41, %v3171_v42 }
 0x5ad   : > { %v13542_v12 = vsub.f32 %v13470_v43, %v3224_v14  ;;  %v13545_v0 = vsub.f32 %v13468_v57, %v3224_v14  ;;  %v3123_v14 = vadd.f32 %v3122_v25, %v3074_v62  ;;  %v11937_v25 = vld [vmem:[#allocation2 + $0xa8] sm:$0xff] }
 0x5af   : > { %v3272_v50 = vmul.f32 %v13542_v12, %v13542_v12  ;;  %v3273_v36 = vmul.f32 %v13545_v0, %v13545_v0  ;;  %v13592_v13 = vadd.f32 %v11934_v27, %v3123_v14 }
 0x5b1   : > { %v3304_v58 = vadd.f32 %v3273_v36, %v3272_v50  ;;  %v3125_v36 = vpop.f32.mrf.mxu3 }
 0x5b2   : > { %v3174_v43 = vpop.xlane.xlu2 %3173 }
 0x5b3   : > { %v3225_v57 = vmul.f32 %v13538_v41, %v3174_v43  ;;  %3305 = vadd.xlane.f32.xlu0 %v3304_v58  ;;  %v11935_v43 = vld [vmem:[#allocation2 + $0x70] sm:$0xff] }
 0x5b5   : > { %v13556_v32 = vsub.f32 %v13476_v9, %v3225_v57  ;;  %v13559_v4 = vsub.f32 %v13478_v56, %v3225_v57  ;;  %v2975_v9 = vpop.f32.mrf.mxu0  ;;  %v3027_v57 = vpop.f32.mrf.mxu1 }
 0x5b6   : > { %v2976_v37 = vadd.f32 %v2975_v9, %v13464_v54 }
 0x5b7   : > { %v3274_v8 = vmul.f32 %v13556_v32, %v13556_v32  ;;  %v3275_v39 = vmul.f32 %v13559_v4, %v13559_v4 }
 0x5b8   : > { %v3025_v48 = vadd.f32 %v3024_v52, %v2976_v37  ;;  %v3081_v37 = vpop.f32.mrf.mxu2 }
 0x5b9   : > { %v3307_v56 = vadd.f32 %v3275_v39, %v3274_v8  ;;  %v3126_v8 = vadd.f32 %v3125_v36, %v3077_v47  ;;  %v3127_v62 = vpop.f32.mrf.mxu3  ;;  %v11938_v36 = vld [vmem:[#allocation2 + $0x28] sm:$0xff] }
 0x5ba   : > { %v3177_v30 = vpop.xlane.xlu0 %3176  ;;  %v13601_v59 = vadd.f32 %v11935_v43, %v3025_v48 }
 0x5bb   : > { %v3226_v3 = vmul.f32 %v13538_v41, %v3177_v30  ;;  %3308 = vadd.xlane.f32.xlu1 %v3307_v56  ;;  %3197 = vadd.xlane.f32.xlu0 %v3196_v17  ;;  %v11936_v30 = vld [vmem:[#allocation2 + $0xd0] sm:$0xff] }
 0x5bd   : > { %v13579_v51 = vsub.f32 %v13486_v23, %v3226_v3  ;;  %v13582_v26 = vsub.f32 %v13484_v10, %v3226_v3  ;;  %v2978_v24 = vpop.f32.mrf.mxu0  ;;  %v3199_v23 = vadd.f32 %v13574_v7, %v13576_v46  ;;  %v13618_v3 = vadd.f32 %v11936_v30, %v3126_v8 }
 0x5be   : > { %v2979_v35 = vadd.f32 %v2978_v24, %v13464_v54 }
 0x5bf   : > { %v3276_v20 = vmul.f32 %v13579_v51, %v13579_v51  ;;  %v3277_v42 = vmul.f32 %v13582_v26, %v13582_v26 }
 0x5c0   : > { %v3028_v9 = vadd.f32 %v3027_v57, %v2979_v35 }
 0x5c1   : > { %v3310_v33 = vadd.f32 %v3277_v42, %v3276_v20  ;;  %v3128_v20 = vadd.f32 %v3127_v62, %v3079_v1  ;;  %v3130_v47 = vpop.f32.mrf.mxu3  ;;  %v11940_v62 = vld [vmem:[#allocation2 + $0xf8] sm:$0xff] }
 0x5c2   : > { %v3180_v50 = vpop.xlane.xlu1 %3179  ;;  %v13620_v52 = vadd.f32 %v11937_v25, %v3028_v9 }
 0x5c3   : > { %v3227_v10 = vmul.f32 %v13538_v41, %v3180_v50  ;;  %3311 = vadd.xlane.f32.xlu1 %v3310_v33  ;;  %3200 = vadd.xlane.f32.xlu0 %v3199_v23  ;;  %v3082_v23 = vadd.f32 %v3081_v37, %v13462_v6  ;;  %v13637_v27 = vadd.f32 %v11938_v36, %v3128_v20 }
 0x5c5   : > { %v13596_v58 = vsub.f32 %v13492_v22, %v3227_v10  ;;  %v13599_v5 = vsub.f32 %v13494_v18, %v3227_v10  ;;  %v3202_v22 = vadd.f32 %v13592_v13, %v13601_v59  ;;  %v2980_v18 = vpop.f32.mrf.mxu0  ;;  %v3131_v15 = vadd.f32 %v3130_v47, %v3082_v23 }
 0x5c6   : > { %v2981_v40 = vadd.f32 %v2980_v18, %v13464_v54 }
 0x5c7   : > { %v3278_v11 = vmul.f32 %v13596_v58, %v13596_v58  ;;  %v3279_v2 = vmul.f32 %v13599_v5, %v13599_v5  ;;  %v13656_v25 = vadd.f32 %v11940_v62, %v3131_v15 }
 0x5c9   : > { %v3313_v39 = vadd.f32 %v3279_v2, %v3278_v11  ;;  %v11939_v11 = vld [vmem:[#allocation2 + $0x10] sm:$0xff] }
 0x5ca   : > { %v3183_v45 = vpop.xlane.xlu2 %3182 }
 0x5cb   : > { %v3228_v44 = vmul.f32 %v13538_v41, %v3183_v45  ;;  %3203 = vadd.xlane.f32.xlu1 %v3202_v22  ;;  %3314 = vadd.xlane.f32.xlu2 %v3313_v39  ;;  %v3083_v22 = vpop.f32.mrf.mxu2 }
 0x5cd   : > { %v13613_v56 = vsub.f32 %v13502_v29, %v3228_v44  ;;  %v13616_v17 = vsub.f32 %v13500_v34, %v3228_v44  ;;  %v3029_v29 = vpop.f32.mrf.mxu1  ;;  %v3205_v34 = vadd.f32 %v13618_v3, %v13620_v52  ;;  %v2983_v14 = vpop.f32.mrf.mxu0  ;;  %v3084_v44 = vadd.f32 %v3083_v22, %v13462_v6 }
 0x5ce   : > { %v3030_v48 = vadd.f32 %v3029_v29, %v2981_v40  ;;  %v2984_v43 = vadd.f32 %v2983_v14, %v13464_v54  ;;  %v11941_v29 = vld [vmem:[#allocation2 + $0xa0] sm:$0xff]  ;;  %v3132_v6 = vpop.f32.mrf.mxu3 }
 0x5cf   : > { %v3280_v53 = vmul.f32 %v13613_v56, %v13613_v56  ;;  %v3281_v19 = vmul.f32 %v13616_v17, %v13616_v17 }
 0x5d0   : > { %v13644_v2 = vadd.f32 %v11939_v11, %v3030_v48 }
 0x5d1   : > { %v3316_v42 = vadd.f32 %v3281_v19, %v3280_v53 }
 0x5d2   : > { %v3186_v24 = vpop.xlane.xlu0 %3185 }
 0x5d3   : > { %v3229_v33 = vmul.f32 %v13538_v41, %v3186_v24  ;;  %3206 = vadd.xlane.f32.xlu1 %v3205_v34  ;;  %3317 = vadd.xlane.f32.xlu2 %v3316_v42 }
 0x5d5   : > { %v13632_v50 = vsub.f32 %v13508_v21, %v3229_v33  ;;  %v13635_v10 = vsub.f32 %v13510_v28, %v3229_v33  ;;  %v3032_v21 = vpop.f32.mrf.mxu1  ;;  %v3208_v28 = vadd.f32 %v13637_v27, %v13644_v2  ;;  %v2985_v9 = vpop.f32.mrf.mxu0  ;;  %v11942_v33 = vld [vmem:[#allocation2 + $0x98] sm:$0xff] }
 0x5d6   : > { %v3033_v18 = vadd.f32 %v3032_v21, %v2984_v43  ;;  %v2986_v40 = vadd.f32 %v2985_v9, %v13464_v54  ;;  %v11943_v43 = vld [vmem:[#allocation2 + $0x20] sm:$0xff] }
 0x5d7   : > { %v3282_v57 = vmul.f32 %v13632_v50, %v13632_v50  ;;  %v3283_v35 = vmul.f32 %v13635_v10, %v13635_v10  ;;  %v11207_v9 = vld [vmem:[%s12262_s23 + $0x3dc] sm:$0xf0] }
 0x5d8   : > { %v13663_v37 = vadd.f32 %v11941_v29, %v3033_v18  ;;  %v11143_v18 = vld [vmem:[%s12262_s23 + $0x1dc] sm:$0xf0] }
 0x5d9   : > { %v3319_v8 = vadd.f32 %v3283_v35, %v3282_v57 }
 0x5da   : > { %v3189_v39 = vpop.xlane.xlu1 %3188 }
 0x5db   : > { %v3230_v45 = vmul.f32 %v13538_v41, %v3189_v39  ;;  %3320 = vadd.xlane.f32.xlu0 %v3319_v8  ;;  %3209 = vadd.xlane.f32.xlu2 %v3208_v28  ;;  %v9958_v39 = vld [vmem:[%s12262_s23 + $0x1c0] sm:$0xf] }
 0x5dd   : > { %v13651_v1 = vsub.f32 %v13518_v16, %v3230_v45  ;;  %v13654_v30 = vsub.f32 %v13516_v60, %v3230_v45  ;;  %v3133_v16 = vadd.f32 %v3132_v6, %v3084_v44  ;;  %v3211_v60 = vadd.f32 %v13656_v25, %v13663_v37  ;;  %v3034_v34 = vpop.f32.mrf.mxu1  ;;  %v10214_v45 = vld [vmem:[%s12262_s23 + $0x3c0] sm:$0xf]  ;;  %v11139_v44 = vld [vmem:[%s12262_s23 + $0x1c4] sm:$0xf] }
 0x5de   : > { %v3035_v14 = vadd.f32 %v3034_v34, %v2986_v40  ;;  %v10215_v62 = vor.u32 %v11207_v9, %v10214_v45  ;;  %v9926_v6 = vld [vmem:[%s12262_s23 + $0x180] sm:$0xf]  ;;  %v11187_v45 = vld [vmem:[%s12262_s23 + $0x344] sm:$0xf] }
 0x5df   : > { %v3284_v53 = vmul.f32 %v13651_v1, %v13651_v1  ;;  %v3285_v19 = vmul.f32 %v13654_v30, %v13654_v30  ;;  %v13674_v23 = vadd.f32 %v11942_v33, %v3133_v16  ;;  %v11135_v16 = vld [vmem:[%s12262_s23 + $0x19c] sm:$0xf0] }
 0x5e0   : > { %v13680_v57 = vadd.f32 %v11943_v43, %v3035_v14  ;;  %4501 = vmatpush.bf16.msrb.mxu1 %v10215_v62  ;;  %v11199_v34 = vld [vmem:[%s12262_s23 + $0x39c] sm:$0xf0]  ;;  %v9928_v14 = vld [vmem:[%s12262_s23 + $0x1a0] sm:$0xf0] }
 0x5e1   : > { %v3322_v20 = vadd.f32 %v3285_v19, %v3284_v53  ;;  %v11203_v53 = vld [vmem:[%s12262_s23 + $0x3c4] sm:$0xf]  ;;  %v10118_v62 = vld [vmem:[%s12262_s23 + $0x300] sm:$0xf] }
 0x5e2   : > { %v3192_v42 = vpop.xlane.xlu2 %3191  ;;  %v10216_v19 = vld [vmem:[%s12262_s23 + $0x3e0] sm:$0xf0] }
 0x5e3   : > { %v3231_v54 = vmul.f32 %v13538_v41, %v3192_v42  ;;  %3323 = vadd.xlane.f32.xlu0 %v3322_v20  ;;  %3212 = vadd.xlane.f32.xlu2 %v3211_v60  ;;  %v10219_v29 = vor.u32 %v11203_v53, %v10216_v19  ;;  %v10182_v20 = vld [vmem:[%s12262_s23 + $0x380] sm:$0xf]  ;;  %v9927_v60 = vor.u32 %v11135_v16, %v9926_v6  ;;  %v11131_v42 = vld [vmem:[%s12262_s23 + $0x184] sm:$0xf] }
 0x5e4   : > { %v9931_v33 = vor.u32 %v11131_v42, %v9928_v14  ;;  %v11183_v53 = vld [vmem:[%s12262_s23 + $0x31c] sm:$0xf0]  ;;  %v11115_v19 = vld [vmem:[%s12262_s23 + $0x104] sm:$0xf] }
 0x5e5   : > { %v13669_v24 = vsub.f32 %v13524_v55, %v3231_v54  ;;  %v13672_v48 = vsub.f32 %v13526_v49, %v3231_v54  ;;  %v3214_v49 = vadd.f32 %v13674_v23, %v13680_v57  ;;  %4599 = vmatpush.bf16.msrb.mxu3 %v10219_v29  ;;  %v10183_v54 = vor.u32 %v11199_v34, %v10182_v20  ;;  %v9864_v29 = vld [vmem:[%s12262_s23 + $0x120] sm:$0xf0]  ;;  %v9830_v42 = vld [vmem:[%s12262_s23 + $0xc0] sm:$0xf] }
 0x5e6   : > { %v10119_v6 = vor.u32 %v11183_v53, %v10118_v62  ;;  %v9867_v16 = vor.u32 %v11115_v19, %v9864_v29  ;;  %v11179_v20 = vld [vmem:[%s12262_s23 + $0x304] sm:$0xf]  ;;  %v11111_v14 = vld [vmem:[%s12262_s23 + $0xdc] sm:$0xf0] }
 0x5e7   : > { %v3286_v36 = vmul.f32 %v13669_v24, %v13669_v24  ;;  %v3287_v47 = vmul.f32 %v13672_v48, %v13672_v48  ;;  %4502 = vmatpush.bf16.msrb.mxu1 %v10183_v54  ;;  %v10086_v54 = vld [vmem:[%s12262_s23 + $0x2c0] sm:$0xf]  ;;  %v11163_v62 = vld [vmem:[%s12262_s23 + $0x284] sm:$0xf] }
 0x5e8   : > { %v9766_v19 = vld [vmem:[%s12262_s23 + $0x40] sm:$0xf] }
 0x5e9   : > { %v3325_v55 = vadd.f32 %v3287_v47, %v3286_v36  ;;  %v11195_v36 = vld [vmem:[%s12262_s23 + $0x384] sm:$0xf]  ;;  %v11095_v29 = vld [vmem:[%s12262_s23 + $0x5c] sm:$0xf0] }
 0x5ea   : > { %v3195_v35 = vpop.xlane.xlu2 %3194  ;;  %v10184_v47 = vld [vmem:[%s12262_s23 + $0x3a0] sm:$0xf0] }
 0x5eb   : > { %v3232_v11 = vmul.f32 %v13538_v41, %v3195_v35  ;;  %3326 = vadd.xlane.f32.xlu1 %v3325_v55  ;;  %3215 = vadd.xlane.f32.xlu0 %v3214_v49  ;;  %v10187_v43 = vor.u32 %v11195_v36, %v10184_v47  ;;  %v9894_v55 = vld [vmem:[%s12262_s23 + $0x140] sm:$0xf]  ;;  %v11107_v47 = vld [vmem:[%s12262_s23 + $0xc4] sm:$0xf] }
 0x5ec   : > { %v11127_v49 = vld [vmem:[%s12262_s23 + $0x15c] sm:$0xf0] }
 0x5ed   : > { %v13686_v21 = vsub.f32 %v13534_v38, %v3232_v11  ;;  %v13689_v15 = vsub.f32 %v13532_v61, %v3232_v11  ;;  %v9959_v38 = vor.u32 %v11143_v18, %v9958_v39  ;;  %v9960_v61 = vld [vmem:[%s12262_s23 + $0x1e0] sm:$0xf0]  ;;  %v10150_v35 = vld [vmem:[%s12262_s23 + $0x340] sm:$0xf]  ;;  %4600 = vmatpush.bf16.msrb.mxu3 %v10187_v43  ;;  %v9895_v11 = vor.u32 %v11127_v49, %v9894_v55 }
 0x5ee   : > { %v9963_v40 = vor.u32 %v11139_v44, %v9960_v61  ;;  %v9862_v44 = vld [vmem:[%s12262_s23 + $0x100] sm:$0xf]  ;;  %v9832_v43 = vld [vmem:[%s12262_s23 + $0xe0] sm:$0xf0] }
 0x5ef   : > { %v3288_v8 = vmul.f32 %v13686_v21, %v13686_v21  ;;  %v3289_v28 = vmul.f32 %v13689_v15, %v13689_v15  ;;  %4452 = vmatpush.bf16.msrb.mxu0 %v9959_v38  ;;  %v10152_v38 = vld [vmem:[%s12262_s23 + $0x360] sm:$0xf0]  ;;  %v11119_v61 = vld [vmem:[%s12262_s23 + $0x11c] sm:$0xf0]  ;;  %v9835_v49 = vor.u32 %v11107_v47, %v9832_v43 }
 0x5f0   : > { %4550 = vmatpush.bf16.msrb.mxu2 %v9963_v40  ;;  %v10155_v9 = vor.u32 %v11187_v45, %v10152_v38  ;;  %v9863_v40 = vor.u32 %v11119_v61, %v9862_v44  ;;  %v11175_v36 = vld [vmem:[%s12262_s23 + $0x2dc] sm:$0xf0]  ;;  %v11099_v38 = vld [vmem:[%s12262_s23 + $0x84] sm:$0xf] }
 0x5f1   : > { %v3328_v22 = vadd.f32 %v3289_v28, %v3288_v8  ;;  %v11191_v8 = vld [vmem:[%s12262_s23 + $0x35c] sm:$0xf0]  ;;  %v11123_v28 = vld [vmem:[%s12262_s23 + $0x144] sm:$0xf]  ;;  %v10087_v55 = vor.u32 %v11175_v36, %v10086_v54 }
 0x5f2   : > { %v10151_v39 = vor.u32 %v11191_v8, %v10150_v35  ;;  %4601 = vmatpush.bf16.msrb.mxu3 %v10155_v9  ;;  %v11171_v35 = vld [vmem:[%s12262_s23 + $0x2c4] sm:$0xf]  ;;  %v11167_v45 = vld [vmem:[%s12262_s23 + $0x29c] sm:$0xf0] }
 0x5f3   : > { %3329 = vadd.xlane.f32.xlu1 %v3328_v22  ;;  %4453 = vmatpush.bf16.msrb.mxu0 %v9927_v60  ;;  %v9896_v22 = vld [vmem:[%s12262_s23 + $0x160] sm:$0xf0] }
 0x5f4   : > { %4551 = vmatpush.bf16.msrb.mxu2 %v9931_v33  ;;  %v9899_v18 = vor.u32 %v11123_v28, %v9896_v22  ;;  %4503 = vmatpush.bf16.msrb.mxu1 %v10151_v39  ;;  %v10120_v60 = vld [vmem:[%s12262_s23 + $0x320] sm:$0xf0]  ;;  %v9831_v33 = vor.u32 %v11111_v14, %v9830_v42  ;;  %v9798_v28 = vld [vmem:[%s12262_s23 + $0x80] sm:$0xf] }
 0x5f5   : > { %v10123_v34 = vor.u32 %v11179_v20, %v10120_v60  ;;  %v11103_v22 = vld [vmem:[%s12262_s23 + $0x9c] sm:$0xf0]  ;;  %v9800_v9 = vld [vmem:[%s12262_s23 + $0xa0] sm:$0xf0] }
 0x5f6   : > { %v10054_v39 = vld [vmem:[%s12262_s23 + $0x280] sm:$0xf]  ;;  %v9803_v61 = vor.u32 %v11099_v38, %v9800_v9  ;;  %v11091_v60 = vld [vmem:[%s12262_s23 + $0x44] sm:$0xf] }
 0x5f7   : > { %4454 = vmatpush.bf16.msrb.mxu0 %v9895_v11  ;;  %4602 = vmatpush.bf16.msrb.mxu3 %v10123_v34  ;;  %v10088_v11 = vld [vmem:[%s12262_s23 + $0x2e0] sm:$0xf0]  ;;  %v10055_v44 = vor.u32 %v11167_v45, %v10054_v39  ;;  %v11159_v20 = vld [vmem:[%s12262_s23 + $0x25c] sm:$0xf0] }
 0x5f8   : > { %4552 = vmatpush.bf16.msrb.mxu2 %v9899_v18  ;;  %4504 = vmatpush.bf16.msrb.mxu1 %v10119_v6  ;;  %v10091_v8 = vor.u32 %v11171_v35, %v10088_v11  ;;  %v9799_v18 = vor.u32 %v11103_v22, %v9798_v28  ;;  %v10022_v6 = vld [vmem:[%s12262_s23 + $0x240] sm:$0xf]  ;;  %v9768_v34 = vld [vmem:[%s12262_s23 + $0x60] sm:$0xf0] }
 0x5f9   : > { %v10023_v14 = vor.u32 %v11159_v20, %v10022_v6  ;;  %v9771_v54 = vor.u32 %v11091_v60, %v9768_v34  ;;  %v10024_v36 = vld [vmem:[%s12262_s23 + $0x260] sm:$0xf0]  ;;  %v9990_v35 = vld [vmem:[%s12262_s23 + $0x200] sm:$0xf] }
 0x5fa   : > { %v11151_v28 = vld [vmem:[%s12262_s23 + $0x21c] sm:$0xf0]  ;;  %v11083_v22 = vld [vmem:[%s12262_s23 + $0x4] sm:$0xf] }
 0x5fb   : > { %4455 = vmatpush.bf16.msrb.mxu0 %v9863_v40  ;;  %4603 = vmatpush.bf16.msrb.mxu3 %v10091_v8  ;;  %v10056_v40 = vld [vmem:[%s12262_s23 + $0x2a0] sm:$0xf0]  ;;  %v9991_v39 = vor.u32 %v11151_v28, %v9990_v35 }
 0x5fc   : > { %4553 = vmatpush.bf16.msrb.mxu2 %v9867_v16  ;;  %4505 = vmatpush.bf16.msrb.mxu1 %v10087_v55  ;;  %v10059_v53 = vor.u32 %v11163_v62, %v10056_v40  ;;  %v9767_v16 = vor.u32 %v11095_v29, %v9766_v19  ;;  %v9734_v55 = vld [vmem:[%s12262_s23] sm:$0xf]  ;;  %v11147_v45 = vld [vmem:[%s12262_s23 + $0x204] sm:$0xf] }
 0x5fd   : > { %v9992_v38 = vld [vmem:[%s12262_s23 + $0x220] sm:$0xf0] }
 0x5ff   : > { %4456 = vmatpush.bf16.msrb.mxu0 %v9831_v33  ;;  %4604 = vmatpush.bf16.msrb.mxu3 %v10059_v53  ;;  %v11155_v33 = vld [vmem:[%s12262_s23 + $0x244] sm:$0xf] }
 0x600   : > { %4554 = vmatpush.bf16.msrb.mxu2 %v9835_v49  ;;  %4506 = vmatpush.bf16.msrb.mxu1 %v10055_v44  ;;  %v10027_v43 = vor.u32 %v11155_v33, %v10024_v36  ;;  %v11087_v49 = vld [vmem:[%s12262_s23 + $0x1c] sm:$0xf0]  ;;  %v9995_v44 = vor.u32 %v11147_v45, %v9992_v38 }
 0x601   : > { %v9735_v8 = vor.u32 %v11087_v49, %v9734_v55 }
 0x603   : > { %4457 = vmatpush.bf16.msrb.mxu0 %v9799_v18  ;;  %4605 = vmatpush.bf16.msrb.mxu3 %v10027_v43  ;;  %v9736_v18 = vld [vmem:[%s12262_s23 + $0x20] sm:$0xf0] }
 0x604   : > { %4555 = vmatpush.bf16.msrb.mxu2 %v9803_v61  ;;  %4507 = vmatpush.bf16.msrb.mxu1 %v10023_v14  ;;  %v9739_v9 = vor.u32 %v11083_v22, %v9736_v18 }
 0x607   : > { %4458 = vmatpush.bf16.msrb.mxu0 %v9767_v16  ;;  %4606 = vmatpush.bf16.msrb.mxu3 %v9995_v44 }
 0x608   : > { %4556 = vmatpush.bf16.msrb.mxu2 %v9771_v54  ;;  %4508 = vmatpush.bf16.msrb.mxu1 %v9991_v39 }
 0x60b   : > { %4459 = vmatpush.bf16.msrb.mxu0 %v9735_v8 }
 0x60c   : > { %4557 = vmatpush.bf16.msrb.mxu2 %v9739_v9 }
 0x626   : > { %v3306_v42 = vpop.xlane.xlu0 %3305 }
 0x627   : > { %v3352_v47 = vmul.f32 %v3306_v42, %v13538_v41 }
 0x629   : > { %v3368_v11 = vadd.f32 1e-05, %v3352_v47 }
 0x62b   : > { %11592 = vrsqrt.f32 %v3368_v11  ;;  %vm3390_vm2 = vweird.f32 %v3368_v11 }
 0x62e   : > { %v3198_v61 = vpop.xlane.xlu0 %3197  ;;  %v3309_v62 = vpop.xlane.xlu1 %3308 }
 0x62f   : > { %v3233_v40 = vmul.f32 %v13538_v41, %v3198_v61  ;;  %v3353_v53 = vmul.f32 %v3309_v62, %v13538_v41 }
 0x631   : > { %v11593_v19 = vpop.eup %11592  ;;  %v13763_v29 = vsub.f32 %v13561_v31, %v3233_v40  ;;  %v13766_v6 = vsub.f32 %v13568_v63, %v3233_v40  ;;  %v3369_v16 = vadd.f32 1e-05, %v3353_v53 }
 0x632   : > { %v3385_v20 = vmul.f32 %v11593_v19, %v3368_v11  ;;  %vm3391_vm1 = vweird.f32 %v11593_v19  ;;  %v3168_v11 = vld [vmem:[%s17368_s30] sm:$0x3] }
 0x633   : > { %11594 = vrsqrt.f32 %v3369_v16  ;;  %v3290_v60 = vmul.f32 %v13763_v29, %v13763_v29  ;;  %v3291_v34 = vmul.f32 %v13766_v6, %v13766_v6  ;;  %vm3392_vm3 = vmor %vm3390_vm2, %vm3391_vm1  ;;  %vm3400_vm5 = vweird.f32 %v3369_v16 }
 0x634   : > { %v3386_v42 = vmul.f32 %v11593_v19, %v3385_v20 }
 0x635   : > { %v3331_v14 = vadd.f32 %v3291_v34, %v3290_v60 }
 0x636   : > { %v3387_v54 = vmul.f32 0.5, %v3386_v42  ;;  %v3201_v33 = vpop.xlane.xlu0 %3200  ;;  %v3312_v36 = vpop.xlane.xlu1 %3311  ;;  %v13805_v42 = vperm.slane %v3168_v11, 0 }
 0x637   : > { %v3234_v31 = vmul.f32 %v13538_v41, %v3201_v33  ;;  %v3354_v63 = vmul.f32 %v3312_v36, %v13538_v41  ;;  %3332 = vadd.xlane.f32.xlu2 %v3331_v14 }
 0x638   : > { %v3388_v47 = vsub.f32 1.5, %v3387_v54 }
 0x639   : > { %v11595_v43 = vpop.eup %11594  ;;  %v13775_v55 = vsub.f32 %v13576_v46, %v3234_v31  ;;  %v13778_v49 = vsub.f32 %v13574_v7, %v3234_v31  ;;  %v13780_v35 = vadd.f32 1e-05, %v3354_v63  ;;  %v3167_v7 = vld [vmem:[%s17366_s15] sm:$0x3]  ;;  %v13816_v31 = vperm.slane %v3168_v11, 1 }
 0x63a   : > { %v3389_v8 = vmul.f32 %v11593_v19, %v3388_v47  ;;  %v3395_v28 = vmul.f32 %v11595_v43, %v3369_v16  ;;  %v13797_v61 = vperm.slane %v3167_v7, 0  ;;  %vm3401_vm4 = vweird.f32 %v11595_v43 }
 0x63b   : > { %11596 = vrsqrt.f32 %v13780_v35  ;;  %v3292_v22 = vmul.f32 %v13775_v55, %v13775_v55  ;;  %v3293_v39 = vmul.f32 %v13778_v49, %v13778_v49  ;;  %vm3402_vm6 = vmor %vm3400_vm5, %vm3401_vm4  ;;  %vm3410_vm8 = vweird.f32 %v13780_v35 }
 0x63c   : > { %v3393_v46 = vsel %vm3392_vm3, %v11593_v19, %v3389_v8  ;;  %v3396_v18 = vmul.f32 %v11595_v43, %v3395_v28  ;;  %v13802_v19 = vperm.slane %v3167_v7, 1 }
 0x63d   : > { %v3334_v45 = vadd.f32 %v3293_v39, %v3292_v22  ;;  %v3544_v62 = vmul.f32 %v3393_v46, %v13542_v12  ;;  %v3545_v20 = vmul.f32 %v3393_v46, %v13545_v0 }
 0x63e   : > { %v3397_v38 = vmul.f32 0.5, %v3396_v18  ;;  %v3315_v9 = vpop.xlane.xlu2 %3314  ;;  %v3204_v44 = vpop.xlane.xlu1 %3203 }
 0x63f   : > { %v3355_v40 = vmul.f32 %v3315_v9, %v13538_v41  ;;  %v3235_v53 = vmul.f32 %v13538_v41, %v3204_v44  ;;  %3335 = vadd.xlane.f32.xlu0 %v3334_v45  ;;  %v3581_v0 = vmul.f32 %v13797_v61, %v3544_v62 }
 0x640   : > { %v3398_v60 = vsub.f32 1.5, %v3397_v38 }
 0x641   : > { %v11597_v34 = vpop.eup %11596  ;;  %v13807_v14 = vadd.f32 1e-05, %v3355_v40  ;;  %v13810_v54 = vsub.f32 %v13601_v59, %v3235_v53  ;;  %v13814_v36 = vsub.f32 %v13592_v13, %v3235_v53  ;;  %v3582_v59 = vmul.f32 %v13802_v19, %v3545_v20 }
 0x642   : > { %v3399_v12 = vmul.f32 %v11595_v43, %v3398_v60  ;;  %v3405_v33 = vmul.f32 %v11597_v34, %v13780_v35  ;;  %v13832_v38 = vadd.f32 %v13805_v42, %v3581_v0  ;;  %vm3411_vm7 = vweird.f32 %v11597_v34 }
 0x643   : > { %11598 = vrsqrt.f32 %v13807_v14  ;;  %v3294_v63 = vmul.f32 %v13810_v54, %v13810_v54  ;;  %v3295_v16 = vmul.f32 %v13814_v36, %v13814_v36  ;;  %v13835_v9 = vadd.f32 %v13816_v31, %v3582_v59  ;;  %vm3412_vm9 = vmor %vm3410_vm8, %vm3411_vm7 }
 0x644   : > { %v3403_v47 = vsel %vm3402_vm6, %v11595_v43, %v3399_v12  ;;  %v3406_v8 = vmul.f32 %v11597_v34, %v3405_v33  ;;  %17369 = vst [vmem:[#allocation19_spill] sm:$0xff] %v13832_v38  ;;  %vm3420_vm11 = vweird.f32 %v13807_v14 }
 0x645   : > { %v3546_v13 = vmul.f32 %v3403_v47, %v13556_v32  ;;  %v3547_v28 = vmul.f32 %v3403_v47, %v13559_v4  ;;  %v3337_v46 = vadd.f32 %v3295_v16, %v3294_v63  ;;  %17370 = vst [vmem:[#allocation22_spill] sm:$0xff] %v13835_v9 }
 0x646   : > { %v3407_v22 = vmul.f32 0.5, %v3406_v8  ;;  %v3318_v39 = vpop.xlane.xlu2 %3317  ;;  %v3207_v7 = vpop.xlane.xlu1 %3206 }
 0x647   : > { %v3583_v18 = vmul.f32 %v13797_v61, %v3546_v13  ;;  %v3584_v45 = vmul.f32 %v13802_v19, %v3547_v28  ;;  %v3356_v11 = vmul.f32 %v3318_v39, %v13538_v41  ;;  %v3236_v43 = vmul.f32 %v13538_v41, %v3207_v7  ;;  %3338 = vadd.xlane.f32.xlu1 %v3337_v46 }
 0x648   : > { %v3408_v32 = vsub.f32 1.5, %v3407_v22 }
 0x649   : > { %v11599_v4 = vpop.eup %11598  ;;  %v13838_v44 = vadd.f32 %v13805_v42, %v3583_v18  ;;  %v13841_v62 = vadd.f32 %v13816_v31, %v3584_v45  ;;  %v13843_v40 = vadd.f32 1e-05, %v3356_v11  ;;  %v13846_v53 = vsub.f32 %v13620_v52, %v3236_v43 }
 0x64a   : > { %v3409_v20 = vmul.f32 %v11597_v34, %v3408_v32  ;;  %v3415_v60 = vmul.f32 %v11599_v4, %v13807_v14  ;;  %v13851_v12 = vsub.f32 %v13618_v3, %v3236_v43  ;;  %vm3421_vm10 = vweird.f32 %v11599_v4 }
 0x64b   : > { %17371 = vst [vmem:[#allocation20_spill] sm:$0xff] %v13838_v44  ;;  %v13855_v33 = vpack.c.bf16 %v13838_v44, %v13832_v38  ;;  %v13859_v0 = vpack.c.bf16 %v13841_v62, %v13835_v9  ;;  %11600 = vrsqrt.f32 %v13843_v40  ;;  %v3296_v35 = vmul.f32 %v13846_v53, %v13846_v53  ;;  %vm3422_vm12 = vmor %vm3420_vm11, %vm3421_vm10  ;;  %v11160_v44 = vld [vmem:[%s12262_s23 + $0x264] sm:$0xf0]  ;;  %v9776_v9 = vld [vmem:[%s12262_s23 + $0x68] sm:$0xf0] }
 0x64c   : > { %17372 = vst [vmem:[#allocation25_spill] sm:$0xff] %v13841_v62  ;;  %v3413_v52 = vsel %vm3412_vm9, %v11597_v34, %v3409_v20  ;;  %v3416_v63 = vmul.f32 %v11599_v4, %v3415_v60  ;;  %v3297_v3 = vmul.f32 %v13851_v12, %v13851_v12  ;;  %vm3430_vm14 = vweird.f32 %v13843_v40  ;;  %v11092_v62 = vld [vmem:[%s12262_s23 + $0x4c] sm:$0xf] }
 0x64d   : > { %4460 = vmatmul.bf16.vlgmr.msrb.gmra.mxu0 %v13855_v33  ;;  %4509 = vmatmul.bf16.vlgmr.msrb.gmra.mxu1 %v13859_v0  ;;  %v3548_v34 = vmul.f32 %v3413_v52, %v13579_v51  ;;  %v3549_v22 = vmul.f32 %v3413_v52, %v13582_v26 }
 0x64e   : > { %v3417_v59 = vmul.f32 0.5, %v3416_v63  ;;  %4558 = vmatmul.bf16.vlgmr.msrb.gmra.mxu2 %v13855_v33  ;;  %4607 = vmatmul.bf16.vlgmr.msrb.gmra.mxu3 %v13859_v0  ;;  %v3321_v47 = vpop.xlane.xlu0 %3320  ;;  %v3210_v8 = vpop.xlane.xlu2 %3209  ;;  %v3340_v16 = vadd.f32 %v3297_v3, %v3296_v35 }
 0x64f   : > { %v3357_v13 = vmul.f32 %v3321_v47, %v13538_v41  ;;  %v3237_v28 = vmul.f32 %v13538_v41, %v3210_v8  ;;  %v3585_v43 = vmul.f32 %v13797_v61, %v3548_v34  ;;  %v3586_v32 = vmul.f32 %v13802_v19, %v3549_v22 }
 0x650   : > { %v3418_v39 = vsub.f32 1.5, %v3417_v59  ;;  %3341 = vadd.xlane.f32.xlu2 %v3340_v16 }
 0x651   : > { %v11601_v7 = vpop.eup %11600  ;;  %v13874_v46 = vadd.f32 1e-05, %v3357_v13  ;;  %v13877_v18 = vsub.f32 %v13644_v2, %v3237_v28  ;;  %v13882_v11 = vsub.f32 %v13637_v27, %v3237_v28  ;;  %v13898_v16 = vadd.f32 %v13805_v42, %v3585_v43 }
 0x652   : > { %v3419_v45 = vmul.f32 %v11599_v4, %v3418_v39  ;;  %v3425_v51 = vmul.f32 %v11601_v7, %v13843_v40  ;;  %v13901_v34 = vadd.f32 %v13816_v31, %v3586_v32  ;;  %vm3431_vm13 = vweird.f32 %v11601_v7 }
 0x653   : > { %11602 = vrsqrt.f32 %v13874_v46  ;;  %v3298_v26 = vmul.f32 %v13877_v18, %v13877_v18  ;;  %v3299_v14 = vmul.f32 %v13882_v11, %v13882_v11  ;;  %17373 = vst [vmem:[#allocation23_spill] sm:$0xff] %v13898_v16  ;;  %vm3432_vm15 = vmor %vm3430_vm14, %vm3431_vm13  ;;  %vm3440_vm1 = vweird.f32 %v13874_v46 }
 0x654   : > { %v3423_v2 = vsel %vm3422_vm12, %v11599_v4, %v3419_v45  ;;  %v3426_v20 = vmul.f32 %v11601_v7, %v3425_v51  ;;  %17374 = vst [vmem:[#allocation26_spill] sm:$0xff] %v13901_v34 }
 0x655   : > { %v3550_v60 = vmul.f32 %v3423_v2, %v13596_v58  ;;  %v3551_v27 = vmul.f32 %v3423_v2, %v13599_v5  ;;  %v3343_v3 = vadd.f32 %v3299_v14, %v3298_v26 }
 0x656   : > { %v3427_v52 = vmul.f32 0.5, %v3426_v20  ;;  %v3324_v63 = vpop.xlane.xlu0 %3323  ;;  %v3213_v35 = vpop.xlane.xlu2 %3212 }
 0x657   : > { %v3587_v59 = vmul.f32 %v13797_v61, %v3550_v60  ;;  %v3588_v47 = vmul.f32 %v13802_v19, %v3551_v27  ;;  %v3358_v8 = vmul.f32 %v3324_v63, %v13538_v41  ;;  %v3238_v4 = vmul.f32 %v13538_v41, %v3213_v35  ;;  %3344 = vadd.xlane.f32.xlu0 %v3343_v3 }
 0x658   : > { %v3428_v58 = vsub.f32 1.5, %v3427_v52 }
 0x659   : > { %v11603_v5 = vpop.eup %11602  ;;  %v13904_v13 = vadd.f32 %v13805_v42, %v3587_v59  ;;  %v13907_v28 = vadd.f32 %v13816_v31, %v3588_v47  ;;  %v13909_v22 = vadd.f32 1e-05, %v3358_v8  ;;  %v13912_v39 = vsub.f32 %v13663_v37, %v3238_v4 }
 0x65a   : > { %v3429_v45 = vmul.f32 %v11601_v7, %v3428_v58  ;;  %v3435_v51 = vmul.f32 %v11603_v5, %v13874_v46  ;;  %v13916_v43 = vsub.f32 %v13656_v25, %v3238_v4  ;;  %vm3441_vm0 = vweird.f32 %v11603_v5 }
 0x65b   : > { %17375 = vst [vmem:[#allocation24_spill] sm:$0xff] %v13904_v13  ;;  %v13920_v26 = vpack.c.bf16 %v13904_v13, %v13898_v16  ;;  %v13924_v32 = vpack.c.bf16 %v13907_v28, %v13901_v34  ;;  %11604 = vrsqrt.f32 %v13909_v22  ;;  %v3300_v2 = vmul.f32 %v13912_v39, %v13912_v39  ;;  %vm3442_vm2 = vmor %vm3440_vm1, %vm3441_vm0  ;;  %v9808_v13 = vld [vmem:[%s12262_s23 + $0xa8] sm:$0xf0]  ;;  %v10030_v16 = vld [vmem:[%s12262_s23 + $0x248] sm:$0xf] }
 0x65c   : > { %17376 = vst [vmem:[#allocation29_spill] sm:$0xff] %v13907_v28  ;;  %v3436_v37 = vmul.f32 %v11603_v5, %v3435_v51  ;;  %v3301_v25 = vmul.f32 %v13916_v43, %v13916_v43  ;;  %v3433_v20 = vsel %vm3432_vm15, %v11601_v7, %v3429_v45  ;;  %vm3450_vm4 = vweird.f32 %v13909_v22  ;;  %v11164_v28 = vld [vmem:[%s12262_s23 + $0x28c] sm:$0xf] }
 0x65d   : > { %4465 = vmatmul.bf16.gmra.mxu0 %v13920_v26  ;;  %4514 = vmatmul.bf16.gmra.mxu1 %v13924_v32  ;;  %v3552_v59 = vmul.f32 %v3433_v20, %v13613_v56  ;;  %v3553_v7 = vmul.f32 %v3433_v20, %v13616_v17 }
 0x65e   : > { %v3437_v14 = vmul.f32 0.5, %v3436_v37  ;;  %4563 = vmatmul.bf16.gmra.mxu2 %v13920_v26  ;;  %4612 = vmatmul.bf16.gmra.mxu3 %v13924_v32  ;;  %v3327_v60 = vpop.xlane.xlu1 %3326  ;;  %v3216_v40 = vpop.xlane.xlu0 %3215  ;;  %v3346_v27 = vadd.f32 %v3301_v25, %v3300_v2 }
 0x65f   : > { %v3359_v52 = vmul.f32 %v3327_v60, %v13538_v41  ;;  %v3239_v63 = vmul.f32 %v13538_v41, %v3216_v40  ;;  %v3590_v2 = vmul.f32 %v13802_v19, %v3553_v7 }
 0x660   : > { %v3438_v35 = vsub.f32 1.5, %v3437_v14  ;;  %3347 = vadd.xlane.f32.xlu1 %v3346_v27 }
 0x661   : > { %v11605_v3 = vpop.eup %11604  ;;  %v3375_v47 = vadd.f32 1e-05, %v3359_v52  ;;  %v13941_v8 = vsub.f32 %v13680_v57, %v3239_v63  ;;  %v13946_v45 = vsub.f32 %v13674_v23, %v3239_v63  ;;  %v3589_v57 = vmul.f32 %v13797_v61, %v3552_v59 }
 0x662   : > { %v3439_v4 = vmul.f32 %v11603_v5, %v3438_v35  ;;  %v3445_v58 = vmul.f32 %v11605_v3, %v13909_v22  ;;  %v13962_v52 = vadd.f32 %v13816_v31, %v3590_v2  ;;  %vm3451_vm3 = vweird.f32 %v11605_v3 }
 0x663   : > { %11606 = vrsqrt.f32 %v3375_v47  ;;  %v3302_v51 = vmul.f32 %v13941_v8, %v13941_v8  ;;  %v3303_v17 = vmul.f32 %v13946_v45, %v13946_v45  ;;  %v13959_v27 = vadd.f32 %v13805_v42, %v3589_v57  ;;  %vm3452_vm5 = vmor %vm3450_vm4, %vm3451_vm3 }
 0x664   : > { %v3443_v56 = vsel %vm3442_vm2, %v11603_v5, %v3439_v4  ;;  %v3446_v37 = vmul.f32 %v11605_v3, %v3445_v58  ;;  %17378 = vst [vmem:[#allocation30_spill] sm:$0xff] %v13962_v52  ;;  %vm3460_vm7 = vweird.f32 %v3375_v47 }
 0x665   : > { %v3554_v46 = vmul.f32 %v3443_v56, %v13632_v50  ;;  %v3555_v25 = vmul.f32 %v3443_v56, %v13635_v10  ;;  %v3349_v20 = vadd.f32 %v3303_v17, %v3302_v51  ;;  %17377 = vst [vmem:[#allocation27_spill] sm:$0xff] %v13959_v27 }
 0x666   : > { %v3447_v23 = vmul.f32 0.5, %v3446_v37 }
 0x667   : > { %v3591_v14 = vmul.f32 %v13797_v61, %v3554_v46  ;;  %v3592_v60 = vmul.f32 %v13802_v19, %v3555_v25  ;;  %3350 = vadd.xlane.f32.xlu2 %v3349_v20 }
 0x668   : > { %v3448_v40 = vsub.f32 1.5, %v3447_v23 }
 0x669   : > { %v11607_v5 = vpop.eup %11606  ;;  %v13965_v63 = vadd.f32 %v13805_v42, %v3591_v14  ;;  %v13968_v50 = vadd.f32 %v13816_v31, %v3592_v60  ;;  %v3330_v60 = vpop.xlane.xlu1 %3329 }
 0x66a   : > { %v3449_v10 = vmul.f32 %v11605_v3, %v3448_v40  ;;  %v3455_v35 = vmul.f32 %v11607_v5, %v3375_v47  ;;  %vm3461_vm6 = vweird.f32 %v11607_v5  ;;  %v3360_v40 = vmul.f32 %v3330_v60, %v13538_v41 }
 0x66b   : > { %17379 = vst [vmem:[#allocation28_spill] sm:$0xff] %v13965_v63  ;;  %v13972_v59 = vpack.c.bf16 %v13965_v63, %v13959_v27  ;;  %v13976_v7 = vpack.c.bf16 %v13968_v50, %v13962_v52  ;;  %vm3462_vm8 = vmor %vm3460_vm7, %vm3461_vm6 }
 0x66c   : > { %17380 = vst [vmem:[#allocation33_spill] sm:$0xff] %v13968_v50  ;;  %v3456_v4 = vmul.f32 %v11607_v5, %v3455_v35  ;;  %v3453_v58 = vsel %vm3452_vm5, %v11605_v3, %v3449_v10 }
 0x66d   : > { %4470 = vmatmul.bf16.gmra.mxu0 %v13972_v59  ;;  %4519 = vmatmul.bf16.gmra.mxu1 %v13976_v7  ;;  %v3556_v37 = vmul.f32 %v3453_v58, %v13651_v1  ;;  %v3557_v17 = vmul.f32 %v3453_v58, %v13654_v30 }
 0x66e   : > { %v3457_v51 = vmul.f32 0.5, %v3456_v4  ;;  %4568 = vmatmul.bf16.gmra.mxu2 %v13972_v59  ;;  %4617 = vmatmul.bf16.gmra.mxu3 %v13976_v7 }
 0x66f   : > { %v3593_v2 = vmul.f32 %v13797_v61, %v3556_v37  ;;  %v3594_v46 = vmul.f32 %v13802_v19, %v3557_v17 }
 0x670   : > { %v3458_v56 = vsub.f32 1.5, %v3457_v51 }
 0x671   : > { %v13992_v1 = vadd.f32 %v13805_v42, %v3593_v2  ;;  %v13995_v30 = vadd.f32 %v13816_v31, %v3594_v46 }
 0x672   : > { %v3459_v57 = vmul.f32 %v11607_v5, %v3458_v56 }
 0x673   : > { %17381 = vst [vmem:[#allocation31_spill] sm:$0xff] %v13992_v1 }
 0x674   : > { %v3463_v22 = vsel %vm3462_vm8, %v11607_v5, %v3459_v57  ;;  %17382 = vst [vmem:[#allocation34_spill] sm:$0xff] %v13995_v30  ;;  %v3376_v5 = vadd.f32 1e-05, %v3360_v40 }
 0x675   : > { %v3558_v3 = vmul.f32 %v3463_v22, %v13669_v24  ;;  %v3559_v25 = vmul.f32 %v3463_v22, %v13672_v48 }
 0x676   : > { %11608 = vrsqrt.f32 %v3376_v5  ;;  %vm3470_vm10 = vweird.f32 %v3376_v5 }
 0x677   : > { %v3595_v23 = vmul.f32 %v13797_v61, %v3558_v3  ;;  %v3596_v20 = vmul.f32 %v13802_v19, %v3559_v25 }
 0x679   : > { %v13998_v47 = vadd.f32 %v13805_v42, %v3595_v23  ;;  %v14001_v14 = vadd.f32 %v13816_v31, %v3596_v20 }
 0x67b   : > { %17383 = vst [vmem:[#allocation32_spill] sm:$0xff] %v13998_v47  ;;  %v14005_v24 = vpack.c.bf16 %v13998_v47, %v13992_v1  ;;  %v14009_v48 = vpack.c.bf16 %v14001_v14, %v13995_v30 }
 0x67c   : > { %17384 = vst [vmem:[#allocation37_spill] sm:$0xff] %v14001_v14  ;;  %v11609_v10 = vpop.eup %11608 }
 0x67d   : > { %4475 = vmatmul.bf16.gmra.mxu0 %v14005_v24  ;;  %4524 = vmatmul.bf16.gmra.mxu1 %v14009_v48  ;;  %v3465_v35 = vmul.f32 %v11609_v10, %v3376_v5  ;;  %vm3471_vm9 = vweird.f32 %v11609_v10 }
 0x67e   : > { %4573 = vmatmul.bf16.gmra.mxu2 %v14005_v24  ;;  %4622 = vmatmul.bf16.gmra.mxu3 %v14009_v48  ;;  %vm3472_vm11 = vmor %vm3470_vm10, %vm3471_vm9 }
 0x67f   : > { %v3466_v4 = vmul.f32 %v11609_v10, %v3465_v35 }
 0x681   : > { %v3467_v56 = vmul.f32 0.5, %v3466_v4 }
 0x683   : > { %v3468_v17 = vsub.f32 1.5, %v3467_v56 }
 0x685   : > { %v3469_v2 = vmul.f32 %v11609_v10, %v3468_v17 }
 0x687   : > { %v3473_v23 = vsel %vm3472_vm11, %v11609_v10, %v3469_v2 }
 0x688   : > { %v3560_v40 = vmul.f32 %v3473_v23, %v13686_v21  ;;  %v3561_v4 = vmul.f32 %v3473_v23, %v13689_v15 }
 0x68a   : > { %v3597_v10 = vmul.f32 %v13797_v61, %v3560_v40  ;;  %v3598_v21 = vmul.f32 %v13802_v19, %v3561_v4  ;;  %v3778_v40 = vld [vmem:[%s12267_s3] sm:$0xff] }
 0x68c   : > { %v14035_v4 = vadd.f32 %v13816_v31, %v3598_v21 }
 0x68e   : > { %17386 = vst [vmem:[#allocation38_spill] sm:$0xff] %v14035_v4 }
 0x6aa   : > { %v3333_v58 = vpop.xlane.xlu2 %3332 }
 0x6ab   : > { %v3361_v51 = vmul.f32 %v3333_v58, %v13538_v41 }
 0x6ad   : > { %v3377_v37 = vadd.f32 1e-05, %v3361_v51 }
 0x6af   : > { %11610 = vrsqrt.f32 %v3377_v37  ;;  %vm3480_vm13 = vweird.f32 %v3377_v37 }
 0x6b2   : > { %v3336_v57 = vpop.xlane.xlu0 %3335 }
 0x6b3   : > { %v3362_v22 = vmul.f32 %v3336_v57, %v13538_v41 }
 0x6b5   : > { %v11611_v46 = vpop.eup %11610  ;;  %v3378_v3 = vadd.f32 1e-05, %v3362_v22 }
 0x6b6   : > { %v3475_v25 = vmul.f32 %v11611_v46, %v3377_v37  ;;  %vm3481_vm12 = vweird.f32 %v11611_v46 }
 0x6b7   : > { %11612 = vrsqrt.f32 %v3378_v3  ;;  %vm3482_vm14 = vmor %vm3480_vm13, %vm3481_vm12  ;;  %vm3490_vm0 = vweird.f32 %v3378_v3 }
 0x6b8   : > { %v3476_v20 = vmul.f32 %v11611_v46, %v3475_v25 }
 0x6ba   : > { %v3477_v60 = vmul.f32 0.5, %v3476_v20  ;;  %v3339_v35 = vpop.xlane.xlu1 %3338 }
 0x6bb   : > { %v3363_v51 = vmul.f32 %v3339_v35, %v13538_v41  ;;  %v14032_v35 = vadd.f32 %v13805_v42, %v3597_v10 }
 0x6bc   : > { %v3478_v58 = vsub.f32 1.5, %v3477_v60 }
 0x6bd   : > { %v11613_v56 = vpop.eup %11612  ;;  %v14021_v57 = vadd.f32 1e-05, %v3363_v51  ;;  %17385 = vst [vmem:[#allocation35_spill] sm:$0xff] %v14032_v35  ;;  %v11140_v51 = vld [vmem:[%s12262_s23 + $0x1cc] sm:$0xf] }
 0x6be   : > { %v3479_v17 = vmul.f32 %v11611_v46, %v3478_v58  ;;  %v3485_v5 = vmul.f32 %v11613_v56, %v3378_v3  ;;  %vm3491_vm15 = vweird.f32 %v11613_v56 }
 0x6bf   : > { %11614 = vrsqrt.f32 %v14021_v57  ;;  %vm3492_vm1 = vmor %vm3490_vm0, %vm3491_vm15  ;;  %vm3500_vm3 = vweird.f32 %v14021_v57 }
 0x6c0   : > { %v3483_v22 = vsel %vm3482_vm14, %v11611_v46, %v3479_v17  ;;  %v3486_v15 = vmul.f32 %v11613_v56, %v3485_v5 }
 0x6c1   : > { %v3562_v2 = vmul.f32 %v3483_v22, %v13763_v29  ;;  %v3563_v25 = vmul.f32 %v3483_v22, %v13766_v6  ;;  %v9968_v29 = vld [vmem:[%s12262_s23 + $0x1e8] sm:$0xf0] }
 0x6c2   : > { %v3487_v23 = vmul.f32 0.5, %v3486_v15  ;;  %v9971_v5 = vor.u32 %v11140_v51, %v9968_v29  ;;  %v14048_v15 = vperm.slane %v3778_v40, 0  ;;  %v10224_v51 = vld [vmem:[%s12262_s23 + $0x3e8] sm:$0xf0]  ;;  %v10222_v29 = vld [vmem:[%s12262_s23 + $0x3c8] sm:$0xf] }
 0x6c3   : > { %v3599_v37 = vmul.f32 %v13797_v61, %v3562_v2  ;;  %v3600_v20 = vmul.f32 %v13802_v19, %v3563_v25  ;;  %v3342_v60 = vpop.xlane.xlu2 %3341 }
 0x6c4   : > { %v3488_v46 = vsub.f32 1.5, %v3487_v23  ;;  %v3364_v58 = vmul.f32 %v3342_v60, %v13538_v41  ;;  %4746 = vmatpush.bf16.msra.mxu2 %v9971_v5 }
 0x6c5   : > { %v14041_v6 = vadd.f32 %v13805_v42, %v3599_v37  ;;  %v14044_v17 = vadd.f32 %v13816_v31, %v3600_v20  ;;  %v11615_v10 = vpop.eup %11614  ;;  %v9966_v37 = vld [vmem:[%s12262_s23 + $0x1c8] sm:$0xf] }
 0x6c6   : > { %v3489_v22 = vmul.f32 %v11613_v56, %v3488_v46  ;;  %v14046_v21 = vadd.f32 1e-05, %v3364_v58  ;;  %v3495_v23 = vmul.f32 %v11615_v10, %v14021_v57  ;;  %v11144_v20 = vld [vmem:[%s12262_s23 + $0x1e4] sm:$0xf0]  ;;  %v11204_v58 = vld [vmem:[%s12262_s23 + $0x3cc] sm:$0xf]  ;;  %vm3501_vm2 = vweird.f32 %v11615_v10 }
 0x6c7   : > { %17387 = vst [vmem:[#allocation36_spill] sm:$0xff] %v14041_v6  ;;  %v14052_v2 = vpack.c.bf16 %v14041_v6, %v14032_v35  ;;  %v14056_v25 = vpack.c.bf16 %v14044_v17, %v14035_v4  ;;  %v9967_v6 = vor.u32 %v11144_v20, %v9966_v37  ;;  %v11208_v4 = vld [vmem:[%s12262_s23 + $0x3e4] sm:$0xf0]  ;;  %vm3502_vm4 = vmor %vm3500_vm3, %vm3501_vm2 }
 0x6c8   : > { %17388 = vst [vmem:[#allocation47_spill] sm:$0xff] %v14044_v17  ;;  %11616 = vrsqrt.f32 %v14046_v21  ;;  %v3493_v60 = vsel %vm3492_vm1, %v11613_v56, %v3489_v22  ;;  %v3496_v46 = vmul.f32 %v11615_v10, %v3495_v23  ;;  %v10227_v17 = vor.u32 %v11204_v58, %v10224_v51  ;;  %v9934_v57 = vld [vmem:[%s12262_s23 + $0x188] sm:$0xf] }
 0x6c9   : > { %4480 = vmatmul.bf16.gmra.mxu0 %v14052_v2  ;;  %4529 = vmatmul.bf16.gmra.mxu1 %v14056_v25  ;;  %v3564_v23 = vmul.f32 %v3493_v60, %v13775_v55  ;;  %v10223_v14 = vor.u32 %v11208_v4, %v10222_v29  ;;  %v3565_v30 = vmul.f32 %v3493_v60, %v13778_v49  ;;  %v14078_v58 = vperm.slane %v3778_v40, 1  ;;  %v11136_v51 = vld [vmem:[%s12262_s23 + $0x1a4] sm:$0xf0]  ;;  %v11196_v29 = vld [vmem:[%s12262_s23 + $0x38c] sm:$0xf] }
 0x6ca   : > { %4578 = vmatmul.bf16.gmra.mxu2 %v14052_v2  ;;  %4627 = vmatmul.bf16.gmra.mxu3 %v14056_v25  ;;  %v4461_v3 = vpop.f32.mrf.mxu0  ;;  %v4510_v5 = vpop.f32.mrf.mxu1  ;;  %v3497_v35 = vmul.f32 0.5, %v3496_v46  ;;  %vm3510_vm6 = vweird.f32 %v14046_v21 }
 0x6cb   : > { %v4462_v56 = vadd.f32 %v4461_v3, %v14048_v15  ;;  %v3345_v22 = vpop.xlane.xlu0 %3344  ;;  %4648 = vmatpush.bf16.msra.mxu0 %v9967_v6  ;;  %4795 = vmatpush.bf16.msra.mxu3 %v10227_v17  ;;  %v3601_v49 = vmul.f32 %v13797_v61, %v3564_v23  ;;  %v9936_v6 = vld [vmem:[%s12262_s23 + $0x1a8] sm:$0xf0] }
 0x6cc   : > { %v3365_v47 = vmul.f32 %v3345_v22, %v13538_v41  ;;  %v3498_v1 = vsub.f32 1.5, %v3497_v35  ;;  %4697 = vmatpush.bf16.msra.mxu1 %v10223_v14  ;;  %v11132_v35 = vld [vmem:[%s12262_s23 + $0x18c] sm:$0xf] }
 0x6cd   : > { %v14074_v37 = vadd.f32 %v4510_v5, %v4462_v56  ;;  %v9939_v60 = vor.u32 %v11132_v35, %v9936_v6 }
 0x6ce   : > { %v11617_v20 = vpop.eup %11616  ;;  %v14076_v46 = vadd.f32 1e-05, %v3365_v47  ;;  %v3499_v55 = vmul.f32 %v11615_v10, %v3498_v1  ;;  %v3602_v47 = vmul.f32 %v13802_v19, %v3565_v30  ;;  %v9935_v30 = vor.u32 %v11136_v51, %v9934_v57 }
 0x6cf   : > { %v3505_v4 = vmul.f32 %v11617_v20, %v14046_v21  ;;  %4747 = vmatpush.bf16.msra.mxu2 %v9939_v60  ;;  %vm3511_vm5 = vweird.f32 %v11617_v20  ;;  %v14106_v51 = vadd.f32 %v13805_v42, %v3601_v49 }
 0x6d0   : > { %11618 = vrsqrt.f32 %v14076_v46  ;;  %v3503_v14 = vsel %vm3502_vm4, %v11615_v10, %v3499_v55  ;;  %v10192_v10 = vld [vmem:[%s12262_s23 + $0x3a8] sm:$0xf0]  ;;  %v10190_v55 = vld [vmem:[%s12262_s23 + $0x388] sm:$0xf]  ;;  %4649 = vmatpush.bf16.msra.mxu0 %v9935_v30  ;;  %vm3512_vm7 = vmor %vm3510_vm6, %vm3511_vm5  ;;  %vm3520_vm9 = vweird.f32 %v14076_v46 }
 0x6d1   : > { %v3506_v40 = vmul.f32 %v11617_v20, %v3505_v4  ;;  %v4559_v1 = vpop.f32.mrf.mxu2  ;;  %v4608_v17 = vpop.f32.mrf.mxu3  ;;  %v3566_v3 = vmul.f32 %v3503_v14, %v13810_v54  ;;  %v3567_v5 = vmul.f32 %v3503_v14, %v13814_v36  ;;  %v11200_v4 = vld [vmem:[%s12262_s23 + $0x3a4] sm:$0xf0]  ;;  %v10195_v35 = vor.u32 %v11196_v29, %v10192_v10  ;;  %17389 = vst [vmem:[#allocation49_spill] sm:$0xff] %v14106_v51 }
 0x6d2   : > { %v4560_v56 = vadd.f32 %v4559_v1, %v14078_v58  ;;  %v14093_v22 = vpop.f32.mrf.mxu0  ;;  %v14095_v23 = vpop.f32.mrf.mxu1  ;;  %v10191_v1 = vor.u32 %v11200_v4, %v10190_v55 }
 0x6d3   : > { %v3507_v63 = vmul.f32 0.5, %v3506_v40  ;;  %v3348_v50 = vpop.xlane.xlu1 %3347  ;;  %v3603_v6 = vmul.f32 %v13797_v61, %v3566_v3  ;;  %v3604_v54 = vmul.f32 %v13802_v19, %v3567_v5  ;;  %4796 = vmatpush.bf16.msra.mxu3 %v10195_v35  ;;  %v14109_v40 = vadd.f32 %v13816_v31, %v3602_v47 }
 0x6d4   : > { %v14102_v52 = vadd.f32 %v4608_v17, %v4560_v56  ;;  %v3366_v36 = vmul.f32 %v3348_v50, %v13538_v41  ;;  %4698 = vmatpush.bf16.msra.mxu1 %v10191_v1  ;;  %v11124_v1 = vld [vmem:[%s12262_s23 + $0x14c] sm:$0xf] }
 0x6d5   : > { %v3508_v14 = vsub.f32 1.5, %v3507_v63  ;;  %17390 = vst [vmem:[#allocation50_spill] sm:$0xff] %v14109_v40  ;;  %v14112_v60 = vadd.f32 %v13805_v42, %v3603_v6  ;;  %v14115_v17 = vadd.f32 %v13816_v31, %v3604_v54 }
 0x6d6   : > { %v11619_v57 = vpop.eup %11618  ;;  %v14119_v50 = vadd.f32 1e-05, %v3366_v36 }
 0x6d7   : > { %17391 = vst [vmem:[#allocation41_spill] sm:$0xff] %v14112_v60  ;;  %v3509_v29 = vmul.f32 %v11617_v20, %v3508_v14  ;;  %v3515_v63 = vmul.f32 %v11619_v57, %v14076_v46  ;;  %v14123_v49 = vpack.c.bf16 %v14112_v60, %v14106_v51  ;;  %v14127_v47 = vpack.c.bf16 %v14115_v17, %v14109_v40  ;;  %v10158_v51 = vld [vmem:[%s12262_s23 + $0x348] sm:$0xf] }
 0x6d8   : > { %17392 = vst [vmem:[#allocation39_spill] sm:$0xff] %v14115_v17  ;;  %11620 = vrsqrt.f32 %v14119_v50  ;;  %vm3521_vm8 = vweird.f32 %v11619_v57  ;;  %vm3530_vm12 = vweird.f32 %v14119_v50 }
 0x6d9   : > { %17393 = vst [vmem:[#allocation48_spill] sm:$0xff] %v14123_v49  ;;  %v3513_v3 = vsel %vm3512_vm7, %v11617_v20, %v3509_v29  ;;  %v3516_v5 = vmul.f32 %v11619_v57, %v3515_v63  ;;  %v14130_v56 = vpop.f32.mrf.mxu2  ;;  %v14132_v21 = vpop.f32.mrf.mxu3  ;;  %4485 = vmatmul.bf16.gmra.mxu0 %v14123_v49  ;;  %4534 = vmatmul.bf16.gmra.mxu1 %v14127_v47  ;;  %v9904_v29 = vld [vmem:[%s12262_s23 + $0x168] sm:$0xf0]  ;;  %vm3522_vm10 = vmor %vm3520_vm9, %vm3521_vm8 }
 0x6da   : > { %17394 = vst [vmem:[#allocation42_spill] sm:$0xff] %v14127_v47  ;;  %v4466_v30 = vpop.f32.mrf.mxu0  ;;  %v4515_v10 = vpop.f32.mrf.mxu1  ;;  %4583 = vmatmul.bf16.gmra.mxu2 %v14123_v49  ;;  %4632 = vmatmul.bf16.gmra.mxu3 %v14127_v47  ;;  %v3568_v35 = vmul.f32 %v3513_v3, %v13846_v53  ;;  %v3569_v6 = vmul.f32 %v3513_v3, %v13851_v12 }
 0x6db   : > { %v3517_v55 = vmul.f32 0.5, %v3516_v5  ;;  %v4467_v20 = vadd.f32 %v4466_v30, %v14048_v15  ;;  %v3351_v4 = vpop.xlane.xlu2 %3350  ;;  %v9907_v30 = vor.u32 %v11124_v1, %v9904_v29  ;;  %v9902_v1 = vld [vmem:[%s12262_s23 + $0x148] sm:$0xf] }
 0x6dc   : > { %v3367_v14 = vmul.f32 %v3351_v4, %v13538_v41  ;;  %v3605_v53 = vmul.f32 %v13797_v61, %v3568_v35  ;;  %v3606_v12 = vmul.f32 %v13802_v19, %v3569_v6  ;;  %v11128_v29 = vld [vmem:[%s12262_s23 + $0x164] sm:$0xf0] }
 0x6dd   : > { %v3518_v54 = vsub.f32 1.5, %v3517_v55  ;;  %v14142_v36 = vadd.f32 %v4515_v10, %v4467_v20  ;;  %4748 = vmatpush.bf16.msra.mxu2 %v9907_v30  ;;  %v9903_v41 = vor.u32 %v11128_v29, %v9902_v1 }
 0x6de   : > { %v3383_v5 = vadd.f32 1e-05, %v3367_v14  ;;  %v11621_v60 = vpop.eup %11620  ;;  %v14162_v6 = vadd.f32 %v13805_v42, %v3605_v53 }
 0x6df   : > { %v3519_v63 = vmul.f32 %v11619_v57, %v3518_v54  ;;  %v3525_v14 = vmul.f32 %v11621_v60, %v14119_v50  ;;  %4650 = vmatpush.bf16.msra.mxu0 %v9903_v41  ;;  %vm3531_vm11 = vweird.f32 %v11621_v60 }
 0x6e0   : > { %11622 = vrsqrt.f32 %v3383_v5  ;;  %17395 = vst [vmem:[#allocation40_spill] sm:$0xff] %v14162_v6  ;;  %vm3532_vm13 = vmor %vm3530_vm12, %vm3531_vm11  ;;  %vm3540_vm15 = vweird.f32 %v3383_v5 }
 0x6e1   : > { %v3523_v3 = vsel %vm3522_vm10, %v11619_v57, %v3519_v63  ;;  %v4564_v10 = vpop.f32.mrf.mxu2  ;;  %v4613_v55 = vpop.f32.mrf.mxu3 }
 0x6e2   : > { %v3570_v20 = vmul.f32 %v3523_v3, %v13877_v18  ;;  %v3571_v4 = vmul.f32 %v3523_v3, %v13882_v11  ;;  %v14152_v54 = vpop.f32.mrf.mxu0  ;;  %v14154_v46 = vpop.f32.mrf.mxu1  ;;  %v14165_v18 = vadd.f32 %v13816_v31, %v3606_v12  ;;  %v3526_v11 = vmul.f32 %v11621_v60, %v3525_v14 }
 0x6e3   : > { %v4565_v3 = vadd.f32 %v4564_v10, %v14078_v58 }
 0x6e4   : > { %v3607_v35 = vmul.f32 %v13797_v61, %v3570_v20  ;;  %v3608_v57 = vmul.f32 %v13802_v19, %v3571_v4  ;;  %17396 = vst [vmem:[#allocation45_spill] sm:$0xff] %v14165_v18  ;;  %v3527_v20 = vmul.f32 0.5, %v3526_v11 }
 0x6e5   : > { %v14186_v29 = vadd.f32 %v4613_v55, %v4565_v3 }
 0x6e6   : > { %v14168_v63 = vadd.f32 %v13805_v42, %v3607_v35  ;;  %v14171_v30 = vadd.f32 %v13816_v31, %v3608_v57  ;;  %v11623_v17 = vpop.eup %11622  ;;  %v3528_v14 = vsub.f32 1.5, %v3527_v20 }
 0x6e7   : > { %v3535_v4 = vmul.f32 %v11623_v17, %v3383_v5  ;;  %17400 = vst [vmem:[#allocation51_spill] sm:$0xff] %v14186_v29  ;;  %vm3541_vm14 = vweird.f32 %v11623_v17 }
 0x6e8   : > { %17397 = vst [vmem:[#allocation43_spill] sm:$0xff] %v14168_v63  ;;  %v14176_v53 = vpack.c.bf16 %v14168_v63, %v14162_v6  ;;  %v14180_v12 = vpack.c.bf16 %v14171_v30, %v14165_v18  ;;  %v11188_v63 = vld [vmem:[%s12262_s23 + $0x34c] sm:$0xf]  ;;  %v3529_v18 = vmul.f32 %v11621_v60, %v3528_v14  ;;  %vm3542_vm0 = vmor %vm3540_vm15, %vm3541_vm14 }
 0x6e9   : > { %17398 = vst [vmem:[#allocation46_spill] sm:$0xff] %v14171_v30  ;;  %v14182_v35 = vpop.f32.mrf.mxu2  ;;  %v14184_v10 = vpop.f32.mrf.mxu3  ;;  %v3536_v1 = vmul.f32 %v11623_v17, %v3535_v4  ;;  %v10160_v30 = vld [vmem:[%s12262_s23 + $0x368] sm:$0xf0] }
 0x6ea   : > { %17399 = vst [vmem:[#allocation44_spill] sm:$0xff] %v14184_v10  ;;  %4490 = vmatmul.bf16.gmra.mxu0 %v14176_v53  ;;  %4539 = vmatmul.bf16.gmra.mxu1 %v14180_v12  ;;  %v4471_v57 = vpop.f32.mrf.mxu0  ;;  %v4520_v11 = vpop.f32.mrf.mxu1  ;;  %v3533_v3 = vsel %vm3532_vm13, %v11621_v60, %v3529_v18  ;;  %v10163_v20 = vor.u32 %v11188_v63, %v10160_v30 }
 0x6eb   : > { %4588 = vmatmul.bf16.gmra.mxu2 %v14176_v53  ;;  %4637 = vmatmul.bf16.gmra.mxu3 %v14180_v12  ;;  %v3537_v41 = vmul.f32 0.5, %v3536_v1  ;;  %v4472_v55 = vadd.f32 %v4471_v57, %v14048_v15  ;;  %v3572_v6 = vmul.f32 %v3533_v3, %v13912_v39  ;;  %v3573_v14 = vmul.f32 %v3533_v3, %v13916_v43  ;;  %v11192_v1 = vld [vmem:[%s12262_s23 + $0x364] sm:$0xf0] }
 0x6ec   : > { %4797 = vmatpush.bf16.msra.mxu3 %v10163_v20  ;;  %v10126_v3 = vld [vmem:[%s12262_s23 + $0x308] sm:$0xf] }
 0x6ed   : > { %v3538_v4 = vsub.f32 1.5, %v3537_v41  ;;  %v14199_v50 = vadd.f32 %v4520_v11, %v4472_v55  ;;  %v3609_v43 = vmul.f32 %v13797_v61, %v3572_v6  ;;  %v3610_v30 = vmul.f32 %v13802_v19, %v3573_v14  ;;  %v11120_v55 = vld [vmem:[%s12262_s23 + $0x124] sm:$0xf0]  ;;  %v10128_v14 = vld [vmem:[%s12262_s23 + $0x328] sm:$0xf0] }
 0x6ee   : > { %v10159_v11 = vor.u32 %v11192_v1, %v10158_v51  ;;  %v11184_v20 = vld [vmem:[%s12262_s23 + $0x324] sm:$0xf0]  ;;  %v9872_v51 = vld [vmem:[%s12262_s23 + $0x128] sm:$0xf0] }
 0x6ef   : > { %17401 = vst [vmem:[#allocation52_spill] sm:$0xff] %v14199_v50  ;;  %v3539_v40 = vmul.f32 %v11623_v17, %v3538_v4  ;;  %v11116_v4 = vld [vmem:[%s12262_s23 + $0x10c] sm:$0xf] }
 0x6f0   : > { %4699 = vmatpush.bf16.msra.mxu1 %v10159_v11  ;;  %v10094_v11 = vld [vmem:[%s12262_s23 + $0x2c8] sm:$0xf] }
 0x6f1   : > { %v4569_v27 = vpop.f32.mrf.mxu2  ;;  %v4618_v60 = vpop.f32.mrf.mxu3  ;;  %v3543_v18 = vsel %vm3542_vm0, %v11623_v17, %v3539_v40  ;;  %v9870_v17 = vld [vmem:[%s12262_s23 + $0x108] sm:$0xf] }
 0x6f2   : > { %v14203_v63 = vpop.f32.mrf.mxu0  ;;  %v14205_v39 = vpop.f32.mrf.mxu1  ;;  %v3574_v5 = vmul.f32 %v3543_v18, %v13941_v8  ;;  %v3575_v57 = vmul.f32 %v3543_v18, %v13946_v45  ;;  %v4570_v6 = vadd.f32 %v4569_v27, %v14078_v58  ;;  %v14220_v8 = vadd.f32 %v13805_v42, %v3609_v43  ;;  %v11180_v27 = vld [vmem:[%s12262_s23 + $0x30c] sm:$0xf]  ;;  %v9838_v43 = vld [vmem:[%s12262_s23 + $0xc8] sm:$0xf] }
 0x6f3   : > { %17402 = vst [vmem:[#allocation53_spill] sm:$0xff] %v14203_v63  ;;  %v14223_v45 = vadd.f32 %v13816_v31, %v3610_v30  ;;  %v9871_v18 = vor.u32 %v11120_v55, %v9870_v17  ;;  %v10131_v17 = vor.u32 %v11180_v27, %v10128_v14  ;;  %v10062_v14 = vld [vmem:[%s12262_s23 + $0x288] sm:$0xf] }
 0x6f4   : > { %17403 = vst [vmem:[#allocation54_spill] sm:$0xff] %v14205_v39  ;;  %v3611_v41 = vmul.f32 %v13797_v61, %v3574_v5  ;;  %v3612_v40 = vmul.f32 %v13802_v19, %v3575_v57  ;;  %v14234_v1 = vadd.f32 %v4618_v60, %v4570_v6  ;;  %v11112_v60 = vld [vmem:[%s12262_s23 + $0xe4] sm:$0xf0]  ;;  %v11108_v6 = vld [vmem:[%s12262_s23 + $0xcc] sm:$0xf] }
 0x6f5   : > { %17404 = vst [vmem:[#allocation55_spill] sm:$0xff] %v14220_v8  ;;  %4651 = vmatpush.bf16.msra.mxu0 %v9871_v18  ;;  %v11104_v18 = vld [vmem:[%s12262_s23 + $0xa4] sm:$0xf0]  ;;  %4798 = vmatpush.bf16.msra.mxu3 %v10131_v17  ;;  %v10104_v39 = vld [vmem:[%s12262_s23 + $0x2f0] sm:$0xf0] }
 0x6f6   : > { %17405 = vst [vmem:[#allocation56_spill] sm:$0xff] %v14223_v45  ;;  %v14226_v61 = vadd.f32 %v13805_v42, %v3611_v41  ;;  %v14229_v19 = vadd.f32 %v13816_v31, %v3612_v40  ;;  %v10127_v31 = vor.u32 %v11184_v20, %v10126_v3  ;;  %v11176_v41 = vld [vmem:[%s12262_s23 + $0x2e4] sm:$0xf0]  ;;  %v9875_v40 = vor.u32 %v11116_v4, %v9872_v51  ;;  %v11172_v3 = vld [vmem:[%s12262_s23 + $0x2cc] sm:$0xf] }
 0x6f7   : > { %17408 = vst [vmem:[#allocation59_spill] sm:$0xff] %v14234_v1  ;;  %v9839_v51 = vor.u32 %v11112_v60, %v9838_v43  ;;  %v10095_v27 = vor.u32 %v11176_v41, %v10094_v11  ;;  %v9774_v17 = vld [vmem:[%s12262_s23 + $0x48] sm:$0xf] }
 0x6f8   : > { %17406 = vst [vmem:[#allocation57_spill] sm:$0xff] %v14226_v61  ;;  %v14239_v30 = vpack.c.bf16 %v14226_v61, %v14220_v8  ;;  %v14243_v42 = vpack.c.bf16 %v14229_v19, %v14223_v45  ;;  %v9840_v61 = vld [vmem:[%s12262_s23 + $0xe8] sm:$0xf0]  ;;  %4700 = vmatpush.bf16.msra.mxu1 %v10127_v31  ;;  %v9806_v45 = vld [vmem:[%s12262_s23 + $0x88] sm:$0xf]  ;;  %4749 = vmatpush.bf16.msra.mxu2 %v9875_v40 }
 0x6f9   : > { %17407 = vst [vmem:[#allocation58_spill] sm:$0xff] %v14229_v19  ;;  %v14245_v5 = vpop.f32.mrf.mxu2  ;;  %v14247_v57 = vpop.f32.mrf.mxu3  ;;  %v10096_v19 = vld [vmem:[%s12262_s23 + $0x2e8] sm:$0xf0]  ;;  %v11168_v8 = vld [vmem:[%s12262_s23 + $0x2a4] sm:$0xf0]  ;;  %4652 = vmatpush.bf16.msra.mxu0 %v9839_v51  ;;  %v9843_v43 = vor.u32 %v11108_v6, %v9840_v61  ;;  %v9807_v11 = vor.u32 %v11104_v18, %v9806_v45 }
 0x6fa   : > { %17409 = vst [vmem:[#allocation60_spill] sm:$0xff] %v14245_v5  ;;  %v4476_v55 = vpop.f32.mrf.mxu0  ;;  %4495 = vmatmul.bf16.gmra.mxu0 %v14239_v30  ;;  %v4525_v4 = vpop.f32.mrf.mxu1  ;;  %v11100_v31 = vld [vmem:[%s12262_s23 + $0x8c] sm:$0xf]  ;;  %4544 = vmatmul.bf16.gmra.mxu1 %v14243_v42  ;;  %v10099_v60 = vor.u32 %v11172_v3, %v10096_v19  ;;  %v10063_v41 = vor.u32 %v11168_v8, %v10062_v14  ;;  %v9742_v6 = vld [vmem:[%s12262_s23 + $0x8] sm:$0xf] }
 0x6fb   : > { %17410 = vst [vmem:[#allocation61_spill] sm:$0xff] %v14247_v57  ;;  %v4477_v20 = vadd.f32 %v4476_v55, %v14048_v15  ;;  %4593 = vmatmul.bf16.gmra.mxu2 %v14239_v30  ;;  %v10064_v40 = vld [vmem:[%s12262_s23 + $0x2a8] sm:$0xf0]  ;;  %4642 = vmatmul.bf16.gmra.mxu3 %v14243_v42  ;;  %v11088_v3 = vld [vmem:[%s12262_s23 + $0x24] sm:$0xf0] }
 0x6fc   : > { %4701 = vmatpush.bf16.msra.mxu1 %v10095_v27  ;;  %4750 = vmatpush.bf16.msra.mxu2 %v9843_v43  ;;  %v10067_v34 = vor.u32 %v11164_v28, %v10064_v40  ;;  %v11156_v61 = vld [vmem:[%s12262_s23 + $0x24c] sm:$0xf]  ;;  %v10031_v28 = vor.u32 %v11160_v44, %v10030_v16  ;;  %v9779_v27 = vor.u32 %v11092_v62, %v9776_v9  ;;  %v11152_v40 = vld [vmem:[%s12262_s23 + $0x224] sm:$0xf0]  ;;  %v11141_v9 = vld [vmem:[%s12262_s23 + $0x1d4] sm:$0xf] }
 0x6fd   : > { %v14265_v55 = vadd.f32 %v4525_v4, %v4477_v20  ;;  %v11096_v20 = vld [vmem:[%s12262_s23 + $0x64] sm:$0xf0]  ;;  %4799 = vmatpush.bf16.msra.mxu3 %v10099_v60  ;;  %v9811_v4 = vor.u32 %v11100_v31, %v9808_v13  ;;  %v10032_v19 = vld [vmem:[%s12262_s23 + $0x268] sm:$0xf0]  ;;  %4653 = vmatpush.bf16.msra.mxu0 %v9807_v11  ;;  %v9976_v62 = vld [vmem:[%s12262_s23 + $0x1f0] sm:$0xf0] }
 0x6fe   : > { %v9775_v45 = vor.u32 %v11096_v20, %v9774_v17  ;;  %v10035_v14 = vor.u32 %v11156_v61, %v10032_v19  ;;  %v9998_v31 = vld [vmem:[%s12262_s23 + $0x208] sm:$0xf]  ;;  %v11084_v43 = vld [vmem:[%s12262_s23 + $0xc] sm:$0xf]  ;;  %v9743_v17 = vor.u32 %v11088_v3, %v9742_v6  ;;  %v9974_v20 = vld [vmem:[%s12262_s23 + $0x1d0] sm:$0xf] }
 0x6ff   : > { %17411 = vst [vmem:[#allocation62_spill] sm:$0xff] %v14265_v55  ;;  %v9744_v60 = vld [vmem:[%s12262_s23 + $0x28] sm:$0xf0]  ;;  %v11205_v61 = vld [vmem:[%s12262_s23 + $0x3d4] sm:$0xf] }
 0x700   : > { %4702 = vmatpush.bf16.msra.mxu1 %v10063_v41  ;;  %4751 = vmatpush.bf16.msra.mxu2 %v9811_v4  ;;  %v11148_v11 = vld [vmem:[%s12262_s23 + $0x20c] sm:$0xf]  ;;  %v9999_v41 = vor.u32 %v11152_v40, %v9998_v31  ;;  %v9747_v44 = vor.u32 %v11084_v43, %v9744_v60  ;;  %v11145_v4 = vld [vmem:[%s12262_s23 + $0x1ec] sm:$0xf0]  ;;  %v11133_v60 = vld [vmem:[%s12262_s23 + $0x194] sm:$0xf] }
 0x701   : > { %v4574_v51 = vpop.f32.mrf.mxu2  ;;  %v4623_v13 = vpop.f32.mrf.mxu3  ;;  %4800 = vmatpush.bf16.msra.mxu3 %v10067_v34  ;;  %4654 = vmatpush.bf16.msra.mxu0 %v9775_v45  ;;  %v9979_v34 = vor.u32 %v11141_v9, %v9976_v62  ;;  %v9975_v19 = vor.u32 %v11145_v4, %v9974_v20  ;;  %v10230_v45 = vld [vmem:[%s12262_s23 + $0x3d0] sm:$0xf]  ;;  %v11197_v4 = vld [vmem:[%s12262_s23 + $0x394] sm:$0xf] }
 0x702   : > { %v4575_v8 = vadd.f32 %v4574_v51, %v14078_v58  ;;  %v10000_v51 = vld [vmem:[%s12262_s23 + $0x228] sm:$0xf0]  ;;  %v14313_v6 = vpop.f32.mrf.mxu1  ;;  %v11137_v20 = vld [vmem:[%s12262_s23 + $0x1ac] sm:$0xf0]  ;;  %v9848_v57 = vld [vmem:[%s12262_s23 + $0xf0] sm:$0xf0] }
 0x703   : > { %v10003_v16 = vor.u32 %v11148_v11, %v10000_v51  ;;  %17414 = vst [vmem:[#allocation65_spill] sm:$0xff] %v14313_v6  ;;  %v9944_v11 = vld [vmem:[%s12262_s23 + $0x1b0] sm:$0xf0]  ;;  %v10102_v6 = vld [vmem:[%s12262_s23 + $0x2d0] sm:$0xf] }
 0x704   : > { %v14282_v18 = vadd.f32 %v4623_v13, %v4575_v8  ;;  %4703 = vmatpush.bf16.msra.mxu1 %v10031_v28  ;;  %4752 = vmatpush.bf16.msra.mxu2 %v9779_v27  ;;  %v10232_v8 = vld [vmem:[%s12262_s23 + $0x3f0] sm:$0xf0]  ;;  %v11209_v13 = vld [vmem:[%s12262_s23 + $0x3ec] sm:$0xf0]  ;;  %v14311_v28 = vpop.f32.mrf.mxu0 }
 0x705   : > { %4801 = vmatpush.bf16.msra.mxu3 %v10035_v14  ;;  %4655 = vmatpush.bf16.msra.mxu0 %v9743_v17  ;;  %17413 = vst [vmem:[#allocation64_spill] sm:$0xff] %v14311_v28  ;;  %v10235_v3 = vor.u32 %v11205_v61, %v10232_v8  ;;  %v10231_v27 = vor.u32 %v11209_v13, %v10230_v45  ;;  %v10200_v13 = vld [vmem:[%s12262_s23 + $0x3b0] sm:$0xf0] }
 0x706   : > { %17412 = vst [vmem:[#allocation63_spill] sm:$0xff] %v14282_v18  ;;  %v9947_v17 = vor.u32 %v11133_v60, %v9944_v11  ;;  %v11173_v5 = vld [vmem:[%s12262_s23 + $0x2d4] sm:$0xf] }
 0x708   : > { %4704 = vmatpush.bf16.msra.mxu1 %v9999_v41  ;;  %4753 = vmatpush.bf16.msra.mxu2 %v9747_v44 }
 0x709   : > { %4802 = vmatpush.bf16.msra.mxu3 %v10003_v16  ;;  %4844 = vmatpush.bf16.msrb.mxu0 %v9975_v19  ;;  %v14318_v14 = vpop.f32.mrf.mxu2  ;;  %v14320_v31 = vpop.f32.mrf.mxu3 }
 0x70a   : > { %4656 = vmatmul.bf16.vlgmr.msra.gmra.mxu0 %v13855_v33  ;;  %17415 = vst [vmem:[#allocation66_spill] sm:$0xff] %v14318_v14 }
 0x70b   : > { %4705 = vmatmul.bf16.vlgmr.msra.gmra.mxu1 %v13859_v0  ;;  %4754 = vmatmul.bf16.vlgmr.msra.gmra.mxu2 %v13855_v33  ;;  %17416 = vst [vmem:[#allocation67_spill] sm:$0xff] %v14320_v31  ;;  %v10166_v31 = vld [vmem:[%s12262_s23 + $0x350] sm:$0xf] }
 0x70c   : > { %4803 = vmatmul.bf16.vlgmr.msra.gmra.mxu3 %v13859_v0  ;;  %4942 = vmatpush.bf16.msrb.mxu2 %v9979_v34  ;;  %v9942_v34 = vld [vmem:[%s12262_s23 + $0x190] sm:$0xf] }
 0x70d   : > { %4991 = vmatpush.bf16.msrb.mxu3 %v10235_v3  ;;  %4893 = vmatpush.bf16.msrb.mxu1 %v10231_v27  ;;  %v9943_v45 = vor.u32 %v11137_v20, %v9942_v34  ;;  %v10198_v3 = vld [vmem:[%s12262_s23 + $0x390] sm:$0xf] }
 0x70e   : > { %v11201_v27 = vld [vmem:[%s12262_s23 + $0x3ac] sm:$0xf0] }
 0x70f   : > { %v10199_v60 = vor.u32 %v11201_v27, %v10198_v3  ;;  %4845 = vmatpush.bf16.msrb.mxu0 %v9943_v45  ;;  %v9912_v45 = vld [vmem:[%s12262_s23 + $0x170] sm:$0xf0] }
 0x710   : > { %4943 = vmatpush.bf16.msrb.mxu2 %v9947_v17 }
 0x711   : > { %4894 = vmatpush.bf16.msrb.mxu1 %v10199_v60  ;;  %v11129_v60 = vld [vmem:[%s12262_s23 + $0x16c] sm:$0xf0] }
 0x71a   : > { %4661 = vmatmul.bf16.gmra.mxu0 %v13920_v26 }
 0x71b   : > { %4710 = vmatmul.bf16.gmra.mxu1 %v13924_v32  ;;  %4759 = vmatmul.bf16.gmra.mxu2 %v13920_v26 }
 0x71c   : > { %4808 = vmatmul.bf16.gmra.mxu3 %v13924_v32 }
 0x72a   : > { %4666 = vmatmul.bf16.gmra.mxu0 %v13972_v59 }
 0x72b   : > { %4715 = vmatmul.bf16.gmra.mxu1 %v13976_v7  ;;  %4764 = vmatmul.bf16.gmra.mxu2 %v13972_v59 }
 0x72c   : > { %4813 = vmatmul.bf16.gmra.mxu3 %v13976_v7 }
 0x73a   : > { %4671 = vmatmul.bf16.gmra.mxu0 %v14005_v24 }
 0x73b   : > { %4720 = vmatmul.bf16.gmra.mxu1 %v14009_v48  ;;  %4769 = vmatmul.bf16.gmra.mxu2 %v14005_v24 }
 0x73c   : > { %4818 = vmatmul.bf16.gmra.mxu3 %v14009_v48 }
 0x746   : > { %v4481_v40 = vpop.f32.mrf.mxu0  ;;  %v4530_v43 = vpop.f32.mrf.mxu1 }
 0x747   : > { %v4482_v51 = vadd.f32 %v4481_v40, %v14048_v15 }
 0x749   : > { %v14325_v41 = vadd.f32 %v4530_v43, %v4482_v51  ;;  %v10203_v43 = vor.u32 %v11197_v4, %v10200_v13 }
 0x74a   : > { %4676 = vmatmul.bf16.gmra.mxu0 %v14052_v2 }
 0x74b   : > { %v5300_v44 = vmul.f32 %v14325_v41, %v14325_v41  ;;  %4725 = vmatmul.bf16.gmra.mxu1 %v14056_v25  ;;  %4774 = vmatmul.bf16.gmra.mxu2 %v14052_v2 }
 0x74c   : > { %4823 = vmatmul.bf16.gmra.mxu3 %v14056_v25 }
 0x74d   : > { %v5428_v16 = vmul.f32 %v5300_v44, %v14325_v41  ;;  %v4579_v9 = vpop.f32.mrf.mxu2  ;;  %v4628_v62 = vpop.f32.mrf.mxu3  ;;  %4992 = vmatpush.bf16.msrb.mxu3 %v10203_v43  ;;  %v9910_v43 = vld [vmem:[%s12262_s23 + $0x150] sm:$0xf] }
 0x74e   : > { %v4580_v61 = vadd.f32 %v4579_v9, %v14078_v58  ;;  %v4483_v19 = vpop.f32.mrf.mxu0  ;;  %v4532_v8 = vpop.f32.mrf.mxu1  ;;  %v9911_v38 = vor.u32 %v11129_v60, %v9910_v43 }
 0x74f   : > { %v4484_v40 = vadd.f32 %v4483_v19, %v14048_v15  ;;  %v5556_v51 = vmul.f32 0.044715, %v5428_v16 }
 0x750   : > { %v14342_v11 = vadd.f32 %v4628_v62, %v4580_v61  ;;  %4846 = vmatpush.bf16.msrb.mxu0 %v9911_v38 }
 0x751   : > { %v14344_v17 = vadd.f32 %v4532_v8, %v4484_v40  ;;  %v5684_v62 = vadd.f32 %v5556_v51, %v14325_v41  ;;  %v11125_v8 = vld [vmem:[%s12262_s23 + $0x154] sm:$0xf] }
 0x752   : > { %v5301_v44 = vmul.f32 %v14342_v11, %v14342_v11  ;;  %v9915_v40 = vor.u32 %v11125_v8, %v9912_v45  ;;  %v11193_v45 = vld [vmem:[%s12262_s23 + $0x36c] sm:$0xf0] }
 0x753   : > { %v5308_v9 = vmul.f32 %v14344_v17, %v14344_v17  ;;  %v5812_v14 = vmul.f32 0.7978846, %v5684_v62 }
 0x754   : > { %v5429_v34 = vmul.f32 %v5301_v44, %v14342_v11  ;;  %4944 = vmatpush.bf16.msrb.mxu2 %v9915_v40  ;;  %v11121_v40 = vld [vmem:[%s12262_s23 + $0x12c] sm:$0xf0] }
 0x755   : > { %v5436_v20 = vmul.f32 %v5308_v9, %v14344_v17  ;;  %v4581_v4 = vpop.f32.mrf.mxu2  ;;  %v4630_v16 = vpop.f32.mrf.mxu3  ;;  %11624 = vtanh.f32 %v5812_v14  ;;  %v10107_v14 = vor.u32 %v11173_v5, %v10104_v39  ;;  %v9816_v39 = vld [vmem:[%s12262_s23 + $0xb0] sm:$0xf0] }
 0x756   : > { %v5557_v61 = vmul.f32 0.044715, %v5429_v34  ;;  %v4582_v19 = vadd.f32 %v4581_v4, %v14078_v58  ;;  %v4486_v3 = vpop.f32.mrf.mxu0  ;;  %v4535_v27 = vpop.f32.mrf.mxu1  ;;  %v11189_v34 = vld [vmem:[%s12262_s23 + $0x354] sm:$0xf] }
 0x757   : > { %v5564_v13 = vmul.f32 0.044715, %v5436_v20  ;;  %v4487_v9 = vadd.f32 %v4486_v3, %v14048_v15  ;;  %v10168_v4 = vld [vmem:[%s12262_s23 + $0x370] sm:$0xf0]  ;;  %v10167_v3 = vor.u32 %v11193_v45, %v10166_v31 }
 0x758   : > { %v5685_v51 = vadd.f32 %v5557_v61, %v14342_v11  ;;  %v14359_v44 = vadd.f32 %v4630_v16, %v4582_v19  ;;  %v10171_v8 = vor.u32 %v11189_v34, %v10168_v4  ;;  %v10134_v34 = vld [vmem:[%s12262_s23 + $0x310] sm:$0xf]  ;;  %v9880_v31 = vld [vmem:[%s12262_s23 + $0x130] sm:$0xf0] }
 0x759   : > { %v5692_v20 = vadd.f32 %v5564_v13, %v14344_v17  ;;  %v14369_v19 = vadd.f32 %v4535_v27, %v4487_v9  ;;  %v9878_v13 = vld [vmem:[%s12262_s23 + $0x110] sm:$0xf]  ;;  %4895 = vmatpush.bf16.msrb.mxu1 %v10167_v3  ;;  %v11117_v9 = vld [vmem:[%s12262_s23 + $0x114] sm:$0xf] }
 0x75a   : > { %v5813_v61 = vmul.f32 0.7978846, %v5685_v51  ;;  %v5309_v16 = vmul.f32 %v14359_v44, %v14359_v44  ;;  %4993 = vmatpush.bf16.msrb.mxu3 %v10171_v8  ;;  %v9879_v51 = vor.u32 %v11121_v40, %v9878_v13  ;;  %v11185_v27 = vld [vmem:[%s12262_s23 + $0x32c] sm:$0xf0]  ;;  %4681 = vmatmul.bf16.gmra.mxu0 %v14123_v49  ;;  %v11181_v4 = vld [vmem:[%s12262_s23 + $0x314] sm:$0xf]  ;;  %v9883_v13 = vor.u32 %v11117_v9, %v9880_v31 }
 0x75b   : > { %v14371_v62 = vmul.f32 0.7978846, %v5692_v20  ;;  %v5316_v60 = vmul.f32 %v14369_v19, %v14369_v19  ;;  %v10135_v38 = vor.u32 %v11185_v27, %v10134_v34  ;;  %v10136_v20 = vld [vmem:[%s12262_s23 + $0x330] sm:$0xf0]  ;;  %4730 = vmatmul.bf16.gmra.mxu1 %v14127_v47  ;;  %4779 = vmatmul.bf16.gmra.mxu2 %v14123_v49 }
 0x75c   : > { %v5437_v43 = vmul.f32 %v5309_v16, %v14359_v44  ;;  %4847 = vmatpush.bf16.msrb.mxu0 %v9879_v51  ;;  %v10139_v40 = vor.u32 %v11181_v4, %v10136_v20  ;;  %4828 = vmatmul.bf16.gmra.mxu3 %v14127_v47  ;;  %v11177_v20 = vld [vmem:[%s12262_s23 + $0x2ec] sm:$0xf0]  ;;  %11626 = vtanh.f32 %v5813_v61  ;;  %v11165_v5 = vld [vmem:[%s12262_s23 + $0x294] sm:$0xf] }
 0x75d   : > { %v5444_v45 = vmul.f32 %v5316_v60, %v14369_v19  ;;  %v4584_v16 = vpop.f32.mrf.mxu2  ;;  %v4633_v3 = vpop.f32.mrf.mxu3  ;;  %v11113_v60 = vld [vmem:[%s12262_s23 + $0xec] sm:$0xf0]  ;;  %4896 = vmatpush.bf16.msrb.mxu1 %v10135_v38  ;;  %4945 = vmatpush.bf16.msrb.mxu2 %v9883_v13  ;;  %v10103_v55 = vor.u32 %v11177_v20, %v10102_v6  ;;  %11628 = vtanh.f32 %v14371_v62 }
 0x75e   : > { %v5565_v8 = vmul.f32 0.044715, %v5437_v43  ;;  %v4585_v34 = vadd.f32 %v4584_v16, %v14078_v58  ;;  %v4488_v27 = vpop.f32.mrf.mxu0  ;;  %v4537_v18 = vpop.f32.mrf.mxu1  ;;  %v9846_v43 = vld [vmem:[%s12262_s23 + $0xd0] sm:$0xf]  ;;  %v11109_v16 = vld [vmem:[%s12262_s23 + $0xd4] sm:$0xf]  ;;  %4994 = vmatpush.bf16.msrb.mxu3 %v10139_v40 }
 0x75f   : > { %v5572_v9 = vmul.f32 0.044715, %v5444_v45  ;;  %v4489_v31 = vadd.f32 %v4488_v27, %v14048_v15  ;;  %v9847_v4 = vor.u32 %v11113_v60, %v9846_v43  ;;  %v9851_v45 = vor.u32 %v11109_v16, %v9848_v57  ;;  %v11105_v6 = vld [vmem:[%s12262_s23 + $0xac] sm:$0xf0]  ;;  %v11101_v57 = vld [vmem:[%s12262_s23 + $0x94] sm:$0xf] }
 0x760   : > { %v5693_v51 = vadd.f32 %v5565_v8, %v14359_v44  ;;  %v14397_v28 = vadd.f32 %v4633_v3, %v4585_v34  ;;  %v9814_v3 = vld [vmem:[%s12262_s23 + $0x90] sm:$0xf]  ;;  %v9819_v20 = vor.u32 %v11101_v57, %v9816_v39 }
 0x761   : > { %v5700_v8 = vadd.f32 %v5572_v9, %v14369_v19  ;;  %v14403_v38 = vadd.f32 %v4537_v18, %v4489_v31  ;;  %4848 = vmatpush.bf16.msrb.mxu0 %v9847_v4  ;;  %v10070_v40 = vld [vmem:[%s12262_s23 + $0x290] sm:$0xf]  ;;  %4897 = vmatpush.bf16.msrb.mxu1 %v10103_v55  ;;  %v9815_v18 = vor.u32 %v11105_v6, %v9814_v3  ;;  %v10072_v31 = vld [vmem:[%s12262_s23 + $0x2b0] sm:$0xf0] }
 0x762   : > { %v5317_v13 = vmul.f32 %v14397_v28, %v14397_v28  ;;  %v5821_v34 = vmul.f32 0.7978846, %v5693_v51  ;;  %4946 = vmatpush.bf16.msrb.mxu2 %v9851_v45  ;;  %v11169_v43 = vld [vmem:[%s12262_s23 + $0x2ac] sm:$0xf0]  ;;  %4995 = vmatpush.bf16.msrb.mxu3 %v10107_v14  ;;  %v10075_v16 = vor.u32 %v11165_v5, %v10072_v31  ;;  %v11625_v45 = vpop.eup %11624  ;;  %v11093_v31 = vld [vmem:[%s12262_s23 + $0x54] sm:$0xf] }
 0x763   : > { %v5324_v27 = vmul.f32 %v14403_v38, %v14403_v38  ;;  %v10071_v9 = vor.u32 %v11169_v43, %v10070_v40  ;;  %v5828_v61 = vmul.f32 0.7978846, %v5700_v8  ;;  %v9782_v40 = vld [vmem:[%s12262_s23 + $0x50] sm:$0xf]  ;;  %v11627_v1 = vpop.eup %11626 }
 0x764   : > { %v5445_v60 = vmul.f32 %v5317_v13, %v14397_v28  ;;  %v11097_v62 = vld [vmem:[%s12262_s23 + $0x6c] sm:$0xf0]  ;;  %11630 = vtanh.f32 %v5821_v34 }
 0x765   : > { %v5452_v51 = vmul.f32 %v5324_v27, %v14403_v38  ;;  %v4586_v4 = vpop.f32.mrf.mxu2  ;;  %v4635_v55 = vpop.f32.mrf.mxu3  ;;  %4849 = vmatpush.bf16.msrb.mxu0 %v9815_v18  ;;  %4898 = vmatpush.bf16.msrb.mxu1 %v10071_v9  ;;  %v9783_v18 = vor.u32 %v11097_v62, %v9782_v40  ;;  %v10038_v43 = vld [vmem:[%s12262_s23 + $0x250] sm:$0xf]  ;;  %11632 = vtanh.f32 %v5828_v61  ;;  %v9752_v61 = vld [vmem:[%s12262_s23 + $0x30] sm:$0xf0] }
 0x766   : > { %v5573_v13 = vmul.f32 0.044715, %v5445_v60  ;;  %v4587_v14 = vadd.f32 %v4586_v4, %v14078_v58  ;;  %4947 = vmatpush.bf16.msrb.mxu2 %v9819_v20  ;;  %v11161_v57 = vld [vmem:[%s12262_s23 + $0x26c] sm:$0xf0]  ;;  %4996 = vmatpush.bf16.msrb.mxu3 %v10075_v16  ;;  %v9784_v4 = vld [vmem:[%s12262_s23 + $0x70] sm:$0xf0] }
 0x767   : > { %v4491_v3 = vpop.f32.mrf.mxu0  ;;  %v4540_v6 = vpop.f32.mrf.mxu1  ;;  %v5580_v8 = vmul.f32 0.044715, %v5452_v51  ;;  %v10039_v5 = vor.u32 %v11161_v57, %v10038_v43  ;;  %v11157_v51 = vld [vmem:[%s12262_s23 + $0x254] sm:$0xf]  ;;  %v9787_v34 = vor.u32 %v11093_v31, %v9784_v4  ;;  %v9750_v62 = vld [vmem:[%s12262_s23 + $0x10] sm:$0xf] }
 0x768   : > { %v4492_v27 = vadd.f32 %v4491_v3, %v14048_v15  ;;  %v5701_v60 = vadd.f32 %v5573_v13, %v14397_v28  ;;  %v14427_v39 = vadd.f32 %v4635_v55, %v4587_v14  ;;  %v10040_v3 = vld [vmem:[%s12262_s23 + $0x270] sm:$0xf0]  ;;  %v6068_v13 = vadd.f32 1.0, %v11625_v45  ;;  %v11629_v55 = vpop.eup %11628  ;;  %v11089_v43 = vld [vmem:[%s12262_s23 + $0x2c] sm:$0xf0] }
 0x769   : > { %v5708_v9 = vadd.f32 %v5580_v8, %v14403_v38  ;;  %4850 = vmatpush.bf16.msrb.mxu0 %v9783_v18  ;;  %v10043_v40 = vor.u32 %v11157_v51, %v10040_v3  ;;  %4899 = vmatpush.bf16.msrb.mxu1 %v10039_v5  ;;  %v9751_v8 = vor.u32 %v11089_v43, %v9750_v62  ;;  %v11153_v18 = vld [vmem:[%s12262_s23 + $0x22c] sm:$0xf0]  ;;  %v11085_v31 = vld [vmem:[%s12262_s23 + $0x14] sm:$0xf] }
 0x76a   : > { %v14433_v20 = vadd.f32 %v4540_v6, %v4492_v27  ;;  %v5829_v14 = vmul.f32 0.7978846, %v5701_v60  ;;  %v5325_v16 = vmul.f32 %v14427_v39, %v14427_v39  ;;  %4948 = vmatpush.bf16.msrb.mxu2 %v9787_v34  ;;  %v10006_v27 = vld [vmem:[%s12262_s23 + $0x210] sm:$0xf]  ;;  %4686 = vmatmul.bf16.gmra.mxu0 %v14176_v53  ;;  %v11631_v4 = vpop.eup %11630  ;;  %v9755_v3 = vor.u32 %v11085_v31, %v9752_v61  ;;  %v10008_v62 = vld [vmem:[%s12262_s23 + $0x230] sm:$0xf0] }
 0x76b   : > { %v5836_v45 = vmul.f32 0.7978846, %v5708_v9  ;;  %4997 = vmatpush.bf16.msrb.mxu3 %v10043_v40  ;;  %v10007_v60 = vor.u32 %v11153_v18, %v10006_v27  ;;  %4735 = vmatmul.bf16.gmra.mxu1 %v14180_v12  ;;  %v6076_v9 = vadd.f32 1.0, %v11629_v55  ;;  %v6196_v43 = vmul.f32 0.5, %v6068_v13 }
 0x76c   : > { %v5332_v6 = vmul.f32 %v14433_v20, %v14433_v20  ;;  %11634 = vtanh.f32 %v5829_v14  ;;  %v5453_v57 = vmul.f32 %v5325_v16, %v14427_v39  ;;  %v11149_v14 = vld [vmem:[%s12262_s23 + $0x214] sm:$0xf]  ;;  %4784 = vmatmul.bf16.gmra.mxu2 %v14176_v53  ;;  %4833 = vmatmul.bf16.gmra.mxu3 %v14180_v12  ;;  %v6077_v31 = vadd.f32 1.0, %v11631_v4 }
 0x76d   : > { %4851 = vmatpush.bf16.msrb.mxu0 %v9751_v8  ;;  %v10011_v18 = vor.u32 %v11149_v14, %v10008_v62  ;;  %4900 = vmatpush.bf16.msrb.mxu1 %v10007_v60  ;;  %v6204_v8 = vmul.f32 0.5, %v6076_v9  ;;  %v6324_v55 = vmul.f32 %v6196_v43, %v14325_v41  ;;  %11636 = vtanh.f32 %v5836_v45 }
 0x76e   : > { %v5460_v51 = vmul.f32 %v5332_v6, %v14433_v20  ;;  %v4589_v5 = vpop.f32.mrf.mxu2  ;;  %v4638_v34 = vpop.f32.mrf.mxu3  ;;  %v5581_v16 = vmul.f32 0.044715, %v5453_v57  ;;  %v6069_v6 = vadd.f32 1.0, %v11627_v1  ;;  %4949 = vmatpush.bf16.msrb.mxu2 %v9755_v3  ;;  %v6205_v62 = vmul.f32 0.5, %v6077_v31 }
 0x76f   : > { %v4590_v40 = vadd.f32 %v4589_v5, %v14078_v58  ;;  %v4493_v27 = vpop.f32.mrf.mxu0  ;;  %v4542_v10 = vpop.f32.mrf.mxu1  ;;  %4998 = vmatpush.bf16.msrb.mxu3 %v10011_v18 }
 0x770   : > { %v5588_v63 = vmul.f32 0.044715, %v5460_v51  ;;  %v4494_v50 = vadd.f32 %v4493_v27, %v14048_v15  ;;  %v5709_v13 = vadd.f32 %v5581_v16, %v14427_v39  ;;  %v6197_v61 = vmul.f32 0.5, %v6069_v6  ;;  %v11633_v5 = vpop.eup %11632 }
 0x771   : > { %v14458_v57 = vadd.f32 %v4638_v34, %v4590_v40  ;;  %v6332_v51 = vmul.f32 %v6204_v8, %v14344_v17 }
 0x772   : > { %v5716_v14 = vadd.f32 %v5588_v63, %v14433_v20  ;;  %v14461_v1 = vadd.f32 %v4542_v10, %v4494_v50  ;;  %v11635_v60 = vpop.eup %11634  ;;  %v5837_v3 = vmul.f32 0.7978846, %v5709_v13  ;;  %v6325_v43 = vmul.f32 %v6197_v61, %v14342_v11 }
 0x773   : > { %v5333_v41 = vmul.f32 %v14458_v57, %v14458_v57  ;;  %v14468_v4 = vpack.c.bf16 %v6332_v51, %v6324_v55  ;;  %v6333_v50 = vmul.f32 %v6205_v62, %v14359_v44  ;;  %v6084_v63 = vadd.f32 1.0, %v11633_v5  ;;  %v11637_v6 = vpop.eup %11636 }
 0x774   : > { %v5844_v9 = vmul.f32 0.7978846, %v5716_v14  ;;  %v5340_v34 = vmul.f32 %v14461_v1, %v14461_v1  ;;  %11638 = vtanh.f32 %v5837_v3  ;;  %v6085_v13 = vadd.f32 1.0, %v11635_v60 }
 0x775   : > { %17417 = vst [vmem:[#allocation68_spill] sm:$0xff] %v14468_v4  ;;  %v5461_v10 = vmul.f32 %v5333_v41, %v14458_v57  ;;  %v14475_v18 = vpack.c.bf16 %v6333_v50, %v6325_v43  ;;  %v6212_v11 = vmul.f32 0.5, %v6084_v63  ;;  %v6092_v5 = vadd.f32 1.0, %v11637_v6 }
 0x776   : > { %v5468_v17 = vmul.f32 %v5340_v34, %v14461_v1  ;;  %v4591_v45 = vpop.f32.mrf.mxu2  ;;  %v4640_v27 = vpop.f32.mrf.mxu3  ;;  %11640 = vtanh.f32 %v5844_v9 }
 0x777   : > { %v5589_v16 = vmul.f32 0.044715, %v5461_v10  ;;  %v4592_v40 = vadd.f32 %v4591_v45, %v14078_v58  ;;  %17418 = vst [vmem:[#allocation69_spill] sm:$0xff] %v14475_v18  ;;  %v4496_v55 = vpop.f32.mrf.mxu0  ;;  %v4545_v51 = vpop.f32.mrf.mxu1  ;;  %v6220_v9 = vmul.f32 0.5, %v6092_v5  ;;  %v6213_v10 = vmul.f32 0.5, %v6085_v13 }
 0x778   : > { %v5596_v8 = vmul.f32 0.044715, %v5468_v17  ;;  %v4497_v61 = vadd.f32 %v4496_v55, %v14048_v15  ;;  %v6340_v17 = vmul.f32 %v6212_v11, %v14369_v19 }
 0x779   : > { %v5717_v31 = vadd.f32 %v5589_v16, %v14458_v57  ;;  %v14478_v44 = vadd.f32 %v4640_v27, %v4592_v40  ;;  %v6348_v45 = vmul.f32 %v6220_v9, %v14403_v38  ;;  %v6341_v19 = vmul.f32 %v6213_v10, %v14397_v28 }
 0x77a   : > { %v5724_v14 = vadd.f32 %v5596_v8, %v14461_v1  ;;  %v11639_v3 = vpop.eup %11638  ;;  %v14484_v62 = vadd.f32 %v4545_v51, %v4497_v61  ;;  %4691 = vmatmul.bf16.gmra.mxu0 %v14239_v30 }
 0x77b   : > { %v5341_v41 = vmul.f32 %v14478_v44, %v14478_v44  ;;  %v5845_v34 = vmul.f32 0.7978846, %v5717_v31  ;;  %v6093_v60 = vadd.f32 1.0, %v11639_v3  ;;  %4740 = vmatmul.bf16.gmra.mxu1 %v14243_v42  ;;  %v14496_v8 = vpack.c.bf16 %v6348_v45, %v6340_v17 }
 0x77c   : > { %v5852_v43 = vmul.f32 0.7978846, %v5724_v14  ;;  %v5348_v63 = vmul.f32 %v14484_v62, %v14484_v62  ;;  %v11641_v16 = vpop.eup %11640  ;;  %4789 = vmatmul.bf16.gmra.mxu2 %v14239_v30  ;;  %4838 = vmatmul.bf16.gmra.mxu3 %v14243_v42 }
 0x77d   : > { %v5469_v50 = vmul.f32 %v5341_v41, %v14478_v44  ;;  %v6221_v40 = vmul.f32 0.5, %v6093_v60  ;;  %17419 = vst [vmem:[#allocation70_spill] sm:$0xff] %v14496_v8  ;;  %v6100_v41 = vadd.f32 1.0, %v11641_v16 }
 0x77e   : > { %11642 = vtanh.f32 %v5852_v43  ;;  %v5476_v6 = vmul.f32 %v5348_v63, %v14484_v62  ;;  %v4594_v55 = vpop.f32.mrf.mxu2  ;;  %v4643_v5 = vpop.f32.mrf.mxu3 }
 0x77f   : > { %v5597_v27 = vmul.f32 0.044715, %v5469_v50  ;;  %11644 = vtanh.f32 %v5845_v34  ;;  %v4498_v13 = vpop.f32.mrf.mxu0  ;;  %v6349_v38 = vmul.f32 %v6221_v40, %v14427_v39  ;;  %v4595_v61 = vadd.f32 %v4594_v55, %v14078_v58  ;;  %v4547_v51 = vpop.f32.mrf.mxu1 }
 0x780   : > { %v5604_v31 = vmul.f32 0.044715, %v5476_v6  ;;  %v4499_v14 = vadd.f32 %v4498_v13, %v14048_v15  ;;  %v6228_v45 = vmul.f32 0.5, %v6100_v41 }
 0x781   : > { %v5725_v11 = vadd.f32 %v5597_v27, %v14478_v44  ;;  %v14503_v3 = vpack.c.bf16 %v6349_v38, %v6341_v19  ;;  %v14506_v43 = vadd.f32 %v4643_v5, %v4595_v61  ;;  %v11944_v27 = vld [vmem:[%s12267_s3] sm:$0xff] }
 0x782   : > { %v5732_v34 = vadd.f32 %v5604_v31, %v14484_v62  ;;  %v14508_v28 = vadd.f32 %v4547_v51, %v4499_v14  ;;  %v14517_v6 = vperm.slane %v11944_v27, 2  ;;  %v6356_v14 = vmul.f32 %v6228_v45, %v14433_v20 }
 0x783   : > { %17420 = vst [vmem:[#allocation71_spill] sm:$0xff] %v14503_v3  ;;  %v5853_v9 = vmul.f32 0.7978846, %v5725_v11  ;;  %v5349_v60 = vmul.f32 %v14506_v43, %v14506_v43 }
 0x784   : > { %v11643_v39 = vpop.eup %11642  ;;  %v5356_v10 = vmul.f32 %v14508_v28, %v14508_v28  ;;  %v5860_v17 = vmul.f32 0.7978846, %v5732_v34 }
 0x785   : > { %v6108_v50 = vadd.f32 1.0, %v11643_v39  ;;  %v11645_v63 = vpop.eup %11644  ;;  %11646 = vtanh.f32 %v5853_v9  ;;  %v5477_v16 = vmul.f32 %v5349_v60, %v14506_v43 }
 0x786   : > { %v5484_v40 = vmul.f32 %v5356_v10, %v14508_v28  ;;  %v4596_v13 = vpop.f32.mrf.mxu2  ;;  %v4645_v31 = vpop.f32.mrf.mxu3  ;;  %11648 = vtanh.f32 %v5860_v17  ;;  %v6101_v51 = vadd.f32 1.0, %v11645_v63 }
 0x787   : > { %v6236_v55 = vmul.f32 0.5, %v6108_v50  ;;  %v5605_v19 = vmul.f32 0.044715, %v5477_v16  ;;  %v4597_v11 = vadd.f32 %v4596_v13, %v14078_v58  ;;  %v4657_v5 = vpop.f32.mrf.mxu0  ;;  %v14540_v13 = vperm.slane %v11944_v27, 3 }
 0x788   : > { %v5612_v38 = vmul.f32 0.044715, %v5484_v40  ;;  %v4658_v39 = vadd.f32 %v4657_v5, %v14517_v6  ;;  %v4706_v60 = vpop.f32.mrf.mxu1  ;;  %v6229_v63 = vmul.f32 0.5, %v6101_v51 }
 0x789   : > { %v6364_v61 = vmul.f32 %v6236_v55, %v14461_v1  ;;  %v5733_v41 = vadd.f32 %v5605_v19, %v14506_v43  ;;  %v14524_v34 = vadd.f32 %v4645_v31, %v4597_v11 }
 0x78a   : > { %v5740_v9 = vadd.f32 %v5612_v38, %v14508_v28  ;;  %v14531_v17 = vadd.f32 %v4706_v60, %v4658_v39  ;;  %4852 = vmatmul.bf16.vlgmr.msrb.gmra.mxu0 %v13855_v33 }
 0x78b   : > { %v11647_v10 = vpop.eup %11646  ;;  %v14527_v50 = vpack.c.bf16 %v6364_v61, %v6356_v14  ;;  %v5861_v16 = vmul.f32 0.7978846, %v5733_v41  ;;  %v5357_v1 = vmul.f32 %v14524_v34, %v14524_v34  ;;  %4901 = vmatmul.bf16.vlgmr.msrb.gmra.mxu1 %v13859_v0  ;;  %v6357_v14 = vmul.f32 %v6229_v63, %v14458_v57 }
 0x78c   : > { %v5868_v40 = vmul.f32 0.7978846, %v5740_v9  ;;  %v6109_v20 = vadd.f32 1.0, %v11647_v10  ;;  %v5238_v55 = vmul.f32 %v14531_v17, %v14531_v17  ;;  %4950 = vmatmul.bf16.vlgmr.msrb.gmra.mxu2 %v13855_v33  ;;  %4999 = vmatmul.bf16.vlgmr.msrb.gmra.mxu3 %v13859_v0  ;;  %v11649_v19 = vpop.eup %11648 }
 0x78d   : > { %17421 = vst [vmem:[#allocation72_spill] sm:$0xff] %v14527_v50  ;;  %v5485_v45 = vmul.f32 %v5357_v1, %v14524_v34  ;;  %v6116_v10 = vadd.f32 1.0, %v11649_v19 }
 0x78e   : > { %v6237_v38 = vmul.f32 0.5, %v6109_v20  ;;  %11650 = vtanh.f32 %v5868_v40  ;;  %v5366_v31 = vmul.f32 %v5238_v55, %v14531_v17  ;;  %v4755_v61 = vpop.f32.mrf.mxu2 }
 0x78f   : > { %11652 = vtanh.f32 %v5861_v16  ;;  %v5613_v11 = vmul.f32 0.044715, %v5485_v45  ;;  %v4804_v5 = vpop.f32.mrf.mxu3  ;;  %v4756_v39 = vadd.f32 %v4755_v61, %v14540_v13  ;;  %v4659_v27 = vpop.f32.mrf.mxu0 }
 0x790   : > { %v6365_v51 = vmul.f32 %v6237_v38, %v14478_v44  ;;  %v5494_v9 = vmul.f32 0.044715, %v5366_v31  ;;  %v4708_v60 = vpop.f32.mrf.mxu1  ;;  %v4660_v40 = vadd.f32 %v4659_v27, %v14517_v6 }
 0x791   : > { %v5741_v41 = vadd.f32 %v5613_v11, %v14524_v34  ;;  %v14551_v45 = vadd.f32 %v4804_v5, %v4756_v39  ;;  %v6244_v11 = vmul.f32 0.5, %v6116_v10 }
 0x792   : > { %v14548_v16 = vpack.c.bf16 %v6365_v51, %v6357_v14  ;;  %v5622_v20 = vadd.f32 %v5494_v9, %v14531_v17  ;;  %v14553_v63 = vadd.f32 %v4708_v60, %v4660_v40 }
 0x793   : > { %v5869_v1 = vmul.f32 0.7978846, %v5741_v41  ;;  %v5239_v55 = vmul.f32 %v14551_v45, %v14551_v45  ;;  %v6372_v10 = vmul.f32 %v6244_v11, %v14484_v62 }
 0x794   : > { %17422 = vst [vmem:[#allocation73_spill] sm:$0xff] %v14548_v16  ;;  %v11651_v57 = vpop.eup %11650  ;;  %v5750_v19 = vmul.f32 0.7978846, %v5622_v20  ;;  %v5246_v31 = vmul.f32 %v14553_v63, %v14553_v63 }
 0x795   : > { %v11653_v44 = vpop.eup %11652  ;;  %v6124_v38 = vadd.f32 1.0, %v11651_v57  ;;  %11654 = vtanh.f32 %v5869_v1  ;;  %v5367_v61 = vmul.f32 %v5239_v55, %v14551_v45 }
 0x796   : > { %v5374_v5 = vmul.f32 %v5246_v31, %v14553_v63  ;;  %v4757_v51 = vpop.f32.mrf.mxu2  ;;  %v6117_v9 = vadd.f32 1.0, %v11653_v44  ;;  %11656 = vtanh.f32 %v5750_v19 }
 0x797   : > { %v6252_v14 = vmul.f32 0.5, %v6124_v38  ;;  %v4806_v41 = vpop.f32.mrf.mxu3  ;;  %v5495_v39 = vmul.f32 0.044715, %v5367_v61  ;;  %v4758_v27 = vadd.f32 %v4757_v51, %v14540_v13  ;;  %v4662_v60 = vpop.f32.mrf.mxu0 }
 0x798   : > { %v4711_v40 = vpop.f32.mrf.mxu1  ;;  %v5502_v20 = vmul.f32 0.044715, %v5374_v5  ;;  %v4663_v57 = vadd.f32 %v4662_v60, %v14517_v6 }
 0x799   : > { %v6380_v1 = vmul.f32 %v6252_v14, %v14508_v28  ;;  %v5623_v38 = vadd.f32 %v5495_v39, %v14551_v45  ;;  %v14566_v31 = vadd.f32 %v4806_v41, %v4758_v27  ;;  %v6245_v28 = vmul.f32 0.5, %v6117_v9 }
 0x79a   : > { %4857 = vmatmul.bf16.gmra.mxu0 %v13920_v26  ;;  %v5630_v61 = vadd.f32 %v5502_v20, %v14553_v63  ;;  %v14572_v51 = vadd.f32 %v4711_v40, %v4663_v57 }
 0x79b   : > { %v11655_v55 = vpop.eup %11654  ;;  %v14569_v44 = vpack.c.bf16 %v6380_v1, %v6372_v10  ;;  %4906 = vmatmul.bf16.gmra.mxu1 %v13924_v32  ;;  %v5751_v11 = vmul.f32 0.7978846, %v5623_v38  ;;  %v5247_v19 = vmul.f32 %v14566_v31, %v14566_v31  ;;  %v6373_v10 = vmul.f32 %v6245_v28, %v14506_v43 }
 0x79c   : > { %v6125_v62 = vadd.f32 1.0, %v11655_v55  ;;  %4955 = vmatmul.bf16.gmra.mxu2 %v13920_v26  ;;  %5004 = vmatmul.bf16.gmra.mxu3 %v13924_v32  ;;  %v5758_v14 = vmul.f32 0.7978846, %v5630_v61  ;;  %v5254_v5 = vmul.f32 %v14572_v51, %v14572_v51  ;;  %v11657_v27 = vpop.eup %11656 }
 0x79d   : > { %17423 = vst [vmem:[#allocation74_spill] sm:$0xff] %v14569_v44  ;;  %v5375_v39 = vmul.f32 %v5247_v19, %v14566_v31 }
 0x79e   : > { %v6253_v41 = vmul.f32 0.5, %v6125_v62  ;;  %11658 = vtanh.f32 %v5758_v14  ;;  %v5382_v60 = vmul.f32 %v5254_v5, %v14572_v51  ;;  %v4760_v9 = vpop.f32.mrf.mxu2  ;;  %v6006_v14 = vadd.f32 1.0, %v11657_v27 }
 0x79f   : > { %v4809_v40 = vpop.f32.mrf.mxu3  ;;  %11660 = vtanh.f32 %v5751_v11  ;;  %v5503_v20 = vmul.f32 0.044715, %v5375_v39  ;;  %v4761_v57 = vadd.f32 %v4760_v9, %v14540_v13  ;;  %v4664_v55 = vpop.f32.mrf.mxu0 }
 0x7a0   : > { %v6381_v1 = vmul.f32 %v6253_v41, %v14524_v34  ;;  %v4713_v38 = vpop.f32.mrf.mxu1  ;;  %v5510_v61 = vmul.f32 0.044715, %v5382_v60  ;;  %v4665_v62 = vadd.f32 %v4664_v55, %v14517_v6 }
 0x7a1   : > { %v5631_v5 = vadd.f32 %v5503_v20, %v14566_v31  ;;  %v14590_v44 = vadd.f32 %v4809_v40, %v4761_v57 }
 0x7a2   : > { %v14587_v19 = vpack.c.bf16 %v6381_v1, %v6373_v10  ;;  %v5638_v43 = vadd.f32 %v5510_v61, %v14572_v51  ;;  %v14593_v28 = vadd.f32 %v4713_v38, %v4665_v62  ;;  %v6134_v10 = vmul.f32 0.5, %v6006_v14 }
 0x7a3   : > { %v5759_v34 = vmul.f32 0.7978846, %v5631_v5  ;;  %v5255_v11 = vmul.f32 %v14590_v44, %v14590_v44 }
 0x7a4   : > { %17424 = vst [vmem:[#allocation75_spill] sm:$0xff] %v14587_v19  ;;  %v11659_v41 = vpop.eup %11658  ;;  %v5766_v39 = vmul.f32 0.7978846, %v5638_v43  ;;  %v5262_v60 = vmul.f32 %v14593_v28, %v14593_v28  ;;  %v6262_v14 = vmul.f32 %v6134_v10, %v14531_v17 }
 0x7a5   : > { %v11661_v9 = vpop.eup %11660  ;;  %v6014_v27 = vadd.f32 1.0, %v11659_v41  ;;  %11662 = vtanh.f32 %v5759_v34  ;;  %v5383_v40 = vmul.f32 %v5255_v11, %v14590_v44 }
 0x7a6   : > { %11664 = vtanh.f32 %v5766_v39  ;;  %v5390_v1 = vmul.f32 %v5262_v60, %v14593_v28  ;;  %v4762_v20 = vpop.f32.mrf.mxu2  ;;  %v6007_v43 = vadd.f32 1.0, %v11661_v9 }
 0x7a7   : > { %v4811_v57 = vpop.f32.mrf.mxu3  ;;  %v6142_v55 = vmul.f32 0.5, %v6014_v27  ;;  %v5511_v38 = vmul.f32 0.044715, %v5383_v40  ;;  %v4763_v61 = vadd.f32 %v4762_v20, %v14540_v13  ;;  %v4667_v62 = vpop.f32.mrf.mxu0 }
 0x7a8   : > { %v4716_v5 = vpop.f32.mrf.mxu1  ;;  %v5518_v19 = vmul.f32 0.044715, %v5390_v1  ;;  %v4668_v16 = vadd.f32 %v4667_v62, %v14517_v6  ;;  %v6135_v10 = vmul.f32 0.5, %v6007_v43 }
 0x7a9   : > { %v6270_v34 = vmul.f32 %v6142_v55, %v14553_v63  ;;  %v5639_v11 = vadd.f32 %v5511_v38, %v14590_v44  ;;  %v14606_v41 = vadd.f32 %v4811_v57, %v4763_v61 }
 0x7aa   : > { %4862 = vmatmul.bf16.gmra.mxu0 %v13972_v59  ;;  %v5646_v39 = vadd.f32 %v5518_v19, %v14593_v28  ;;  %v14610_v60 = vadd.f32 %v4716_v5, %v4668_v16 }
 0x7ab   : > { %4911 = vmatmul.bf16.gmra.mxu1 %v13976_v7  ;;  %v11663_v9 = vpop.eup %11662  ;;  %v14613_v27 = vpack.c.bf16 %v6270_v34, %v6262_v14  ;;  %v5767_v40 = vmul.f32 0.7978846, %v5639_v11  ;;  %v5263_v17 = vmul.f32 %v14606_v41, %v14606_v41  ;;  %v6263_v11 = vmul.f32 %v6135_v10, %v14551_v45 }
 0x7ac   : > { %4960 = vmatmul.bf16.gmra.mxu2 %v13972_v59  ;;  %5009 = vmatmul.bf16.gmra.mxu3 %v13976_v7  ;;  %v11665_v63 = vpop.eup %11664  ;;  %v6015_v1 = vadd.f32 1.0, %v11663_v9  ;;  %v5774_v20 = vmul.f32 0.7978846, %v5646_v39  ;;  %v5270_v16 = vmul.f32 %v14610_v60, %v14610_v60 }
 0x7ad   : > { %17425 = vst [vmem:[#allocation76_spill] sm:$0xff] %v14613_v27  ;;  %v5391_v19 = vmul.f32 %v5263_v17, %v14606_v41  ;;  %v6022_v62 = vadd.f32 1.0, %v11665_v63 }
 0x7ae   : > { %v6143_v57 = vmul.f32 0.5, %v6015_v1  ;;  %v5398_v55 = vmul.f32 %v5270_v16, %v14610_v60  ;;  %v4765_v38 = vpop.f32.mrf.mxu2  ;;  %11666 = vtanh.f32 %v5774_v20 }
 0x7af   : > { %v4814_v61 = vpop.f32.mrf.mxu3  ;;  %11668 = vtanh.f32 %v5767_v40  ;;  %v5519_v5 = vmul.f32 0.044715, %v5391_v19  ;;  %v4766_v14 = vadd.f32 %v4765_v38, %v14540_v13  ;;  %v4669_v34 = vpop.f32.mrf.mxu0  ;;  %v6150_v20 = vmul.f32 0.5, %v6022_v62  ;;  %v9984_v62 = vld [vmem:[%s12262_s23 + $0x1f8] sm:$0xf0] }
 0x7b0   : > { %v4718_v43 = vpop.f32.mrf.mxu1  ;;  %v6271_v39 = vmul.f32 %v6143_v57, %v14566_v31  ;;  %v5526_v9 = vmul.f32 0.044715, %v5398_v55  ;;  %v4670_v17 = vadd.f32 %v4669_v34, %v14517_v6 }
 0x7b1   : > { %v5647_v1 = vadd.f32 %v5519_v5, %v14606_v41  ;;  %v14628_v16 = vadd.f32 %v4814_v61, %v4766_v14 }
 0x7b2   : > { %v14630_v50 = vpack.c.bf16 %v6271_v39, %v6263_v11  ;;  %v5654_v40 = vadd.f32 %v5526_v9, %v14610_v60  ;;  %v14633_v63 = vadd.f32 %v4718_v43, %v4670_v17  ;;  %v11142_v43 = vld [vmem:[%s12262_s23 + $0x1dc] sm:$0xf]  ;;  %v6278_v11 = vmul.f32 %v6150_v20, %v14572_v51 }
 0x7b3   : > { %v5775_v19 = vmul.f32 0.7978846, %v5647_v1  ;;  %v5271_v45 = vmul.f32 %v14628_v16, %v14628_v16 }
 0x7b4   : > { %17426 = vst [vmem:[#allocation77_spill] sm:$0xff] %v14630_v50  ;;  %v11667_v31 = vpop.eup %11666  ;;  %v5782_v10 = vmul.f32 0.7978846, %v5654_v40  ;;  %v5278_v57 = vmul.f32 %v14633_v63, %v14633_v63  ;;  %v9987_v40 = vor.u32 %v11142_v43, %v9984_v62  ;;  %v9982_v43 = vld [vmem:[%s12262_s23 + $0x1d8] sm:$0xf] }
 0x7b5   : > { %v11669_v55 = vpop.eup %11668  ;;  %v5399_v38 = vmul.f32 %v5271_v45, %v14628_v16  ;;  %v6030_v61 = vadd.f32 1.0, %v11667_v31  ;;  %11670 = vtanh.f32 %v5775_v19  ;;  %v11146_v62 = vld [vmem:[%s12262_s23 + $0x1f4] sm:$0xf0] }
 0x7b6   : > { %v5406_v5 = vmul.f32 %v5278_v57, %v14633_v63  ;;  %v4767_v14 = vpop.f32.mrf.mxu2  ;;  %11672 = vtanh.f32 %v5782_v10  ;;  %v6023_v19 = vadd.f32 1.0, %v11669_v55  ;;  %5138 = vmatpush.bf16.msra.mxu2 %v9987_v40  ;;  %v9983_v40 = vor.u32 %v11146_v62, %v9982_v43 }
 0x7b7   : > { %v4816_v34 = vpop.f32.mrf.mxu3  ;;  %v5527_v39 = vmul.f32 0.044715, %v5399_v38  ;;  %v4768_v9 = vadd.f32 %v4767_v14, %v14540_v13  ;;  %v4672_v17 = vpop.f32.mrf.mxu0  ;;  %v6158_v3 = vmul.f32 0.5, %v6030_v61 }
 0x7b8   : > { %v4721_v1 = vpop.f32.mrf.mxu1  ;;  %v5534_v8 = vmul.f32 0.044715, %v5406_v5  ;;  %v4673_v45 = vadd.f32 %v4672_v17, %v14517_v6  ;;  %v6151_v14 = vmul.f32 0.5, %v6023_v19  ;;  %5040 = vmatpush.bf16.msra.mxu0 %v9983_v40 }
 0x7b9   : > { %v5655_v31 = vadd.f32 %v5527_v39, %v14628_v16  ;;  %v14647_v57 = vadd.f32 %v4816_v34, %v4768_v9  ;;  %v6286_v51 = vmul.f32 %v6158_v3, %v14593_v28  ;;  %v11206_v39 = vld [vmem:[%s12262_s23 + $0x3dc] sm:$0xf] }
 0x7ba   : > { %4867 = vmatmul.bf16.gmra.mxu0 %v14005_v24  ;;  %v5662_v20 = vadd.f32 %v5534_v8, %v14633_v63  ;;  %v14652_v38 = vadd.f32 %v4721_v1, %v4673_v45  ;;  %v10240_v45 = vld [vmem:[%s12262_s23 + $0x3f8] sm:$0xf0]  ;;  %v6279_v62 = vmul.f32 %v6151_v14, %v14590_v44 }
 0x7bb   : > { %4916 = vmatmul.bf16.gmra.mxu1 %v14009_v48  ;;  %v11671_v10 = vpop.eup %11670  ;;  %v5783_v55 = vmul.f32 0.7978846, %v5655_v31  ;;  %v5279_v61 = vmul.f32 %v14647_v57, %v14647_v57  ;;  %v14659_v3 = vpack.c.bf16 %v6286_v51, %v6278_v11  ;;  %v10238_v31 = vld [vmem:[%s12262_s23 + $0x3d8] sm:$0xf]  ;;  %v10243_v18 = vor.u32 %v11206_v39, %v10240_v45  ;;  %v11134_v45 = vld [vmem:[%s12262_s23 + $0x19c] sm:$0xf] }
 0x7bc   : > { %4965 = vmatmul.bf16.gmra.mxu2 %v14005_v24  ;;  %5014 = vmatmul.bf16.gmra.mxu3 %v14009_v48  ;;  %v5790_v8 = vmul.f32 0.7978846, %v5662_v20  ;;  %v5286_v28 = vmul.f32 %v14652_v38, %v14652_v38  ;;  %v6031_v5 = vadd.f32 1.0, %v11671_v10  ;;  %v11673_v9 = vpop.eup %11672  ;;  %v11210_v51 = vld [vmem:[%s12262_s23 + $0x3f4] sm:$0xf0] }
 0x7bd   : > { %17427 = vst [vmem:[#allocation78_spill] sm:$0xff] %v14659_v3  ;;  %11674 = vtanh.f32 %v5783_v55  ;;  %v5407_v34 = vmul.f32 %v5279_v61, %v14647_v57  ;;  %v10239_v61 = vor.u32 %v11210_v51, %v10238_v31  ;;  %5187 = vmatpush.bf16.msra.mxu3 %v10243_v18  ;;  %v6038_v43 = vadd.f32 1.0, %v11673_v9  ;;  %v9952_v31 = vld [vmem:[%s12262_s23 + $0x1b8] sm:$0xf0] }
 0x7be   : > { %v5414_v17 = vmul.f32 %v5286_v28, %v14652_v38  ;;  %v4770_v1 = vpop.f32.mrf.mxu2  ;;  %11676 = vtanh.f32 %v5790_v8  ;;  %v6159_v50 = vmul.f32 0.5, %v6031_v5 }
 0x7bf   : > { %v4819_v11 = vpop.f32.mrf.mxu3  ;;  %v5535_v20 = vmul.f32 0.044715, %v5407_v34  ;;  %v4771_v10 = vadd.f32 %v4770_v1, %v14540_v13  ;;  %v4674_v19 = vpop.f32.mrf.mxu0  ;;  %5089 = vmatpush.bf16.msra.mxu1 %v10239_v61 }
 0x7c0   : > { %v4723_v55 = vpop.f32.mrf.mxu1  ;;  %v5542_v4 = vmul.f32 0.044715, %v5414_v17  ;;  %v4675_v3 = vadd.f32 %v4674_v19, %v14517_v6  ;;  %v6287_v39 = vmul.f32 %v6159_v50, %v14606_v41  ;;  %v9955_v19 = vor.u32 %v11134_v45, %v9952_v31  ;;  %v11198_v45 = vld [vmem:[%s12262_s23 + $0x39c] sm:$0xf] }
 0x7c1   : > { %v5663_v28 = vadd.f32 %v5535_v20, %v14647_v57  ;;  %v14674_v27 = vadd.f32 %v4819_v11, %v4771_v10 }
 0x7c2   : > { %v5670_v8 = vadd.f32 %v5542_v4, %v14652_v38  ;;  %v14677_v34 = vadd.f32 %v4723_v55, %v4675_v3  ;;  %v14685_v9 = vpack.c.bf16 %v6287_v39, %v6279_v62  ;;  %v6166_v3 = vmul.f32 0.5, %v6038_v43  ;;  %5139 = vmatpush.bf16.msra.mxu2 %v9955_v19 }
 0x7c3   : > { %v11675_v17 = vpop.eup %11674  ;;  %v5791_v1 = vmul.f32 0.7978846, %v5663_v28  ;;  %v5287_v5 = vmul.f32 %v14674_v27, %v14674_v27 }
 0x7c4   : > { %v11677_v11 = vpop.eup %11676  ;;  %v5798_v40 = vmul.f32 0.7978846, %v5670_v8  ;;  %v5294_v18 = vmul.f32 %v14677_v34, %v14677_v34  ;;  %17428 = vst [vmem:[#allocation79_spill] sm:$0xff] %v14685_v9  ;;  %v6039_v43 = vadd.f32 1.0, %v11675_v17  ;;  %v6294_v62 = vmul.f32 %v6166_v3, %v14610_v60  ;;  %v9856_v9 = vld [vmem:[%s12262_s23 + $0xf8] sm:$0xf0] }
 0x7c5   : > { %v6046_v4 = vadd.f32 1.0, %v11677_v11  ;;  %11678 = vtanh.f32 %v5791_v1  ;;  %v5415_v44 = vmul.f32 %v5287_v5, %v14674_v27 }
 0x7c6   : > { %v5422_v50 = vmul.f32 %v5294_v18, %v14677_v34  ;;  %v4772_v41 = vpop.f32.mrf.mxu2  ;;  %11680 = vtanh.f32 %v5798_v40  ;;  %v6167_v3 = vmul.f32 0.5, %v6039_v43 }
 0x7c7   : > { %v4821_v14 = vpop.f32.mrf.mxu3  ;;  %v4773_v51 = vadd.f32 %v4772_v41, %v14540_v13  ;;  %v4677_v20 = vpop.f32.mrf.mxu0  ;;  %v6174_v55 = vmul.f32 0.5, %v6046_v4  ;;  %v5543_v1 = vmul.f32 0.044715, %v5415_v44  ;;  %v9950_v41 = vld [vmem:[%s12262_s23 + $0x198] sm:$0xf] }
 0x7c8   : > { %v4726_v10 = vpop.f32.mrf.mxu1  ;;  %v5550_v61 = vmul.f32 0.044715, %v5422_v50  ;;  %v4678_v28 = vadd.f32 %v4677_v20, %v14517_v6 }
 0x7c9   : > { %v14693_v8 = vadd.f32 %v4821_v14, %v4773_v51  ;;  %v6302_v39 = vmul.f32 %v6174_v55, %v14633_v63  ;;  %v11138_v14 = vld [vmem:[%s12262_s23 + $0x1b4] sm:$0xf0]  ;;  %v5671_v31 = vadd.f32 %v5543_v1, %v14674_v27  ;;  %v10208_v55 = vld [vmem:[%s12262_s23 + $0x3b8] sm:$0xf0] }
 0x7ca   : > { %4872 = vmatmul.bf16.gmra.mxu0 %v14052_v2  ;;  %v5678_v5 = vadd.f32 %v5550_v61, %v14677_v34  ;;  %v14699_v11 = vadd.f32 %v4726_v10, %v4678_v28  ;;  %v9951_v19 = vor.u32 %v11138_v14, %v9950_v41  ;;  %v10206_v61 = vld [vmem:[%s12262_s23 + $0x398] sm:$0xf] }
 0x7cb   : > { %4921 = vmatmul.bf16.gmra.mxu1 %v14056_v25  ;;  %v11679_v17 = vpop.eup %11678  ;;  %v5295_v40 = vmul.f32 %v14693_v8, %v14693_v8  ;;  %v14706_v60 = vpack.c.bf16 %v6302_v39, %v6294_v62  ;;  %v11202_v28 = vld [vmem:[%s12262_s23 + $0x3b4] sm:$0xf0] }
 0x7cc   : > { %4970 = vmatmul.bf16.gmra.mxu2 %v14052_v2  ;;  %5019 = vmatmul.bf16.gmra.mxu3 %v14056_v25  ;;  %v5806_v63 = vmul.f32 0.7978846, %v5678_v5  ;;  %v5302_v18 = vmul.f32 %v14699_v11, %v14699_v11  ;;  %v6047_v4 = vadd.f32 1.0, %v11679_v17  ;;  %v11681_v44 = vpop.eup %11680  ;;  %v10211_v17 = vor.u32 %v11198_v45, %v10208_v55 }
 0x7cd   : > { %17429 = vst [vmem:[#allocation80_spill] sm:$0xff] %v14706_v60  ;;  %v5423_v50 = vmul.f32 %v5295_v40, %v14693_v8  ;;  %v10207_v40 = vor.u32 %v11202_v28, %v10206_v61  ;;  %5041 = vmatpush.bf16.msra.mxu0 %v9951_v19  ;;  %v6054_v60 = vadd.f32 1.0, %v11681_v44  ;;  %v9920_v19 = vld [vmem:[%s12262_s23 + $0x178] sm:$0xf0]  ;;  %v11130_v61 = vld [vmem:[%s12262_s23 + $0x174] sm:$0xf0] }
 0x7ce   : > { %v5430_v51 = vmul.f32 %v5302_v18, %v14699_v11  ;;  %v4775_v20 = vpop.f32.mrf.mxu2  ;;  %11682 = vtanh.f32 %v5806_v63  ;;  %v6175_v18 = vmul.f32 0.5, %v6047_v4  ;;  %5188 = vmatpush.bf16.msra.mxu3 %v10211_v17  ;;  %v6295_v63 = vmul.f32 %v6167_v3, %v14628_v16 }
 0x7cf   : > { %v4824_v10 = vpop.f32.mrf.mxu3  ;;  %v5551_v62 = vmul.f32 0.044715, %v5423_v50  ;;  %v4776_v43 = vadd.f32 %v4775_v20, %v14540_v13  ;;  %v4679_v39 = vpop.f32.mrf.mxu0  ;;  %5090 = vmatpush.bf16.msra.mxu1 %v10207_v40  ;;  %v5799_v50 = vmul.f32 0.7978846, %v5671_v31  ;;  %v9918_v31 = vld [vmem:[%s12262_s23 + $0x158] sm:$0xf] }
 0x7d0   : > { %v4728_v5 = vpop.f32.mrf.mxu1  ;;  %v4680_v1 = vadd.f32 %v4679_v39, %v14517_v6  ;;  %v6303_v20 = vmul.f32 %v6175_v18, %v14647_v57  ;;  %v5558_v4 = vmul.f32 0.044715, %v5430_v51  ;;  %v11190_v51 = vld [vmem:[%s12262_s23 + $0x35c] sm:$0xf] }
 0x7d1   : > { %v14721_v41 = vadd.f32 %v4824_v10, %v4776_v43  ;;  %v5679_v14 = vadd.f32 %v5551_v62, %v14693_v8  ;;  %v11126_v10 = vld [vmem:[%s12262_s23 + $0x15c] sm:$0xf]  ;;  %v6182_v62 = vmul.f32 0.5, %v6054_v60  ;;  %v9919_v43 = vor.u32 %v11130_v61, %v9918_v31 }
 0x7d2   : > { %v14725_v45 = vadd.f32 %v4728_v5, %v4680_v1  ;;  %v9923_v3 = vor.u32 %v11126_v10, %v9920_v19  ;;  %v14736_v28 = vpack.c.bf16 %v6303_v20, %v6295_v63  ;;  %v10176_v39 = vld [vmem:[%s12262_s23 + $0x378] sm:$0xf0]  ;;  %v10174_v5 = vld [vmem:[%s12262_s23 + $0x358] sm:$0xf]  ;;  %v5686_v60 = vadd.f32 %v5558_v4, %v14699_v11 }
 0x7d3   : > { %v5303_v44 = vmul.f32 %v14721_v41, %v14721_v41  ;;  %v5807_v17 = vmul.f32 0.7978846, %v5679_v14  ;;  %v10179_v10 = vor.u32 %v11190_v51, %v10176_v39  ;;  %v11194_v19 = vld [vmem:[%s12262_s23 + $0x374] sm:$0xf0]  ;;  %5042 = vmatpush.bf16.msra.mxu0 %v9919_v43  ;;  %11684 = vtanh.f32 %v5799_v50 }
 0x7d4   : > { %v11683_v55 = vpop.eup %11682  ;;  %v5310_v16 = vmul.f32 %v14725_v45, %v14725_v45  ;;  %17430 = vst [vmem:[#allocation81_spill] sm:$0xff] %v14736_v28  ;;  %5140 = vmatpush.bf16.msra.mxu2 %v9923_v3  ;;  %v10175_v14 = vor.u32 %v11194_v19, %v10174_v5  ;;  %v11122_v28 = vld [vmem:[%s12262_s23 + $0x134] sm:$0xf0]  ;;  %v11118_v5 = vld [vmem:[%s12262_s23 + $0x11c] sm:$0xf] }
 0x7d5   : > { %v5431_v57 = vmul.f32 %v5303_v44, %v14721_v41  ;;  %v6062_v63 = vadd.f32 1.0, %v11683_v55  ;;  %5189 = vmatpush.bf16.msra.mxu3 %v10179_v10  ;;  %v10142_v55 = vld [vmem:[%s12262_s23 + $0x318] sm:$0xf]  ;;  %v11182_v19 = vld [vmem:[%s12262_s23 + $0x31c] sm:$0xf]  ;;  %11686 = vtanh.f32 %v5807_v17 }
 0x7d6   : > { %v5438_v40 = vmul.f32 %v5310_v16, %v14725_v45  ;;  %v4777_v1 = vpop.f32.mrf.mxu2  ;;  %v9886_v16 = vld [vmem:[%s12262_s23 + $0x118] sm:$0xf]  ;;  %5091 = vmatpush.bf16.msra.mxu1 %v10175_v14 }
 0x7d7   : > { %v4826_v18 = vpop.f32.mrf.mxu3  ;;  %v5559_v20 = vmul.f32 0.044715, %v5431_v57  ;;  %v4778_v44 = vadd.f32 %v4777_v1, %v14540_v13  ;;  %v4682_v31 = vpop.f32.mrf.mxu0  ;;  %v9887_v39 = vor.u32 %v11122_v28, %v9886_v16  ;;  %v11186_v4 = vld [vmem:[%s12262_s23 + $0x334] sm:$0xf0] }
 0x7d8   : > { %v4731_v61 = vpop.f32.mrf.mxu1  ;;  %v5566_v3 = vmul.f32 0.044715, %v5438_v40  ;;  %v4683_v51 = vadd.f32 %v4682_v31, %v14517_v6  ;;  %v10143_v43 = vor.u32 %v11186_v4, %v10142_v55  ;;  %v9888_v40 = vld [vmem:[%s12262_s23 + $0x138] sm:$0xf0]  ;;  %v9854_v16 = vld [vmem:[%s12262_s23 + $0xd8] sm:$0xf] }
 0x7d9   : > { %v5687_v57 = vadd.f32 %v5559_v20, %v14721_v41  ;;  %v14752_v1 = vadd.f32 %v4826_v18, %v4778_v44  ;;  %v9891_v50 = vor.u32 %v11118_v5, %v9888_v40  ;;  %v10144_v20 = vld [vmem:[%s12262_s23 + $0x338] sm:$0xf0]  ;;  %v6190_v18 = vmul.f32 0.5, %v6062_v63  ;;  %5043 = vmatpush.bf16.msra.mxu0 %v9887_v39  ;;  %v10110_v55 = vld [vmem:[%s12262_s23 + $0x2d8] sm:$0xf] }
 0x7da   : > { %4877 = vmatmul.bf16.gmra.mxu0 %v14123_v49  ;;  %v5694_v10 = vadd.f32 %v5566_v3, %v14725_v45  ;;  %v14759_v28 = vadd.f32 %v4731_v61, %v4683_v51  ;;  %v5814_v44 = vmul.f32 0.7978846, %v5686_v60  ;;  %v10147_v14 = vor.u32 %v11182_v19, %v10144_v20  ;;  %v11114_v61 = vld [vmem:[%s12262_s23 + $0xf4] sm:$0xf0]  ;;  %5092 = vmatpush.bf16.msra.mxu1 %v10143_v43  ;;  %v11110_v20 = vld [vmem:[%s12262_s23 + $0xdc] sm:$0xf]  ;;  %v11685_v43 = vpop.eup %11684 }
 0x7db   : > { %4926 = vmatmul.bf16.gmra.mxu1 %v14127_v47  ;;  %v5311_v31 = vmul.f32 %v14752_v1, %v14752_v1  ;;  %v6310_v3 = vmul.f32 %v6182_v62, %v14652_v38  ;;  %v5815_v51 = vmul.f32 0.7978846, %v5687_v57  ;;  %5141 = vmatpush.bf16.msra.mxu2 %v9891_v50  ;;  %v9855_v60 = vor.u32 %v11114_v61, %v9854_v16  ;;  %v11178_v4 = vld [vmem:[%s12262_s23 + $0x2f4] sm:$0xf0]  ;;  %v11174_v38 = vld [vmem:[%s12262_s23 + $0x2dc] sm:$0xf] }
 0x7dc   : > { %4975 = vmatmul.bf16.gmra.mxu2 %v14123_v49  ;;  %5024 = vmatmul.bf16.gmra.mxu3 %v14127_v47  ;;  %v5318_v63 = vmul.f32 %v14759_v28, %v14759_v28  ;;  %v6318_v5 = vmul.f32 %v6190_v18, %v14677_v34  ;;  %v10111_v19 = vor.u32 %v11178_v4, %v10110_v55  ;;  %v5822_v62 = vmul.f32 0.7978846, %v5694_v10  ;;  %v10112_v61 = vld [vmem:[%s12262_s23 + $0x2f8] sm:$0xf0]  ;;  %v9822_v17 = vld [vmem:[%s12262_s23 + $0x98] sm:$0xf] }
 0x7dd   : > { %v5439_v40 = vmul.f32 %v5311_v31, %v14752_v1  ;;  %5190 = vmatpush.bf16.msra.mxu3 %v10147_v14  ;;  %v9859_v16 = vor.u32 %v11110_v20, %v9856_v9  ;;  %v10115_v4 = vor.u32 %v11174_v38, %v10112_v61  ;;  %v11106_v10 = vld [vmem:[%s12262_s23 + $0xb4] sm:$0xf0]  ;;  %5044 = vmatpush.bf16.msra.mxu0 %v9855_v60  ;;  %11688 = vtanh.f32 %v5814_v44  ;;  %v11102_v61 = vld [vmem:[%s12262_s23 + $0x9c] sm:$0xf] }
 0x7de   : > { %v5446_v39 = vmul.f32 %v5318_v63, %v14759_v28  ;;  %v4780_v57 = vpop.f32.mrf.mxu2  ;;  %v14781_v34 = vpack.c.bf16 %v6318_v5, %v6310_v3  ;;  %v9823_v3 = vor.u32 %v11106_v10, %v9822_v17  ;;  %v10078_v5 = vld [vmem:[%s12262_s23 + $0x298] sm:$0xf]  ;;  %5093 = vmatpush.bf16.msra.mxu1 %v10111_v19  ;;  %v10080_v17 = vld [vmem:[%s12262_s23 + $0x2b8] sm:$0xf0]  ;;  %v6055_v44 = vadd.f32 1.0, %v11685_v43 }
 0x7df   : > { %v4829_v50 = vpop.f32.mrf.mxu3  ;;  %v5567_v18 = vmul.f32 0.044715, %v5439_v40  ;;  %v4781_v31 = vadd.f32 %v4780_v57, %v14540_v13  ;;  %v4684_v14 = vpop.f32.mrf.mxu0  ;;  %5142 = vmatpush.bf16.msra.mxu2 %v9859_v16  ;;  %v11170_v20 = vld [vmem:[%s12262_s23 + $0x2b4] sm:$0xf0]  ;;  %11690 = vtanh.f32 %v5822_v62  ;;  %v11158_v62 = vld [vmem:[%s12262_s23 + $0x25c] sm:$0xf] }
 0x7e0   : > { %17431 = vst [vmem:[#allocation82_spill] sm:$0xff] %v14781_v34  ;;  %v4733_v55 = vpop.f32.mrf.mxu1  ;;  %v5574_v63 = vmul.f32 0.044715, %v5446_v39  ;;  %v4685_v9 = vadd.f32 %v4684_v14, %v14517_v6  ;;  %v10079_v38 = vor.u32 %v11170_v20, %v10078_v5  ;;  %v9824_v39 = vld [vmem:[%s12262_s23 + $0xb8] sm:$0xf0]  ;;  %11692 = vtanh.f32 %v5815_v51 }
 0x7e1   : > { %v5695_v40 = vadd.f32 %v5567_v18, %v14752_v1  ;;  %v14790_v57 = vadd.f32 %v4829_v50, %v4781_v31  ;;  %5191 = vmatpush.bf16.msra.mxu3 %v10115_v4  ;;  %v11166_v34 = vld [vmem:[%s12262_s23 + $0x29c] sm:$0xf]  ;;  %v9827_v14 = vor.u32 %v11102_v61, %v9824_v39  ;;  %v11687_v18 = vpop.eup %11686  ;;  %v9790_v4 = vld [vmem:[%s12262_s23 + $0x58] sm:$0xf]  ;;  %5045 = vmatpush.bf16.msra.mxu0 %v9823_v3 }
 0x7e2   : > { %v5702_v60 = vadd.f32 %v5574_v63, %v14759_v28  ;;  %v14796_v16 = vadd.f32 %v4733_v55, %v4685_v9  ;;  %v10083_v31 = vor.u32 %v11166_v34, %v10080_v17  ;;  %v11098_v10 = vld [vmem:[%s12262_s23 + $0x74] sm:$0xf0]  ;;  %5094 = vmatpush.bf16.msra.mxu1 %v10079_v38  ;;  %v9792_v61 = vld [vmem:[%s12262_s23 + $0x78] sm:$0xf0]  ;;  %v6063_v17 = vadd.f32 1.0, %v11687_v18 }
 0x7e3   : > { %v5823_v50 = vmul.f32 0.7978846, %v5695_v40  ;;  %v5319_v19 = vmul.f32 %v14790_v57, %v14790_v57  ;;  %5143 = vmatpush.bf16.msra.mxu2 %v9827_v14  ;;  %v9791_v43 = vor.u32 %v11098_v10, %v9790_v4  ;;  %v10046_v9 = vld [vmem:[%s12262_s23 + $0x258] sm:$0xf]  ;;  %v11094_v40 = vld [vmem:[%s12262_s23 + $0x5c] sm:$0xf] }
 0x7e4   : > { %v5830_v55 = vmul.f32 0.7978846, %v5702_v60  ;;  %v5326_v63 = vmul.f32 %v14796_v16, %v14796_v16  ;;  %v11162_v5 = vld [vmem:[%s12262_s23 + $0x274] sm:$0xf0]  ;;  %v9795_v60 = vor.u32 %v11094_v40, %v9792_v61  ;;  %v10048_v14 = vld [vmem:[%s12262_s23 + $0x278] sm:$0xf0] }
 0x7e5   : > { %v5447_v20 = vmul.f32 %v5319_v19, %v14790_v57  ;;  %5192 = vmatpush.bf16.msra.mxu3 %v10083_v31  ;;  %v10047_v34 = vor.u32 %v11162_v5, %v10046_v9  ;;  %11694 = vtanh.f32 %v5823_v50  ;;  %v6183_v4 = vmul.f32 0.5, %v6055_v44  ;;  %v11689_v19 = vpop.eup %11688  ;;  %v9758_v47 = vld [vmem:[%s12262_s23 + $0x18] sm:$0xf]  ;;  %5046 = vmatpush.bf16.msra.mxu0 %v9791_v43  ;;  %v9760_v43 = vld [vmem:[%s12262_s23 + $0x38] sm:$0xf0] }
 0x7e6   : > { %v5454_v51 = vmul.f32 %v5326_v63, %v14796_v16  ;;  %v4782_v39 = vpop.f32.mrf.mxu2  ;;  %v10051_v5 = vor.u32 %v11158_v62, %v10048_v14  ;;  %v11090_v49 = vld [vmem:[%s12262_s23 + $0x34] sm:$0xf0]  ;;  %11696 = vtanh.f32 %v5830_v55  ;;  %v11086_v14 = vld [vmem:[%s12262_s23 + $0x1c] sm:$0xf] }
 0x7e7   : > { %v4831_v3 = vpop.f32.mrf.mxu3  ;;  %v5575_v38 = vmul.f32 0.044715, %v5447_v20  ;;  %v4783_v31 = vadd.f32 %v4782_v39, %v14540_v13  ;;  %v4687_v10 = vpop.f32.mrf.mxu0  ;;  %5144 = vmatpush.bf16.msra.mxu2 %v9795_v60  ;;  %v9759_v40 = vor.u32 %v11090_v49, %v9758_v47  ;;  %v10014_v18 = vld [vmem:[%s12262_s23 + $0x218] sm:$0xf]  ;;  %v6311_v44 = vmul.f32 %v6183_v4, %v14674_v27  ;;  %5095 = vmatpush.bf16.msra.mxu1 %v10047_v34  ;;  %v11150_v55 = vld [vmem:[%s12262_s23 + $0x21c] sm:$0xf] }
 0x7e8   : > { %v4736_v9 = vpop.f32.mrf.mxu1  ;;  %v5582_v50 = vmul.f32 0.044715, %v5454_v51  ;;  %v4688_v63 = vadd.f32 %v4687_v10, %v14517_v6  ;;  %v11154_v61 = vld [vmem:[%s12262_s23 + $0x234] sm:$0xf0]  ;;  %v11691_v20 = vpop.eup %11690  ;;  %v9763_v27 = vor.u32 %v11086_v14, %v9760_v43  ;;  %v10016_v4 = vld [vmem:[%s12262_s23 + $0x238] sm:$0xf0] }
 0x7e9   : > { %v5703_v62 = vadd.f32 %v5575_v38, %v14790_v57  ;;  %v14821_v39 = vadd.f32 %v4831_v3, %v4783_v31  ;;  %v10015_v51 = vor.u32 %v11154_v61, %v10014_v18  ;;  %v11693_v60 = vpop.eup %11692  ;;  %5193 = vmatpush.bf16.msra.mxu3 %v10051_v5  ;;  %v6191_v38 = vmul.f32 0.5, %v6063_v17  ;;  %5047 = vmatpush.bf16.msra.mxu0 %v9759_v40 }
 0x7ea   : > { %4882 = vmatmul.bf16.gmra.mxu0 %v14176_v53  ;;  %v5710_v49 = vadd.f32 %v5582_v50, %v14796_v16  ;;  %v14827_v47 = vadd.f32 %v4736_v9, %v4688_v63  ;;  %v10019_v10 = vor.u32 %v11150_v55, %v10016_v4  ;;  %v6070_v50 = vadd.f32 1.0, %v11689_v19 }
 0x7eb   : > { %4931 = vmatmul.bf16.gmra.mxu1 %v14180_v12  ;;  %v11695_v3 = vpop.eup %11694  ;;  %v5831_v31 = vmul.f32 0.7978846, %v5703_v62  ;;  %v5327_v34 = vmul.f32 %v14821_v39, %v14821_v39  ;;  %5145 = vmatpush.bf16.msra.mxu2 %v9763_v27  ;;  %v6319_v5 = vmul.f32 %v6191_v38, %v14693_v8  ;;  %v6078_v17 = vadd.f32 1.0, %v11691_v20 }
 0x7ec   : > { %4980 = vmatmul.bf16.gmra.mxu2 %v14176_v53  ;;  %5029 = vmatmul.bf16.gmra.mxu3 %v14180_v12  ;;  %v5838_v9 = vmul.f32 0.7978846, %v5710_v49  ;;  %v5334_v63 = vmul.f32 %v14827_v47, %v14827_v47  ;;  %v6198_v61 = vmul.f32 0.5, %v6070_v50  ;;  %v6071_v62 = vadd.f32 1.0, %v11693_v60  ;;  %v11697_v40 = vpop.eup %11696 }
 0x7ed   : > { %11698 = vtanh.f32 %v5831_v31  ;;  %v5455_v18 = vmul.f32 %v5327_v34, %v14821_v39  ;;  %5096 = vmatpush.bf16.msra.mxu1 %v10015_v51  ;;  %5194 = vmatpush.bf16.msra.mxu3 %v10019_v10  ;;  %v14841_v19 = vpack.c.bf16 %v6319_v5, %v6311_v44  ;;  %v6206_v49 = vmul.f32 0.5, %v6078_v17 }
 0x7ee   : > { %v5462_v14 = vmul.f32 %v5334_v63, %v14827_v47  ;;  %v6079_v4 = vadd.f32 1.0, %v11695_v3  ;;  %v5236_v8 = vmul.f32 %v14074_v37, %v14074_v37  ;;  %v6326_v60 = vmul.f32 %v6198_v61, %v14699_v11 }
 0x7ef   : > { %v4785_v43 = vpop.f32.mrf.mxu2  ;;  %v4834_v55 = vpop.f32.mrf.mxu3  ;;  %17432 = vst [vmem:[#allocation83_spill] sm:$0xff] %v14841_v19  ;;  %v5583_v20 = vmul.f32 0.044715, %v5455_v18  ;;  %v6334_v10 = vmul.f32 %v6206_v49, %v14725_v45  ;;  %v6199_v44 = vmul.f32 0.5, %v6071_v62  ;;  %11700 = vtanh.f32 %v5838_v9  ;;  %v17452_v19 = vld [vmem:[#allocation61_spill] sm:$0xff] }
 0x7f0   : > { %v4786_v27 = vadd.f32 %v4785_v43, %v14540_v13  ;;  %v4689_v38 = vpop.f32.mrf.mxu0  ;;  %v4738_v51 = vpop.f32.mrf.mxu1  ;;  %v5590_v31 = vmul.f32 0.044715, %v5462_v14  ;;  %v6207_v63 = vmul.f32 0.5, %v6079_v4  ;;  %v6086_v43 = vadd.f32 1.0, %v11697_v40 }
 0x7f1   : > { %v4690_v34 = vadd.f32 %v4689_v38, %v14517_v6  ;;  %v5711_v50 = vadd.f32 %v5583_v20, %v14821_v39  ;;  %v14855_v18 = vpack.c.bf16 %v6334_v10, %v6326_v60  ;;  %v6327_v11 = vmul.f32 %v6199_v44, %v14721_v41 }
 0x7f2   : > { %v14850_v3 = vadd.f32 %v4834_v55, %v4786_v27  ;;  %v5718_v5 = vadd.f32 %v5590_v31, %v14827_v47  ;;  %v6335_v62 = vmul.f32 %v6207_v63, %v14752_v1  ;;  %v5364_v49 = vmul.f32 %v5236_v8, %v14074_v37 }
 0x7f3   : > { %v14853_v17 = vadd.f32 %v4738_v51, %v4690_v34  ;;  %17433 = vst [vmem:[#allocation84_spill] sm:$0xff] %v14855_v18  ;;  %v11699_v61 = vpop.eup %11698  ;;  %v5839_v14 = vmul.f32 0.7978846, %v5711_v50  ;;  %v6214_v34 = vmul.f32 0.5, %v6086_v43 }
 0x7f4   : > { %v5335_v45 = vmul.f32 %v14850_v3, %v14850_v3  ;;  %v5846_v55 = vmul.f32 0.7978846, %v5718_v5  ;;  %v14865_v20 = vpack.c.bf16 %v6335_v62, %v6327_v11  ;;  %v6087_v10 = vadd.f32 1.0, %v11699_v61 }
 0x7f5   : > { %v5342_v9 = vmul.f32 %v14853_v17, %v14853_v17  ;;  %11702 = vtanh.f32 %v5839_v14  ;;  %v11701_v51 = vpop.eup %11700  ;;  %v5492_v63 = vmul.f32 0.044715, %v5364_v49  ;;  %v4464_v5 = vadd.f32 %v14093_v22, %v14048_v15 }
 0x7f6   : > { %v5463_v4 = vmul.f32 %v5335_v45, %v14850_v3  ;;  %17434 = vst [vmem:[#allocation85_spill] sm:$0xff] %v14865_v20  ;;  %11704 = vtanh.f32 %v5846_v55  ;;  %v6094_v50 = vadd.f32 1.0, %v11701_v51  ;;  %v5237_v45 = vmul.f32 %v14102_v52, %v14102_v52 }
 0x7f7   : > { %v5470_v41 = vmul.f32 %v5342_v9, %v14853_v17  ;;  %v4787_v27 = vpop.f32.mrf.mxu2  ;;  %v4836_v38 = vpop.f32.mrf.mxu3  ;;  %v6342_v49 = vmul.f32 %v6214_v34, %v14759_v28 }
 0x7f8   : > { %v5591_v60 = vmul.f32 0.044715, %v5463_v4  ;;  %v4788_v1 = vadd.f32 %v4787_v27, %v14540_v13  ;;  %v4692_v40 = vpop.f32.mrf.mxu0  ;;  %v4741_v31 = vpop.f32.mrf.mxu1  ;;  %v6222_v43 = vmul.f32 0.5, %v6094_v50  ;;  %v6215_v4 = vmul.f32 0.5, %v6087_v10 }
 0x7f9   : > { %v5598_v44 = vmul.f32 0.044715, %v5470_v41  ;;  %v4693_v8 = vadd.f32 %v4692_v40, %v14517_v6  ;;  %v5365_v50 = vmul.f32 %v5237_v45, %v14102_v52 }
 0x7fa   : > { %v5719_v11 = vadd.f32 %v5591_v60, %v14850_v3  ;;  %v14873_v14 = vadd.f32 %v4836_v38, %v4788_v1  ;;  %4887 = vmatmul.bf16.gmra.mxu0 %v14239_v30  ;;  %v6350_v38 = vmul.f32 %v6222_v43, %v14796_v16  ;;  %v5620_v60 = vadd.f32 %v5492_v63, %v14074_v37 }
 0x7fb   : > { %v5726_v61 = vadd.f32 %v5598_v44, %v14853_v17  ;;  %v14879_v62 = vadd.f32 %v4741_v31, %v4693_v8  ;;  %4936 = vmatmul.bf16.gmra.mxu1 %v14243_v42  ;;  %v11703_v55 = vpop.eup %11702  ;;  %v14892_v1 = vadd.f32 %v14095_v23, %v4464_v5  ;;  %v6343_v43 = vmul.f32 %v6215_v4, %v14790_v57 }
 0x7fc   : > { %v5847_v9 = vmul.f32 0.7978846, %v5719_v11  ;;  %v5343_v22 = vmul.f32 %v14873_v14, %v14873_v14  ;;  %4985 = vmatmul.bf16.gmra.mxu2 %v14239_v30  ;;  %5034 = vmatmul.bf16.gmra.mxu3 %v14243_v42  ;;  %v6095_v51 = vadd.f32 1.0, %v11703_v55  ;;  %v11705_v31 = vpop.eup %11704  ;;  %v14896_v34 = vpack.c.bf16 %v6350_v38, %v6342_v49 }
 0x7fd   : > { %v5854_v41 = vmul.f32 0.7978846, %v5726_v61  ;;  %v5350_v27 = vmul.f32 %v14879_v62, %v14879_v62  ;;  %v5493_v57 = vmul.f32 0.044715, %v5365_v50 }
 0x7fe   : > { %v5471_v40 = vmul.f32 %v5343_v22, %v14873_v14  ;;  %17435 = vst [vmem:[#allocation86_spill] sm:$0xff] %v14896_v34  ;;  %v6223_v10 = vmul.f32 0.5, %v6095_v51  ;;  %v5244_v22 = vmul.f32 %v14892_v1, %v14892_v1 }
 0x7ff   : > { %v5478_v44 = vmul.f32 %v5350_v27, %v14879_v62  ;;  %v4790_v8 = vpop.f32.mrf.mxu2  ;;  %v4839_v28 = vpop.f32.mrf.mxu3  ;;  %11706 = vtanh.f32 %v5854_v41  ;;  %v4562_v41 = vadd.f32 %v14130_v56, %v14078_v58 }
 0x800   : > { %11708 = vtanh.f32 %v5847_v9  ;;  %v5599_v16 = vmul.f32 0.044715, %v5471_v40  ;;  %v4791_v63 = vadd.f32 %v4790_v8, %v14540_v13  ;;  %v4694_v11 = vpop.f32.mrf.mxu0  ;;  %v4743_v23 = vpop.f32.mrf.mxu1  ;;  %v6351_v55 = vmul.f32 %v6223_v10, %v14821_v39 }
 0x801   : > { %v5606_v5 = vmul.f32 0.044715, %v5478_v44  ;;  %v4695_v61 = vadd.f32 %v4694_v11, %v14517_v6  ;;  %v6102_v9 = vadd.f32 1.0, %v11705_v31  ;;  %v11945_v31 = vld [vmem:[%s12267_s3] sm:$0xff]  ;;  %v5372_v50 = vmul.f32 %v5244_v22, %v14892_v1 }
 0x802   : > { %v5727_v49 = vadd.f32 %v5599_v16, %v14873_v14  ;;  %v14906_v45 = vadd.f32 %v4839_v28, %v4791_v63  ;;  %v14913_v6 = vpack.c.bf16 %v6351_v55, %v6343_v43  ;;  %v14920_v8 = vperm.slane %v11945_v31, 4 }
 0x803   : > { %v5734_v27 = vadd.f32 %v5606_v5, %v14879_v62  ;;  %v14911_v38 = vadd.f32 %v4743_v23, %v4695_v61  ;;  %v6230_v16 = vmul.f32 0.5, %v6102_v9  ;;  %v5748_v63 = vmul.f32 0.7978846, %v5620_v60 }
 0x804   : > { %17436 = vst [vmem:[#allocation87_spill] sm:$0xff] %v14913_v6  ;;  %v5855_v4 = vmul.f32 0.7978846, %v5727_v49  ;;  %v5351_v39 = vmul.f32 %v14906_v45, %v14906_v45  ;;  %v14925_v11 = vadd.f32 %v14132_v21, %v4562_v41  ;;  %v5621_v43 = vadd.f32 %v5493_v57, %v14102_v52 }
 0x805   : > { %v11707_v51 = vpop.eup %11706  ;;  %v5862_v40 = vmul.f32 0.7978846, %v5734_v27  ;;  %v5358_v44 = vmul.f32 %v14911_v38, %v14911_v38 }
 0x806   : > { %v11709_v56 = vpop.eup %11708  ;;  %v5479_v28 = vmul.f32 %v5351_v39, %v14906_v45  ;;  %v6110_v10 = vadd.f32 1.0, %v11707_v51  ;;  %11710 = vtanh.f32 %v5855_v4  ;;  %v6358_v4 = vmul.f32 %v6230_v16, %v14827_v47 }
 0x807   : > { %v5486_v23 = vmul.f32 %v5358_v44, %v14911_v38  ;;  %v4792_v5 = vpop.f32.mrf.mxu2  ;;  %v4841_v61 = vpop.f32.mrf.mxu3  ;;  %11712 = vtanh.f32 %v5862_v40  ;;  %v6103_v22 = vadd.f32 1.0, %v11709_v56  ;;  %v14947_v47 = vperm.slane %v11945_v31, 5 }
 0x808   : > { %v5607_v55 = vmul.f32 0.044715, %v5479_v28  ;;  %v4793_v49 = vadd.f32 %v4792_v5, %v14540_v13  ;;  %v4853_v27 = vpop.f32.mrf.mxu0  ;;  %v4902_v39 = vpop.f32.mrf.mxu1  ;;  %v6238_v51 = vmul.f32 0.5, %v6110_v10  ;;  %v5245_v13 = vmul.f32 %v14925_v11, %v14925_v11 }
 0x809   : > { %v5614_v9 = vmul.f32 0.044715, %v5486_v23  ;;  %v4854_v60 = vadd.f32 %v4853_v27, %v14920_v8  ;;  %11714 = vtanh.f32 %v5748_v63 }
 0x80a   : > { %v5735_v21 = vadd.f32 %v5607_v55, %v14906_v45  ;;  %v14932_v41 = vadd.f32 %v4841_v61, %v4793_v49  ;;  %5048 = vmatmul.bf16.vlgmr.msra.gmra.mxu0 %v13855_v33  ;;  %v6366_v57 = vmul.f32 %v6238_v51, %v14853_v17  ;;  %v6231_v61 = vmul.f32 0.5, %v6103_v22 }
 0x80b   : > { %v5742_v44 = vadd.f32 %v5614_v9, %v14911_v38  ;;  %v14940_v40 = vadd.f32 %v4902_v39, %v4854_v60  ;;  %5097 = vmatmul.bf16.vlgmr.msra.gmra.mxu1 %v13859_v0  ;;  %v5749_v55 = vmul.f32 0.7978846, %v5621_v43  ;;  %v5500_v49 = vmul.f32 0.044715, %v5372_v50 }
 0x80c   : > { %v11711_v56 = vpop.eup %11710  ;;  %v5863_v28 = vmul.f32 0.7978846, %v5735_v21  ;;  %v5359_v10 = vmul.f32 %v14932_v41, %v14932_v41  ;;  %5146 = vmatmul.bf16.vlgmr.msra.gmra.mxu2 %v13855_v33  ;;  %5195 = vmatmul.bf16.vlgmr.msra.gmra.mxu3 %v13859_v0  ;;  %v14949_v17 = vpack.c.bf16 %v6366_v57, %v6358_v4  ;;  %v5252_v33 = vmul.f32 %v14142_v36, %v14142_v36 }
 0x80d   : > { %v5870_v16 = vmul.f32 0.7978846, %v5742_v44  ;;  %v5240_v23 = vmul.f32 %v14940_v40, %v14940_v40  ;;  %v6111_v5 = vadd.f32 1.0, %v11711_v56  ;;  %v11713_v39 = vpop.eup %11712  ;;  %v5373_v60 = vmul.f32 %v5245_v13, %v14925_v11 }
 0x80e   : > { %17437 = vst [vmem:[#allocation88_spill] sm:$0xff] %v14949_v17  ;;  %v5487_v27 = vmul.f32 %v5359_v10, %v14932_v41  ;;  %v6359_v57 = vmul.f32 %v6231_v61, %v14850_v3  ;;  %v5628_v56 = vadd.f32 %v5500_v49, %v14892_v1  ;;  %v6118_v13 = vadd.f32 1.0, %v11713_v39 }
 0x80f   : > { %v5368_v0 = vmul.f32 %v5240_v23, %v14940_v40  ;;  %v4951_v31 = vpop.f32.mrf.mxu2  ;;  %v5000_v51 = vpop.f32.mrf.mxu3  ;;  %v6239_v9 = vmul.f32 0.5, %v6111_v5  ;;  %11716 = vtanh.f32 %v5870_v16 }
 0x810   : > { %11718 = vtanh.f32 %v5863_v28  ;;  %v5615_v21 = vmul.f32 0.044715, %v5487_v27  ;;  %v4952_v63 = vadd.f32 %v4951_v31, %v14947_v47  ;;  %v4855_v43 = vpop.f32.mrf.mxu0  ;;  %v4904_v50 = vpop.f32.mrf.mxu1  ;;  %v5380_v28 = vmul.f32 %v5252_v33, %v14142_v36 }
 0x811   : > { %v5496_v22 = vmul.f32 0.044715, %v5368_v0  ;;  %v4856_v4 = vadd.f32 %v4855_v43, %v14920_v8  ;;  %v6367_v44 = vmul.f32 %v6239_v9, %v14873_v14  ;;  %v11715_v0 = vpop.eup %11714  ;;  %v5501_v31 = vmul.f32 0.044715, %v5373_v60 }
 0x812   : > { %v5743_v10 = vadd.f32 %v5615_v21, %v14932_v41  ;;  %v14964_v16 = vadd.f32 %v5000_v51, %v4952_v63  ;;  %11720 = vtanh.f32 %v5749_v55  ;;  %v6246_v21 = vmul.f32 0.5, %v6118_v13 }
 0x813   : > { %v5624_v23 = vadd.f32 %v5496_v22, %v14940_v40  ;;  %v14968_v5 = vadd.f32 %v4904_v50, %v4856_v4  ;;  %v14970_v27 = vpack.c.bf16 %v6367_v44, %v6359_v57  ;;  %v6004_v63 = vadd.f32 1.0, %v11715_v0 }
 0x814   : > { %v5871_v3 = vmul.f32 0.7978846, %v5743_v10  ;;  %v5241_v14 = vmul.f32 %v14964_v16, %v14964_v16  ;;  %v5756_v43 = vmul.f32 0.7978846, %v5628_v56  ;;  %v5508_v50 = vmul.f32 0.044715, %v5380_v28 }
 0x815   : > { %17438 = vst [vmem:[#allocation89_spill] sm:$0xff] %v14970_v27  ;;  %v11717_v61 = vpop.eup %11716  ;;  %v5752_v49 = vmul.f32 0.7978846, %v5624_v23  ;;  %v5248_v39 = vmul.f32 %v14968_v5, %v14968_v5  ;;  %v5629_v57 = vadd.f32 %v5501_v31, %v14925_v11  ;;  %v6374_v0 = vmul.f32 %v6246_v21, %v14879_v62 }
 0x816   : > { %v11719_v51 = vpop.eup %11718  ;;  %v5369_v33 = vmul.f32 %v5241_v14, %v14964_v16  ;;  %v6126_v9 = vadd.f32 1.0, %v11717_v61  ;;  %11722 = vtanh.f32 %v5871_v3 }
 0x817   : > { %v5376_v60 = vmul.f32 %v5248_v39, %v14968_v5  ;;  %v4953_v22 = vpop.f32.mrf.mxu2  ;;  %v5002_v4 = vpop.f32.mrf.mxu3  ;;  %11724 = vtanh.f32 %v5752_v49  ;;  %v6119_v3 = vadd.f32 1.0, %v11719_v51  ;;  %v14987_v39 = vmul.f32 0.5, %v6004_v63 }
 0x818   : > { %v5497_v55 = vmul.f32 0.044715, %v5369_v33  ;;  %v4954_v44 = vadd.f32 %v4953_v22, %v14947_v47  ;;  %v4858_v10 = vpop.f32.mrf.mxu0  ;;  %v4907_v23 = vpop.f32.mrf.mxu1  ;;  %v6254_v27 = vmul.f32 0.5, %v6126_v9  ;;  %v4469_v49 = vadd.f32 %v14152_v54, %v14048_v15 }
 0x819   : > { %v5504_v14 = vmul.f32 0.044715, %v5376_v60  ;;  %v4859_v13 = vadd.f32 %v4858_v10, %v14920_v8  ;;  %v11721_v61 = vpop.eup %11720  ;;  %11726 = vtanh.f32 %v5756_v43  ;;  %v6247_v63 = vmul.f32 0.5, %v6119_v3 }
 0x81a   : > { %v5625_v56 = vadd.f32 %v5497_v55, %v14964_v16  ;;  %v14982_v28 = vadd.f32 %v5002_v4, %v4954_v44  ;;  %5053 = vmatmul.bf16.gmra.mxu0 %v13920_v26  ;;  %v6382_v31 = vmul.f32 %v6254_v27, %v14911_v38  ;;  %v6005_v22 = vadd.f32 1.0, %v11721_v61 }
 0x81b   : > { %v5632_v33 = vadd.f32 %v5504_v14, %v14968_v5  ;;  %v14992_v9 = vadd.f32 %v4907_v23, %v4859_v13  ;;  %5102 = vmatmul.bf16.gmra.mxu1 %v13924_v32  ;;  %v5757_v4 = vmul.f32 0.7978846, %v5629_v57  ;;  %v5636_v43 = vadd.f32 %v5508_v50, %v14142_v36 }
 0x81c   : > { %v11723_v51 = vpop.eup %11722  ;;  %v5753_v60 = vmul.f32 0.7978846, %v5625_v56  ;;  %v5249_v62 = vmul.f32 %v14982_v28, %v14982_v28  ;;  %5151 = vmatmul.bf16.gmra.mxu2 %v13920_v26  ;;  %5200 = vmatmul.bf16.gmra.mxu3 %v13924_v32  ;;  %v14999_v38 = vpack.c.bf16 %v6382_v31, %v6374_v0  ;;  %v15006_v10 = vadd.f32 %v14154_v46, %v4469_v49 }
 0x81d   : > { %v5760_v27 = vmul.f32 0.7978846, %v5632_v33  ;;  %v5256_v54 = vmul.f32 %v14992_v9, %v14992_v9  ;;  %v6127_v21 = vadd.f32 1.0, %v11723_v51  ;;  %v11725_v44 = vpop.eup %11724  ;;  %v4567_v13 = vadd.f32 %v14182_v35, %v14078_v58 }
 0x81e   : > { %17439 = vst [vmem:[#allocation90_spill] sm:$0xff] %v14999_v38  ;;  %v5377_v55 = vmul.f32 %v5249_v62, %v14982_v28  ;;  %v6375_v46 = vmul.f32 %v6247_v63, %v14906_v45  ;;  %v6008_v33 = vadd.f32 1.0, %v11725_v44  ;;  %v5253_v35 = vmul.f32 %v14186_v29, %v14186_v29  ;;  %v17442_v44 = vld [vmem:[#allocation44_spill] sm:$0xff] }
 0x81f   : > { %17440 = vst [vmem:[#allocation91_spill] sm:$0xff] %v15006_v10  ;;  %11728 = vtanh.f32 %v5760_v27  ;;  %v5384_v26 = vmul.f32 %v5256_v54, %v14992_v9  ;;  %v4956_v32 = vpop.f32.mrf.mxu2  ;;  %v5005_v23 = vpop.f32.mrf.mxu3  ;;  %v6255_v14 = vmul.f32 0.5, %v6127_v21  ;;  %v5764_v21 = vmul.f32 0.7978846, %v5636_v43 }
 0x820   : > { %11730 = vtanh.f32 %v5753_v60  ;;  %v5505_v3 = vmul.f32 0.044715, %v5377_v55  ;;  %v4957_v57 = vadd.f32 %v4956_v32, %v14947_v47  ;;  %v4860_v50 = vpop.f32.mrf.mxu0  ;;  %v4909_v56 = vpop.f32.mrf.mxu1  ;;  %v5260_v45 = vmul.f32 %v15006_v10, %v15006_v10 }
 0x821   : > { %v5512_v0 = vmul.f32 0.044715, %v5384_v26  ;;  %v4861_v31 = vadd.f32 %v4860_v50, %v14920_v8  ;;  %v6383_v61 = vmul.f32 %v6255_v14, %v14932_v41  ;;  %v11727_v49 = vpop.eup %11726  ;;  %11732 = vtanh.f32 %v5757_v4 }
 0x822   : > { %v5633_v51 = vadd.f32 %v5505_v3, %v14982_v28  ;;  %v15016_v62 = vadd.f32 %v5005_v23, %v4957_v57  ;;  %v15029_v55 = vmul.f32 0.5, %v6005_v22  ;;  %v15032_v26 = vadd.f32 %v17442_v44, %v4567_v13 }
 0x823   : > { %v5640_v60 = vadd.f32 %v5512_v0, %v14992_v9  ;;  %v15021_v27 = vadd.f32 %v4909_v56, %v4861_v31  ;;  %v15023_v54 = vpack.c.bf16 %v6383_v61, %v6375_v46  ;;  %v6136_v3 = vmul.f32 0.5, %v6008_v33 }
 0x824   : > { %v5761_v41 = vmul.f32 0.7978846, %v5633_v51  ;;  %v5257_v63 = vmul.f32 %v15016_v62, %v15016_v62  ;;  %17443 = vst [vmem:[#allocation44_spill] sm:$0xff] %v15032_v26  ;;  %v6012_v50 = vadd.f32 1.0, %v11727_v49  ;;  %v5381_v56 = vmul.f32 %v5253_v35, %v14186_v29 }
 0x825   : > { %17441 = vst [vmem:[#allocation92_spill] sm:$0xff] %v15023_v54  ;;  %v11729_v4 = vpop.eup %11728  ;;  %v5768_v32 = vmul.f32 0.7978846, %v5640_v60  ;;  %v5264_v23 = vmul.f32 %v15021_v27, %v15021_v27  ;;  %v5388_v46 = vmul.f32 %v5260_v45, %v15006_v10  ;;  %v6264_v44 = vmul.f32 %v6136_v3, %v14940_v40 }
 0x826   : > { %v11731_v14 = vpop.eup %11730  ;;  %v6016_v43 = vadd.f32 1.0, %v11729_v4  ;;  %11734 = vtanh.f32 %v5761_v41  ;;  %v5385_v57 = vmul.f32 %v5257_v63, %v15016_v62  ;;  %v5261_v41 = vmul.f32 %v15032_v26, %v15032_v26 }
 0x827   : > { %11736 = vtanh.f32 %v5768_v32  ;;  %v5392_v22 = vmul.f32 %v5264_v23, %v15021_v27  ;;  %v4958_v0 = vpop.f32.mrf.mxu2  ;;  %v5007_v31 = vpop.f32.mrf.mxu3  ;;  %v6009_v49 = vadd.f32 1.0, %v11731_v14 }
 0x828   : > { %v11733_v13 = vpop.eup %11732  ;;  %v6144_v61 = vmul.f32 0.5, %v6016_v43  ;;  %v5513_v51 = vmul.f32 0.044715, %v5385_v57  ;;  %v4959_v60 = vadd.f32 %v4958_v0, %v14947_v47  ;;  %v4863_v33 = vpop.f32.mrf.mxu0  ;;  %v15050_v43 = vmul.f32 0.5, %v6012_v50 }
 0x829   : > { %v4912_v4 = vpop.f32.mrf.mxu1  ;;  %v5520_v63 = vmul.f32 0.044715, %v5392_v22  ;;  %v4864_v35 = vadd.f32 %v4863_v33, %v14920_v8  ;;  %11738 = vtanh.f32 %v5764_v21  ;;  %v6013_v22 = vadd.f32 1.0, %v11733_v13 }
 0x82a   : > { %v6272_v32 = vmul.f32 %v6144_v61, %v14968_v5  ;;  %v5641_v23 = vadd.f32 %v5513_v51, %v15016_v62  ;;  %v15047_v45 = vadd.f32 %v5007_v31, %v4959_v60  ;;  %5058 = vmatmul.bf16.gmra.mxu0 %v13972_v59  ;;  %v6137_v21 = vmul.f32 0.5, %v6009_v49 }
 0x82b   : > { %v5648_v57 = vadd.f32 %v5520_v63, %v15021_v27  ;;  %v15053_v0 = vadd.f32 %v4912_v4, %v4864_v35  ;;  %5107 = vmatmul.bf16.gmra.mxu1 %v13976_v7  ;;  %v5509_v60 = vmul.f32 0.044715, %v5381_v56  ;;  %v5516_v33 = vmul.f32 0.044715, %v5388_v46 }
 0x82c   : > { %v11735_v14 = vpop.eup %11734  ;;  %v15056_v40 = vpack.c.bf16 %v6272_v32, %v6264_v44  ;;  %v5769_v5 = vmul.f32 0.7978846, %v5641_v23  ;;  %v5265_v3 = vmul.f32 %v15047_v45, %v15047_v45  ;;  %5156 = vmatmul.bf16.gmra.mxu2 %v13972_v59  ;;  %5205 = vmatmul.bf16.gmra.mxu3 %v13976_v7  ;;  %v5389_v13 = vmul.f32 %v5261_v41, %v15032_v26  ;;  %v17445_v32 = vld [vmem:[#allocation52_spill] sm:$0xff] }
 0x82d   : > { %v11737_v50 = vpop.eup %11736  ;;  %v6017_v31 = vadd.f32 1.0, %v11735_v14  ;;  %v5776_v61 = vmul.f32 0.7978846, %v5648_v57  ;;  %v5272_v51 = vmul.f32 %v15053_v0, %v15053_v0  ;;  %v5268_v49 = vmul.f32 %v17445_v32, %v17445_v32 }
 0x82e   : > { %17444 = vst [vmem:[#allocation93_spill] sm:$0xff] %v15056_v40  ;;  %v5393_v4 = vmul.f32 %v5265_v3, %v15047_v45  ;;  %v6024_v7 = vadd.f32 1.0, %v11737_v50  ;;  %v6265_v41 = vmul.f32 %v6137_v21, %v14964_v16  ;;  %v5637_v50 = vadd.f32 %v5509_v60, %v14186_v29 }
 0x82f   : > { %v6145_v63 = vmul.f32 0.5, %v6017_v31  ;;  %v5400_v35 = vmul.f32 %v5272_v51, %v15053_v0  ;;  %v4961_v44 = vpop.f32.mrf.mxu2  ;;  %v5010_v59 = vpop.f32.mrf.mxu3  ;;  %11740 = vtanh.f32 %v5776_v61  ;;  %v17446_v61 = vld [vmem:[#allocation53_spill] sm:$0xff]  ;;  %v5644_v21 = vadd.f32 %v5516_v33, %v15006_v10 }
 0x830   : > { %11742 = vtanh.f32 %v5769_v5  ;;  %v5521_v23 = vmul.f32 0.044715, %v5393_v4  ;;  %v4962_v57 = vadd.f32 %v4961_v44, %v14947_v47  ;;  %v4865_v56 = vpop.f32.mrf.mxu0  ;;  %v15070_v14 = vpop.eup %11738  ;;  %v4474_v40 = vadd.f32 %v17446_v61, %v14048_v15  ;;  %v10430_v61 = vld [vmem:[%s12272_s13 + $0x170] sm:$0xf] }
 0x831   : > { %v4914_v46 = vpop.f32.mrf.mxu1  ;;  %v6273_v3 = vmul.f32 %v6145_v63, %v14982_v28  ;;  %v5528_v31 = vmul.f32 0.044715, %v5400_v35  ;;  %v4866_v51 = vadd.f32 %v4865_v56, %v14920_v8  ;;  %v6152_v16 = vmul.f32 0.5, %v6024_v7 }
 0x832   : > { %v5649_v5 = vadd.f32 %v5521_v23, %v15047_v45  ;;  %v15079_v4 = vadd.f32 %v5010_v59, %v4962_v57  ;;  %v15086_v28 = vmul.f32 0.5, %v6013_v22  ;;  %v5517_v59 = vmul.f32 0.044715, %v5389_v13 }
 0x833   : > { %v15081_v44 = vpack.c.bf16 %v6273_v3, %v6265_v41  ;;  %v5656_v54 = vadd.f32 %v5528_v31, %v15053_v0  ;;  %v15084_v38 = vadd.f32 %v4914_v46, %v4866_v51  ;;  %v5396_v23 = vmul.f32 %v5268_v49, %v17445_v32  ;;  %v17448_v41 = vld [vmem:[#allocation59_spill] sm:$0xff]  ;;  %v17449_v31 = vld [vmem:[#allocation54_spill] sm:$0xff] }
 0x834   : > { %v5777_v63 = vmul.f32 0.7978846, %v5649_v5  ;;  %v5273_v60 = vmul.f32 %v15079_v4, %v15079_v4  ;;  %v15094_v7 = vmul.f32 0.7978846, %v5637_v50  ;;  %v5269_v3 = vmul.f32 %v17448_v41, %v17448_v41  ;;  %v11258_v5 = vld [vmem:[%s12272_s13 + $0x174] sm:$0xf0] }
 0x835   : > { %17447 = vst [vmem:[#allocation52_spill] sm:$0xff] %v15081_v44  ;;  %v11741_v35 = vpop.eup %11740  ;;  %v5784_v57 = vmul.f32 0.7978846, %v5656_v54  ;;  %v5280_v56 = vmul.f32 %v15084_v38, %v15084_v38  ;;  %v15100_v51 = vadd.f32 %v17449_v31, %v4474_v40  ;;  %v6280_v44 = vmul.f32 %v6152_v16, %v14992_v9 }
 0x836   : > { %v11743_v46 = vpop.eup %11742  ;;  %v5401_v22 = vmul.f32 %v5273_v60, %v15079_v4  ;;  %v6032_v33 = vadd.f32 1.0, %v11741_v35  ;;  %11744 = vtanh.f32 %v5777_v63  ;;  %v10431_v63 = vor.u32 %v11258_v5, %v10430_v61 }
 0x837   : > { %v5408_v13 = vmul.f32 %v5280_v56, %v15084_v38  ;;  %v4963_v49 = vpop.f32.mrf.mxu2  ;;  %v5012_v54 = vpop.f32.mrf.mxu3  ;;  %11746 = vtanh.f32 %v5784_v57  ;;  %v6025_v31 = vadd.f32 1.0, %v11743_v46  ;;  %v15108_v20 = vmul.f32 0.7978846, %v5644_v21 }
 0x838   : > { %v5529_v50 = vmul.f32 0.044715, %v5401_v22  ;;  %v4964_v17 = vadd.f32 %v4963_v49, %v14947_v47  ;;  %v4868_v60 = vpop.f32.mrf.mxu0  ;;  %v6160_v6 = vmul.f32 0.5, %v6032_v33  ;;  %7324 = vmatpush.bf16.msrb.mxu2 %v10431_v63  ;;  %v5524_v16 = vmul.f32 0.044715, %v5396_v23 }
 0x839   : > { %v4917_v35 = vpop.f32.mrf.mxu1  ;;  %v5536_v34 = vmul.f32 0.044715, %v5408_v13  ;;  %v4869_v40 = vadd.f32 %v4868_v60, %v14920_v8  ;;  %v5276_v22 = vmul.f32 %v15100_v51, %v15100_v51  ;;  %v5645_v61 = vadd.f32 %v5517_v59, %v15032_v26 }
 0x83a   : > { %v5657_v56 = vadd.f32 %v5529_v50, %v15079_v4  ;;  %v15111_v18 = vadd.f32 %v5012_v54, %v4964_v17  ;;  %5063 = vmatmul.bf16.gmra.mxu0 %v14005_v24  ;;  %v6288_v9 = vmul.f32 %v6160_v6, %v15021_v27  ;;  %v17450_v17 = vld [vmem:[#allocation60_spill] sm:$0xff]  ;;  %v6153_v54 = vmul.f32 0.5, %v6025_v31  ;;  %v11274_v31 = vld [vmem:[%s12272_s13 + $0x1f4] sm:$0xf0] }
 0x83b   : > { %v5664_v57 = vadd.f32 %v5536_v34, %v15084_v38  ;;  %v15118_v33 = vadd.f32 %v4917_v35, %v4869_v40  ;;  %5112 = vmatmul.bf16.gmra.mxu1 %v14009_v48  ;;  %v4572_v46 = vadd.f32 %v17450_v17, %v14078_v58  ;;  %v5397_v5 = vmul.f32 %v5269_v3, %v17448_v41  ;;  %v10302_v50 = vld [vmem:[%s12272_s13 + $0x70] sm:$0xf] }
 0x83c   : > { %v11745_v21 = vpop.eup %11744  ;;  %v5785_v13 = vmul.f32 0.7978846, %v5657_v56  ;;  %v5281_v6 = vmul.f32 %v15111_v18, %v15111_v18  ;;  %5161 = vmatmul.bf16.gmra.mxu2 %v14005_v24  ;;  %5210 = vmatmul.bf16.gmra.mxu3 %v14009_v48  ;;  %v15127_v34 = vpack.c.bf16 %v6288_v9, %v6280_v44  ;;  %v11226_v48 = vld [vmem:[%s12272_s13 + $0x74] sm:$0xf0]  ;;  %v10494_v44 = vld [vmem:[%s12272_s13 + $0x1f0] sm:$0xf]  ;;  %v5404_v35 = vmul.f32 %v5276_v22, %v15100_v51 }
 0x83d   : > { %v5792_v27 = vmul.f32 0.7978846, %v5664_v57  ;;  %v5288_v23 = vmul.f32 %v15118_v33, %v15118_v33  ;;  %v6033_v49 = vadd.f32 1.0, %v11745_v21  ;;  %v11747_v60 = vpop.eup %11746  ;;  %v10303_v9 = vor.u32 %v11226_v48, %v10302_v50  ;;  %v10366_v57 = vld [vmem:[%s12272_s13 + $0xf0] sm:$0xf] }
 0x83e   : > { %17451 = vst [vmem:[#allocation53_spill] sm:$0xff] %v15127_v34  ;;  %11748 = vtanh.f32 %v5785_v13  ;;  %v5409_v24 = vmul.f32 %v5281_v6, %v15111_v18  ;;  %v11242_v21 = vld [vmem:[%s12272_s13 + $0xf4] sm:$0xf0]  ;;  %v10495_v6 = vor.u32 %v11274_v31, %v10494_v44  ;;  %v15144_v29 = vadd.f32 %v17452_v19, %v4572_v46 }
 0x83f   : > { %v5416_v63 = vmul.f32 %v5288_v23, %v15118_v33  ;;  %v4966_v40 = vpop.f32.mrf.mxu2  ;;  %v5015_v56 = vpop.f32.mrf.mxu3  ;;  %11750 = vtanh.f32 %v5792_v27  ;;  %v10367_v34 = vor.u32 %v11242_v21, %v10366_v57  ;;  %7226 = vmatpush.bf16.msrb.mxu0 %v10303_v9  ;;  %v6161_v26 = vmul.f32 0.5, %v6033_v49 }
 0x840   : > { %v5537_v59 = vmul.f32 0.044715, %v5409_v24  ;;  %v4967_v3 = vadd.f32 %v4966_v40, %v14947_v47  ;;  %v4870_v17 = vpop.f32.mrf.mxu0  ;;  %v5525_v50 = vmul.f32 0.044715, %v5397_v5  ;;  %7373 = vmatpush.bf16.msrb.mxu3 %v10495_v6  ;;  %v6040_v27 = vadd.f32 1.0, %v11747_v60 }
 0x841   : > { %v4919_v13 = vpop.f32.mrf.mxu1  ;;  %v5544_v22 = vmul.f32 0.044715, %v5416_v63  ;;  %v4871_v23 = vadd.f32 %v4870_v17, %v14920_v8  ;;  %7275 = vmatpush.bf16.msrb.mxu1 %v10367_v34  ;;  %v6281_v19 = vmul.f32 %v6153_v54, %v15016_v62  ;;  %v6289_v46 = vmul.f32 %v6161_v26, %v15047_v45  ;;  %v10422_v17 = vld [vmem:[%s12272_s13 + $0x160] sm:$0xf] }
 0x842   : > { %v5665_v48 = vadd.f32 %v5537_v59, %v15111_v18  ;;  %v15148_v10 = vadd.f32 %v5015_v56, %v4967_v3  ;;  %v15155_v40 = vmul.f32 0.7978846, %v5645_v61  ;;  %v5652_v49 = vadd.f32 %v5524_v16, %v17445_v32 }
 0x843   : > { %v5672_v24 = vadd.f32 %v5544_v22, %v15118_v33  ;;  %v15151_v44 = vadd.f32 %v4919_v13, %v4871_v23  ;;  %v6020_v62 = vadd.f32 1.0, %v15070_v14  ;;  %v15163_v54 = vpack.c.bf16 %v6289_v46, %v6281_v19  ;;  %v11256_v13 = vld [vmem:[%s12272_s13 + $0x164] sm:$0xf0] }
 0x844   : > { %v11749_v63 = vpop.eup %11748  ;;  %v5793_v5 = vmul.f32 0.7978846, %v5665_v48  ;;  %v5289_v56 = vmul.f32 %v15148_v10, %v15148_v10  ;;  %v5532_v26 = vmul.f32 0.044715, %v5404_v35  ;;  %v6168_v61 = vmul.f32 0.5, %v6040_v27  ;;  %v17453_v48 = vld [vmem:[#allocation62_spill] sm:$0xff] }
 0x845   : > { %v11751_v34 = vpop.eup %11750  ;;  %v5800_v60 = vmul.f32 0.7978846, %v5672_v24  ;;  %v5296_v9 = vmul.f32 %v15151_v44, %v15151_v44  ;;  %v5653_v16 = vadd.f32 %v5525_v50, %v17448_v41  ;;  %v5277_v31 = vmul.f32 %v15144_v29, %v15144_v29 }
 0x846   : > { %v6048_v45 = vadd.f32 1.0, %v11751_v34  ;;  %11752 = vtanh.f32 %v5793_v5  ;;  %v5417_v57 = vmul.f32 %v5289_v56, %v15148_v10  ;;  %v10423_v22 = vor.u32 %v11256_v13, %v10422_v17  ;;  %v10294_v13 = vld [vmem:[%s12272_s13 + $0x60] sm:$0xf] }
 0x847   : > { %v5424_v21 = vmul.f32 %v5296_v9, %v15151_v44  ;;  %v4968_v59 = vpop.f32.mrf.mxu2  ;;  %v5017_v3 = vpop.f32.mrf.mxu3  ;;  %11754 = vtanh.f32 %v5800_v60  ;;  %v5284_v50 = vmul.f32 %v17453_v48, %v17453_v48  ;;  %v6041_v19 = vadd.f32 1.0, %v11749_v63 }
 0x848   : > { %v4969_v14 = vadd.f32 %v4968_v59, %v14947_v47  ;;  %v4873_v35 = vpop.f32.mrf.mxu0  ;;  %v6176_v23 = vmul.f32 0.5, %v6048_v45  ;;  %v15176_v46 = vmul.f32 0.7978846, %v5652_v49  ;;  %7325 = vmatpush.bf16.msrb.mxu2 %v10423_v22  ;;  %v6296_v56 = vmul.f32 %v6168_v61, %v15053_v0 }
 0x849   : > { %v4922_v6 = vpop.f32.mrf.mxu1  ;;  %v5552_v27 = vmul.f32 0.044715, %v5424_v21  ;;  %v4874_v24 = vadd.f32 %v4873_v35, %v14920_v8  ;;  %v5545_v60 = vmul.f32 0.044715, %v5417_v57  ;;  %v15187_v21 = vmul.f32 0.5, %v6020_v62 }
 0x84a   : > { %v15178_v5 = vadd.f32 %v5017_v3, %v4969_v14  ;;  %5068 = vmatmul.bf16.gmra.mxu0 %v14052_v2  ;;  %v6304_v34 = vmul.f32 %v6176_v23, %v15084_v38  ;;  %v15189_v49 = vmul.f32 0.7978846, %v5653_v16  ;;  %v5660_v59 = vadd.f32 %v5532_v26, %v15100_v51  ;;  %v11224_v14 = vld [vmem:[%s12272_s13 + $0x64] sm:$0xf0]  ;;  %v10486_v35 = vld [vmem:[%s12272_s13 + $0x1e0] sm:$0xf] }
 0x84b   : > { %v5680_v9 = vadd.f32 %v5552_v27, %v15151_v44  ;;  %v15184_v45 = vadd.f32 %v4922_v6, %v4874_v24  ;;  %5117 = vmatmul.bf16.gmra.mxu1 %v14056_v25  ;;  %v6169_v57 = vmul.f32 0.5, %v6041_v19  ;;  %v6268_v3 = vmul.f32 %v15050_v43, %v14892_v1  ;;  %v11272_v19 = vld [vmem:[%s12272_s13 + $0x1e4] sm:$0xf0] }
 0x84c   : > { %v11753_v63 = vpop.eup %11752  ;;  %v5297_v38 = vmul.f32 %v15178_v5, %v15178_v5  ;;  %5166 = vmatmul.bf16.gmra.mxu2 %v14052_v2  ;;  %5215 = vmatmul.bf16.gmra.mxu3 %v14056_v25  ;;  %v15196_v0 = vpack.c.bf16 %v6304_v34, %v6296_v56  ;;  %v5405_v17 = vmul.f32 %v5277_v31, %v15144_v29  ;;  %v10358_v56 = vld [vmem:[%s12272_s13 + $0xe0] sm:$0xf]  ;;  %v11240_v34 = vld [vmem:[%s12272_s13 + $0xe4] sm:$0xf0] }
 0x84d   : > { %v5808_v61 = vmul.f32 0.7978846, %v5680_v9  ;;  %v5304_v62 = vmul.f32 %v15184_v45, %v15184_v45  ;;  %v6049_v16 = vadd.f32 1.0, %v11753_v63  ;;  %v11755_v26 = vpop.eup %11754  ;;  %v5412_v2 = vmul.f32 %v5284_v50, %v17453_v48 }
 0x84e   : > { %17454 = vst [vmem:[#allocation59_spill] sm:$0xff] %v15196_v0  ;;  %v5425_v25 = vmul.f32 %v5297_v38, %v15178_v5  ;;  %v5673_v6 = vadd.f32 %v5545_v60, %v15148_v10  ;;  %v10295_v24 = vor.u32 %v11224_v14, %v10294_v13  ;;  %v10487_v9 = vor.u32 %v11272_v19, %v10486_v35  ;;  %v10286_v19 = vld [vmem:[%s12272_s13 + $0x50] sm:$0xf] }
 0x84f   : > { %v5432_v22 = vmul.f32 %v5304_v62, %v15184_v45  ;;  %v4971_v23 = vpop.f32.mrf.mxu2  ;;  %v5020_v27 = vpop.f32.mrf.mxu3  ;;  %11756 = vtanh.f32 %v5808_v61  ;;  %v10359_v63 = vor.u32 %v11240_v34, %v10358_v56  ;;  %v15214_v38 = vmul.f32 0.7978846, %v5660_v59 }
 0x850   : > { %v5553_v1 = vmul.f32 0.044715, %v5425_v25  ;;  %v4972_v43 = vadd.f32 %v4971_v23, %v14947_v47  ;;  %v4875_v31 = vpop.f32.mrf.mxu0  ;;  %7227 = vmatpush.bf16.msrb.mxu0 %v10295_v24  ;;  %v6177_v62 = vmul.f32 0.5, %v6049_v16  ;;  %v6056_v0 = vadd.f32 1.0, %v11755_v26  ;;  %7374 = vmatpush.bf16.msrb.mxu3 %v10487_v9 }
 0x851   : > { %v4924_v50 = vpop.f32.mrf.mxu1  ;;  %v4876_v60 = vadd.f32 %v4875_v31, %v14920_v8  ;;  %v15217_v13 = vmul.f32 0.044715, %v5405_v17  ;;  %v15219_v14 = vmul.f32 0.044715, %v5412_v2  ;;  %7276 = vmatpush.bf16.msrb.mxu1 %v10359_v63  ;;  %v6297_v59 = vmul.f32 %v6169_v57, %v15079_v4  ;;  %v10414_v57 = vld [vmem:[%s12272_s13 + $0x150] sm:$0xf] }
 0x852   : > { %v15221_v61 = vadd.f32 %v5020_v27, %v4972_v43  ;;  %v5801_v25 = vmul.f32 0.7978846, %v5673_v6  ;;  %v5681_v35 = vadd.f32 %v5553_v1, %v15178_v5  ;;  %v6305_v16 = vmul.f32 %v6177_v62, %v15111_v18  ;;  %v11254_v6 = vld [vmem:[%s12272_s13 + $0x154] sm:$0xf0]  ;;  %v10478_v1 = vld [vmem:[%s12272_s13 + $0x1d0] sm:$0xf] }
 0x853   : > { %v15225_v23 = vadd.f32 %v4924_v50, %v4876_v60  ;;  %v6260_v26 = vmul.f32 %v14987_v39, %v14074_v37  ;;  %v15232_v17 = vmul.f32 %v15029_v55, %v14102_v52  ;;  %v5560_v2 = vmul.f32 0.044715, %v5432_v22  ;;  %v11222_v37 = vld [vmem:[%s12272_s13 + $0x54] sm:$0xf0]  ;;  %v10350_v31 = vld [vmem:[%s12272_s13 + $0xd0] sm:$0xf] }
 0x854   : > { %v5305_v4 = vmul.f32 %v15221_v61, %v15221_v61  ;;  %v10415_v24 = vor.u32 %v11254_v6, %v10414_v57  ;;  %v15242_v39 = vpack.c.bf16 %v6305_v16, %v6297_v59  ;;  %v6184_v52 = vmul.f32 0.5, %v6056_v0  ;;  %v11270_v43 = vld [vmem:[%s12272_s13 + $0x1d4] sm:$0xf0]  ;;  %v11220_v57 = vld [vmem:[%s12272_s13 + $0x44] sm:$0xf0] }
 0x855   : > { %v11757_v27 = vpop.eup %11756  ;;  %v5312_v18 = vmul.f32 %v15225_v23, %v15225_v23  ;;  %v15244_v55 = vpack.c.bf16 %v6268_v3, %v6260_v26  ;;  %v6269_v22 = vmul.f32 %v15086_v28, %v14925_v11  ;;  %v10287_v34 = vor.u32 %v11222_v37, %v10286_v19  ;;  %v11238_v3 = vld [vmem:[%s12272_s13 + $0xd4] sm:$0xf0] }
 0x856   : > { %v5433_v56 = vmul.f32 %v5305_v4, %v15221_v61  ;;  %v5809_v50 = vmul.f32 0.7978846, %v5681_v35  ;;  %7326 = vmatpush.bf16.msrb.mxu2 %v10415_v24  ;;  %v10479_v0 = vor.u32 %v11270_v43, %v10478_v1  ;;  %v6064_v62 = vadd.f32 1.0, %v11757_v27  ;;  %v10278_v4 = vld [vmem:[%s12272_s13 + $0x40] sm:$0xf] }
 0x857   : > { %v5440_v9 = vmul.f32 %v5312_v18, %v15225_v23  ;;  %v4973_v63 = vpop.f32.mrf.mxu2  ;;  %v5022_v60 = vpop.f32.mrf.mxu3  ;;  %v5688_v11 = vadd.f32 %v5560_v2, %v15184_v45  ;;  %7228 = vmatpush.bf16.msrb.mxu0 %v10287_v34  ;;  %v10351_v35 = vor.u32 %v11238_v3, %v10350_v31  ;;  %11758 = vtanh.f32 %v15094_v7  ;;  %v10342_v2 = vld [vmem:[%s12272_s13 + $0xc0] sm:$0xf]  ;;  %v11236_v24 = vld [vmem:[%s12272_s13 + $0xc4] sm:$0xf0] }
 0x858   : > { %v5561_v28 = vmul.f32 0.044715, %v5433_v56  ;;  %v4974_v59 = vadd.f32 %v4973_v63, %v14947_v47  ;;  %v4878_v16 = vpop.f32.mrf.mxu0  ;;  %7375 = vmatpush.bf16.msrb.mxu3 %v10479_v0  ;;  %v10279_v18 = vor.u32 %v11220_v57, %v10278_v4  ;;  %11760 = vtanh.f32 %v5801_v25  ;;  %v17455_v56 = vld [vmem:[#allocation48_spill] sm:$0xff]  ;;  %v10406_v7 = vld [vmem:[%s12272_s13 + $0x140] sm:$0xf] }
 0x859   : > { %v4927_v26 = vpop.f32.mrf.mxu1  ;;  %v5568_v6 = vmul.f32 0.044715, %v5440_v9  ;;  %v4879_v27 = vadd.f32 %v4878_v16, %v14920_v8  ;;  %7277 = vmatpush.bf16.msrb.mxu1 %v10351_v35  ;;  %v10343_v34 = vor.u32 %v11236_v24, %v10342_v2  ;;  %v11252_v1 = vld [vmem:[%s12272_s13 + $0x144] sm:$0xf0]  ;;  %v10470_v43 = vld [vmem:[%s12272_s13 + $0x1c0] sm:$0xf]  ;;  %v6312_v35 = vmul.f32 %v6184_v52, %v15118_v33 }
 0x85a   : > { %v5689_v19 = vadd.f32 %v5561_v28, %v15221_v61  ;;  %v15263_v37 = vadd.f32 %v5022_v60, %v4974_v59  ;;  %5073 = vmatmul.bf16.gmra.mxu0 %v17455_v56  ;;  %v17456_v63 = vld [vmem:[#allocation42_spill] sm:$0xff]  ;;  %v10407_v25 = vor.u32 %v11252_v1, %v10406_v7  ;;  %v11268_v0 = vld [vmem:[%s12272_s13 + $0x1c4] sm:$0xf0]  ;;  %v6192_v60 = vmul.f32 0.5, %v6064_v62  ;;  %v10270_v16 = vld [vmem:[%s12272_s13 + $0x30] sm:$0xf] }
 0x85b   : > { %v5696_v31 = vadd.f32 %v5568_v6, %v15225_v23  ;;  %v15270_v9 = vadd.f32 %v4927_v26, %v4879_v27  ;;  %5122 = vmatmul.bf16.gmra.mxu1 %v17456_v63  ;;  %v5816_v3 = vmul.f32 0.7978846, %v5688_v11  ;;  %v10471_v59 = vor.u32 %v11268_v0, %v10470_v43  ;;  %v11218_v26 = vld [vmem:[%s12272_s13 + $0x34] sm:$0xf0]  ;;  %7229 = vmatpush.bf16.msrb.mxu0 %v10279_v18  ;;  %v10334_v57 = vld [vmem:[%s12272_s13 + $0xb0] sm:$0xf] }
 0x85c   : > { %v5313_v28 = vmul.f32 %v15263_v37, %v15263_v37  ;;  %5171 = vmatmul.bf16.gmra.mxu2 %v17455_v56  ;;  %5220 = vmatmul.bf16.gmra.mxu3 %v17456_v63  ;;  %v5817_v4 = vmul.f32 0.7978846, %v5689_v19  ;;  %v10271_v11 = vor.u32 %v11218_v26, %v10270_v16  ;;  %v11234_v6 = vld [vmem:[%s12272_s13 + $0xb4] sm:$0xf0]  ;;  %v6320_v27 = vmul.f32 %v6192_v60, %v15151_v44  ;;  %v10398_v52 = vld [vmem:[%s12272_s13 + $0x130] sm:$0xf] }
 0x85d   : > { %v5320_v62 = vmul.f32 %v15270_v9, %v15270_v9  ;;  %7327 = vmatpush.bf16.msrb.mxu2 %v10407_v25  ;;  %v15287_v2 = vpack.c.bf16 %v6269_v22, %v15232_v17  ;;  %7278 = vmatpush.bf16.msrb.mxu1 %v10343_v34  ;;  %v10335_v33 = vor.u32 %v11234_v6, %v10334_v57  ;;  %v11250_v19 = vld [vmem:[%s12272_s13 + $0x134] sm:$0xf0]  ;;  %v10462_v56 = vld [vmem:[%s12272_s13 + $0x1b0] sm:$0xf]  ;;  %11762 = vtanh.f32 %v5809_v50  ;;  %v15293_v18 = vpop.eup %11758  ;;  %v11216_v16 = vld [vmem:[%s12272_s13 + $0x24] sm:$0xf0] }
 0x85e   : > { %v5441_v24 = vmul.f32 %v5313_v28, %v15263_v37  ;;  %7376 = vmatpush.bf16.msrb.mxu3 %v10471_v59  ;;  %v5824_v7 = vmul.f32 0.7978846, %v5696_v31  ;;  %v10399_v17 = vor.u32 %v11250_v19, %v10398_v52  ;;  %v11266_v22 = vld [vmem:[%s12272_s13 + $0x1b4] sm:$0xf0]  ;;  %v15297_v63 = vpack.c.bf16 %v6320_v27, %v6312_v35  ;;  %v11761_v34 = vpop.eup %11760  ;;  %v10262_v59 = vld [vmem:[%s12272_s13 + $0x20] sm:$0xf] }
 0x85f   : > { %v5448_v44 = vmul.f32 %v5320_v62, %v15270_v9  ;;  %v4976_v1 = vpop.f32.mrf.mxu2  ;;  %v5025_v43 = vpop.f32.mrf.mxu3  ;;  %v10463_v28 = vor.u32 %v11266_v22, %v10462_v56  ;;  %11764 = vtanh.f32 %v15108_v20  ;;  %7230 = vmatpush.bf16.msrb.mxu0 %v10271_v11  ;;  %v10263_v35 = vor.u32 %v11216_v16, %v10262_v59  ;;  %v10326_v62 = vld [vmem:[%s12272_s13 + $0xa0] sm:$0xf]  ;;  %v11232_v57 = vld [vmem:[%s12272_s13 + $0xa4] sm:$0xf0]  ;;  %v10254_v22 = vld [vmem:[%s12272_s13 + $0x10] sm:$0xf] }
 0x860   : > { %v5569_v25 = vmul.f32 0.044715, %v5441_v24  ;;  %v4977_v0 = vadd.f32 %v4976_v1, %v14947_v47  ;;  %v4880_v60 = vpop.f32.mrf.mxu0  ;;  %11766 = vtanh.f32 %v15176_v46  ;;  %v10327_v20 = vor.u32 %v11232_v57, %v10326_v62  ;;  %v10390_v46 = vld [vmem:[%s12272_s13 + $0x120] sm:$0xf]  ;;  %v11248_v24 = vld [vmem:[%s12272_s13 + $0x124] sm:$0xf0] }
 0x861   : > { %v4929_v50 = vpop.f32.mrf.mxu1  ;;  %v5576_v31 = vmul.f32 0.044715, %v5448_v44  ;;  %v4881_v26 = vadd.f32 %v4880_v60, %v14920_v8  ;;  %7328 = vmatpush.bf16.msrb.mxu2 %v10399_v17  ;;  %11768 = vtanh.f32 %v5816_v3  ;;  %7279 = vmatpush.bf16.msrb.mxu1 %v10335_v33  ;;  %v10454_v52 = vld [vmem:[%s12272_s13 + $0x1a0] sm:$0xf]  ;;  %v10391_v56 = vor.u32 %v11248_v24, %v10390_v46  ;;  %v11264_v44 = vld [vmem:[%s12272_s13 + $0x1a4] sm:$0xf0] }
 0x862   : > { %v5697_v6 = vadd.f32 %v5569_v25, %v15263_v37  ;;  %v15308_v27 = vadd.f32 %v5025_v43, %v4977_v0  ;;  %7377 = vmatpush.bf16.msrb.mxu3 %v10463_v28  ;;  %v6057_v3 = vadd.f32 1.0, %v11761_v34  ;;  %v10455_v17 = vor.u32 %v11264_v44, %v10454_v52  ;;  %v11214_v25 = vld [vmem:[%s12272_s13 + $0x14] sm:$0xf0]  ;;  %v17457_v16 = vld [vmem:[#allocation64_spill] sm:$0xff] }
 0x863   : > { %v5704_v11 = vadd.f32 %v5576_v31, %v15270_v9  ;;  %v15314_v19 = vadd.f32 %v4929_v50, %v4881_v26  ;;  %v11763_v1 = vpop.eup %11762  ;;  %11770 = vtanh.f32 %v5824_v7  ;;  %7231 = vmatpush.bf16.msrb.mxu0 %v10263_v35  ;;  %v10255_v34 = vor.u32 %v11214_v25, %v10254_v22  ;;  %v10318_v50 = vld [vmem:[%s12272_s13 + $0x90] sm:$0xf]  ;;  %v11230_v28 = vld [vmem:[%s12272_s13 + $0x94] sm:$0xf0] }
 0x864   : > { %v5825_v43 = vmul.f32 0.7978846, %v5697_v6  ;;  %v5321_v33 = vmul.f32 %v15308_v27, %v15308_v27  ;;  %11772 = vtanh.f32 %v5817_v4  ;;  %v15329_v31 = vadd.f32 %v17457_v16, %v14048_v15  ;;  %v10382_v26 = vld [vmem:[%s12272_s13 + $0x110] sm:$0xf]  ;;  %v11246_v62 = vld [vmem:[%s12272_s13 + $0x114] sm:$0xf0] }
 0x865   : > { %v5832_v0 = vmul.f32 0.7978846, %v5704_v11  ;;  %v5328_v60 = vmul.f32 %v15314_v19, %v15314_v19  ;;  %7329 = vmatpush.bf16.msrb.mxu2 %v10391_v56  ;;  %v15325_v59 = vpop.eup %11764  ;;  %7280 = vmatpush.bf16.msrb.mxu1 %v10327_v20  ;;  %v10319_v4 = vor.u32 %v11230_v28, %v10318_v50  ;;  %v10446_v57 = vld [vmem:[%s12272_s13 + $0x190] sm:$0xf]  ;;  %v10383_v52 = vor.u32 %v11246_v62, %v10382_v26  ;;  %v11262_v15 = vld [vmem:[%s12272_s13 + $0x194] sm:$0xf0] }
 0x866   : > { %v5449_v7 = vmul.f32 %v5321_v33, %v15308_v27  ;;  %7378 = vmatpush.bf16.msrb.mxu3 %v10455_v17  ;;  %11774 = vtanh.f32 %v5825_v43  ;;  %v15335_v35 = vpop.eup %11766  ;;  %v6065_v11 = vadd.f32 1.0, %v11763_v1  ;;  %v6185_v56 = vmul.f32 0.5, %v6057_v3  ;;  %v11212_v50 = vld [vmem:[%s12272_s13 + $0x4] sm:$0xf0]  ;;  %v10310_v16 = vld [vmem:[%s12272_s13 + $0x80] sm:$0xf] }
 0x867   : > { %v5456_v6 = vmul.f32 %v5328_v60, %v15314_v19  ;;  %v4978_v46 = vpop.f32.mrf.mxu2  ;;  %v5027_v24 = vpop.f32.mrf.mxu3  ;;  %v15341_v44 = vadd.f32 %v15217_v13, %v15144_v29  ;;  %v10447_v25 = vor.u32 %v11262_v15, %v10446_v57  ;;  %v10246_v60 = vld [vmem:[%s12272_s13] sm:$0xf]  ;;  %7232 = vmatpush.bf16.msrb.mxu0 %v10255_v34  ;;  %v11228_v26 = vld [vmem:[%s12272_s13 + $0x84] sm:$0xf0]  ;;  %11776 = vtanh.f32 %v5832_v0 }
 0x868   : > { %v11769_v20 = vpop.eup %11768  ;;  %v5577_v43 = vmul.f32 0.044715, %v5449_v7  ;;  %v4979_v33 = vadd.f32 %v4978_v46, %v14947_v47  ;;  %v4883_v17 = vpop.f32.mrf.mxu0  ;;  %v10247_v3 = vor.u32 %v11212_v50, %v10246_v60  ;;  %v6313_v13 = vmul.f32 %v6185_v56, %v15148_v10  ;;  %v10374_v46 = vld [vmem:[%s12272_s13 + $0x100] sm:$0xf]  ;;  %v11244_v34 = vld [vmem:[%s12272_s13 + $0x104] sm:$0xf0] }
 0x869   : > { %v4932_v22 = vpop.f32.mrf.mxu1  ;;  %v5584_v28 = vmul.f32 0.044715, %v5456_v6  ;;  %v4884_v1 = vadd.f32 %v4883_v17, %v14920_v8  ;;  %7330 = vmatpush.bf16.msrb.mxu2 %v10383_v52  ;;  %v11771_v7 = vpop.eup %11770  ;;  %7281 = vmatpush.bf16.msrb.mxu1 %v10319_v4  ;;  %v10311_v6 = vor.u32 %v11228_v26, %v10310_v16  ;;  %v10375_v10 = vor.u32 %v11244_v34, %v10374_v46  ;;  %v10438_v0 = vld [vmem:[%s12272_s13 + $0x180] sm:$0xf]  ;;  %v11260_v56 = vld [vmem:[%s12272_s13 + $0x184] sm:$0xf0] }
 0x86a   : > { %v5705_v62 = vadd.f32 %v5577_v43, %v15308_v27  ;;  %v15351_v57 = vadd.f32 %v5027_v24, %v4979_v33  ;;  %5078 = vmatmul.bf16.gmra.mxu0 %v14176_v53  ;;  %v11773_v52 = vpop.eup %11772  ;;  %7379 = vmatpush.bf16.msrb.mxu3 %v10447_v25  ;;  %v6193_v43 = vmul.f32 0.5, %v6065_v11  ;;  %v10439_v60 = vor.u32 %v11260_v56, %v10438_v0 }
 0x86b   : > { %v5712_v15 = vadd.f32 %v5584_v28, %v15314_v19  ;;  %v15357_v17 = vadd.f32 %v4932_v22, %v4884_v1  ;;  %5127 = vmatmul.bf16.gmra.mxu1 %v14180_v12  ;;  %v6072_v50 = vadd.f32 1.0, %v11769_v20  ;;  %7233 = vmatpush.bf16.msrb.mxu0 %v10247_v3  ;;  %v6080_v11 = vadd.f32 1.0, %v11771_v7 }
 0x86c   : > { %v11775_v24 = vpop.eup %11774  ;;  %v5833_v33 = vmul.f32 0.7978846, %v5705_v62  ;;  %v5329_v4 = vmul.f32 %v15351_v57, %v15351_v57  ;;  %5176 = vmatmul.bf16.gmra.mxu2 %v14176_v53  ;;  %5225 = vmatmul.bf16.gmra.mxu3 %v14180_v12  ;;  %v6321_v25 = vmul.f32 %v6193_v43, %v15178_v5  ;;  %v6073_v26 = vadd.f32 1.0, %v11773_v52 }
 0x86d   : > { %v5840_v22 = vmul.f32 0.7978846, %v5712_v15  ;;  %v5336_v28 = vmul.f32 %v15357_v17, %v15357_v17  ;;  %7331 = vmatpush.bf16.msrb.mxu2 %v10375_v10  ;;  %7282 = vmatpush.bf16.msrb.mxu1 %v10311_v6  ;;  %v6200_v16 = vmul.f32 0.5, %v6072_v50  ;;  %v6208_v46 = vmul.f32 0.5, %v6080_v11  ;;  %v11777_v3 = vpop.eup %11776 }
 0x86e   : > { %11778 = vtanh.f32 %v5833_v33  ;;  %v5457_v1 = vmul.f32 %v5329_v4, %v15351_v57  ;;  %7380 = vmatpush.bf16.msrb.mxu3 %v10439_v60  ;;  %v15371_v20 = vpack.c.bf16 %v6321_v25, %v6313_v13  ;;  %v6081_v34 = vadd.f32 1.0, %v11775_v24 }
 0x86f   : > { %v5464_v53 = vmul.f32 %v5336_v28, %v15357_v17  ;;  %v4981_v12 = vpop.f32.mrf.mxu2  ;;  %v5030_v62 = vpop.f32.mrf.mxu3  ;;  %v5668_v5 = vadd.f32 %v15219_v14, %v17453_v48  ;;  %v6328_v52 = vmul.f32 %v6200_v16, %v15184_v45  ;;  %v6336_v43 = vmul.f32 %v6208_v46, %v15225_v23 }
 0x870   : > { %v5585_v7 = vmul.f32 0.044715, %v5457_v1  ;;  %v4982_v15 = vadd.f32 %v4981_v12, %v14947_v47  ;;  %v4885_v10 = vpop.f32.mrf.mxu0  ;;  %v6201_v13 = vmul.f32 0.5, %v6073_v26  ;;  %v6209_v4 = vmul.f32 0.5, %v6081_v34  ;;  %v17459_v12 = vld [vmem:[#allocation63_spill] sm:$0xff] }
 0x871   : > { %v4934_v6 = vpop.f32.mrf.mxu1  ;;  %v5592_v0 = vmul.f32 0.044715, %v5464_v53  ;;  %v4886_v56 = vadd.f32 %v4885_v10, %v14920_v8  ;;  %11780 = vtanh.f32 %v5840_v22  ;;  %v15385_v50 = vpack.c.bf16 %v6336_v43, %v6328_v52  ;;  %v17458_v22 = vld [vmem:[#allocation65_spill] sm:$0xff] }
 0x872   : > { %v5713_v33 = vadd.f32 %v5585_v7, %v15351_v57  ;;  %v15380_v24 = vadd.f32 %v5030_v62, %v4982_v15  ;;  %v6329_v45 = vmul.f32 %v6201_v13, %v15221_v61  ;;  %v6337_v11 = vmul.f32 %v6209_v4, %v15263_v37 }
 0x873   : > { %v5720_v14 = vadd.f32 %v5592_v0, %v15357_v17  ;;  %v15383_v60 = vadd.f32 %v4934_v6, %v4886_v56  ;;  %v6088_v1 = vadd.f32 1.0, %v11777_v3  ;;  %11782 = vtanh.f32 %v15189_v49 }
 0x874   : > { %v11779_v28 = vpop.eup %11778  ;;  %v5841_v25 = vmul.f32 0.7978846, %v5713_v33  ;;  %v5337_v23 = vmul.f32 %v15380_v24, %v15380_v24  ;;  %v15394_v16 = vadd.f32 %v17458_v22, %v15329_v31  ;;  %v5285_v61 = vmul.f32 %v17459_v12, %v17459_v12 }
 0x875   : > { %v5848_v26 = vmul.f32 0.7978846, %v5720_v14  ;;  %v5344_v53 = vmul.f32 %v15383_v60, %v15383_v60  ;;  %v15401_v46 = vpack.c.bf16 %v6337_v11, %v6329_v45  ;;  %v15404_v37 = vmul.f32 0.7978846, %v15341_v44 }
 0x876   : > { %v5465_v62 = vmul.f32 %v5337_v23, %v15380_v24  ;;  %11784 = vtanh.f32 %v5841_v25  ;;  %v5796_v49 = vmul.f32 0.7978846, %v5668_v5  ;;  %v6028_v7 = vadd.f32 1.0, %v15325_v59 }
 0x877   : > { %v5472_v34 = vmul.f32 %v5344_v53, %v15383_v60  ;;  %v4983_v31 = vpop.f32.mrf.mxu2  ;;  %v5032_v3 = vpop.f32.mrf.mxu3  ;;  %v6216_v56 = vmul.f32 0.5, %v6088_v1  ;;  %v6089_v43 = vadd.f32 1.0, %v11779_v28  ;;  %11786 = vtanh.f32 %v5848_v26 }
 0x878   : > { %v11781_v15 = vpop.eup %11780  ;;  %v5593_v10 = vmul.f32 0.044715, %v5465_v62  ;;  %v4984_v6 = vadd.f32 %v4983_v31, %v14947_v47  ;;  %v4888_v52 = vpop.f32.mrf.mxu0  ;;  %v5292_v5 = vmul.f32 %v15394_v16, %v15394_v16  ;;  %v15418_v59 = vmul.f32 %v15187_v21, %v14142_v36 }
 0x879   : > { %v4937_v0 = vpop.f32.mrf.mxu1  ;;  %v5600_v13 = vmul.f32 0.044715, %v5472_v34  ;;  %v4889_v44 = vadd.f32 %v4888_v52, %v14920_v8  ;;  %v6096_v33 = vadd.f32 1.0, %v11781_v15  ;;  %v15420_v45 = vpop.eup %11782  ;;  %11788 = vtanh.f32 %v15155_v40 }
 0x87a   : > { %v5721_v4 = vadd.f32 %v5593_v10, %v15380_v24  ;;  %v15413_v14 = vadd.f32 %v5032_v3, %v4984_v6  ;;  %5083 = vmatmul.bf16.gmra.mxu0 %v14239_v30  ;;  %v6344_v36 = vmul.f32 %v6216_v56, %v15270_v9  ;;  %v6217_v21 = vmul.f32 0.5, %v6089_v43 }
 0x87b   : > { %v5728_v28 = vadd.f32 %v5600_v13, %v15383_v60  ;;  %v15423_v25 = vadd.f32 %v4937_v0, %v4889_v44  ;;  %5132 = vmatmul.bf16.gmra.mxu1 %v14243_v42  ;;  %v6224_v23 = vmul.f32 0.5, %v6096_v33  ;;  %11790 = vtanh.f32 %v5796_v49 }
 0x87c   : > { %v11785_v11 = vpop.eup %11784  ;;  %v5849_v1 = vmul.f32 0.7978846, %v5721_v4  ;;  %v5345_v22 = vmul.f32 %v15413_v14, %v15413_v14  ;;  %5181 = vmatmul.bf16.gmra.mxu2 %v14239_v30  ;;  %5230 = vmatmul.bf16.gmra.mxu3 %v14243_v42  ;;  %v5413_v34 = vmul.f32 %v5285_v61, %v17459_v12  ;;  %v6156_v3 = vmul.f32 0.5, %v6028_v7 }
 0x87d   : > { %v5856_v26 = vmul.f32 0.7978846, %v5728_v28  ;;  %v5352_v53 = vmul.f32 %v15423_v25, %v15423_v25  ;;  %v6352_v62 = vmul.f32 %v6224_v23, %v15314_v19  ;;  %v6097_v40 = vadd.f32 1.0, %v11785_v11  ;;  %v11787_v15 = vpop.eup %11786  ;;  %v17461_v11 = vld [vmem:[#allocation66_spill] sm:$0xff] }
 0x87e   : > { %v5473_v31 = vmul.f32 %v5345_v22, %v15413_v14  ;;  %v6021_v61 = vadd.f32 1.0, %v15293_v18  ;;  %v6345_v13 = vmul.f32 %v6217_v21, %v15308_v27  ;;  %v5420_v33 = vmul.f32 %v5292_v5, %v15394_v16 }
 0x87f   : > { %v5480_v30 = vmul.f32 %v5352_v53, %v15423_v25  ;;  %v4986_v42 = vpop.f32.mrf.mxu2  ;;  %v5035_v10 = vpop.f32.mrf.mxu3  ;;  %v15438_v9 = vpack.c.bf16 %v6352_v62, %v6344_v36  ;;  %v6225_v6 = vmul.f32 0.5, %v6097_v40  ;;  %11792 = vtanh.f32 %v5856_v26  ;;  %v11946_v62 = vld [vmem:[%s12267_s3] sm:$0xff] }
 0x880   : > { %11794 = vtanh.f32 %v5849_v1  ;;  %v5601_v52 = vmul.f32 0.044715, %v5473_v31  ;;  %v4987_v19 = vadd.f32 %v4986_v42, %v14947_v47  ;;  %v4890_v0 = vpop.f32.mrf.mxu0  ;;  %v11789_v56 = vpop.eup %11788  ;;  %v6104_v23 = vadd.f32 1.0, %v11787_v15  ;;  %v17463_v31 = vld [vmem:[#allocation91_spill] sm:$0xff] }
 0x881   : > { %17460 = vst [vmem:[#allocation54_spill] sm:$0xff] %v15438_v9  ;;  %v4939_v49 = vpop.f32.mrf.mxu1  ;;  %v5608_v43 = vmul.f32 0.044715, %v5480_v30  ;;  %v4891_v7 = vadd.f32 %v4890_v0, %v14920_v8  ;;  %v6353_v44 = vmul.f32 %v6225_v6, %v15351_v57  ;;  %v4577_v1 = vadd.f32 %v17461_v11, %v14078_v58  ;;  %v15456_v27 = vpop.eup %11790 }
 0x882   : > { %v5729_v4 = vadd.f32 %v5601_v52, %v15413_v14  ;;  %v15447_v28 = vadd.f32 %v5035_v10, %v4987_v19  ;;  %v5541_v57 = vmul.f32 0.044715, %v5413_v34  ;;  %v6036_v21 = vadd.f32 1.0, %v15335_v35  ;;  %v17464_v52 = vld [vmem:[#allocation67_spill] sm:$0xff] }
 0x883   : > { %v5736_v18 = vadd.f32 %v5608_v43, %v15423_v25  ;;  %v15452_v22 = vadd.f32 %v4939_v49, %v4891_v7  ;;  %v15454_v8 = vpack.c.bf16 %v6353_v44, %v6345_v13  ;;  %v15464_v40 = vperm.slane %v11946_v62, 6 }
 0x884   : > { %v5857_v36 = vmul.f32 0.7978846, %v5729_v4  ;;  %v5353_v5 = vmul.f32 %v15447_v28, %v15447_v28  ;;  %v15467_v15 = vmul.f32 %v6156_v3, %v17463_v31  ;;  %v6232_v10 = vmul.f32 0.5, %v6104_v23 }
 0x885   : > { %17462 = vst [vmem:[#allocation60_spill] sm:$0xff] %v15454_v8  ;;  %v11793_v26 = vpop.eup %11792  ;;  %v5864_v53 = vmul.f32 0.7978846, %v5736_v18  ;;  %v5360_v58 = vmul.f32 %v15452_v22, %v15452_v22  ;;  %v5548_v6 = vmul.f32 0.044715, %v5420_v33  ;;  %v15471_v35 = vadd.f32 %v17464_v52, %v4577_v1 }
 0x886   : > { %v11795_v30 = vpop.eup %11794  ;;  %v5481_v34 = vmul.f32 %v5353_v5, %v15447_v28  ;;  %v6112_v42 = vadd.f32 1.0, %v11793_v26  ;;  %11796 = vtanh.f32 %v5857_v36  ;;  %v15474_v43 = vmul.f32 0.5, %v6021_v61 }
 0x887   : > { %v5488_v19 = vmul.f32 %v5360_v58, %v15452_v22  ;;  %v4988_v0 = vpop.f32.mrf.mxu2  ;;  %v5037_v49 = vpop.f32.mrf.mxu3  ;;  %11798 = vtanh.f32 %v15214_v38  ;;  %v6105_v11 = vadd.f32 1.0, %v11795_v30  ;;  %v6360_v61 = vmul.f32 %v6232_v10, %v15357_v17  ;;  %v17465_v30 = vld [vmem:[#allocation76_spill] sm:$0xff]  ;;  %v17466_v17 = vld [vmem:[#allocation77_spill] sm:$0xff] }
 0x888   : > { %v5609_v7 = vmul.f32 0.044715, %v5481_v34  ;;  %v4989_v3 = vadd.f32 %v4988_v0, %v14947_v47  ;;  %v5049_v13 = vpop.f32.mrf.mxu0  ;;  %v6240_v4 = vmul.f32 0.5, %v6112_v42  ;;  %11800 = vtanh.f32 %v5864_v53 }
 0x889   : > { %v5098_v44 = vpop.f32.mrf.mxu1  ;;  %v5616_v23 = vmul.f32 0.044715, %v5488_v19  ;;  %v5050_v33 = vadd.f32 %v5049_v13, %v15464_v40  ;;  %v5293_v36 = vmul.f32 %v15471_v35, %v15471_v35  ;;  %v6029_v26 = vadd.f32 1.0, %v11789_v56 }
 0x88a   : > { %v5737_v1 = vadd.f32 %v5609_v7, %v15447_v28  ;;  %v15480_v18 = vadd.f32 %v5037_v49, %v4989_v3  ;;  %7234 = vmatmul.bf16.vlgmr.msrb.gmra.mxu0 %v15244_v55  ;;  %v6368_v47 = vmul.f32 %v6240_v4, %v15383_v60  ;;  %v15495_v60 = vperm.slane %v11946_v62, 7 }
 0x88b   : > { %v5744_v38 = vadd.f32 %v5616_v23, %v15452_v22  ;;  %v15488_v5 = vadd.f32 %v5098_v44, %v5050_v33  ;;  %7283 = vmatmul.bf16.vlgmr.msrb.gmra.mxu1 %v15287_v2  ;;  %v6233_v19 = vmul.f32 0.5, %v6105_v11  ;;  %v5669_v0 = vadd.f32 %v5541_v57, %v17459_v12 }
 0x88c   : > { %v11797_v53 = vpop.eup %11796  ;;  %v5865_v58 = vmul.f32 0.7978846, %v5737_v1  ;;  %v5361_v31 = vmul.f32 %v15480_v18, %v15480_v18  ;;  %7332 = vmatmul.bf16.vlgmr.msrb.gmra.mxu2 %v17465_v30  ;;  %7381 = vmatmul.bf16.vlgmr.msrb.gmra.mxu3 %v17466_v17  ;;  %v15497_v34 = vpack.c.bf16 %v6368_v47, %v6360_v61  ;;  %v15505_v7 = vmul.f32 0.5, %v6036_v21 }
 0x88d   : > { %v5872_v42 = vmul.f32 0.7978846, %v5744_v38  ;;  %v5242_v10 = vmul.f32 %v15488_v5, %v15488_v5  ;;  %v6113_v52 = vadd.f32 1.0, %v11797_v53  ;;  %v15501_v56 = vpop.eup %11798  ;;  %11802 = vtanh.f32 %v15404_v37 }
 0x88e   : > { %v5489_v49 = vmul.f32 %v5361_v31, %v15480_v18  ;;  %v11801_v62 = vpop.eup %11800  ;;  %v5421_v3 = vmul.f32 %v5293_v36, %v15471_v35  ;;  %v6157_v61 = vmul.f32 0.5, %v6029_v26  ;;  %v6361_v37 = vmul.f32 %v6233_v19, %v15380_v24 }
 0x88f   : > { %v5370_v13 = vmul.f32 %v5242_v10, %v15488_v5  ;;  %v5147_v44 = vpop.f32.mrf.mxu2  ;;  %v5196_v4 = vpop.f32.mrf.mxu3  ;;  %v6241_v23 = vmul.f32 0.5, %v6113_v52  ;;  %11804 = vtanh.f32 %v5872_v42  ;;  %v5676_v38 = vadd.f32 %v5548_v6, %v15394_v16 }
 0x890   : > { %11806 = vtanh.f32 %v5865_v58  ;;  %v5617_v33 = vmul.f32 0.044715, %v5489_v49  ;;  %v5148_v11 = vadd.f32 %v5147_v44, %v15495_v60  ;;  %v5051_v57 = vpop.f32.mrf.mxu0  ;;  %v6120_v58 = vadd.f32 1.0, %v11801_v62 }
 0x891   : > { %v5100_v1 = vpop.f32.mrf.mxu1  ;;  %v5498_v21 = vmul.f32 0.044715, %v5370_v13  ;;  %v5052_v47 = vadd.f32 %v5051_v57, %v15464_v40  ;;  %v6369_v36 = vmul.f32 %v6241_v23, %v15413_v14  ;;  %v5549_v42 = vmul.f32 0.044715, %v5421_v3  ;;  %v17468_v14 = vld [vmem:[#allocation44_spill] sm:$0xff]  ;;  %v17470_v23 = vld [vmem:[#allocation51_spill] sm:$0xff] }
 0x892   : > { %v5745_v53 = vadd.f32 %v5617_v33, %v15480_v18  ;;  %v15516_v31 = vadd.f32 %v5196_v4, %v5148_v11  ;;  %v6285_v19 = vmul.f32 %v6157_v61, %v17468_v14  ;;  %v6037_v6 = vadd.f32 1.0, %v15420_v45 }
 0x893   : > { %v5626_v10 = vadd.f32 %v5498_v21, %v15488_v5  ;;  %v15519_v52 = vadd.f32 %v5100_v1, %v5052_v47  ;;  %v15521_v26 = vpack.c.bf16 %v6369_v36, %v6361_v37  ;;  %v11803_v49 = vpop.eup %11802  ;;  %v15531_v3 = vpack.c.bf16 %v15467_v15, %v15418_v59 }
 0x894   : > { %v5873_v13 = vmul.f32 0.7978846, %v5745_v53  ;;  %v5243_v24 = vmul.f32 %v15516_v31, %v15516_v31  ;;  %v6277_v33 = vmul.f32 %v15474_v43, %v17470_v23  ;;  %v6248_v21 = vmul.f32 0.5, %v6120_v58 }
 0x895   : > { %17467 = vst [vmem:[#allocation61_spill] sm:$0xff] %v15521_v26  ;;  %v11805_v44 = vpop.eup %11804  ;;  %v5754_v4 = vmul.f32 0.7978846, %v5626_v10  ;;  %v5250_v62 = vmul.f32 %v15519_v52, %v15519_v52  ;;  %v5797_v61 = vmul.f32 0.7978846, %v5669_v0  ;;  %v5677_v47 = vadd.f32 %v5549_v42, %v15471_v35 }
 0x896   : > { %17469 = vst [vmem:[#allocation62_spill] sm:$0xff] %v15531_v3  ;;  %v11807_v11 = vpop.eup %11806  ;;  %v5371_v57 = vmul.f32 %v5243_v24, %v15516_v31  ;;  %v6128_v1 = vadd.f32 1.0, %v11805_v44  ;;  %11808 = vtanh.f32 %v5873_v13  ;;  %v5804_v45 = vmul.f32 0.7978846, %v5676_v38 }
 0x897   : > { %v5378_v37 = vmul.f32 %v5250_v62, %v15519_v52  ;;  %v5149_v36 = vpop.f32.mrf.mxu2  ;;  %v5198_v53 = vpop.f32.mrf.mxu3  ;;  %v15539_v43 = vpack.c.bf16 %v6285_v19, %v6277_v33  ;;  %11810 = vtanh.f32 %v5754_v4  ;;  %v6121_v0 = vadd.f32 1.0, %v11807_v11 }
 0x898   : > { %v5499_v10 = vmul.f32 0.044715, %v5371_v57  ;;  %v5150_v59 = vadd.f32 %v5149_v36, %v15495_v60  ;;  %v5054_v15 = vpop.f32.mrf.mxu0  ;;  %v6256_v23 = vmul.f32 0.5, %v6128_v1  ;;  %v6376_v13 = vmul.f32 %v6248_v21, %v15423_v25  ;;  %v17472_v1 = vld [vmem:[#allocation78_spill] sm:$0xff] }
 0x899   : > { %v5103_v14 = vpop.f32.mrf.mxu1  ;;  %17471 = vst [vmem:[#allocation48_spill] sm:$0xff] %v15539_v43  ;;  %v5506_v24 = vmul.f32 0.044715, %v5378_v37  ;;  %v5055_v58 = vadd.f32 %v5054_v15, %v15464_v40  ;;  %11812 = vtanh.f32 %v5797_v61  ;;  %v6044_v4 = vadd.f32 1.0, %v15501_v56  ;;  %v17473_v37 = vld [vmem:[#allocation79_spill] sm:$0xff] }
 0x89a   : > { %v5627_v38 = vadd.f32 %v5499_v10, %v15516_v31  ;;  %v15543_v42 = vadd.f32 %v5198_v53, %v5150_v59  ;;  %7239 = vmatmul.bf16.gmra.mxu0 %v15531_v3  ;;  %v6384_v44 = vmul.f32 %v6256_v23, %v15452_v22  ;;  %v6045_v25 = vadd.f32 1.0, %v11803_v49 }
 0x89b   : > { %v5634_v19 = vadd.f32 %v5506_v24, %v15519_v52  ;;  %v15549_v62 = vadd.f32 %v5103_v14, %v5055_v58  ;;  %7288 = vmatmul.bf16.gmra.mxu1 %v15539_v43  ;;  %v6249_v53 = vmul.f32 0.5, %v6121_v0  ;;  %v5805_v10 = vmul.f32 0.7978846, %v5677_v47  ;;  %v11326_v43 = vld [vmem:[%s12272_s13 + $0x394] sm:$0xf0] }
 0x89c   : > { %v11809_v33 = vpop.eup %11808  ;;  %v5755_v11 = vmul.f32 0.7978846, %v5627_v38  ;;  %v5251_v57 = vmul.f32 %v15543_v42, %v15543_v42  ;;  %7337 = vmatmul.bf16.gmra.mxu2 %v17472_v1  ;;  %7386 = vmatmul.bf16.gmra.mxu3 %v17473_v37  ;;  %v15557_v22 = vpack.c.bf16 %v6384_v44, %v6376_v13  ;;  %v6165_v59 = vmul.f32 0.5, %v6037_v6  ;;  %v11314_v37 = vld [vmem:[%s12272_s13 + $0x334] sm:$0xf0] }
 0x89d   : > { %v5762_v21 = vmul.f32 0.7978846, %v5634_v19  ;;  %v5258_v61 = vmul.f32 %v15549_v62, %v15549_v62  ;;  %v6129_v36 = vadd.f32 1.0, %v11809_v33  ;;  %v11811_v15 = vpop.eup %11810  ;;  %v6172_v49 = vmul.f32 0.5, %v6044_v4  ;;  %v10718_v1 = vld [vmem:[%s12272_s13 + $0x3b0] sm:$0xf] }
 0x89e   : > { %11814 = vtanh.f32 %v5755_v11  ;;  %v5379_v56 = vmul.f32 %v5251_v57, %v15543_v42  ;;  %v6173_v33 = vmul.f32 0.5, %v6045_v25  ;;  %v6377_v6 = vmul.f32 %v6249_v53, %v15447_v28 }
 0x89f   : > { %11816 = vtanh.f32 %v5762_v21  ;;  %v5386_v14 = vmul.f32 %v5258_v61, %v15549_v62  ;;  %v5152_v23 = vpop.f32.mrf.mxu2  ;;  %v5201_v24 = vpop.f32.mrf.mxu3  ;;  %v6257_v58 = vmul.f32 0.5, %v6129_v36  ;;  %v6010_v21 = vadd.f32 1.0, %v11811_v15 }
 0x8a0   : > { %v5507_v38 = vmul.f32 0.044715, %v5379_v56  ;;  %v5153_v13 = vadd.f32 %v5152_v23, %v15495_v60  ;;  %v5056_v44 = vpop.f32.mrf.mxu0  ;;  %11818 = vtanh.f32 %v5804_v45  ;;  %v11813_v47 = vpop.eup %11812  ;;  %v6300_v45 = vmul.f32 %v6172_v49, %v15100_v51 }
 0x8a1   : > { %v5105_v19 = vpop.f32.mrf.mxu1  ;;  %v5514_v0 = vmul.f32 0.044715, %v5386_v14  ;;  %v5057_v11 = vadd.f32 %v5056_v44, %v15464_v40  ;;  %v6385_v57 = vmul.f32 %v6257_v58, %v15480_v18  ;;  %11820 = vtanh.f32 %v5805_v10 }
 0x8a2   : > { %v5635_v61 = vadd.f32 %v5507_v38, %v15543_v42  ;;  %v15568_v4 = vadd.f32 %v5201_v24, %v5153_v13  ;;  %v6292_v18 = vmul.f32 %v15505_v7, %v17445_v32  ;;  %v6293_v53 = vmul.f32 %v6165_v59, %v17448_v41 }
 0x8a3   : > { %v5642_v36 = vadd.f32 %v5514_v0, %v15549_v62  ;;  %v15571_v56 = vadd.f32 %v5105_v19, %v5057_v11  ;;  %v15574_v25 = vpack.c.bf16 %v6385_v57, %v6377_v6  ;;  %v6301_v58 = vmul.f32 %v6173_v33, %v15144_v29 }
 0x8a4   : > { %v11815_v14 = vpop.eup %11814  ;;  %v5763_v23 = vmul.f32 0.7978846, %v5635_v61  ;;  %v5259_v28 = vmul.f32 %v15568_v4, %v15568_v4  ;;  %v6052_v51 = vadd.f32 1.0, %v15456_v27  ;;  %v6138_v38 = vmul.f32 0.5, %v6010_v21 }
 0x8a5   : > { %v11817_v15 = vpop.eup %11816  ;;  %v5770_v10 = vmul.f32 0.7978846, %v5642_v36  ;;  %v5266_v24 = vmul.f32 %v15571_v56, %v15571_v56  ;;  %v6011_v19 = vadd.f32 1.0, %v11815_v14  ;;  %v15587_v59 = vpack.c.bf16 %v6300_v45, %v6292_v18 }
 0x8a6   : > { %v11819_v49 = vpop.eup %11818  ;;  %v6018_v13 = vadd.f32 1.0, %v11817_v15  ;;  %11822 = vtanh.f32 %v5763_v23  ;;  %v5387_v44 = vmul.f32 %v5259_v28, %v15568_v4  ;;  %v6053_v0 = vadd.f32 1.0, %v11813_v47 }
 0x8a7   : > { %v5394_v32 = vmul.f32 %v5266_v24, %v15571_v56  ;;  %v5154_v7 = vpop.f32.mrf.mxu2  ;;  %v5203_v41 = vpop.f32.mrf.mxu3  ;;  %17474 = vst [vmem:[#allocation42_spill] sm:$0xff] %v15587_v59  ;;  %11824 = vtanh.f32 %v5770_v10  ;;  %v15591_v36 = vpack.c.bf16 %v6301_v58, %v6293_v53  ;;  %v6060_v14 = vadd.f32 1.0, %v11819_v49  ;;  %v17476_v49 = vld [vmem:[#allocation80_spill] sm:$0xff] }
 0x8a8   : > { %v11821_v11 = vpop.eup %11820  ;;  %v6146_v6 = vmul.f32 0.5, %v6018_v13  ;;  %v5515_v29 = vmul.f32 0.044715, %v5387_v44  ;;  %v5155_v27 = vadd.f32 %v5154_v7, %v15495_v60  ;;  %v5059_v33 = vpop.f32.mrf.mxu0  ;;  %v6266_v23 = vmul.f32 %v6138_v38, %v15488_v5  ;;  %v17477_v38 = vld [vmem:[#allocation81_spill] sm:$0xff] }
 0x8a9   : > { %v5108_v57 = vpop.f32.mrf.mxu1  ;;  %v5522_v21 = vmul.f32 0.044715, %v5394_v32  ;;  %v5060_v61 = vadd.f32 %v5059_v33, %v15464_v40  ;;  %17475 = vst [vmem:[#allocation64_spill] sm:$0xff] %v15591_v36  ;;  %v6061_v10 = vadd.f32 1.0, %v11821_v11  ;;  %v6139_v24 = vmul.f32 0.5, %v6011_v19 }
 0x8aa   : > { %v6274_v45 = vmul.f32 %v6146_v6, %v15519_v52  ;;  %v5643_v47 = vadd.f32 %v5515_v29, %v15568_v4  ;;  %v15596_v28 = vadd.f32 %v5203_v41, %v5155_v27  ;;  %7244 = vmatmul.bf16.gmra.mxu0 %v15587_v59  ;;  %v6180_v11 = vmul.f32 0.5, %v6052_v51 }
 0x8ab   : > { %v5650_v18 = vadd.f32 %v5522_v21, %v15571_v56  ;;  %v15600_v15 = vadd.f32 %v5108_v57, %v5060_v61  ;;  %7293 = vmatmul.bf16.gmra.mxu1 %v15591_v36  ;;  %v6188_v19 = vmul.f32 0.5, %v6060_v14  ;;  %v6181_v6 = vmul.f32 0.5, %v6053_v0 }
 0x8ac   : > { %v11823_v53 = vpop.eup %11822  ;;  %v15603_v58 = vpack.c.bf16 %v6274_v45, %v6266_v23  ;;  %v5771_v5 = vmul.f32 0.7978846, %v5643_v47  ;;  %v5267_v52 = vmul.f32 %v15596_v28, %v15596_v28  ;;  %7342 = vmatmul.bf16.gmra.mxu2 %v17476_v49  ;;  %7391 = vmatmul.bf16.gmra.mxu3 %v17477_v38  ;;  %v6189_v21 = vmul.f32 0.5, %v6061_v10 }
 0x8ad   : > { %v6019_v13 = vadd.f32 1.0, %v11823_v53  ;;  %v5778_v44 = vmul.f32 0.7978846, %v5650_v18  ;;  %v5274_v32 = vmul.f32 %v15600_v15, %v15600_v15  ;;  %v11825_v7 = vpop.eup %11824  ;;  %v6267_v61 = vmul.f32 %v6139_v24, %v15516_v31 }
 0x8ae   : > { %v5395_v41 = vmul.f32 %v5267_v52, %v15596_v28  ;;  %v6026_v14 = vadd.f32 1.0, %v11825_v7  ;;  %v6316_v10 = vmul.f32 %v6188_v19, %v15394_v16  ;;  %v6308_v7 = vmul.f32 %v6180_v11, %v17453_v48 }
 0x8af   : > { %v6147_v29 = vmul.f32 0.5, %v6019_v13  ;;  %v5402_v27 = vmul.f32 %v5274_v32, %v15600_v15  ;;  %v5157_v33 = vpop.f32.mrf.mxu2  ;;  %v5206_v57 = vpop.f32.mrf.mxu3  ;;  %11826 = vtanh.f32 %v5778_v44  ;;  %v6309_v19 = vmul.f32 %v6181_v6, %v17459_v12 }
 0x8b0   : > { %11828 = vtanh.f32 %v5771_v5  ;;  %v5523_v23 = vmul.f32 0.044715, %v5395_v41  ;;  %v5158_v45 = vadd.f32 %v5157_v33, %v15495_v60  ;;  %v5061_v47 = vpop.f32.mrf.mxu0  ;;  %v6317_v5 = vmul.f32 %v6189_v21, %v15471_v35 }
 0x8b1   : > { %v5110_v18 = vpop.f32.mrf.mxu1  ;;  %v6275_v53 = vmul.f32 %v6147_v29, %v15543_v42  ;;  %v5530_v51 = vmul.f32 0.044715, %v5402_v27  ;;  %v5062_v0 = vadd.f32 %v5061_v47, %v15464_v40  ;;  %v6154_v27 = vmul.f32 0.5, %v6026_v14  ;;  %v11322_v47 = vld [vmem:[%s12272_s13 + $0x374] sm:$0xf0] }
 0x8b2   : > { %v5651_v52 = vadd.f32 %v5523_v23, %v15596_v28  ;;  %v15618_v13 = vadd.f32 %v5206_v57, %v5158_v45  ;;  %v15635_v11 = vpack.c.bf16 %v6316_v10, %v6308_v7  ;;  %v15637_v23 = vpack.c.bf16 %v6317_v5, %v6309_v19  ;;  %v10686_v45 = vld [vmem:[%s12272_s13 + $0x370] sm:$0xf]  ;;  %v17480_v19 = vld [vmem:[#allocation82_spill] sm:$0xff] }
 0x8b3   : > { %v15621_v44 = vpack.c.bf16 %v6275_v53, %v6267_v61  ;;  %v5658_v31 = vadd.f32 %v5530_v51, %v15600_v15  ;;  %v15624_v24 = vadd.f32 %v5110_v18, %v5062_v0  ;;  %v10687_v51 = vor.u32 %v11322_v47, %v10686_v45  ;;  %v10558_v45 = vld [vmem:[%s12272_s13 + $0x270] sm:$0xf]  ;;  %v11290_v47 = vld [vmem:[%s12272_s13 + $0x274] sm:$0xf0] }
 0x8b4   : > { %v5779_v32 = vmul.f32 0.7978846, %v5651_v52  ;;  %v5275_v42 = vmul.f32 %v15618_v13, %v15618_v13  ;;  %17478 = vst [vmem:[#allocation65_spill] sm:$0xff] %v15635_v11 }
 0x8b5   : > { %v11827_v41 = vpop.eup %11826  ;;  %v5786_v29 = vmul.f32 0.7978846, %v5658_v31  ;;  %v5282_v16 = vmul.f32 %v15624_v24, %v15624_v24  ;;  %17479 = vst [vmem:[#allocation63_spill] sm:$0xff] %v15637_v23  ;;  %v6282_v31 = vmul.f32 %v6154_v27, %v15549_v62  ;;  %7520 = vmatpush.bf16.msra.mxu2 %v10687_v51  ;;  %v17481_v27 = vld [vmem:[#allocation83_spill] sm:$0xff]  ;;  %v10559_v51 = vor.u32 %v11290_v47, %v10558_v45 }
 0x8b6   : > { %v11829_v33 = vpop.eup %11828  ;;  %v5403_v57 = vmul.f32 %v5275_v42, %v15618_v13  ;;  %v6034_v35 = vadd.f32 1.0, %v11827_v41  ;;  %11830 = vtanh.f32 %v5779_v32 }
 0x8b7   : > { %11832 = vtanh.f32 %v5786_v29  ;;  %v5410_v21 = vmul.f32 %v5282_v16, %v15624_v24  ;;  %v5159_v61 = vpop.f32.mrf.mxu2  ;;  %v5208_v48 = vpop.f32.mrf.mxu3  ;;  %v6027_v32 = vadd.f32 1.0, %v11829_v33  ;;  %7422 = vmatpush.bf16.msra.mxu0 %v10559_v51 }
 0x8b8   : > { %v5531_v18 = vmul.f32 0.044715, %v5403_v57  ;;  %v5160_v12 = vadd.f32 %v5159_v61, %v15495_v60  ;;  %v5064_v6 = vpop.f32.mrf.mxu0  ;;  %v6162_v0 = vmul.f32 0.5, %v6034_v35 }
 0x8b9   : > { %v5113_v53 = vpop.f32.mrf.mxu1  ;;  %v5538_v14 = vmul.f32 0.044715, %v5410_v21  ;;  %v5065_v52 = vadd.f32 %v5064_v6, %v15464_v40  ;;  %v6155_v61 = vmul.f32 0.5, %v6027_v32 }
 0x8ba   : > { %v5659_v10 = vadd.f32 %v5531_v18, %v15618_v13  ;;  %v15645_v42 = vadd.f32 %v5208_v48, %v5160_v12  ;;  %7249 = vmatmul.bf16.gmra.mxu0 %v15635_v11  ;;  %v6290_v5 = vmul.f32 %v6162_v0, %v15571_v56  ;;  %v10750_v18 = vld [vmem:[%s12272_s13 + $0x3f0] sm:$0xf]  ;;  %v11338_v0 = vld [vmem:[%s12272_s13 + $0x3f4] sm:$0xf0] }
 0x8bb   : > { %v5666_v7 = vadd.f32 %v5538_v14, %v15624_v24  ;;  %v15650_v41 = vadd.f32 %v5113_v53, %v5065_v52  ;;  %7298 = vmatmul.bf16.gmra.mxu1 %v15637_v23  ;;  %v10622_v14 = vld [vmem:[%s12272_s13 + $0x2f0] sm:$0xf]  ;;  %v11306_v52 = vld [vmem:[%s12272_s13 + $0x2f4] sm:$0xf0]  ;;  %v6283_v47 = vmul.f32 %v6155_v61, %v15568_v4  ;;  %v10678_v61 = vld [vmem:[%s12272_s13 + $0x360] sm:$0xf] }
 0x8bc   : > { %v11831_v62 = vpop.eup %11830  ;;  %v5787_v29 = vmul.f32 0.7978846, %v5659_v10  ;;  %v5283_v16 = vmul.f32 %v15645_v42, %v15645_v42  ;;  %7347 = vmatmul.bf16.gmra.mxu2 %v17480_v19  ;;  %7396 = vmatmul.bf16.gmra.mxu3 %v17481_v27  ;;  %v15657_v56 = vpack.c.bf16 %v6290_v5, %v6282_v31 }
 0x8bd   : > { %v11833_v33 = vpop.eup %11832  ;;  %v5794_v57 = vmul.f32 0.7978846, %v5666_v7  ;;  %v5290_v35 = vmul.f32 %v15650_v41, %v15650_v41  ;;  %v6035_v21 = vadd.f32 1.0, %v11831_v62  ;;  %v10751_v7 = vor.u32 %v11338_v0, %v10750_v18 }
 0x8be   : > { %11834 = vtanh.f32 %v5787_v29  ;;  %v5411_v48 = vmul.f32 %v5283_v16, %v15645_v42  ;;  %v10623_v62 = vor.u32 %v11306_v52, %v10622_v14 }
 0x8bf   : > { %v5418_v12 = vmul.f32 %v5290_v35, %v15650_v41  ;;  %v5162_v6 = vpop.f32.mrf.mxu2  ;;  %v5211_v53 = vpop.f32.mrf.mxu3  ;;  %11836 = vtanh.f32 %v5794_v57  ;;  %v6163_v27 = vmul.f32 0.5, %v6035_v21  ;;  %v6042_v35 = vadd.f32 1.0, %v11833_v33  ;;  %7569 = vmatpush.bf16.msra.mxu3 %v10751_v7 }
 0x8c0   : > { %v5539_v31 = vmul.f32 0.044715, %v5411_v48  ;;  %v5163_v10 = vadd.f32 %v5162_v6, %v15495_v60  ;;  %v5066_v5 = vpop.f32.mrf.mxu0  ;;  %7471 = vmatpush.bf16.msra.mxu1 %v10623_v62 }
 0x8c1   : > { %v5115_v32 = vpop.f32.mrf.mxu1  ;;  %v5546_v29 = vmul.f32 0.044715, %v5418_v12  ;;  %v5067_v16 = vadd.f32 %v5066_v5, %v15464_v40  ;;  %v6291_v18 = vmul.f32 %v6163_v27, %v15596_v28  ;;  %v6170_v14 = vmul.f32 0.5, %v6042_v35 }
 0x8c2   : > { %v5667_v19 = vadd.f32 %v5539_v31, %v15645_v42  ;;  %v15672_v45 = vadd.f32 %v5211_v53, %v5163_v10  ;;  %v11320_v31 = vld [vmem:[%s12272_s13 + $0x364] sm:$0xf0] }
 0x8c3   : > { %v5674_v57 = vadd.f32 %v5546_v29, %v15650_v41  ;;  %v15675_v48 = vadd.f32 %v5115_v32, %v5067_v16  ;;  %v15683_v0 = vpack.c.bf16 %v6291_v18, %v6283_v47  ;;  %v10679_v62 = vor.u32 %v11320_v31, %v10678_v61 }
 0x8c4   : > { %v11835_v12 = vpop.eup %11834  ;;  %v5795_v6 = vmul.f32 0.7978846, %v5667_v19  ;;  %v5291_v33 = vmul.f32 %v15672_v45, %v15672_v45 }
 0x8c5   : > { %v11837_v21 = vpop.eup %11836  ;;  %v5802_v53 = vmul.f32 0.7978846, %v5674_v57  ;;  %v5298_v51 = vmul.f32 %v15675_v48, %v15675_v48  ;;  %v6298_v57 = vmul.f32 %v6170_v14, %v15600_v15  ;;  %v6043_v47 = vadd.f32 1.0, %v11835_v12  ;;  %7521 = vmatpush.bf16.msra.mxu2 %v10679_v62  ;;  %v10742_v62 = vld [vmem:[%s12272_s13 + $0x3e0] sm:$0xf] }
 0x8c6   : > { %v5419_v52 = vmul.f32 %v5291_v33, %v15672_v45  ;;  %v6050_v4 = vadd.f32 1.0, %v11837_v21  ;;  %11838 = vtanh.f32 %v5795_v6  ;;  %v17482_v33 = vld [vmem:[#allocation68_spill] sm:$0xff] }
 0x8c7   : > { %11840 = vtanh.f32 %v5802_v53  ;;  %v5426_v28 = vmul.f32 %v5298_v51, %v15675_v48  ;;  %v5164_v27 = vpop.f32.mrf.mxu2  ;;  %v5213_v19 = vpop.f32.mrf.mxu3 }
 0x8c8   : > { %v5547_v10 = vmul.f32 0.044715, %v5419_v52  ;;  %v5165_v5 = vadd.f32 %v5164_v27, %v15495_v60  ;;  %v5069_v32 = vpop.f32.mrf.mxu0  ;;  %v6178_v29 = vmul.f32 0.5, %v6050_v4  ;;  %v17483_v52 = vld [vmem:[#allocation69_spill] sm:$0xff]  ;;  %v17484_v4 = vld [vmem:[#allocation84_spill] sm:$0xff] }
 0x8c9   : > { %v5118_v7 = vpop.f32.mrf.mxu1  ;;  %v5554_v16 = vmul.f32 0.044715, %v5426_v28  ;;  %v5070_v35 = vadd.f32 %v5069_v32, %v15464_v40  ;;  %v17485_v28 = vld [vmem:[#allocation85_spill] sm:$0xff]  ;;  %v10550_v32 = vld [vmem:[%s12272_s13 + $0x260] sm:$0xf] }
 0x8ca   : > { %v5675_v18 = vadd.f32 %v5547_v10, %v15672_v45  ;;  %v15693_v6 = vadd.f32 %v5213_v19, %v5165_v5  ;;  %7254 = vmatmul.bf16.gmra.mxu0 %v17482_v33  ;;  %v6306_v21 = vmul.f32 %v6178_v29, %v15624_v24  ;;  %v6171_v10 = vmul.f32 0.5, %v6043_v47 }
 0x8cb   : > { %v5682_v53 = vadd.f32 %v5554_v16, %v15675_v48  ;;  %v15698_v51 = vadd.f32 %v5118_v7, %v5070_v35  ;;  %7303 = vmatmul.bf16.gmra.mxu1 %v17483_v52  ;;  %v11288_v7 = vld [vmem:[%s12272_s13 + $0x264] sm:$0xf0] }
 0x8cc   : > { %v11839_v15 = vpop.eup %11838  ;;  %v5803_v12 = vmul.f32 0.7978846, %v5675_v18  ;;  %v5299_v14 = vmul.f32 %v15693_v6, %v15693_v6  ;;  %7352 = vmatmul.bf16.gmra.mxu2 %v17484_v4  ;;  %7401 = vmatmul.bf16.gmra.mxu3 %v17485_v28  ;;  %v15705_v24 = vpack.c.bf16 %v6306_v21, %v6298_v57  ;;  %v10551_v57 = vor.u32 %v11288_v7, %v10550_v32  ;;  %v11336_v18 = vld [vmem:[%s12272_s13 + $0x3e4] sm:$0xf0]  ;;  %v10614_v21 = vld [vmem:[%s12272_s13 + $0x2e0] sm:$0xf] }
 0x8cd   : > { %v11841_v27 = vpop.eup %11840  ;;  %v5810_v19 = vmul.f32 0.7978846, %v5682_v53  ;;  %v5306_v61 = vmul.f32 %v15698_v51, %v15698_v51  ;;  %v6051_v31 = vadd.f32 1.0, %v11839_v15  ;;  %v11304_v28 = vld [vmem:[%s12272_s13 + $0x2e4] sm:$0xf0]  ;;  %v6299_v7 = vmul.f32 %v6171_v10, %v15618_v13 }
 0x8ce   : > { %11842 = vtanh.f32 %v5803_v12  ;;  %v5427_v5 = vmul.f32 %v5299_v14, %v15693_v6  ;;  %v10743_v12 = vor.u32 %v11336_v18, %v10742_v62  ;;  %v10615_v52 = vor.u32 %v11304_v28, %v10614_v21  ;;  %7423 = vmatpush.bf16.msra.mxu0 %v10551_v57  ;;  %v10670_v10 = vld [vmem:[%s12272_s13 + $0x350] sm:$0xf]  ;;  %v11318_v57 = vld [vmem:[%s12272_s13 + $0x354] sm:$0xf0] }
 0x8cf   : > { %v5434_v29 = vmul.f32 %v5306_v61, %v15698_v51  ;;  %v5167_v16 = vpop.f32.mrf.mxu2  ;;  %v5216_v35 = vpop.f32.mrf.mxu3  ;;  %11844 = vtanh.f32 %v5810_v19  ;;  %v6179_v23 = vmul.f32 0.5, %v6051_v31  ;;  %v6058_v61 = vadd.f32 1.0, %v11841_v27 }
 0x8d0   : > { %v5555_v53 = vmul.f32 0.044715, %v5427_v5  ;;  %v5168_v4 = vadd.f32 %v5167_v16, %v15495_v60  ;;  %v5071_v15 = vpop.f32.mrf.mxu0  ;;  %7570 = vmatpush.bf16.msra.mxu3 %v10743_v12  ;;  %7472 = vmatpush.bf16.msra.mxu1 %v10615_v52  ;;  %v10671_v12 = vor.u32 %v11318_v57, %v10670_v10 }
 0x8d1   : > { %v5120_v47 = vpop.f32.mrf.mxu1  ;;  %v5562_v14 = vmul.f32 0.044715, %v5434_v29  ;;  %v5072_v33 = vadd.f32 %v5071_v15, %v15464_v40  ;;  %v6307_v28 = vmul.f32 %v6179_v23, %v15645_v42 }
 0x8d2   : > { %v5683_v11 = vadd.f32 %v5555_v53, %v15693_v6  ;;  %v15720_v32 = vadd.f32 %v5216_v35, %v5168_v4  ;;  %7522 = vmatpush.bf16.msra.mxu2 %v10671_v12  ;;  %v10734_v12 = vld [vmem:[%s12272_s13 + $0x3d0] sm:$0xf] }
 0x8d3   : > { %v5690_v19 = vadd.f32 %v5562_v14, %v15698_v51  ;;  %v15723_v5 = vadd.f32 %v5120_v47, %v5072_v33  ;;  %v15731_v16 = vpack.c.bf16 %v6307_v28, %v6299_v7  ;;  %v6186_v33 = vmul.f32 0.5, %v6058_v61 }
 0x8d4   : > { %v11843_v62 = vpop.eup %11842  ;;  %v5811_v29 = vmul.f32 0.7978846, %v5683_v11  ;;  %v5307_v27 = vmul.f32 %v15720_v32, %v15720_v32 }
 0x8d5   : > { %v11845_v31 = vpop.eup %11844  ;;  %v5818_v4 = vmul.f32 0.7978846, %v5690_v19  ;;  %v5314_v52 = vmul.f32 %v15723_v5, %v15723_v5  ;;  %v6059_v18 = vadd.f32 1.0, %v11843_v62  ;;  %v6314_v7 = vmul.f32 %v6186_v33, %v15650_v41  ;;  %v17488_v33 = vld [vmem:[#allocation86_spill] sm:$0xff] }
 0x8d6   : > { %v5435_v35 = vmul.f32 %v5307_v27, %v15720_v32  ;;  %v6066_v13 = vadd.f32 1.0, %v11845_v31  ;;  %11846 = vtanh.f32 %v5811_v29  ;;  %v17486_v27 = vld [vmem:[#allocation70_spill] sm:$0xff] }
 0x8d7   : > { %11848 = vtanh.f32 %v5818_v4  ;;  %v5442_v23 = vmul.f32 %v5314_v52, %v15723_v5  ;;  %v5169_v42 = vpop.f32.mrf.mxu2  ;;  %v5218_v11 = vpop.f32.mrf.mxu3  ;;  %v17487_v52 = vld [vmem:[#allocation71_spill] sm:$0xff] }
 0x8d8   : > { %v5563_v21 = vmul.f32 0.044715, %v5435_v35  ;;  %v5170_v53 = vadd.f32 %v5169_v42, %v15495_v60  ;;  %v5074_v15 = vpop.f32.mrf.mxu0  ;;  %v6194_v14 = vmul.f32 0.5, %v6066_v13  ;;  %v17489_v13 = vld [vmem:[#allocation87_spill] sm:$0xff] }
 0x8d9   : > { %v5123_v47 = vpop.f32.mrf.mxu1  ;;  %v5570_v61 = vmul.f32 0.044715, %v5442_v23  ;;  %v5075_v19 = vadd.f32 %v5074_v15, %v15464_v40  ;;  %v10542_v15 = vld [vmem:[%s12272_s13 + $0x250] sm:$0xf] }
 0x8da   : > { %v5691_v28 = vadd.f32 %v5563_v21, %v15720_v32  ;;  %v15741_v29 = vadd.f32 %v5218_v11, %v5170_v53  ;;  %7259 = vmatmul.bf16.gmra.mxu0 %v17486_v27  ;;  %v6322_v62 = vmul.f32 %v6194_v14, %v15675_v48  ;;  %v6187_v48 = vmul.f32 0.5, %v6059_v18  ;;  %v10606_v18 = vld [vmem:[%s12272_s13 + $0x2d0] sm:$0xf] }
 0x8db   : > { %v5698_v31 = vadd.f32 %v5570_v61, %v15723_v5  ;;  %v15746_v4 = vadd.f32 %v5123_v47, %v5075_v19  ;;  %7308 = vmatmul.bf16.gmra.mxu1 %v17487_v52  ;;  %v11286_v47 = vld [vmem:[%s12272_s13 + $0x254] sm:$0xf0] }
 0x8dc   : > { %v11847_v35 = vpop.eup %11846  ;;  %v5315_v41 = vmul.f32 %v15741_v29, %v15741_v29  ;;  %7357 = vmatmul.bf16.gmra.mxu2 %v17488_v33  ;;  %7406 = vmatmul.bf16.gmra.mxu3 %v17489_v13  ;;  %v15753_v23 = vpack.c.bf16 %v6322_v62, %v6314_v7  ;;  %v5819_v11 = vmul.f32 0.7978846, %v5691_v28  ;;  %v10543_v7 = vor.u32 %v11286_v47, %v10542_v15  ;;  %v11334_v62 = vld [vmem:[%s12272_s13 + $0x3d4] sm:$0xf0] }
 0x8dd   : > { %v11849_v42 = vpop.eup %11848  ;;  %v5826_v10 = vmul.f32 0.7978846, %v5698_v31  ;;  %v5322_v57 = vmul.f32 %v15746_v4, %v15746_v4  ;;  %v6067_v21 = vadd.f32 1.0, %v11847_v35  ;;  %v11302_v13 = vld [vmem:[%s12272_s13 + $0x2d4] sm:$0xf0]  ;;  %v10735_v27 = vor.u32 %v11334_v62, %v10734_v12 }
 0x8de   : > { %v5443_v53 = vmul.f32 %v5315_v41, %v15741_v29  ;;  %v10607_v35 = vor.u32 %v11302_v13, %v10606_v18  ;;  %7424 = vmatpush.bf16.msra.mxu0 %v10543_v7  ;;  %v6074_v36 = vadd.f32 1.0, %v11849_v42  ;;  %11850 = vtanh.f32 %v5819_v11 }
 0x8df   : > { %v5450_v14 = vmul.f32 %v5322_v57, %v15746_v4  ;;  %v5172_v61 = vpop.f32.mrf.mxu2  ;;  %v5221_v19 = vpop.f32.mrf.mxu3  ;;  %v6195_v49 = vmul.f32 0.5, %v6067_v21  ;;  %7571 = vmatpush.bf16.msra.mxu3 %v10735_v27  ;;  %11852 = vtanh.f32 %v5826_v10 }
 0x8e0   : > { %v5571_v33 = vmul.f32 0.044715, %v5443_v53  ;;  %v5173_v28 = vadd.f32 %v5172_v61, %v15495_v60  ;;  %v5076_v31 = vpop.f32.mrf.mxu0  ;;  %7473 = vmatpush.bf16.msra.mxu1 %v10607_v35  ;;  %v6315_v53 = vmul.f32 %v6187_v48, %v15672_v45  ;;  %v15777_v27 = vmul.f32 0.5, %v6074_v36  ;;  %v10598_v48 = vld [vmem:[%s12272_s13 + $0x2c0] sm:$0xf] }
 0x8e1   : > { %v5125_v52 = vpop.f32.mrf.mxu1  ;;  %v5578_v38 = vmul.f32 0.044715, %v5450_v14  ;;  %v5077_v41 = vadd.f32 %v5076_v31, %v15464_v40  ;;  %v6323_v47 = vmul.f32 %v6195_v49, %v15693_v6  ;;  %v10534_v6 = vld [vmem:[%s12272_s13 + $0x240] sm:$0xf]  ;;  %v11300_v14 = vld [vmem:[%s12272_s13 + $0x2c4] sm:$0xf0] }
 0x8e2   : > { %v5699_v57 = vadd.f32 %v5571_v33, %v15741_v29  ;;  %v15768_v59 = vadd.f32 %v5221_v19, %v5173_v28  ;;  %v10662_v61 = vld [vmem:[%s12272_s13 + $0x340] sm:$0xf]  ;;  %v11316_v19 = vld [vmem:[%s12272_s13 + $0x344] sm:$0xf0]  ;;  %v10599_v31 = vor.u32 %v11300_v14, %v10598_v48 }
 0x8e3   : > { %v5706_v13 = vadd.f32 %v5578_v38, %v15746_v4  ;;  %v15772_v15 = vadd.f32 %v5125_v52, %v5077_v41  ;;  %v15785_v45 = vpack.c.bf16 %v6323_v47, %v6315_v53  ;;  %v11284_v52 = vld [vmem:[%s12272_s13 + $0x244] sm:$0xf0]  ;;  %v10663_v35 = vor.u32 %v11316_v19, %v10662_v61  ;;  %v10726_v41 = vld [vmem:[%s12272_s13 + $0x3c0] sm:$0xf]  ;;  %v10590_v61 = vld [vmem:[%s12272_s13 + $0x2b0] sm:$0xf] }
 0x8e4   : > { %v5323_v33 = vmul.f32 %v15768_v59, %v15768_v59  ;;  %v15779_v42 = vmul.f32 0.7978846, %v5699_v57  ;;  %v10535_v12 = vor.u32 %v11284_v52, %v10534_v6  ;;  %v11332_v57 = vld [vmem:[%s12272_s13 + $0x3c4] sm:$0xf0]  ;;  %v11851_v53 = vpop.eup %11850  ;;  %7474 = vmatpush.bf16.msra.mxu1 %v10599_v31  ;;  %v10654_v19 = vld [vmem:[%s12272_s13 + $0x330] sm:$0xf] }
 0x8e5   : > { %v15781_v21 = vmul.f32 0.7978846, %v5706_v13  ;;  %v5330_v38 = vmul.f32 %v15772_v15, %v15772_v15  ;;  %17490 = vst [vmem:[#allocation66_spill] sm:$0xff] %v15785_v45  ;;  %v11853_v6 = vpop.eup %11852  ;;  %7523 = vmatpush.bf16.msra.mxu2 %v10663_v35  ;;  %v17493_v31 = vld [vmem:[#allocation88_spill] sm:$0xff] }
 0x8e6   : > { %v5451_v49 = vmul.f32 %v5323_v33, %v15768_v59  ;;  %7425 = vmatpush.bf16.msra.mxu0 %v10535_v12  ;;  %v10727_v33 = vor.u32 %v11332_v57, %v10726_v41  ;;  %v17492_v41 = vld [vmem:[#allocation73_spill] sm:$0xff]  ;;  %11854 = vtanh.f32 %v15779_v42 }
 0x8e7   : > { %v5458_v11 = vmul.f32 %v5330_v38, %v15772_v15  ;;  %v5174_v36 = vpop.f32.mrf.mxu2  ;;  %v5223_v10 = vpop.f32.mrf.mxu3  ;;  %v10526_v38 = vld [vmem:[%s12272_s13 + $0x230] sm:$0xf]  ;;  %11856 = vtanh.f32 %v15781_v21  ;;  %v11294_v21 = vld [vmem:[%s12272_s13 + $0x294] sm:$0xf0] }
 0x8e8   : > { %v5579_v7 = vmul.f32 0.044715, %v5451_v49  ;;  %v5175_v62 = vadd.f32 %v5174_v36, %v15495_v60  ;;  %v5079_v18 = vpop.f32.mrf.mxu0  ;;  %v11282_v49 = vld [vmem:[%s12272_s13 + $0x234] sm:$0xf0]  ;;  %v17491_v36 = vld [vmem:[#allocation72_spill] sm:$0xff]  ;;  %7572 = vmatpush.bf16.msra.mxu3 %v10727_v33 }
 0x8e9   : > { %v5128_v28 = vpop.f32.mrf.mxu1  ;;  %v5586_v13 = vmul.f32 0.044715, %v5458_v11  ;;  %v5080_v47 = vadd.f32 %v5079_v18, %v15464_v40  ;;  %v10527_v14 = vor.u32 %v11282_v49, %v10526_v38  ;;  %v11298_v11 = vld [vmem:[%s12272_s13 + $0x2b4] sm:$0xf0]  ;;  %v6082_v49 = vadd.f32 1.0, %v11853_v6 }
 0x8ea   : > { %v5707_v52 = vadd.f32 %v5579_v7, %v15768_v59  ;;  %v15802_v48 = vadd.f32 %v5223_v10, %v5175_v62  ;;  %7264 = vmatmul.bf16.gmra.mxu0 %v17491_v36  ;;  %v10591_v57 = vor.u32 %v11298_v11, %v10590_v61  ;;  %v11330_v10 = vld [vmem:[%s12272_s13 + $0x3b4] sm:$0xf0]  ;;  %v10518_v11 = vld [vmem:[%s12272_s13 + $0x220] sm:$0xf]  ;;  %v11296_v33 = vld [vmem:[%s12272_s13 + $0x2a4] sm:$0xf0] }
 0x8eb   : > { %v5714_v12 = vadd.f32 %v5586_v13, %v15772_v15  ;;  %v15809_v18 = vadd.f32 %v5128_v28, %v5080_v47  ;;  %7313 = vmatmul.bf16.gmra.mxu1 %v17492_v41  ;;  %v17494_v38 = vld [vmem:[#allocation89_spill] sm:$0xff]  ;;  %v10655_v28 = vor.u32 %v11314_v37, %v10654_v19  ;;  %v10719_v13 = vor.u32 %v11330_v10, %v10718_v1  ;;  %v10646_v10 = vld [vmem:[%s12272_s13 + $0x320] sm:$0xf] }
 0x8ec   : > { %v5835_v7 = vmul.f32 0.7978846, %v5707_v52  ;;  %v5331_v62 = vmul.f32 %v15802_v48, %v15802_v48  ;;  %7362 = vmatmul.bf16.gmra.mxu2 %v17493_v31  ;;  %7411 = vmatmul.bf16.gmra.mxu3 %v17494_v38  ;;  %v15821_v52 = vadd.f32 1.0, %v11851_v53  ;;  %v11280_v31 = vld [vmem:[%s12272_s13 + $0x224] sm:$0xf0] }
 0x8ed   : > { %v5842_v47 = vmul.f32 0.7978846, %v5714_v12  ;;  %v5338_v35 = vmul.f32 %v15809_v18, %v15809_v18  ;;  %7426 = vmatpush.bf16.msra.mxu0 %v10527_v14  ;;  %7475 = vmatpush.bf16.msra.mxu1 %v10591_v57  ;;  %v10582_v38 = vld [vmem:[%s12272_s13 + $0x2a0] sm:$0xf]  ;;  %v10519_v12 = vor.u32 %v11280_v31, %v10518_v11  ;;  %v11312_v14 = vld [vmem:[%s12272_s13 + $0x324] sm:$0xf0] }
 0x8ee   : > { %v5459_v61 = vmul.f32 %v5331_v62, %v15802_v48  ;;  %7524 = vmatpush.bf16.msra.mxu2 %v10655_v28  ;;  %v10583_v41 = vor.u32 %v11296_v33, %v10582_v38  ;;  %v10710_v36 = vld [vmem:[%s12272_s13 + $0x3a0] sm:$0xf]  ;;  %v11328_v28 = vld [vmem:[%s12272_s13 + $0x3a4] sm:$0xf0]  ;;  %7573 = vmatpush.bf16.msra.mxu3 %v10719_v13 }
 0x8ef   : > { %v5466_v1 = vmul.f32 %v5338_v35, %v15809_v18  ;;  %v5177_v37 = vpop.f32.mrf.mxu2  ;;  %v5226_v19 = vpop.f32.mrf.mxu3  ;;  %v10647_v35 = vor.u32 %v11312_v14, %v10646_v10  ;;  %v10711_v42 = vor.u32 %v11328_v28, %v10710_v36  ;;  %v10574_v14 = vld [vmem:[%s12272_s13 + $0x290] sm:$0xf]  ;;  %11858 = vtanh.f32 %v5842_v47  ;;  %v10502_v47 = vld [vmem:[%s12272_s13 + $0x200] sm:$0xf] }
 0x8f0   : > { %v5587_v53 = vmul.f32 0.044715, %v5459_v61  ;;  %v5178_v6 = vadd.f32 %v5177_v37, %v15495_v60  ;;  %v5081_v57 = vpop.f32.mrf.mxu0  ;;  %v10510_v61 = vld [vmem:[%s12272_s13 + $0x210] sm:$0xf]  ;;  %v11278_v37 = vld [vmem:[%s12272_s13 + $0x214] sm:$0xf0]  ;;  %v10575_v36 = vor.u32 %v11294_v21, %v10574_v14  ;;  %11860 = vtanh.f32 %v5835_v7 }
 0x8f1   : > { %v5130_v62 = vpop.f32.mrf.mxu1  ;;  %v5594_v31 = vmul.f32 0.044715, %v5466_v1  ;;  %v5082_v11 = vadd.f32 %v5081_v57, %v15464_v40  ;;  %7427 = vmatpush.bf16.msra.mxu0 %v10519_v12  ;;  %7476 = vmatpush.bf16.msra.mxu1 %v10583_v41  ;;  %v10511_v10 = vor.u32 %v11278_v37, %v10510_v61  ;;  %v10638_v1 = vld [vmem:[%s12272_s13 + $0x310] sm:$0xf]  ;;  %v11310_v57 = vld [vmem:[%s12272_s13 + $0x314] sm:$0xf0] }
 0x8f2   : > { %v5715_v38 = vadd.f32 %v5587_v53, %v15802_v48  ;;  %v15840_v33 = vadd.f32 %v5226_v19, %v5178_v6  ;;  %7525 = vmatpush.bf16.msra.mxu2 %v10647_v35  ;;  %v10702_v28 = vld [vmem:[%s12272_s13 + $0x390] sm:$0xf]  ;;  %v10639_v53 = vor.u32 %v11310_v57, %v10638_v1  ;;  %v11855_v6 = vpop.eup %11854  ;;  %7574 = vmatpush.bf16.msra.mxu3 %v10711_v42  ;;  %v6210_v61 = vmul.f32 0.5, %v6082_v49  ;;  %v11292_v14 = vld [vmem:[%s12272_s13 + $0x284] sm:$0xf0] }
 0x8f3   : > { %v5722_v13 = vadd.f32 %v5594_v31, %v15809_v18  ;;  %v15846_v12 = vadd.f32 %v5130_v62, %v5082_v11  ;;  %v10703_v35 = vor.u32 %v11326_v43, %v10702_v28  ;;  %v11276_v11 = vld [vmem:[%s12272_s13 + $0x204] sm:$0xf0]  ;;  %v10630_v21 = vld [vmem:[%s12272_s13 + $0x300] sm:$0xf]  ;;  %v6330_v1 = vmul.f32 %v15777_v27, %v15698_v51 }
 0x8f4   : > { %v5843_v19 = vmul.f32 0.7978846, %v5715_v38  ;;  %v5339_v41 = vmul.f32 %v15840_v33, %v15840_v33  ;;  %v10503_v37 = vor.u32 %v11276_v11, %v10502_v47  ;;  %v10566_v38 = vld [vmem:[%s12272_s13 + $0x280] sm:$0xf]  ;;  %v11308_v57 = vld [vmem:[%s12272_s13 + $0x304] sm:$0xf0] }
 0x8f5   : > { %v5850_v31 = vmul.f32 0.7978846, %v5722_v13  ;;  %v5346_v62 = vmul.f32 %v15846_v12, %v15846_v12  ;;  %7428 = vmatpush.bf16.msra.mxu0 %v10511_v10  ;;  %7477 = vmatpush.bf16.msra.mxu1 %v10575_v36  ;;  %v11857_v13 = vpop.eup %11856  ;;  %v10567_v10 = vor.u32 %v11292_v14, %v10566_v38  ;;  %v10694_v28 = vld [vmem:[%s12272_s13 + $0x380] sm:$0xf]  ;;  %v11324_v36 = vld [vmem:[%s12272_s13 + $0x384] sm:$0xf0]  ;;  %v10631_v27 = vor.u32 %v11308_v57, %v10630_v21 }
 0x8f6   : > { %v5467_v7 = vmul.f32 %v5339_v41, %v15840_v33  ;;  %11862 = vtanh.f32 %v5843_v19  ;;  %7526 = vmatpush.bf16.msra.mxu2 %v10639_v53  ;;  %v6338_v41 = vmul.f32 %v6210_v61, %v15723_v5  ;;  %v11859_v47 = vpop.eup %11858  ;;  %v10695_v19 = vor.u32 %v11324_v36, %v10694_v28  ;;  %7575 = vmatpush.bf16.msra.mxu3 %v10703_v35  ;;  %v17495_v61 = vld [vmem:[#allocation74_spill] sm:$0xff] }
 0x8f7   : > { %11864 = vtanh.f32 %v5850_v31  ;;  %v5474_v43 = vmul.f32 %v5346_v62, %v15846_v12  ;;  %v5179_v42 = vpop.f32.mrf.mxu2  ;;  %v5228_v49 = vpop.f32.mrf.mxu3  ;;  %v6083_v38 = vadd.f32 1.0, %v11855_v6  ;;  %v6090_v21 = vadd.f32 1.0, %v11857_v13 }
 0x8f8   : > { %v5595_v11 = vmul.f32 0.044715, %v5467_v7  ;;  %v5180_v3 = vadd.f32 %v5179_v42, %v15495_v60  ;;  %v5084_v17 = vpop.f32.mrf.mxu0  ;;  %v15870_v53 = vpack.c.bf16 %v6338_v41, %v6330_v1  ;;  %v11861_v14 = vpop.eup %11860  ;;  %v6203_v7 = vmul.f32 0.5, %v15821_v52 }
 0x8f9   : > { %v5133_v51 = vpop.f32.mrf.mxu1  ;;  %v5602_v31 = vmul.f32 0.044715, %v5474_v43  ;;  %v5085_v62 = vadd.f32 %v5084_v17, %v15464_v40  ;;  %7429 = vmatpush.bf16.msra.mxu0 %v10503_v37  ;;  %7478 = vmatpush.bf16.msra.mxu1 %v10567_v10  ;;  %v17496_v17 = vld [vmem:[#allocation75_spill] sm:$0xff]  ;;  %v6211_v35 = vmul.f32 0.5, %v6083_v38  ;;  %v6098_v6 = vadd.f32 1.0, %v11859_v47  ;;  %v17498_v10 = vld [vmem:[#allocation92_spill] sm:$0xff] }
 0x8fa   : > { %v5723_v30 = vadd.f32 %v5595_v11, %v15840_v33  ;;  %v15873_v5 = vadd.f32 %v5228_v49, %v5180_v3  ;;  %7269 = vmatmul.bf16.gmra.mxu0 %v17495_v61  ;;  %7527 = vmatpush.bf16.msra.mxu2 %v10631_v27  ;;  %v17497_v49 = vld [vmem:[#allocation90_spill] sm:$0xff]  ;;  %v6331_v52 = vmul.f32 %v6203_v7, %v15720_v32  ;;  %v6218_v13 = vmul.f32 0.5, %v6090_v21 }
 0x8fb   : > { %v5730_v43 = vadd.f32 %v5602_v31, %v15846_v12  ;;  %v15878_v42 = vadd.f32 %v5133_v51, %v5085_v62  ;;  %7318 = vmatmul.bf16.gmra.mxu1 %v17496_v17  ;;  %7576 = vmatpush.bf16.msra.mxu3 %v10695_v19  ;;  %v6339_v41 = vmul.f32 %v6211_v35, %v15741_v29  ;;  %v6226_v47 = vmul.f32 0.5, %v6098_v6 }
 0x8fc   : > { %v11863_v37 = vpop.eup %11862  ;;  %v5851_v1 = vmul.f32 0.7978846, %v5723_v30  ;;  %v5347_v3 = vmul.f32 %v15873_v5, %v15873_v5  ;;  %7367 = vmatmul.bf16.gmra.mxu2 %v17497_v49  ;;  %7416 = vmatmul.bf16.gmra.mxu3 %v17498_v10  ;;  %v6346_v11 = vmul.f32 %v6218_v13, %v15746_v4  ;;  %v6091_v51 = vadd.f32 1.0, %v11861_v14  ;;  %v6516_v13 = vld [vmem:[%s12278_s0] sm:$0x3] }
 0x8fd   : > { %v11865_v57 = vpop.eup %11864  ;;  %v5858_v28 = vmul.f32 0.7978846, %v5730_v43  ;;  %v5354_v36 = vmul.f32 %v15878_v42, %v15878_v42  ;;  %v15892_v62 = vpack.c.bf16 %v6339_v41, %v6331_v52  ;;  %v6354_v38 = vmul.f32 %v6226_v47, %v15772_v15 }
 0x8fe   : > { %11866 = vtanh.f32 %v5851_v1  ;;  %v5475_v30 = vmul.f32 %v5347_v3, %v15873_v5  ;;  %v6099_v7 = vadd.f32 1.0, %v11863_v37  ;;  %v6219_v35 = vmul.f32 0.5, %v6091_v51 }
 0x8ff   : > { %v5482_v27 = vmul.f32 %v5354_v36, %v15878_v42  ;;  %v5182_v31 = vpop.f32.mrf.mxu2  ;;  %v5231_v32 = vpop.f32.mrf.mxu3  ;;  %17499 = vst [vmem:[#allocation91_spill] sm:$0xff] %v15892_v62  ;;  %11868 = vtanh.f32 %v5858_v28  ;;  %v15897_v14 = vpack.c.bf16 %v6354_v38, %v6346_v11  ;;  %v6106_v28 = vadd.f32 1.0, %v11865_v57 }
 0x900   : > { %v5603_v19 = vmul.f32 0.044715, %v5475_v30  ;;  %v5183_v29 = vadd.f32 %v5182_v31, %v15495_v60  ;;  %v5086_v21 = vpop.f32.mrf.mxu0  ;;  %v6227_v1 = vmul.f32 0.5, %v6099_v7  ;;  %v6347_v15 = vmul.f32 %v6219_v35, %v15768_v59 }
 0x901   : > { %v5135_v43 = vpop.f32.mrf.mxu1  ;;  %v5610_v6 = vmul.f32 0.044715, %v5482_v27  ;;  %v5087_v4 = vadd.f32 %v5086_v21, %v15464_v40  ;;  %17500 = vst [vmem:[#allocation67_spill] sm:$0xff] %v15897_v14  ;;  %v15912_v27 = vperm.slane %v6516_v13, 0 }
 0x902   : > { %v5731_v3 = vadd.f32 %v5603_v19, %v15873_v5  ;;  %v15900_v52 = vadd.f32 %v5231_v32, %v5183_v29  ;;  %v6355_v41 = vmul.f32 %v6227_v1, %v15802_v48  ;;  %v6234_v19 = vmul.f32 0.5, %v6106_v28 }
 0x903   : > { %v5738_v37 = vadd.f32 %v5610_v6, %v15878_v42  ;;  %v15905_v36 = vadd.f32 %v5135_v43, %v5087_v4 }
 0x904   : > { %v11867_v47 = vpop.eup %11866  ;;  %v5859_v30 = vmul.f32 0.7978846, %v5731_v3  ;;  %v5355_v40 = vmul.f32 %v15900_v52, %v15900_v52  ;;  %v15914_v31 = vpack.c.bf16 %v6355_v41, %v6347_v15 }
 0x905   : > { %v5866_v11 = vmul.f32 0.7978846, %v5738_v37  ;;  %v5362_v51 = vmul.f32 %v15905_v36, %v15905_v36  ;;  %v11869_v59 = vpop.eup %11868  ;;  %v6107_v6 = vadd.f32 1.0, %v11867_v47  ;;  %v17502_v37 = vld [vmem:[#allocation93_spill] sm:$0xff] }
 0x906   : > { %17501 = vst [vmem:[#allocation44_spill] sm:$0xff] %v15914_v31  ;;  %v5483_v32 = vmul.f32 %v5355_v40, %v15900_v52  ;;  %11870 = vtanh.f32 %v5859_v30  ;;  %v6114_v7 = vadd.f32 1.0, %v11869_v59  ;;  %v17503_v30 = vld [vmem:[#allocation52_spill] sm:$0xff] }
 0x907   : > { %v5490_v48 = vmul.f32 %v5362_v51, %v15905_v36  ;;  %v5184_v57 = vpop.f32.mrf.mxu2  ;;  %v5233_v38 = vpop.f32.mrf.mxu3  ;;  %11872 = vtanh.f32 %v5866_v11 }
 0x908   : > { %v5611_v29 = vmul.f32 0.044715, %v5483_v32  ;;  %v5185_v21 = vadd.f32 %v5184_v57, %v15495_v60  ;;  %v7235_v43 = vpop.f32.mrf.mxu0  ;;  %v6242_v3 = vmul.f32 0.5, %v6114_v7  ;;  %v6362_v60 = vmul.f32 %v6234_v19, %v15809_v18 }
 0x909   : > { %v7284_v35 = vpop.f32.mrf.mxu1  ;;  %v5618_v4 = vmul.f32 0.044715, %v5490_v48  ;;  %v7236_v1 = vadd.f32 %v7235_v43, %v15912_v27  ;;  %v6235_v57 = vmul.f32 0.5, %v6107_v6 }
 0x90a   : > { %v5739_v13 = vadd.f32 %v5611_v29, %v15900_v52  ;;  %v15921_v15 = vadd.f32 %v5233_v38, %v5185_v21  ;;  %7430 = vmatmul.bf16.vlgmr.msra.gmra.mxu0 %v17502_v37  ;;  %v6370_v47 = vmul.f32 %v6242_v3, %v15846_v12 }
 0x90b   : > { %v5746_v41 = vadd.f32 %v5618_v4, %v15905_v36  ;;  %v7285_v28 = vadd.f32 %v7284_v35, %v7236_v1  ;;  %7479 = vmatmul.bf16.vlgmr.msra.gmra.mxu1 %v17503_v30  ;;  %v6363_v1 = vmul.f32 %v6235_v57, %v15840_v33 }
 0x90c   : > { %v11871_v40 = vpop.eup %11870  ;;  %v5867_v11 = vmul.f32 0.7978846, %v5739_v13  ;;  %v5363_v51 = vmul.f32 %v15921_v15, %v15921_v15  ;;  %7528 = vmatmul.bf16.vlgmr.msra.gmra.mxu2 %v15603_v58  ;;  %7577 = vmatmul.bf16.vlgmr.msra.gmra.mxu3 %v15621_v44  ;;  %v15932_v32 = vpack.c.bf16 %v6370_v47, %v6362_v60 }
 0x90d   : > { %v5874_v59 = vmul.f32 0.7978846, %v5746_v41  ;;  %v6115_v48 = vadd.f32 1.0, %v11871_v40  ;;  %v11873_v7 = vpop.eup %11872 }
 0x90e   : > { %17504 = vst [vmem:[#allocation51_spill] sm:$0xff] %v15932_v32  ;;  %v5491_v38 = vmul.f32 %v5363_v51, %v15921_v15  ;;  %v6122_v41 = vadd.f32 1.0, %v11873_v7  ;;  %v17506_v7 = vld [vmem:[#allocation53_spill] sm:$0xff] }
 0x90f   : > { %v7333_v18 = vpop.f32.mrf.mxu2  ;;  %v7382_v19 = vpop.f32.mrf.mxu3  ;;  %v6243_v12 = vmul.f32 0.5, %v6115_v48  ;;  %11874 = vtanh.f32 %v5874_v59 }
 0x910   : > { %11876 = vtanh.f32 %v5867_v11  ;;  %v5619_v29 = vmul.f32 0.044715, %v5491_v38  ;;  %v7334_v21 = vadd.f32 %v7333_v18, %v7285_v28  ;;  %v7237_v43 = vpop.f32.mrf.mxu0  ;;  %v6250_v59 = vmul.f32 0.5, %v6122_v41 }
 0x911   : > { %v7286_v35 = vpop.f32.mrf.mxu1  ;;  %v7238_v4 = vadd.f32 %v7237_v43, %v15912_v27  ;;  %v6371_v3 = vmul.f32 %v6243_v12, %v15873_v5 }
 0x912   : > { %v5747_v6 = vadd.f32 %v5619_v29, %v15921_v15  ;;  %v15939_v13 = vadd.f32 %v7382_v19, %v7334_v21  ;;  %v6378_v21 = vmul.f32 %v6250_v59, %v15878_v42 }
 0x913   : > { %v7287_v60 = vadd.f32 %v7286_v35, %v7238_v4  ;;  %v15941_v47 = vpack.c.bf16 %v6371_v3, %v6363_v1 }
 0x914   : > { %v5875_v40 = vmul.f32 0.7978846, %v5747_v6 }
 0x915   : > { %17505 = vst [vmem:[#allocation74_spill] sm:$0xff] %v15941_v47  ;;  %v11875_v11 = vpop.eup %11874 }
 0x916   : > { %v11877_v51 = vpop.eup %11876  ;;  %v6130_v28 = vadd.f32 1.0, %v11875_v11  ;;  %11878 = vtanh.f32 %v5875_v40 }
 0x917   : > { %v7335_v48 = vpop.f32.mrf.mxu2  ;;  %v7384_v38 = vpop.f32.mrf.mxu3  ;;  %v6123_v19 = vadd.f32 1.0, %v11877_v51 }
 0x918   : > { %v7336_v18 = vadd.f32 %v7335_v48, %v7287_v60  ;;  %v7240_v33 = vpop.f32.mrf.mxu0  ;;  %v6258_v5 = vmul.f32 0.5, %v6130_v28 }
 0x919   : > { %v7289_v57 = vpop.f32.mrf.mxu1  ;;  %v7241_v12 = vadd.f32 %v7240_v33, %v15912_v27  ;;  %v6251_v6 = vmul.f32 0.5, %v6123_v19 }
 0x91a   : > { %v15944_v29 = vadd.f32 %v7384_v38, %v7336_v18  ;;  %7435 = vmatmul.bf16.gmra.mxu0 %v17506_v7  ;;  %v6386_v43 = vmul.f32 %v6258_v5, %v15905_v36 }
 0x91b   : > { %v7290_v35 = vadd.f32 %v7289_v57, %v7241_v12  ;;  %7484 = vmatmul.bf16.gmra.mxu1 %v15163_v54  ;;  %v6379_v28 = vmul.f32 %v6251_v6, %v15900_v52 }
 0x91c   : > { %v11879_v4 = vpop.eup %11878  ;;  %7533 = vmatmul.bf16.gmra.mxu2 %v15657_v56  ;;  %7582 = vmatmul.bf16.gmra.mxu3 %v15683_v0  ;;  %v15952_v1 = vpack.c.bf16 %v6386_v43, %v6378_v21 }
 0x91d   : > { %v6131_v3 = vadd.f32 1.0, %v11879_v4  ;;  %v10432_v4 = vld [vmem:[%s12272_s13 + $0x178] sm:$0xf0] }
 0x91f   : > { %v7338_v41 = vpop.f32.mrf.mxu2  ;;  %v7387_v60 = vpop.f32.mrf.mxu3  ;;  %v6259_v40 = vmul.f32 0.5, %v6131_v3 }
 0x920   : > { %v7339_v11 = vadd.f32 %v7338_v41, %v7290_v35  ;;  %v7242_v51 = vpop.f32.mrf.mxu0  ;;  %v17507_v35 = vld [vmem:[#allocation59_spill] sm:$0xff] }
 0x921   : > { %v7291_v42 = vpop.f32.mrf.mxu1  ;;  %v7243_v36 = vadd.f32 %v7242_v51, %v15912_v27  ;;  %v6387_v59 = vmul.f32 %v6259_v40, %v15921_v15  ;;  %v11257_v15 = vld [vmem:[%s12272_s13 + $0x174] sm:$0xf] }
 0x922   : > { %v15957_v48 = vadd.f32 %v7387_v60, %v7339_v11  ;;  %v10435_v3 = vor.u32 %v11257_v15, %v10432_v4 }
 0x923   : > { %v7292_v38 = vadd.f32 %v7291_v42, %v7243_v36  ;;  %v15959_v18 = vpack.c.bf16 %v6387_v59, %v6379_v28  ;;  %v11225_v36 = vld [vmem:[%s12272_s13 + $0x74] sm:$0xf]  ;;  %v10304_v28 = vld [vmem:[%s12272_s13 + $0x78] sm:$0xf0] }
 0x924   : > { %7716 = vmatpush.bf16.msrb.mxu2 %v10435_v3  ;;  %v11273_v59 = vld [vmem:[%s12272_s13 + $0x1f4] sm:$0xf] }
 0x927   : > { %v7340_v33 = vpop.f32.mrf.mxu2  ;;  %v7389_v57 = vpop.f32.mrf.mxu3 }
 0x928   : > { %v7341_v5 = vadd.f32 %v7340_v33, %v7292_v38  ;;  %v7245_v12 = vpop.f32.mrf.mxu0  ;;  %v10307_v33 = vor.u32 %v11225_v36, %v10304_v28 }
 0x929   : > { %v7294_v19 = vpop.f32.mrf.mxu1  ;;  %v7246_v21 = vadd.f32 %v7245_v12, %v15912_v27  ;;  %v10368_v12 = vld [vmem:[%s12272_s13 + $0xf8] sm:$0xf0] }
 0x92a   : > { %v15962_v43 = vadd.f32 %v7389_v57, %v7341_v5  ;;  %7440 = vmatmul.bf16.gmra.mxu0 %v17507_v35  ;;  %v10496_v57 = vld [vmem:[%s12272_s13 + $0x1f8] sm:$0xf0]  ;;  %v11241_v5 = vld [vmem:[%s12272_s13 + $0xf4] sm:$0xf] }
 0x92b   : > { %v7295_v52 = vadd.f32 %v7294_v19, %v7246_v21  ;;  %7489 = vmatmul.bf16.gmra.mxu1 %v15242_v39  ;;  %v10499_v19 = vor.u32 %v11273_v59, %v10496_v57  ;;  %v10371_v21 = vor.u32 %v11241_v5, %v10368_v12  ;;  %7618 = vmatpush.bf16.msrb.mxu0 %v10307_v33 }
 0x92c   : > { %7538 = vmatmul.bf16.gmra.mxu2 %v15705_v24  ;;  %7587 = vmatmul.bf16.gmra.mxu3 %v15731_v16 }
 0x92d   : > { %7765 = vmatpush.bf16.msrb.mxu3 %v10499_v19  ;;  %7667 = vmatpush.bf16.msrb.mxu1 %v10371_v21  ;;  %v11223_v19 = vld [vmem:[%s12272_s13 + $0x64] sm:$0xf]  ;;  %v10296_v21 = vld [vmem:[%s12272_s13 + $0x68] sm:$0xf0] }
 0x92f   : > { %v7343_v6 = vpop.f32.mrf.mxu2  ;;  %v7392_v41 = vpop.f32.mrf.mxu3 }
 0x930   : > { %v7344_v60 = vadd.f32 %v7343_v6, %v7295_v52  ;;  %v7247_v40 = vpop.f32.mrf.mxu0 }
 0x931   : > { %v7296_v11 = vpop.f32.mrf.mxu1  ;;  %v7248_v51 = vadd.f32 %v7247_v40, %v15912_v27 }
 0x932   : > { %v15971_v42 = vadd.f32 %v7392_v41, %v7344_v60 }
 0x933   : > { %v7297_v38 = vadd.f32 %v7296_v11, %v7248_v51  ;;  %v11255_v11 = vld [vmem:[%s12272_s13 + $0x164] sm:$0xf]  ;;  %v10424_v51 = vld [vmem:[%s12272_s13 + $0x168] sm:$0xf0] }
 0x934   : > { %v10427_v36 = vor.u32 %v11255_v11, %v10424_v51 }
 0x936   : > { %7717 = vmatpush.bf16.msrb.mxu2 %v10427_v36 }
 0x937   : > { %v7345_v52 = vpop.f32.mrf.mxu2  ;;  %v7394_v15 = vpop.f32.mrf.mxu3 }
 0x938   : > { %v7346_v4 = vadd.f32 %v7345_v52, %v7297_v38  ;;  %v7250_v3 = vpop.f32.mrf.mxu0  ;;  %v11271_v52 = vld [vmem:[%s12272_s13 + $0x1e4] sm:$0xf] }
 0x939   : > { %v7299_v6 = vpop.f32.mrf.mxu1  ;;  %v7251_v41 = vadd.f32 %v7250_v3, %v15912_v27  ;;  %v10488_v3 = vld [vmem:[%s12272_s13 + $0x1e8] sm:$0xf0] }
 0x93a   : > { %v15980_v60 = vadd.f32 %v7394_v15, %v7346_v4  ;;  %7445 = vmatmul.bf16.gmra.mxu0 %v15297_v63  ;;  %v10299_v4 = vor.u32 %v11223_v19, %v10296_v21  ;;  %v10491_v11 = vor.u32 %v11271_v52, %v10488_v3  ;;  %v10416_v19 = vld [vmem:[%s12272_s13 + $0x158] sm:$0xf0] }
 0x93b   : > { %v7300_v40 = vadd.f32 %v7299_v6, %v7251_v41  ;;  %7494 = vmatmul.bf16.gmra.mxu1 %v15371_v20  ;;  %v11239_v6 = vld [vmem:[%s12272_s13 + $0xe4] sm:$0xf]  ;;  %v10360_v41 = vld [vmem:[%s12272_s13 + $0xe8] sm:$0xf0] }
 0x93c   : > { %7543 = vmatmul.bf16.gmra.mxu2 %v15753_v23  ;;  %7592 = vmatmul.bf16.gmra.mxu3 %v15785_v45  ;;  %v10363_v51 = vor.u32 %v11239_v6, %v10360_v41 }
 0x93d   : > { %7619 = vmatpush.bf16.msrb.mxu0 %v10299_v4  ;;  %7766 = vmatpush.bf16.msrb.mxu3 %v10491_v11 }
 0x93e   : > { %7668 = vmatpush.bf16.msrb.mxu1 %v10363_v51  ;;  %v11221_v51 = vld [vmem:[%s12272_s13 + $0x54] sm:$0xf] }
 0x93f   : > { %v7348_v28 = vpop.f32.mrf.mxu2  ;;  %v7397_v59 = vpop.f32.mrf.mxu3 }
 0x940   : > { %v7349_v38 = vadd.f32 %v7348_v28, %v7300_v40  ;;  %v7252_v33 = vpop.f32.mrf.mxu0 }
 0x941   : > { %v7301_v57 = vpop.f32.mrf.mxu1  ;;  %v7253_v5 = vadd.f32 %v7252_v33, %v15912_v27 }
 0x942   : > { %v15989_v12 = vadd.f32 %v7397_v59, %v7349_v38 }
 0x943   : > { %v7302_v15 = vadd.f32 %v7301_v57, %v7253_v5  ;;  %v11253_v5 = vld [vmem:[%s12272_s13 + $0x154] sm:$0xf] }
 0x944   : > { %v10419_v21 = vor.u32 %v11253_v5, %v10416_v19 }
 0x946   : > { %7718 = vmatpush.bf16.msrb.mxu2 %v10419_v21 }
 0x947   : > { %v7350_v40 = vpop.f32.mrf.mxu2  ;;  %v7399_v36 = vpop.f32.mrf.mxu3 }
 0x948   : > { %v7351_v28 = vadd.f32 %v7350_v40, %v7302_v15  ;;  %v7255_v59 = vpop.f32.mrf.mxu0  ;;  %v10288_v40 = vld [vmem:[%s12272_s13 + $0x58] sm:$0xf0] }
 0x949   : > { %v7304_v38 = vpop.f32.mrf.mxu1  ;;  %v7256_v33 = vadd.f32 %v7255_v59, %v15912_v27  ;;  %v10291_v59 = vor.u32 %v11221_v51, %v10288_v40  ;;  %v10280_v51 = vld [vmem:[%s12272_s13 + $0x48] sm:$0xf0]  ;;  %v11235_v40 = vld [vmem:[%s12272_s13 + $0xc4] sm:$0xf] }
 0x94a   : > { %v15998_v45 = vadd.f32 %v7399_v36, %v7351_v28  ;;  %7450 = vmatmul.bf16.gmra.mxu0 %v15385_v50  ;;  %v11269_v36 = vld [vmem:[%s12272_s13 + $0x1d4] sm:$0xf] }
 0x94b   : > { %v7305_v57 = vadd.f32 %v7304_v38, %v7256_v33  ;;  %7499 = vmatmul.bf16.gmra.mxu1 %v15401_v46  ;;  %v10480_v38 = vld [vmem:[%s12272_s13 + $0x1d8] sm:$0xf0]  ;;  %v11237_v33 = vld [vmem:[%s12272_s13 + $0xd4] sm:$0xf]  ;;  %7620 = vmatpush.bf16.msrb.mxu0 %v10291_v59  ;;  %v11251_v59 = vld [vmem:[%s12272_s13 + $0x144] sm:$0xf] }
 0x94c   : > { %7548 = vmatmul.bf16.gmra.mxu2 %v15870_v53  ;;  %7597 = vmatmul.bf16.gmra.mxu3 %v15892_v62  ;;  %v10352_v62 = vld [vmem:[%s12272_s13 + $0xd8] sm:$0xf0]  ;;  %v10483_v5 = vor.u32 %v11269_v36, %v10480_v38  ;;  %v10408_v38 = vld [vmem:[%s12272_s13 + $0x148] sm:$0xf0] }
 0x94d   : > { %v10355_v19 = vor.u32 %v11237_v33, %v10352_v62 }
 0x94e   : > { %7767 = vmatpush.bf16.msrb.mxu3 %v10483_v5  ;;  %v10411_v5 = vor.u32 %v11251_v59, %v10408_v38  ;;  %v11265_v59 = vld [vmem:[%s12272_s13 + $0x1b4] sm:$0xf] }
 0x94f   : > { %v7353_v52 = vpop.f32.mrf.mxu2  ;;  %v7402_v15 = vpop.f32.mrf.mxu3  ;;  %7669 = vmatpush.bf16.msrb.mxu1 %v10355_v19  ;;  %v11267_v19 = vld [vmem:[%s12272_s13 + $0x1c4] sm:$0xf] }
 0x950   : > { %v7354_v4 = vadd.f32 %v7353_v52, %v7305_v57  ;;  %v7257_v3 = vpop.f32.mrf.mxu0  ;;  %7719 = vmatpush.bf16.msrb.mxu2 %v10411_v5 }
 0x951   : > { %v7306_v6 = vpop.f32.mrf.mxu1  ;;  %v7258_v41 = vadd.f32 %v7257_v3, %v15912_v27 }
 0x952   : > { %v16007_v11 = vadd.f32 %v7402_v15, %v7354_v4 }
 0x953   : > { %v7307_v28 = vadd.f32 %v7306_v6, %v7258_v41  ;;  %v11219_v41 = vld [vmem:[%s12272_s13 + $0x44] sm:$0xf] }
 0x954   : > { %v10283_v36 = vor.u32 %v11219_v41, %v10280_v51 }
 0x956   : > { %7621 = vmatpush.bf16.msrb.mxu0 %v10283_v36 }
 0x957   : > { %v7355_v57 = vpop.f32.mrf.mxu2  ;;  %v7404_v21 = vpop.f32.mrf.mxu3 }
 0x958   : > { %v7356_v52 = vadd.f32 %v7355_v57, %v7307_v28  ;;  %v7260_v15 = vpop.f32.mrf.mxu0  ;;  %v10344_v28 = vld [vmem:[%s12272_s13 + $0xc8] sm:$0xf0] }
 0x959   : > { %v7309_v4 = vpop.f32.mrf.mxu1  ;;  %v7261_v3 = vadd.f32 %v7260_v15, %v15912_v27  ;;  %v10347_v33 = vor.u32 %v11235_v40, %v10344_v28  ;;  %v10472_v57 = vld [vmem:[%s12272_s13 + $0x1c8] sm:$0xf0]  ;;  %v10272_v15 = vld [vmem:[%s12272_s13 + $0x38] sm:$0xf0]  ;;  %v11249_v40 = vld [vmem:[%s12272_s13 + $0x134] sm:$0xf] }
 0x95a   : > { %v16016_v6 = vadd.f32 %v7404_v21, %v7356_v52  ;;  %7455 = vmatmul.bf16.gmra.mxu0 %v15438_v9  ;;  %v11217_v21 = vld [vmem:[%s12272_s13 + $0x34] sm:$0xf]  ;;  %v10475_v52 = vor.u32 %v11267_v19, %v10472_v57  ;;  %v10400_v28 = vld [vmem:[%s12272_s13 + $0x138] sm:$0xf0] }
 0x95b   : > { %v7310_v62 = vadd.f32 %v7309_v4, %v7261_v3  ;;  %7504 = vmatmul.bf16.gmra.mxu1 %v15454_v8  ;;  %v11233_v4 = vld [vmem:[%s12272_s13 + $0xb4] sm:$0xf]  ;;  %v10336_v3 = vld [vmem:[%s12272_s13 + $0xb8] sm:$0xf0]  ;;  %v10275_v41 = vor.u32 %v11217_v21, %v10272_v15  ;;  %v10403_v19 = vor.u32 %v11249_v40, %v10400_v28  ;;  %v10392_v40 = vld [vmem:[%s12272_s13 + $0x128] sm:$0xf0] }
 0x95c   : > { %7553 = vmatmul.bf16.gmra.mxu2 %v15897_v14  ;;  %7602 = vmatmul.bf16.gmra.mxu3 %v15914_v31  ;;  %v10339_v51 = vor.u32 %v11233_v4, %v10336_v3  ;;  %v10464_v57 = vld [vmem:[%s12272_s13 + $0x1b8] sm:$0xf0]  ;;  %v10328_v3 = vld [vmem:[%s12272_s13 + $0xa8] sm:$0xf0] }
 0x95d   : > { %7670 = vmatpush.bf16.msrb.mxu1 %v10347_v33  ;;  %7768 = vmatpush.bf16.msrb.mxu3 %v10475_v52  ;;  %v10467_v5 = vor.u32 %v11265_v59, %v10464_v57  ;;  %v11231_v52 = vld [vmem:[%s12272_s13 + $0xa4] sm:$0xf]  ;;  %v10456_v59 = vld [vmem:[%s12272_s13 + $0x1a8] sm:$0xf0]  ;;  %v10320_v57 = vld [vmem:[%s12272_s13 + $0x98] sm:$0xf0] }
 0x95e   : > { %7622 = vmatpush.bf16.msrb.mxu0 %v10275_v41  ;;  %7720 = vmatpush.bf16.msrb.mxu2 %v10403_v19  ;;  %v11263_v41 = vld [vmem:[%s12272_s13 + $0x1a4] sm:$0xf]  ;;  %v11229_v19 = vld [vmem:[%s12272_s13 + $0x94] sm:$0xf]  ;;  %v10384_v9 = vld [vmem:[%s12272_s13 + $0x118] sm:$0xf0] }
 0x95f   : > { %v7358_v14 = vpop.f32.mrf.mxu2  ;;  %v7407_v31 = vpop.f32.mrf.mxu3 }
 0x960   : > { %v7359_v38 = vadd.f32 %v7358_v14, %v7310_v62  ;;  %v7262_v8 = vpop.f32.mrf.mxu0  ;;  %v11215_v14 = vld [vmem:[%s12272_s13 + $0x24] sm:$0xf]  ;;  %v10264_v62 = vld [vmem:[%s12272_s13 + $0x28] sm:$0xf0] }
 0x961   : > { %v7311_v36 = vpop.f32.mrf.mxu1  ;;  %v7263_v33 = vadd.f32 %v7262_v8, %v15912_v27  ;;  %7671 = vmatpush.bf16.msrb.mxu1 %v10339_v51  ;;  %7769 = vmatpush.bf16.msrb.mxu3 %v10467_v5  ;;  %v10267_v4 = vor.u32 %v11215_v14, %v10264_v62  ;;  %v11247_v8 = vld [vmem:[%s12272_s13 + $0x124] sm:$0xf]  ;;  %v11213_v51 = vld [vmem:[%s12272_s13 + $0x14] sm:$0xf] }
 0x962   : > { %v16039_v21 = vadd.f32 %v7407_v31, %v7359_v38  ;;  %v10331_v31 = vor.u32 %v11231_v52, %v10328_v3  ;;  %v10395_v28 = vor.u32 %v11247_v8, %v10392_v40  ;;  %v10459_v38 = vor.u32 %v11263_v41, %v10456_v59  ;;  %v11245_v62 = vld [vmem:[%s12272_s13 + $0x114] sm:$0xf] }
 0x963   : > { %v7312_v15 = vadd.f32 %v7311_v36, %v7263_v33  ;;  %7623 = vmatpush.bf16.msrb.mxu0 %v10267_v4  ;;  %v10256_v36 = vld [vmem:[%s12272_s13 + $0x18] sm:$0xf0]  ;;  %v11261_v52 = vld [vmem:[%s12272_s13 + $0x194] sm:$0xf]  ;;  %v10323_v59 = vor.u32 %v11229_v19, %v10320_v57  ;;  %v11243_v57 = vld [vmem:[%s12272_s13 + $0x104] sm:$0xf] }
 0x964   : > { %7721 = vmatpush.bf16.msrb.mxu2 %v10395_v28  ;;  %v10259_v14 = vor.u32 %v11213_v51, %v10256_v36  ;;  %v10448_v4 = vld [vmem:[%s12272_s13 + $0x198] sm:$0xf0] }
 0x965   : > { %7672 = vmatpush.bf16.msrb.mxu1 %v10331_v31  ;;  %7770 = vmatpush.bf16.msrb.mxu3 %v10459_v38  ;;  %v10387_v31 = vor.u32 %v11245_v62, %v10384_v9  ;;  %v10451_v51 = vor.u32 %v11261_v52, %v10448_v4  ;;  %v10248_v38 = vld [vmem:[%s12272_s13 + $0x8] sm:$0xf0] }
 0x966   : > { %v10312_v9 = vld [vmem:[%s12272_s13 + $0x88] sm:$0xf0] }
 0x967   : > { %v7360_v33 = vpop.f32.mrf.mxu2  ;;  %v7409_v5 = vpop.f32.mrf.mxu3  ;;  %7624 = vmatpush.bf16.msrb.mxu0 %v10259_v14 }
 0x968   : > { %v7361_v3 = vadd.f32 %v7360_v33, %v7312_v15  ;;  %v7265_v8 = vpop.f32.mrf.mxu0  ;;  %v11211_v15 = vld [vmem:[%s12272_s13 + $0x4] sm:$0xf]  ;;  %7722 = vmatpush.bf16.msrb.mxu2 %v10387_v31 }
 0x969   : > { %v7314_v40 = vpop.f32.mrf.mxu1  ;;  %v7266_v41 = vadd.f32 %v7265_v8, %v15912_v27  ;;  %v11227_v33 = vld [vmem:[%s12272_s13 + $0x84] sm:$0xf]  ;;  %v10251_v19 = vor.u32 %v11211_v15, %v10248_v38  ;;  %7673 = vmatpush.bf16.msrb.mxu1 %v10323_v59  ;;  %v10440_v8 = vld [vmem:[%s12272_s13 + $0x188] sm:$0xf0]  ;;  %7771 = vmatpush.bf16.msrb.mxu3 %v10451_v51 }
 0x96a   : > { %v16058_v28 = vadd.f32 %v7409_v5, %v7361_v3  ;;  %7460 = vmatmul.bf16.gmra.mxu0 %v15497_v34  ;;  %v10376_v5 = vld [vmem:[%s12272_s13 + $0x108] sm:$0xf0]  ;;  %v10315_v62 = vor.u32 %v11227_v33, %v10312_v9  ;;  %v11259_v3 = vld [vmem:[%s12272_s13 + $0x184] sm:$0xf] }
 0x96b   : > { %v7315_v36 = vadd.f32 %v7314_v40, %v7266_v41  ;;  %7509 = vmatmul.bf16.gmra.mxu1 %v15521_v26  ;;  %v10379_v52 = vor.u32 %v11243_v57, %v10376_v5  ;;  %v10443_v40 = vor.u32 %v11259_v3, %v10440_v8  ;;  %7625 = vmatpush.bf16.msrb.mxu0 %v10251_v19 }
 0x96c   : > { %7558 = vmatmul.bf16.gmra.mxu2 %v15932_v32  ;;  %7607 = vmatmul.bf16.gmra.mxu3 %v15941_v47 }
 0x96d   : > { %7674 = vmatpush.bf16.msrb.mxu1 %v10315_v62  ;;  %7723 = vmatpush.bf16.msrb.mxu2 %v10379_v52 }
 0x96e   : > { %7772 = vmatpush.bf16.msrb.mxu3 %v10443_v40 }
 0x96f   : > { %v7363_v14 = vpop.f32.mrf.mxu2  ;;  %v7412_v4 = vpop.f32.mrf.mxu3 }
 0x970   : > { %v7364_v41 = vadd.f32 %v7363_v14, %v7315_v36  ;;  %v7267_v26 = vpop.f32.mrf.mxu0 }
 0x971   : > { %v7316_v32 = vpop.f32.mrf.mxu1  ;;  %v7268_v47 = vadd.f32 %v7267_v26, %v15912_v27 }
 0x972   : > { %v16073_v15 = vadd.f32 %v7412_v4, %v7364_v41 }
 0x973   : > { %v7317_v59 = vadd.f32 %v7316_v32, %v7268_v47 }
 0x977   : > { %v7365_v31 = vpop.f32.mrf.mxu2  ;;  %v7414_v38 = vpop.f32.mrf.mxu3 }
 0x978   : > { %v7366_v33 = vadd.f32 %v7365_v31, %v7317_v59  ;;  %v7270_v9 = vpop.f32.mrf.mxu0 }
 0x979   : > { %v7319_v51 = vpop.f32.mrf.mxu1  ;;  %v7271_v57 = vadd.f32 %v7270_v9, %v15912_v27  ;;  %v17508_v9 = vld [vmem:[#allocation76_spill] sm:$0xff] }
 0x97a   : > { %v16076_v5 = vadd.f32 %v7414_v38, %v7366_v33  ;;  %7465 = vmatmul.bf16.gmra.mxu0 %v15557_v22 }
 0x97b   : > { %v7320_v36 = vadd.f32 %v7319_v51, %v7271_v57  ;;  %7514 = vmatmul.bf16.gmra.mxu1 %v15574_v25 }
 0x97c   : > { %7563 = vmatmul.bf16.gmra.mxu2 %v15952_v1  ;;  %7612 = vmatmul.bf16.gmra.mxu3 %v15959_v18 }
 0x97f   : > { %v7368_v26 = vpop.f32.mrf.mxu2  ;;  %v7417_v32 = vpop.f32.mrf.mxu3 }
 0x980   : > { %v7369_v47 = vadd.f32 %v7368_v26, %v7320_v36  ;;  %v7272_v19 = vpop.f32.mrf.mxu0 }
 0x981   : > { %v7321_v62 = vpop.f32.mrf.mxu1  ;;  %v7273_v52 = vadd.f32 %v7272_v19, %v15912_v27  ;;  %v17509_v27 = vld [vmem:[#allocation77_spill] sm:$0xff] }
 0x982   : > { %v16083_v3 = vadd.f32 %v7417_v32, %v7369_v47 }
 0x983   : > { %v7322_v8 = vadd.f32 %v7321_v62, %v7273_v52 }
 0x987   : > { %v7370_v40 = vpop.f32.mrf.mxu2  ;;  %v7419_v14 = vpop.f32.mrf.mxu3 }
 0x988   : > { %v7371_v4 = vadd.f32 %v7370_v40, %v7322_v8  ;;  %v7431_v41 = vpop.f32.mrf.mxu0 }
 0x989   : > { %v7480_v59 = vpop.f32.mrf.mxu1  ;;  %v7432_v31 = vadd.f32 %v7431_v41, %v15939_v13 }
 0x98a   : > { %v16086_v38 = vadd.f32 %v7419_v14, %v7371_v4  ;;  %7626 = vmatmul.bf16.vlgmr.msrb.gmra.mxu0 %v15244_v55  ;;  %v17510_v4 = vld [vmem:[#allocation62_spill] sm:$0xff] }
 0x98b   : > { %v7481_v33 = vadd.f32 %v7480_v59, %v7432_v31  ;;  %7675 = vmatmul.bf16.vlgmr.msrb.gmra.mxu1 %v15287_v2  ;;  %v17511_v59 = vld [vmem:[#allocation48_spill] sm:$0xff]  ;;  %v17512_v31 = vld [vmem:[#allocation78_spill] sm:$0xff] }
 0x98c   : > { %7724 = vmatmul.bf16.vlgmr.msrb.gmra.mxu2 %v17508_v9  ;;  %7773 = vmatmul.bf16.vlgmr.msrb.gmra.mxu3 %v17509_v27 }
 0x98f   : > { %v7529_v51 = vpop.f32.mrf.mxu2  ;;  %v7578_v57 = vpop.f32.mrf.mxu3 }
 0x990   : > { %v7530_v36 = vadd.f32 %v7529_v51, %v7481_v33  ;;  %v7433_v26 = vpop.f32.mrf.mxu0 }
 0x991   : > { %v7482_v32 = vpop.f32.mrf.mxu1  ;;  %v7434_v47 = vadd.f32 %v7433_v26, %v15944_v29  ;;  %v17513_v29 = vld [vmem:[#allocation79_spill] sm:$0xff] }
 0x992   : > { %v16093_v19 = vadd.f32 %v7578_v57, %v7530_v36 }
 0x993   : > { %v7483_v13 = vadd.f32 %v7482_v32, %v7434_v47 }
 0x997   : > { %v7531_v62 = vpop.f32.mrf.mxu2  ;;  %v7580_v52 = vpop.f32.mrf.mxu3 }
 0x998   : > { %v7532_v55 = vadd.f32 %v7531_v62, %v7483_v13  ;;  %v7436_v8 = vpop.f32.mrf.mxu0 }
 0x999   : > { %v7485_v40 = vpop.f32.mrf.mxu1  ;;  %v7437_v2 = vadd.f32 %v7436_v8, %v15957_v48 }
 0x99a   : > { %v16096_v14 = vadd.f32 %v7580_v52, %v7532_v55  ;;  %7631 = vmatmul.bf16.gmra.mxu0 %v17510_v4  ;;  %v17515_v4 = vld [vmem:[#allocation64_spill] sm:$0xff] }
 0x99b   : > { %v7486_v41 = vadd.f32 %v7485_v40, %v7437_v2  ;;  %7680 = vmatmul.bf16.gmra.mxu1 %v17511_v59  ;;  %v17514_v40 = vld [vmem:[#allocation42_spill] sm:$0xff]  ;;  %v11321_v59 = vld [vmem:[%s12272_s13 + $0x374] sm:$0xf] }
 0x99c   : > { %7729 = vmatmul.bf16.gmra.mxu2 %v17512_v31  ;;  %7778 = vmatmul.bf16.gmra.mxu3 %v17513_v29  ;;  %v10688_v31 = vld [vmem:[%s12272_s13 + $0x378] sm:$0xf0] }
 0x99d   : > { %v10691_v29 = vor.u32 %v11321_v59, %v10688_v31 }
 0x99f   : > { %v7534_v33 = vpop.f32.mrf.mxu2  ;;  %v7583_v9 = vpop.f32.mrf.mxu3  ;;  %7912 = vmatpush.bf16.msra.mxu2 %v10691_v29 }
 0x9a0   : > { %v7535_v27 = vadd.f32 %v7534_v33, %v7486_v41  ;;  %v7438_v51 = vpop.f32.mrf.mxu0  ;;  %v17517_v41 = vld [vmem:[#allocation81_spill] sm:$0xff] }
 0x9a1   : > { %v7487_v57 = vpop.f32.mrf.mxu1  ;;  %v7439_v36 = vadd.f32 %v7438_v51, %v15962_v43  ;;  %v17516_v43 = vld [vmem:[#allocation80_spill] sm:$0xff] }
 0x9a2   : > { %v16103_v48 = vadd.f32 %v7583_v9, %v7535_v27 }
 0x9a3   : > { %v7488_v26 = vadd.f32 %v7487_v57, %v7439_v36 }
 0x9a7   : > { %v7536_v32 = vpop.f32.mrf.mxu2  ;;  %v7585_v47 = vpop.f32.mrf.mxu3 }
 0x9a8   : > { %v7537_v13 = vadd.f32 %v7536_v32, %v7488_v26  ;;  %v7441_v62 = vpop.f32.mrf.mxu0  ;;  %v11289_v32 = vld [vmem:[%s12272_s13 + $0x274] sm:$0xf] }
 0x9a9   : > { %v7490_v52 = vpop.f32.mrf.mxu1  ;;  %v7442_v55 = vadd.f32 %v7441_v62, %v15971_v42 }
 0x9aa   : > { %v16106_v8 = vadd.f32 %v7585_v47, %v7537_v13  ;;  %7636 = vmatmul.bf16.gmra.mxu0 %v17514_v40  ;;  %v10560_v47 = vld [vmem:[%s12272_s13 + $0x278] sm:$0xf0]  ;;  %v11337_v13 = vld [vmem:[%s12272_s13 + $0x3f4] sm:$0xf] }
 0x9ab   : > { %v7491_v2 = vadd.f32 %v7490_v52, %v7442_v55  ;;  %7685 = vmatmul.bf16.gmra.mxu1 %v17515_v4  ;;  %v10563_v62 = vor.u32 %v11289_v32, %v10560_v47  ;;  %v10752_v52 = vld [vmem:[%s12272_s13 + $0x3f8] sm:$0xf0]  ;;  %v11305_v55 = vld [vmem:[%s12272_s13 + $0x2f4] sm:$0xf]  ;;  %v10680_v32 = vld [vmem:[%s12272_s13 + $0x368] sm:$0xf0] }
 0x9ac   : > { %7734 = vmatmul.bf16.gmra.mxu2 %v17516_v43  ;;  %7783 = vmatmul.bf16.gmra.mxu3 %v17517_v41  ;;  %v10624_v40 = vld [vmem:[%s12272_s13 + $0x2f8] sm:$0xf0]  ;;  %v10755_v4 = vor.u32 %v11337_v13, %v10752_v52 }
 0x9ad   : > { %v10627_v43 = vor.u32 %v11305_v55, %v10624_v40  ;;  %7814 = vmatpush.bf16.msra.mxu0 %v10563_v62 }
 0x9ae   : > { %7961 = vmatpush.bf16.msra.mxu3 %v10755_v4 }
 0x9af   : > { %v7539_v42 = vpop.f32.mrf.mxu2  ;;  %v7588_v33 = vpop.f32.mrf.mxu3  ;;  %7863 = vmatpush.bf16.msra.mxu1 %v10627_v43 }
 0x9b0   : > { %v7540_v9 = vadd.f32 %v7539_v42, %v7491_v2  ;;  %v7443_v27 = vpop.f32.mrf.mxu0 }
 0x9b1   : > { %v7492_v51 = vpop.f32.mrf.mxu1  ;;  %v7444_v57 = vadd.f32 %v7443_v27, %v15980_v60  ;;  %v17519_v27 = vld [vmem:[#allocation63_spill] sm:$0xff] }
 0x9b2   : > { %v16115_v36 = vadd.f32 %v7588_v33, %v7540_v9  ;;  %v17518_v33 = vld [vmem:[#allocation65_spill] sm:$0xff] }
 0x9b3   : > { %v7493_v26 = vadd.f32 %v7492_v51, %v7444_v57  ;;  %v17520_v51 = vld [vmem:[#allocation82_spill] sm:$0xff]  ;;  %v17521_v57 = vld [vmem:[#allocation83_spill] sm:$0xff] }
 0x9b7   : > { %v7541_v41 = vpop.f32.mrf.mxu2  ;;  %v7590_v2 = vpop.f32.mrf.mxu3 }
 0x9b8   : > { %v7542_v59 = vadd.f32 %v7541_v41, %v7493_v26  ;;  %v7446_v31 = vpop.f32.mrf.mxu0  ;;  %v11319_v26 = vld [vmem:[%s12272_s13 + $0x364] sm:$0xf] }
 0x9b9   : > { %v7495_v60 = vpop.f32.mrf.mxu1  ;;  %v7447_v29 = vadd.f32 %v7446_v31, %v15989_v12  ;;  %v10683_v47 = vor.u32 %v11319_v26, %v10680_v32  ;;  %v11287_v41 = vld [vmem:[%s12272_s13 + $0x264] sm:$0xf] }
 0x9ba   : > { %v16124_v42 = vadd.f32 %v7590_v2, %v7542_v59  ;;  %7641 = vmatmul.bf16.gmra.mxu0 %v17518_v33  ;;  %v10552_v2 = vld [vmem:[%s12272_s13 + $0x268] sm:$0xf0]  ;;  %v11335_v59 = vld [vmem:[%s12272_s13 + $0x3e4] sm:$0xf] }
 0x9bb   : > { %v7496_v9 = vadd.f32 %v7495_v60, %v7447_v29  ;;  %7690 = vmatmul.bf16.gmra.mxu1 %v17519_v27  ;;  %7913 = vmatpush.bf16.msra.mxu2 %v10683_v47  ;;  %v10555_v31 = vor.u32 %v11287_v41, %v10552_v2  ;;  %v10744_v60 = vld [vmem:[%s12272_s13 + $0x3e8] sm:$0xf0]  ;;  %v11303_v29 = vld [vmem:[%s12272_s13 + $0x2e4] sm:$0xf]  ;;  %v10672_v41 = vld [vmem:[%s12272_s13 + $0x358] sm:$0xf0] }
 0x9bc   : > { %7739 = vmatmul.bf16.gmra.mxu2 %v17520_v51  ;;  %7788 = vmatmul.bf16.gmra.mxu3 %v17521_v57  ;;  %v10616_v33 = vld [vmem:[%s12272_s13 + $0x2e8] sm:$0xf0]  ;;  %v10747_v27 = vor.u32 %v11335_v59, %v10744_v60 }
 0x9bd   : > { %v10619_v51 = vor.u32 %v11303_v29, %v10616_v33  ;;  %7815 = vmatpush.bf16.msra.mxu0 %v10555_v31 }
 0x9be   : > { %7962 = vmatpush.bf16.msra.mxu3 %v10747_v27 }
 0x9bf   : > { %v7544_v12 = vpop.f32.mrf.mxu2  ;;  %v7593_v13 = vpop.f32.mrf.mxu3  ;;  %7864 = vmatpush.bf16.msra.mxu1 %v10619_v51 }
 0x9c0   : > { %v7545_v62 = vadd.f32 %v7544_v12, %v7496_v9  ;;  %v7448_v52 = vpop.f32.mrf.mxu0 }
 0x9c1   : > { %v7497_v55 = vpop.f32.mrf.mxu1  ;;  %v7449_v40 = vadd.f32 %v7448_v52, %v15998_v45  ;;  %v17523_v52 = vld [vmem:[#allocation69_spill] sm:$0xff] }
 0x9c2   : > { %v16133_v4 = vadd.f32 %v7593_v13, %v7545_v62  ;;  %v17522_v13 = vld [vmem:[#allocation68_spill] sm:$0xff] }
 0x9c3   : > { %v7498_v43 = vadd.f32 %v7497_v55, %v7449_v40  ;;  %v17524_v55 = vld [vmem:[#allocation84_spill] sm:$0xff]  ;;  %v17525_v40 = vld [vmem:[#allocation85_spill] sm:$0xff] }
 0x9c7   : > { %v7546_v57 = vpop.f32.mrf.mxu2  ;;  %v7595_v9 = vpop.f32.mrf.mxu3 }
 0x9c8   : > { %v7547_v26 = vadd.f32 %v7546_v57, %v7498_v43  ;;  %v7451_v32 = vpop.f32.mrf.mxu0  ;;  %v11317_v43 = vld [vmem:[%s12272_s13 + $0x354] sm:$0xf] }
 0x9c9   : > { %v7500_v45 = vpop.f32.mrf.mxu1  ;;  %v7452_v47 = vadd.f32 %v7451_v32, %v16007_v11  ;;  %v10675_v2 = vor.u32 %v11317_v43, %v10672_v41  ;;  %v11285_v57 = vld [vmem:[%s12272_s13 + $0x254] sm:$0xf] }
 0x9ca   : > { %v16142_v12 = vadd.f32 %v7595_v9, %v7547_v26  ;;  %7646 = vmatmul.bf16.gmra.mxu0 %v17522_v13  ;;  %v10544_v9 = vld [vmem:[%s12272_s13 + $0x258] sm:$0xf0]  ;;  %v11333_v26 = vld [vmem:[%s12272_s13 + $0x3d4] sm:$0xf] }
 0x9cb   : > { %v7501_v62 = vadd.f32 %v7500_v45, %v7452_v47  ;;  %7695 = vmatmul.bf16.gmra.mxu1 %v17523_v52  ;;  %7914 = vmatpush.bf16.msra.mxu2 %v10675_v2  ;;  %v10547_v32 = vor.u32 %v11285_v57, %v10544_v9  ;;  %v10736_v45 = vld [vmem:[%s12272_s13 + $0x3d8] sm:$0xf0]  ;;  %v11301_v47 = vld [vmem:[%s12272_s13 + $0x2d4] sm:$0xf]  ;;  %v17529_v9 = vld [vmem:[#allocation87_spill] sm:$0xff] }
 0x9cc   : > { %7744 = vmatmul.bf16.gmra.mxu2 %v17524_v55  ;;  %7793 = vmatmul.bf16.gmra.mxu3 %v17525_v40  ;;  %v10608_v13 = vld [vmem:[%s12272_s13 + $0x2d8] sm:$0xf0]  ;;  %v10739_v52 = vor.u32 %v11333_v26, %v10736_v45  ;;  %v10600_v26 = vld [vmem:[%s12272_s13 + $0x2c8] sm:$0xf0] }
 0x9cd   : > { %v10611_v55 = vor.u32 %v11301_v47, %v10608_v13  ;;  %7816 = vmatpush.bf16.msra.mxu0 %v10547_v32  ;;  %v17528_v57 = vld [vmem:[#allocation86_spill] sm:$0xff]  ;;  %v11315_v32 = vld [vmem:[%s12272_s13 + $0x344] sm:$0xf]  ;;  %v10664_v45 = vld [vmem:[%s12272_s13 + $0x348] sm:$0xf0] }
 0x9ce   : > { %7963 = vmatpush.bf16.msra.mxu3 %v10739_v52  ;;  %v10667_v13 = vor.u32 %v11315_v32, %v10664_v45  ;;  %v11331_v52 = vld [vmem:[%s12272_s13 + $0x3c4] sm:$0xf]  ;;  %v10720_v45 = vld [vmem:[%s12272_s13 + $0x3b8] sm:$0xf0] }
 0x9cf   : > { %v7549_v11 = vpop.f32.mrf.mxu2  ;;  %v7598_v59 = vpop.f32.mrf.mxu3  ;;  %7865 = vmatpush.bf16.msra.mxu1 %v10611_v55  ;;  %v10728_v55 = vld [vmem:[%s12272_s13 + $0x3c8] sm:$0xf0] }
 0x9d0   : > { %v7550_v31 = vadd.f32 %v7549_v11, %v7501_v62  ;;  %v7453_v60 = vpop.f32.mrf.mxu0  ;;  %7915 = vmatpush.bf16.msra.mxu2 %v10667_v13 }
 0x9d1   : > { %v7502_v29 = vpop.f32.mrf.mxu1  ;;  %v7454_v33 = vadd.f32 %v7453_v60, %v16016_v6  ;;  %v17527_v60 = vld [vmem:[#allocation71_spill] sm:$0xff] }
 0x9d2   : > { %v16151_v27 = vadd.f32 %v7598_v59, %v7550_v31  ;;  %v17526_v59 = vld [vmem:[#allocation70_spill] sm:$0xff] }
 0x9d3   : > { %v7503_v51 = vadd.f32 %v7502_v29, %v7454_v33  ;;  %v11283_v29 = vld [vmem:[%s12272_s13 + $0x244] sm:$0xf]  ;;  %v10536_v33 = vld [vmem:[%s12272_s13 + $0x248] sm:$0xf0] }
 0x9d7   : > { %v7551_v62 = vpop.f32.mrf.mxu2  ;;  %v7600_v40 = vpop.f32.mrf.mxu3 }
 0x9d8   : > { %v7552_v43 = vadd.f32 %v7551_v62, %v7503_v51  ;;  %v7456_v6 = vpop.f32.mrf.mxu0  ;;  %v11299_v51 = vld [vmem:[%s12272_s13 + $0x2c4] sm:$0xf]  ;;  %v11281_v62 = vld [vmem:[%s12272_s13 + $0x234] sm:$0xf] }
 0x9d9   : > { %v7505_v41 = vpop.f32.mrf.mxu1  ;;  %v7457_v2 = vadd.f32 %v7456_v6, %v16039_v21  ;;  %v10539_v21 = vor.u32 %v11283_v29, %v10536_v33  ;;  %v10603_v47 = vor.u32 %v11299_v51, %v10600_v26  ;;  %v11297_v6 = vld [vmem:[%s12272_s13 + $0x2b4] sm:$0xf]  ;;  %v10656_v51 = vld [vmem:[%s12272_s13 + $0x338] sm:$0xf0] }
 0x9da   : > { %v16160_v11 = vadd.f32 %v7600_v40, %v7552_v43  ;;  %7651 = vmatmul.bf16.gmra.mxu0 %v17526_v59  ;;  %v10731_v40 = vor.u32 %v11331_v52, %v10728_v55  ;;  %v10528_v43 = vld [vmem:[%s12272_s13 + $0x238] sm:$0xf0]  ;;  %v11313_v33 = vld [vmem:[%s12272_s13 + $0x334] sm:$0xf] }
 0x9db   : > { %v7506_v31 = vadd.f32 %v7505_v41, %v7457_v2  ;;  %7700 = vmatmul.bf16.gmra.mxu1 %v17527_v60  ;;  %7817 = vmatpush.bf16.msra.mxu0 %v10539_v21  ;;  %v10592_v41 = vld [vmem:[%s12272_s13 + $0x2b8] sm:$0xf0]  ;;  %v10531_v60 = vor.u32 %v11281_v62, %v10528_v43  ;;  %v10659_v32 = vor.u32 %v11313_v33, %v10656_v51  ;;  %v10520_v62 = vld [vmem:[%s12272_s13 + $0x228] sm:$0xf0]  ;;  %v11327_v33 = vld [vmem:[%s12272_s13 + $0x3a4] sm:$0xf] }
 0x9dc   : > { %7749 = vmatmul.bf16.gmra.mxu2 %v17528_v57  ;;  %7798 = vmatmul.bf16.gmra.mxu3 %v17529_v9  ;;  %v10595_v29 = vor.u32 %v11297_v6, %v10592_v41  ;;  %v11329_v57 = vld [vmem:[%s12272_s13 + $0x3b4] sm:$0xf]  ;;  %v10584_v6 = vld [vmem:[%s12272_s13 + $0x2a8] sm:$0xf0] }
 0x9dd   : > { %7866 = vmatpush.bf16.msra.mxu1 %v10603_v47  ;;  %7964 = vmatpush.bf16.msra.mxu3 %v10731_v40  ;;  %v10723_v13 = vor.u32 %v11329_v57, %v10720_v45  ;;  %v11295_v40 = vld [vmem:[%s12272_s13 + $0x2a4] sm:$0xf]  ;;  %v10648_v41 = vld [vmem:[%s12272_s13 + $0x328] sm:$0xf0]  ;;  %v11277_v51 = vld [vmem:[%s12272_s13 + $0x214] sm:$0xf] }
 0x9de   : > { %7916 = vmatpush.bf16.msra.mxu2 %v10659_v32  ;;  %v10576_v32 = vld [vmem:[%s12272_s13 + $0x298] sm:$0xf0] }
 0x9df   : > { %v7554_v2 = vpop.f32.mrf.mxu2  ;;  %v7603_v59 = vpop.f32.mrf.mxu3  ;;  %7818 = vmatpush.bf16.msra.mxu0 %v10531_v60  ;;  %v10712_v60 = vld [vmem:[%s12272_s13 + $0x3a8] sm:$0xf0] }
 0x9e0   : > { %v7555_v9 = vadd.f32 %v7554_v2, %v7506_v31  ;;  %v7458_v26 = vpop.f32.mrf.mxu0  ;;  %v11279_v31 = vld [vmem:[%s12272_s13 + $0x224] sm:$0xf]  ;;  %v10587_v2 = vor.u32 %v11295_v40, %v10584_v6  ;;  %v10640_v40 = vld [vmem:[%s12272_s13 + $0x318] sm:$0xf0]  ;;  %v11325_v6 = vld [vmem:[%s12272_s13 + $0x394] sm:$0xf] }
 0x9e1   : > { %v7507_v21 = vpop.f32.mrf.mxu1  ;;  %v7459_v47 = vadd.f32 %v7458_v26, %v16058_v28  ;;  %7867 = vmatpush.bf16.msra.mxu1 %v10595_v29  ;;  %7965 = vmatpush.bf16.msra.mxu3 %v10723_v13  ;;  %v10523_v43 = vor.u32 %v11279_v31, %v10520_v62  ;;  %v11311_v28 = vld [vmem:[%s12272_s13 + $0x324] sm:$0xf]  ;;  %v10512_v26 = vld [vmem:[%s12272_s13 + $0x218] sm:$0xf0]  ;;  %v11309_v62 = vld [vmem:[%s12272_s13 + $0x314] sm:$0xf] }
 0x9e2   : > { %v16183_v52 = vadd.f32 %v7603_v59, %v7555_v9  ;;  %v10651_v59 = vor.u32 %v11311_v28, %v10648_v41  ;;  %v10715_v9 = vor.u32 %v11327_v33, %v10712_v60  ;;  %v10515_v31 = vor.u32 %v11277_v51, %v10512_v26  ;;  %v17531_v51 = vld [vmem:[#allocation73_spill] sm:$0xff]  ;;  %v17532_v26 = vld [vmem:[#allocation88_spill] sm:$0xff] }
 0x9e3   : > { %v7508_v55 = vadd.f32 %v7507_v21, %v7459_v47  ;;  %7819 = vmatpush.bf16.msra.mxu0 %v10523_v43  ;;  %v11293_v21 = vld [vmem:[%s12272_s13 + $0x294] sm:$0xf]  ;;  %v10643_v41 = vor.u32 %v11309_v62, %v10640_v40  ;;  %v11323_v40 = vld [vmem:[%s12272_s13 + $0x384] sm:$0xf] }
 0x9e4   : > { %7917 = vmatpush.bf16.msra.mxu2 %v10651_v59  ;;  %v10579_v43 = vor.u32 %v11293_v21, %v10576_v32  ;;  %v17533_v21 = vld [vmem:[#allocation89_spill] sm:$0xff] }
 0x9e5   : > { %7868 = vmatpush.bf16.msra.mxu1 %v10587_v2  ;;  %7966 = vmatpush.bf16.msra.mxu3 %v10715_v9  ;;  %v17530_v2 = vld [vmem:[#allocation72_spill] sm:$0xff]  ;;  %v11291_v9 = vld [vmem:[%s12272_s13 + $0x284] sm:$0xf] }
 0x9e7   : > { %v7556_v29 = vpop.f32.mrf.mxu2  ;;  %v7605_v57 = vpop.f32.mrf.mxu3  ;;  %7820 = vmatpush.bf16.msra.mxu0 %v10515_v31 }
 0x9e8   : > { %v7557_v45 = vadd.f32 %v7556_v29, %v7508_v55  ;;  %v7461_v47 = vpop.f32.mrf.mxu0  ;;  %v10704_v55 = vld [vmem:[%s12272_s13 + $0x398] sm:$0xf0]  ;;  %v11275_v29 = vld [vmem:[%s12272_s13 + $0x204] sm:$0xf]  ;;  %7918 = vmatpush.bf16.msra.mxu2 %v10643_v41 }
 0x9e9   : > { %v7510_v13 = vpop.f32.mrf.mxu1  ;;  %v7462_v28 = vadd.f32 %v7461_v47, %v16073_v15  ;;  %v10707_v59 = vor.u32 %v11325_v6, %v10704_v55  ;;  %v10504_v15 = vld [vmem:[%s12272_s13 + $0x208] sm:$0xf0]  ;;  %7869 = vmatpush.bf16.msra.mxu1 %v10579_v43 }
 0x9ea   : > { %v16202_v33 = vadd.f32 %v7605_v57, %v7557_v45  ;;  %7656 = vmatmul.bf16.gmra.mxu0 %v17530_v2  ;;  %v10507_v32 = vor.u32 %v11275_v29, %v10504_v15  ;;  %v10568_v47 = vld [vmem:[%s12272_s13 + $0x288] sm:$0xf0]  ;;  %v11307_v57 = vld [vmem:[%s12272_s13 + $0x304] sm:$0xf] }
 0x9eb   : > { %v7511_v60 = vadd.f32 %v7510_v13, %v7462_v28  ;;  %7705 = vmatmul.bf16.gmra.mxu1 %v17531_v51  ;;  %v10632_v45 = vld [vmem:[%s12272_s13 + $0x308] sm:$0xf0]  ;;  %v10571_v62 = vor.u32 %v11291_v9, %v10568_v47  ;;  %7967 = vmatpush.bf16.msra.mxu3 %v10707_v59 }
 0x9ec   : > { %7754 = vmatmul.bf16.gmra.mxu2 %v17532_v26  ;;  %7803 = vmatmul.bf16.gmra.mxu3 %v17533_v21  ;;  %v10635_v13 = vor.u32 %v11307_v57, %v10632_v45  ;;  %v10696_v6 = vld [vmem:[%s12272_s13 + $0x388] sm:$0xf0] }
 0x9ed   : > { %v10699_v28 = vor.u32 %v11323_v40, %v10696_v6  ;;  %7821 = vmatpush.bf16.msra.mxu0 %v10507_v32  ;;  %7870 = vmatpush.bf16.msra.mxu1 %v10571_v62 }
 0x9ee   : > { %7919 = vmatpush.bf16.msra.mxu2 %v10635_v13 }
 0x9ef   : > { %v7559_v31 = vpop.f32.mrf.mxu2  ;;  %v7608_v55 = vpop.f32.mrf.mxu3  ;;  %7968 = vmatpush.bf16.msra.mxu3 %v10699_v28 }
 0x9f0   : > { %v7560_v2 = vadd.f32 %v7559_v31, %v7511_v60  ;;  %v7463_v51 = vpop.f32.mrf.mxu0  ;;  %v11947_v31 = vld [vmem:[%s12278_s0] sm:$0x3]  ;;  %s17581_s0 = sld [smem:[#allocation105_spill]] (!%p10756_p1) }
 0x9f1   : > { %v7512_v26 = vpop.f32.mrf.mxu1  ;;  %v7464_v21 = vadd.f32 %v7463_v51, %v16076_v5 }
 0x9f2   : > { %v16217_v29 = vadd.f32 %v7608_v55, %v7560_v2  ;;  %v16230_v55 = vperm.slane %v11947_v31, 1 }
 0x9f3   : > { %v7513_v43 = vadd.f32 %v7512_v26, %v7464_v21 }
 0x9f7   : > { %v7561_v41 = vpop.f32.mrf.mxu2  ;;  %v7610_v15 = vpop.f32.mrf.mxu3 }
 0x9f8   : > { %v7562_v9 = vadd.f32 %v7561_v41, %v7513_v43  ;;  %v7466_v47 = vpop.f32.mrf.mxu0 }
 0x9f9   : > { %v7515_v59 = vpop.f32.mrf.mxu1  ;;  %v7467_v57 = vadd.f32 %v7466_v47, %v16083_v3 }
 0x9fa   : > { %v16220_v32 = vadd.f32 %v7610_v15, %v7562_v9  ;;  %7661 = vmatmul.bf16.gmra.mxu0 %v17495_v61 }
 0x9fb   : > { %v7516_v60 = vadd.f32 %v7515_v59, %v7467_v57  ;;  %7710 = vmatmul.bf16.gmra.mxu1 %v17496_v17 }
 0x9fc   : > { %7759 = vmatmul.bf16.gmra.mxu2 %v17497_v49  ;;  %7808 = vmatmul.bf16.gmra.mxu3 %v17498_v10 }
 0x9ff   : > { %v7564_v5 = vpop.f32.mrf.mxu2  ;;  %v7613_v45 = vpop.f32.mrf.mxu3 }
 0xa00   : > { %v7565_v62 = vadd.f32 %v7564_v5, %v7516_v60  ;;  %v7468_v13 = vpop.f32.mrf.mxu0 }
 0xa01   : > { %v7517_v40 = vpop.f32.mrf.mxu1  ;;  %v7469_v6 = vadd.f32 %v7468_v13, %v16086_v38 }
 0xa02   : > { %v16227_v28 = vadd.f32 %v7613_v45, %v7565_v62 }
 0xa03   : > { %v7518_v3 = vadd.f32 %v7517_v40, %v7469_v6 }
 0xa07   : > { %v7566_v61 = vpop.f32.mrf.mxu2  ;;  %v7615_v2 = vpop.f32.mrf.mxu3 }
 0xa08   : > { %v7567_v17 = vadd.f32 %v7566_v61, %v7518_v3  ;;  %v7627_v51 = vpop.f32.mrf.mxu0 }
 0xa09   : > { %v7676_v49 = vpop.f32.mrf.mxu1  ;;  %v7628_v10 = vadd.f32 %v7627_v51, %v16230_v55 }
 0xa0a   : > { %v16233_v26 = vadd.f32 %v7615_v2, %v7567_v17  ;;  %7822 = vmatmul.bf16.vlgmr.msra.gmra.mxu0 %v17502_v37 }
 0xa0b   : > { %v7677_v21 = vadd.f32 %v7676_v49, %v7628_v10  ;;  %7871 = vmatmul.bf16.vlgmr.msra.gmra.mxu1 %v17503_v30 }
 0xa0c   : > { %7920 = vmatmul.bf16.vlgmr.msra.gmra.mxu2 %v15603_v58  ;;  %7969 = vmatmul.bf16.vlgmr.msra.gmra.mxu3 %v15621_v44 }
 0xa0f   : > { %v7725_v38 = vpop.f32.mrf.mxu2  ;;  %v7774_v43 = vpop.f32.mrf.mxu3 }
 0xa10   : > { %v7726_v41 = vadd.f32 %v7725_v38, %v7677_v21  ;;  %v7629_v15 = vpop.f32.mrf.mxu0 }
 0xa11   : > { %v7678_v9 = vpop.f32.mrf.mxu1  ;;  %v7630_v47 = vadd.f32 %v7629_v15, %v16230_v55 }
 0xa12   : > { %v16240_v59 = vadd.f32 %v7774_v43, %v7726_v41 }
 0xa13   : > { %v7679_v57 = vadd.f32 %v7678_v9, %v7630_v47 }
 0xa17   : > { %v7727_v60 = vpop.f32.mrf.mxu2  ;;  %v7776_v5 = vpop.f32.mrf.mxu3 }
 0xa18   : > { %v7728_v37 = vadd.f32 %v7727_v60, %v7679_v57  ;;  %v7632_v45 = vpop.f32.mrf.mxu0 }
 0xa19   : > { %v7681_v62 = vpop.f32.mrf.mxu1  ;;  %v7633_v30 = vadd.f32 %v7632_v45, %v16230_v55 }
 0xa1a   : > { %v16243_v58 = vadd.f32 %v7776_v5, %v7728_v37  ;;  %7827 = vmatmul.bf16.gmra.mxu0 %v17506_v7 }
 0xa1b   : > { %v7682_v44 = vadd.f32 %v7681_v62, %v7633_v30  ;;  %7876 = vmatmul.bf16.gmra.mxu1 %v15163_v54  ;;  %v17534_v30 = vld [vmem:[#allocation66_spill] sm:$0xff] }
 0xa1c   : > { %7925 = vmatmul.bf16.gmra.mxu2 %v15657_v56  ;;  %7974 = vmatmul.bf16.gmra.mxu3 %v15683_v0 }
 0xa1f   : > { %v7730_v13 = vpop.f32.mrf.mxu2  ;;  %v7779_v40 = vpop.f32.mrf.mxu3 }
 0xa20   : > { %v7731_v6 = vadd.f32 %v7730_v13, %v7682_v44  ;;  %v7634_v3 = vpop.f32.mrf.mxu0 }
 0xa21   : > { %v7683_v31 = vpop.f32.mrf.mxu1  ;;  %v7635_v61 = vadd.f32 %v7634_v3, %v16230_v55 }
 0xa22   : > { %v16250_v2 = vadd.f32 %v7779_v40, %v7731_v6 }
 0xa23   : > { %v7684_v17 = vadd.f32 %v7683_v31, %v7635_v61 }
 0xa27   : > { %v7732_v51 = vpop.f32.mrf.mxu2  ;;  %v7781_v49 = vpop.f32.mrf.mxu3 }
 0xa28   : > { %v7733_v7 = vadd.f32 %v7732_v51, %v7684_v17  ;;  %v7637_v10 = vpop.f32.mrf.mxu0 }
 0xa29   : > { %v7686_v21 = vpop.f32.mrf.mxu1  ;;  %v7638_v54 = vadd.f32 %v7637_v10, %v16230_v55 }
 0xa2a   : > { %v16253_v56 = vadd.f32 %v7781_v49, %v7733_v7  ;;  %7832 = vmatmul.bf16.gmra.mxu0 %v17507_v35 }
 0xa2b   : > { %v7687_v0 = vadd.f32 %v7686_v21, %v7638_v54  ;;  %7881 = vmatmul.bf16.gmra.mxu1 %v15242_v39  ;;  %v17535_v54 = vld [vmem:[#allocation91_spill] sm:$0xff] }
 0xa2c   : > { %7930 = vmatmul.bf16.gmra.mxu2 %v15705_v24  ;;  %7979 = vmatmul.bf16.gmra.mxu3 %v15731_v16 }
 0xa2f   : > { %v7735_v38 = vpop.f32.mrf.mxu2  ;;  %v7784_v43 = vpop.f32.mrf.mxu3 }
 0xa30   : > { %v7736_v41 = vadd.f32 %v7735_v38, %v7687_v0  ;;  %v7639_v15 = vpop.f32.mrf.mxu0 }
 0xa31   : > { %v7688_v9 = vpop.f32.mrf.mxu1  ;;  %v7640_v47 = vadd.f32 %v7639_v15, %v16230_v55 }
 0xa32   : > { %v16260_v57 = vadd.f32 %v7784_v43, %v7736_v41 }
 0xa33   : > { %v7689_v60 = vadd.f32 %v7688_v9, %v7640_v47 }
 0xa37   : > { %v7737_v5 = vpop.f32.mrf.mxu2  ;;  %v7786_v37 = vpop.f32.mrf.mxu3 }
 0xa38   : > { %v7738_v35 = vadd.f32 %v7737_v5, %v7689_v60  ;;  %v7642_v45 = vpop.f32.mrf.mxu0 }
 0xa39   : > { %v7691_v62 = vpop.f32.mrf.mxu1  ;;  %v7643_v39 = vadd.f32 %v7642_v45, %v16230_v55 }
 0xa3a   : > { %v16263_v24 = vadd.f32 %v7786_v37, %v7738_v35  ;;  %7837 = vmatmul.bf16.gmra.mxu0 %v15297_v63 }
 0xa3b   : > { %v7692_v16 = vadd.f32 %v7691_v62, %v7643_v39  ;;  %7886 = vmatmul.bf16.gmra.mxu1 %v15371_v20  ;;  %v17536_v62 = vld [vmem:[#allocation54_spill] sm:$0xff] }
 0xa3c   : > { %7935 = vmatmul.bf16.gmra.mxu2 %v15753_v23  ;;  %7984 = vmatmul.bf16.gmra.mxu3 %v17534_v30  ;;  %v17538_v30 = vld [vmem:[#allocation67_spill] sm:$0xff] }
 0xa3f   : > { %v7740_v44 = vpop.f32.mrf.mxu2  ;;  %v7789_v13 = vpop.f32.mrf.mxu3 }
 0xa40   : > { %v7741_v40 = vadd.f32 %v7740_v44, %v7692_v16  ;;  %v7644_v6 = vpop.f32.mrf.mxu0  ;;  %v17537_v16 = vld [vmem:[#allocation60_spill] sm:$0xff] }
 0xa41   : > { %v7693_v3 = vpop.f32.mrf.mxu1  ;;  %v7645_v31 = vadd.f32 %v7644_v6, %v16230_v55  ;;  %v17539_v44 = vld [vmem:[#allocation44_spill] sm:$0xff] }
 0xa42   : > { %v16270_v61 = vadd.f32 %v7789_v13, %v7741_v40 }
 0xa43   : > { %v7694_v17 = vadd.f32 %v7693_v3, %v7645_v31 }
 0xa47   : > { %v7742_v51 = vpop.f32.mrf.mxu2  ;;  %v7791_v49 = vpop.f32.mrf.mxu3 }
 0xa48   : > { %v7743_v63 = vadd.f32 %v7742_v51, %v7694_v17  ;;  %v7647_v7 = vpop.f32.mrf.mxu0 }
 0xa49   : > { %v7696_v10 = vpop.f32.mrf.mxu1  ;;  %v7648_v20 = vadd.f32 %v7647_v7, %v16230_v55 }
 0xa4a   : > { %v16273_v23 = vadd.f32 %v7791_v49, %v7743_v63  ;;  %7842 = vmatmul.bf16.gmra.mxu0 %v15385_v50 }
 0xa4b   : > { %v7697_v21 = vadd.f32 %v7696_v10, %v7648_v20  ;;  %7891 = vmatmul.bf16.gmra.mxu1 %v15401_v46 }
 0xa4c   : > { %7940 = vmatmul.bf16.gmra.mxu2 %v15870_v53  ;;  %7989 = vmatmul.bf16.gmra.mxu3 %v17535_v54 }
 0xa4f   : > { %v7745_v0 = vpop.f32.mrf.mxu2  ;;  %v7794_v38 = vpop.f32.mrf.mxu3 }
 0xa50   : > { %v7746_v43 = vadd.f32 %v7745_v0, %v7697_v21  ;;  %v7649_v41 = vpop.f32.mrf.mxu0 }
 0xa51   : > { %v7698_v15 = vpop.f32.mrf.mxu1  ;;  %v7650_v9 = vadd.f32 %v7649_v41, %v16230_v55  ;;  %v17541_v41 = vld [vmem:[#allocation51_spill] sm:$0xff] }
 0xa52   : > { %v16280_v47 = vadd.f32 %v7794_v38, %v7746_v43  ;;  %v17540_v43 = vld [vmem:[#allocation61_spill] sm:$0xff] }
 0xa53   : > { %v7699_v60 = vadd.f32 %v7698_v15, %v7650_v9  ;;  %v17542_v15 = vld [vmem:[#allocation74_spill] sm:$0xff] }
 0xa57   : > { %v7747_v5 = vpop.f32.mrf.mxu2  ;;  %v7796_v37 = vpop.f32.mrf.mxu3 }
 0xa58   : > { %v7748_v50 = vadd.f32 %v7747_v5, %v7699_v60  ;;  %v7652_v35 = vpop.f32.mrf.mxu0 }
 0xa59   : > { %v7701_v45 = vpop.f32.mrf.mxu1  ;;  %v7653_v46 = vadd.f32 %v7652_v35, %v16230_v55 }
 0xa5a   : > { %v16283_v53 = vadd.f32 %v7796_v37, %v7748_v50  ;;  %7847 = vmatmul.bf16.gmra.mxu0 %v17536_v62 }
 0xa5b   : > { %v7702_v39 = vadd.f32 %v7701_v45, %v7653_v46  ;;  %7896 = vmatmul.bf16.gmra.mxu1 %v17537_v16 }
 0xa5c   : > { %7945 = vmatmul.bf16.gmra.mxu2 %v17538_v30  ;;  %7994 = vmatmul.bf16.gmra.mxu3 %v17539_v44 }
 0xa5f   : > { %v7750_v13 = vpop.f32.mrf.mxu2  ;;  %v7799_v40 = vpop.f32.mrf.mxu3 }
 0xa60   : > { %v7751_v6 = vadd.f32 %v7750_v13, %v7702_v39  ;;  %v7654_v3 = vpop.f32.mrf.mxu0 }
 0xa61   : > { %v7703_v31 = vpop.f32.mrf.mxu1  ;;  %v7655_v17 = vadd.f32 %v7654_v3, %v16230_v55 }
 0xa62   : > { %v16290_v51 = vadd.f32 %v7799_v40, %v7751_v6 }
 0xa63   : > { %v7704_v49 = vadd.f32 %v7703_v31, %v7655_v17 }
 0xa67   : > { %v7752_v63 = vpop.f32.mrf.mxu2  ;;  %v7801_v7 = vpop.f32.mrf.mxu3 }
 0xa68   : > { %v7753_v10 = vadd.f32 %v7752_v63, %v7704_v49  ;;  %v7657_v20 = vpop.f32.mrf.mxu0 }
 0xa69   : > { %v7706_v21 = vpop.f32.mrf.mxu1  ;;  %v7658_v54 = vadd.f32 %v7657_v20, %v16230_v55 }
 0xa6a   : > { %v16293_v0 = vadd.f32 %v7801_v7, %v7753_v10  ;;  %7852 = vmatmul.bf16.gmra.mxu0 %v15497_v34 }
 0xa6b   : > { %v7707_v38 = vadd.f32 %v7706_v21, %v7658_v54  ;;  %7901 = vmatmul.bf16.gmra.mxu1 %v17540_v43 }
 0xa6c   : > { %7950 = vmatmul.bf16.gmra.mxu2 %v17541_v41  ;;  %7999 = vmatmul.bf16.gmra.mxu3 %v17542_v15 }
 0xa6f   : > { %v7755_v9 = vpop.f32.mrf.mxu2  ;;  %v7804_v60 = vpop.f32.mrf.mxu3 }
 0xa70   : > { %v7756_v5 = vadd.f32 %v7755_v9, %v7707_v38  ;;  %v7659_v37 = vpop.f32.mrf.mxu0 }
 0xa71   : > { %v7708_v50 = vpop.f32.mrf.mxu1  ;;  %v7660_v35 = vadd.f32 %v7659_v37, %v16230_v55  ;;  %v17543_v37 = vld [vmem:[#allocation19_spill] sm:$0xff] }
 0xa72   : > { %v16300_v45 = vadd.f32 %v7804_v60, %v7756_v5 }
 0xa73   : > { %v7709_v46 = vadd.f32 %v7708_v50, %v7660_v35  ;;  %v16318_v50 = vadd.f32 %v16093_v19, %v17543_v37  ;;  %v17544_v35 = vld [vmem:[#allocation22_spill] sm:$0xff]  ;;  %v17546_v19 = vld [vmem:[#allocation20_spill] sm:$0xff] }
 0xa77   : > { %v7757_v62 = vpop.f32.mrf.mxu2  ;;  %v7806_v39 = vpop.f32.mrf.mxu3 }
 0xa78   : > { %v7758_v34 = vadd.f32 %v7757_v62, %v7709_v46  ;;  %v7662_v16 = vpop.f32.mrf.mxu0 }
 0xa79   : > { %v7711_v30 = vpop.f32.mrf.mxu1  ;;  %v7663_v44 = vadd.f32 %v7662_v16, %v16230_v55 }
 0xa7a   : > { %v16303_v13 = vadd.f32 %v7806_v39, %v7758_v34  ;;  %7857 = vmatmul.bf16.gmra.mxu0 %v15557_v22 }
 0xa7b   : > { %v7712_v40 = vadd.f32 %v7711_v30, %v7663_v44  ;;  %7906 = vmatmul.bf16.gmra.mxu1 %v15574_v25 }
 0xa7c   : > { %7955 = vmatmul.bf16.gmra.mxu2 %v15952_v1  ;;  %8004 = vmatmul.bf16.gmra.mxu3 %v15959_v18 }
 0xa7f   : > { %v7760_v6 = vpop.f32.mrf.mxu2  ;;  %v7809_v3 = vpop.f32.mrf.mxu3 }
 0xa80   : > { %v7761_v31 = vadd.f32 %v7760_v6, %v7712_v40  ;;  %v7664_v17 = vpop.f32.mrf.mxu0  ;;  %v17545_v6 = vld [vmem:[#allocation25_spill] sm:$0xff] }
 0xa81   : > { %v7713_v49 = vpop.f32.mrf.mxu1  ;;  %v7665_v63 = vadd.f32 %v7664_v17, %v16230_v55 }
 0xa82   : > { %v16310_v7 = vadd.f32 %v7809_v3, %v7761_v31  ;;  %v16331_v31 = vadd.f32 %v16096_v14, %v17546_v19  ;;  %v17551_v19 = vld [vmem:[#allocation27_spill] sm:$0xff] }
 0xa83   : > { %v7714_v10 = vadd.f32 %v7713_v49, %v7665_v63 }
 0xa87   : > { %v7762_v20 = vpop.f32.mrf.mxu2  ;;  %v7811_v21 = vpop.f32.mrf.mxu3 }
 0xa88   : > { %v7763_v22 = vadd.f32 %v7762_v20, %v7714_v10  ;;  %v7823_v54 = vpop.f32.mrf.mxu0 }
 0xa89   : > { %v7872_v38 = vpop.f32.mrf.mxu1  ;;  %v7824_v1 = vadd.f32 %v7823_v54, %v16240_v59 }
 0xa8a   : > { %v16312_v25 = vadd.f32 %v7811_v21, %v7763_v22 }
 0xa8b   : > { %v7873_v18 = vadd.f32 %v7872_v38, %v7824_v1  ;;  %v17547_v38 = vld [vmem:[#allocation23_spill] sm:$0xff] }
 0xa8c   : > { %v16338_v1 = vadd.f32 %v16103_v48, %v17547_v38  ;;  %v17550_v48 = vld [vmem:[#allocation24_spill] sm:$0xff] }
 0xa8f   : > { %v7921_v43 = vpop.f32.mrf.mxu2  ;;  %v7970_v41 = vpop.f32.mrf.mxu3 }
 0xa90   : > { %v7922_v15 = vadd.f32 %v7921_v43, %v7873_v18  ;;  %v7825_v9 = vpop.f32.mrf.mxu0  ;;  %v17548_v18 = vld [vmem:[#allocation26_spill] sm:$0xff] }
 0xa91   : > { %v7874_v60 = vpop.f32.mrf.mxu1  ;;  %v7826_v55 = vadd.f32 %v7825_v9, %v16243_v58 }
 0xa92   : > { %v7971_v5 = vadd.f32 %v7970_v41, %v7922_v15 }
 0xa93   : > { %v7875_v62 = vadd.f32 %v7874_v60, %v7826_v55 }
 0xa94   : > { %v16321_v46 = vadd.f32 %v7971_v5, %v17544_v35  ;;  %v17549_v35 = vld [vmem:[#allocation29_spill] sm:$0xff] }
 0xa96   : > { %v8044_v59 = vadd.f32 %v16321_v46, %v16318_v50 }
 0xa97   : > { %v7923_v39 = vpop.f32.mrf.mxu2  ;;  %v7972_v34 = vpop.f32.mrf.mxu3 }
 0xa98   : > { %v7924_v16 = vadd.f32 %v7923_v39, %v7875_v62  ;;  %8045 = vadd.xlane.f32.xlu0 %v8044_v59  ;;  %v7828_v30 = vpop.f32.mrf.mxu0  ;;  %v16351_v59 = vadd.f32 %v16106_v8, %v17550_v48  ;;  %v17555_v48 = vld [vmem:[#allocation31_spill] sm:$0xff] }
 0xa99   : > { %v7877_v44 = vpop.f32.mrf.mxu1  ;;  %v7829_v58 = vadd.f32 %v7828_v30, %v16250_v2 }
 0xa9a   : > { %v7973_v40 = vadd.f32 %v7972_v34, %v7924_v16 }
 0xa9b   : > { %v7878_v17 = vadd.f32 %v7877_v44, %v7829_v58 }
 0xa9c   : > { %v16327_v3 = vadd.f32 %v7973_v40, %v17545_v6 }
 0xa9e   : > { %v8047_v49 = vadd.f32 %v16327_v3, %v16331_v31 }
 0xa9f   : > { %v7926_v63 = vpop.f32.mrf.mxu2  ;;  %v7975_v10 = vpop.f32.mrf.mxu3 }
 0xaa0   : > { %v7927_v20 = vadd.f32 %v7926_v63, %v7878_v17  ;;  %8048 = vadd.xlane.f32.xlu1 %v8047_v49  ;;  %v7830_v21 = vpop.f32.mrf.mxu0  ;;  %v16358_v17 = vadd.f32 %v16115_v36, %v17551_v19  ;;  %v17552_v49 = vld [vmem:[#allocation30_spill] sm:$0xff]  ;;  %v17554_v36 = vld [vmem:[#allocation28_spill] sm:$0xff] }
 0xaa1   : > { %v7879_v22 = vpop.f32.mrf.mxu1  ;;  %v7831_v2 = vadd.f32 %v7830_v21, %v16253_v56 }
 0xaa2   : > { %v7976_v54 = vadd.f32 %v7975_v10, %v7927_v20 }
 0xaa3   : > { %v7880_v43 = vadd.f32 %v7879_v22, %v7831_v2 }
 0xaa4   : > { %v16341_v14 = vadd.f32 %v7976_v54, %v17548_v18  ;;  %v17553_v18 = vld [vmem:[#allocation33_spill] sm:$0xff] }
 0xaa6   : > { %v8050_v41 = vadd.f32 %v16341_v14, %v16338_v1 }
 0xaa7   : > { %v7928_v15 = vpop.f32.mrf.mxu2  ;;  %v7977_v9 = vpop.f32.mrf.mxu3 }
 0xaa8   : > { %v7929_v60 = vadd.f32 %v7928_v15, %v7880_v43  ;;  %8051 = vadd.xlane.f32.xlu2 %v8050_v41  ;;  %v7833_v5 = vpop.f32.mrf.mxu0  ;;  %v16371_v41 = vadd.f32 %v16124_v42, %v17554_v36  ;;  %v17559_v36 = vld [vmem:[#allocation35_spill] sm:$0xff] }
 0xaa9   : > { %v7882_v55 = vpop.f32.mrf.mxu1  ;;  %v7834_v56 = vadd.f32 %v7833_v5, %v16260_v57 }
 0xaaa   : > { %v7978_v37 = vadd.f32 %v7977_v9, %v7929_v60 }
 0xaab   : > { %v7883_v39 = vadd.f32 %v7882_v55, %v7834_v56 }
 0xaac   : > { %v16347_v62 = vadd.f32 %v7978_v37, %v17549_v35 }
 0xaae   : > { %v8053_v34 = vadd.f32 %v16347_v62, %v16351_v59 }
 0xaaf   : > { %v7931_v16 = vpop.f32.mrf.mxu2  ;;  %v7980_v30 = vpop.f32.mrf.mxu3 }
 0xab0   : > { %v7932_v44 = vadd.f32 %v7931_v16, %v7883_v39  ;;  %8054 = vadd.xlane.f32.xlu0 %v8053_v34  ;;  %v7835_v40 = vpop.f32.mrf.mxu0  ;;  %v16378_v39 = vadd.f32 %v16133_v4, %v17555_v48  ;;  %v17556_v34 = vld [vmem:[#allocation34_spill] sm:$0xff]  ;;  %v17558_v4 = vld [vmem:[#allocation32_spill] sm:$0xff] }
 0xab1   : > { %v7884_v58 = vpop.f32.mrf.mxu1  ;;  %v7836_v57 = vadd.f32 %v7835_v40, %v16263_v24 }
 0xab2   : > { %v7981_v6 = vadd.f32 %v7980_v30, %v7932_v44 }
 0xab3   : > { %v7885_v63 = vadd.f32 %v7884_v58, %v7836_v57 }
 0xab4   : > { %v16361_v8 = vadd.f32 %v7981_v6, %v17552_v49  ;;  %v17557_v49 = vld [vmem:[#allocation37_spill] sm:$0xff] }
 0xab6   : > { %v8056_v10 = vadd.f32 %v16361_v8, %v16358_v17 }
 0xab7   : > { %v7933_v20 = vpop.f32.mrf.mxu2  ;;  %v7982_v21 = vpop.f32.mrf.mxu3 }
 0xab8   : > { %v7934_v22 = vadd.f32 %v7933_v20, %v7885_v63  ;;  %8057 = vadd.xlane.f32.xlu1 %v8056_v10  ;;  %v7838_v54 = vpop.f32.mrf.mxu0  ;;  %v16391_v10 = vadd.f32 %v16142_v12, %v17558_v4  ;;  %v17563_v4 = vld [vmem:[#allocation49_spill] sm:$0xff] }
 0xab9   : > { %v7887_v2 = vpop.f32.mrf.mxu1  ;;  %v7839_v24 = vadd.f32 %v7838_v54, %v16270_v61 }
 0xaba   : > { %v7983_v38 = vadd.f32 %v7982_v21, %v7934_v22 }
 0xabb   : > { %v7888_v15 = vadd.f32 %v7887_v2, %v7839_v24 }
 0xabc   : > { %v16367_v43 = vadd.f32 %v7983_v38, %v17553_v18 }
 0xabe   : > { %v8059_v9 = vadd.f32 %v16367_v43, %v16371_v41 }
 0xabf   : > { %v7936_v60 = vpop.f32.mrf.mxu2  ;;  %v7985_v5 = vpop.f32.mrf.mxu3 }
 0xac0   : > { %v7937_v55 = vadd.f32 %v7936_v60, %v7888_v15  ;;  %8060 = vadd.xlane.f32.xlu2 %v8059_v9  ;;  %v7840_v37 = vpop.f32.mrf.mxu0  ;;  %v16398_v15 = vadd.f32 %v16151_v27, %v17559_v36  ;;  %v17560_v9 = vld [vmem:[#allocation38_spill] sm:$0xff]  ;;  %v17562_v27 = vld [vmem:[#allocation36_spill] sm:$0xff] }
 0xac1   : > { %v7889_v56 = vpop.f32.mrf.mxu1  ;;  %v7841_v61 = vadd.f32 %v7840_v37, %v16273_v23 }
 0xac2   : > { %v7986_v35 = vadd.f32 %v7985_v5, %v7937_v55 }
 0xac3   : > { %v7890_v16 = vadd.f32 %v7889_v56, %v7841_v61 }
 0xac4   : > { %v16381_v42 = vadd.f32 %v7986_v35, %v17556_v34  ;;  %v17561_v34 = vld [vmem:[#allocation47_spill] sm:$0xff] }
 0xac6   : > { %v8062_v30 = vadd.f32 %v16381_v42, %v16378_v39 }
 0xac7   : > { %v7938_v44 = vpop.f32.mrf.mxu2  ;;  %v7987_v40 = vpop.f32.mrf.mxu3 }
 0xac8   : > { %v7939_v58 = vadd.f32 %v7938_v44, %v7890_v16  ;;  %8063 = vadd.xlane.f32.xlu0 %v8062_v30  ;;  %v7843_v6 = vpop.f32.mrf.mxu0  ;;  %v16411_v30 = vadd.f32 %v16160_v11, %v17562_v27  ;;  %v17567_v27 = vld [vmem:[#allocation40_spill] sm:$0xff] }
 0xac9   : > { %v7892_v57 = vpop.f32.mrf.mxu1  ;;  %v7844_v23 = vadd.f32 %v7843_v6, %v16280_v47 }
 0xaca   : > { %v7988_v19 = vadd.f32 %v7987_v40, %v7939_v58 }
 0xacb   : > { %v7893_v20 = vadd.f32 %v7892_v57, %v7844_v23 }
 0xacc   : > { %v16387_v63 = vadd.f32 %v7988_v19, %v17557_v49 }
 0xace   : > { %v8065_v21 = vadd.f32 %v16387_v63, %v16391_v10 }
 0xacf   : > { %v7941_v22 = vpop.f32.mrf.mxu2  ;;  %v7990_v54 = vpop.f32.mrf.mxu3 }
 0xad0   : > { %v7942_v2 = vadd.f32 %v7941_v22, %v7893_v20  ;;  %8066 = vadd.xlane.f32.xlu1 %v8065_v21  ;;  %v7845_v38 = vpop.f32.mrf.mxu0  ;;  %v16418_v20 = vadd.f32 %v16183_v52, %v17563_v4  ;;  %v17564_v21 = vld [vmem:[#allocation50_spill] sm:$0xff]  ;;  %v17566_v52 = vld [vmem:[#allocation41_spill] sm:$0xff] }
 0xad1   : > { %v7894_v24 = vpop.f32.mrf.mxu1  ;;  %v7846_v47 = vadd.f32 %v7845_v38, %v16283_v53 }
 0xad2   : > { %v7991_v18 = vadd.f32 %v7990_v54, %v7942_v2 }
 0xad3   : > { %v7895_v60 = vadd.f32 %v7894_v24, %v7846_v47 }
 0xad4   : > { %v16401_v12 = vadd.f32 %v7991_v18, %v17560_v9  ;;  %v17565_v9 = vld [vmem:[#allocation39_spill] sm:$0xff] }
 0xad6   : > { %v8068_v5 = vadd.f32 %v16401_v12, %v16398_v15 }
 0xad7   : > { %v7943_v55 = vpop.f32.mrf.mxu2  ;;  %v7992_v37 = vpop.f32.mrf.mxu3 }
 0xad8   : > { %v7944_v56 = vadd.f32 %v7943_v55, %v7895_v60  ;;  %8069 = vadd.xlane.f32.xlu2 %v8068_v5  ;;  %v7848_v35 = vpop.f32.mrf.mxu0  ;;  %v16431_v5 = vadd.f32 %v16202_v33, %v17566_v52 }
 0xad9   : > { %v7897_v61 = vpop.f32.mrf.mxu1  ;;  %v7849_v53 = vadd.f32 %v7848_v35, %v16290_v51 }
 0xada   : > { %v7993_v48 = vadd.f32 %v7992_v37, %v7944_v56 }
 0xadb   : > { %v7898_v44 = vadd.f32 %v7897_v61, %v7849_v53 }
 0xadc   : > { %v16407_v16 = vadd.f32 %v7993_v48, %v17561_v34 }
 0xade   : > { %v8071_v40 = vadd.f32 %v16407_v16, %v16411_v30 }
 0xadf   : > { %v7946_v58 = vpop.f32.mrf.mxu2  ;;  %v7995_v6 = vpop.f32.mrf.mxu3 }
 0xae0   : > { %v7947_v57 = vadd.f32 %v7946_v58, %v7898_v44  ;;  %8072 = vadd.xlane.f32.xlu0 %v8071_v40  ;;  %v7850_v19 = vpop.f32.mrf.mxu0  ;;  %v16438_v44 = vadd.f32 %v16217_v29, %v17567_v27  ;;  %v17568_v40 = vld [vmem:[#allocation45_spill] sm:$0xff]  ;;  %v17570_v29 = vld [vmem:[#allocation43_spill] sm:$0xff]  ;;  %v17573_v27 = vld [vmem:[#allocation58_spill] sm:$0xff] }
 0xae1   : > { %v7899_v23 = vpop.f32.mrf.mxu1  ;;  %v7851_v51 = vadd.f32 %v7850_v19, %v16293_v0 }
 0xae2   : > { %v7996_v49 = vadd.f32 %v7995_v6, %v7947_v57 }
 0xae3   : > { %v7900_v22 = vadd.f32 %v7899_v23, %v7851_v51 }
 0xae4   : > { %v16421_v11 = vadd.f32 %v7996_v49, %v17564_v21  ;;  %v17569_v21 = vld [vmem:[#allocation46_spill] sm:$0xff] }
 0xae6   : > { %v8074_v54 = vadd.f32 %v16421_v11, %v16418_v20 }
 0xae7   : > { %v7948_v2 = vpop.f32.mrf.mxu2  ;;  %v7997_v38 = vpop.f32.mrf.mxu3 }
 0xae8   : > { %v7949_v24 = vadd.f32 %v7948_v2, %v7900_v22  ;;  %8075 = vadd.xlane.f32.xlu1 %v8074_v54  ;;  %v7853_v18 = vpop.f32.mrf.mxu0  ;;  %v16451_v54 = vadd.f32 %v16220_v32, %v17570_v29 }
 0xae9   : > { %v7902_v47 = vpop.f32.mrf.mxu1  ;;  %v7854_v0 = vadd.f32 %v7853_v18, %v16300_v45 }
 0xaea   : > { %v7998_v36 = vadd.f32 %v7997_v38, %v7949_v24 }
 0xaeb   : > { %v7903_v55 = vadd.f32 %v7902_v47, %v7854_v0 }
 0xaec   : > { %v16427_v60 = vadd.f32 %v7998_v36, %v17565_v9  ;;  %v17571_v9 = vld [vmem:[#allocation55_spill] sm:$0xff] }
 0xaed   : > { %v16458_v52 = vadd.f32 %v16227_v28, %v17571_v9 }
 0xaee   : > { %v8077_v37 = vadd.f32 %v16427_v60, %v16431_v5 }
 0xaef   : > { %v7951_v56 = vpop.f32.mrf.mxu2  ;;  %v8000_v35 = vpop.f32.mrf.mxu3 }
 0xaf0   : > { %v7952_v61 = vadd.f32 %v7951_v56, %v7903_v55  ;;  %8078 = vadd.xlane.f32.xlu2 %v8077_v37  ;;  %v7855_v48 = vpop.f32.mrf.mxu0  ;;  %v17572_v55 = vld [vmem:[#allocation56_spill] sm:$0xff] }
 0xaf1   : > { %v7904_v53 = vpop.f32.mrf.mxu1  ;;  %v7856_v45 = vadd.f32 %v7855_v48, %v16303_v13 }
 0xaf2   : > { %v8001_v34 = vadd.f32 %v8000_v35, %v7952_v61 }
 0xaf3   : > { %v7905_v58 = vadd.f32 %v7904_v53, %v7856_v45 }
 0xaf4   : > { %v16441_v33 = vadd.f32 %v8001_v34, %v17568_v40  ;;  %v17574_v40 = vld [vmem:[#allocation21_spill] sm:$0xff] }
 0xaf6   : > { %v8080_v6 = vadd.f32 %v16441_v33, %v16438_v44 }
 0xaf7   : > { %v7953_v57 = vpop.f32.mrf.mxu2  ;;  %v8002_v19 = vpop.f32.mrf.mxu3 }
 0xaf8   : > { %v7954_v23 = vadd.f32 %v7953_v57, %v7905_v58  ;;  %8081 = vadd.xlane.f32.xlu0 %v8080_v6  ;;  %v7858_v49 = vpop.f32.mrf.mxu0  ;;  %v17575_v58 = vld [vmem:[#allocation57_spill] sm:$0xff] }
 0xaf9   : > { %v7859_v4 = vadd.f32 %v7858_v49, %v16310_v7  ;;  %v7907_v13 = vpop.f32.mrf.mxu1  ;;  %v16471_v6 = vadd.f32 %v16233_v26, %v17575_v58 }
 0xafa   : > { %v8003_v51 = vadd.f32 %v8002_v19, %v7954_v23 }
 0xafb   : > { %v7908_v2 = vadd.f32 %v7907_v13, %v7859_v4 }
 0xafc   : > { %v16447_v22 = vadd.f32 %v8003_v51, %v17569_v21 }
 0xafe   : > { %v8083_v38 = vadd.f32 %v16447_v22, %v16451_v54 }
 0xaff   : > { %v7956_v24 = vpop.f32.mrf.mxu2  ;;  %v8005_v18 = vpop.f32.mrf.mxu3 }
 0xb00   : > { %v7957_v47 = vadd.f32 %v7956_v24, %v7908_v2  ;;  %8084 = vadd.xlane.f32.xlu1 %v8083_v38  ;;  %v7860_v36 = vpop.f32.mrf.mxu0 }
 0xb01   : > { %v7861_v7 = vadd.f32 %v7860_v36, %v16312_v25  ;;  %v7909_v32 = vpop.f32.mrf.mxu1 }
 0xb02   : > { %v8006_v0 = vadd.f32 %v8005_v18, %v7957_v47 }
 0xb03   : > { %v7910_v56 = vadd.f32 %v7909_v32, %v7861_v7 }
 0xb04   : > { %v16461_v37 = vadd.f32 %v8006_v0, %v17572_v55 }
 0xb06   : > { %v8086_v35 = vadd.f32 %v16461_v37, %v16458_v52 }
 0xb07   : > { %v7958_v61 = vpop.f32.mrf.mxu2  ;;  %v8007_v53 = vpop.f32.mrf.mxu3 }
 0xb08   : > { %v7959_v48 = vadd.f32 %v7958_v61, %v7910_v56  ;;  %8087 = vadd.xlane.f32.xlu2 %v8086_v35 }
 0xb0a   : > { %v8008_v34 = vadd.f32 %v8007_v53, %v7959_v48 }
 0xb0b   : > { %v8046_v45 = vpop.xlane.xlu0 %8045 }
 0xb0c   : > { %v16466_v25 = vadd.f32 %v8008_v34, %v17573_v27  ;;  %v8092_v28 = vmul.f32 %v8046_v45, %v17574_v40 }
 0xb0e   : > { %v16474_v57 = vsub.f32 %v16318_v50, %v8092_v28  ;;  %v16477_v19 = vsub.f32 %v16321_v46, %v8092_v28  ;;  %v8089_v23 = vadd.f32 %v16466_v25, %v16471_v6 }
 0xb10   : > { %8090 = vadd.xlane.f32.xlu0 %v8089_v23  ;;  %v8140_v49 = vmul.f32 %v16474_v57, %v16474_v57  ;;  %v8141_v51 = vmul.f32 %v16477_v19, %v16477_v19 }
 0xb12   : > { %v8172_v4 = vadd.f32 %v8141_v51, %v8140_v49 }
 0xb13   : > { %v8049_v13 = vpop.xlane.xlu1 %8048 }
 0xb14   : > { %v8093_v26 = vmul.f32 %v8049_v13, %v17574_v40  ;;  %8173 = vadd.xlane.f32.xlu1 %v8172_v4 }
 0xb16   : > { %v16487_v50 = vsub.f32 %v16331_v31, %v8093_v26  ;;  %v16490_v46 = vsub.f32 %v16327_v3, %v8093_v26 }
 0xb18   : > { %v8142_v21 = vmul.f32 %v16487_v50, %v16487_v50  ;;  %v8143_v29 = vmul.f32 %v16490_v46, %v16490_v46 }
 0xb1a   : > { %v8175_v2 = vadd.f32 %v8143_v29, %v8142_v21 }
 0xb1b   : > { %v8052_v38 = vpop.xlane.xlu2 %8051 }
 0xb1c   : > { %v8094_v24 = vmul.f32 %v8052_v38, %v17574_v40  ;;  %8176 = vadd.xlane.f32.xlu2 %v8175_v2 }
 0xb1e   : > { %v16498_v18 = vsub.f32 %v16338_v1, %v8094_v24  ;;  %v16501_v31 = vsub.f32 %v16341_v14, %v8094_v24 }
 0xb20   : > { %v8144_v3 = vmul.f32 %v16498_v18, %v16498_v18  ;;  %v8145_v47 = vmul.f32 %v16501_v31, %v16501_v31 }
 0xb22   : > { %v8178_v36 = vadd.f32 %v8145_v47, %v8144_v3 }
 0xb23   : > { %v8055_v0 = vpop.xlane.xlu0 %8054 }
 0xb24   : > { %v8095_v7 = vmul.f32 %v8055_v0, %v17574_v40  ;;  %8179 = vadd.xlane.f32.xlu0 %v8178_v36 }
 0xb26   : > { %v16509_v9 = vsub.f32 %v16351_v59, %v8095_v7  ;;  %v16512_v1 = vsub.f32 %v16347_v62, %v8095_v7 }
 0xb28   : > { %v8146_v14 = vmul.f32 %v16509_v9, %v16509_v9  ;;  %v8147_v55 = vmul.f32 %v16512_v1, %v16512_v1 }
 0xb2a   : > { %v8181_v32 = vadd.f32 %v8147_v55, %v8146_v14 }
 0xb2b   : > { %v8058_v56 = vpop.xlane.xlu1 %8057 }
 0xb2c   : > { %v8096_v35 = vmul.f32 %v8058_v56, %v17574_v40  ;;  %8182 = vadd.xlane.f32.xlu1 %v8181_v32 }
 0xb2e   : > { %v16520_v61 = vsub.f32 %v16358_v17, %v8096_v35  ;;  %v16523_v59 = vsub.f32 %v16361_v8, %v8096_v35 }
 0xb30   : > { %v8148_v62 = vmul.f32 %v16520_v61, %v16520_v61  ;;  %v8149_v48 = vmul.f32 %v16523_v59, %v16523_v59 }
 0xb32   : > { %v8184_v53 = vadd.f32 %v8149_v48, %v8148_v62 }
 0xb33   : > { %v8061_v34 = vpop.xlane.xlu2 %8060 }
 0xb34   : > { %v8097_v45 = vmul.f32 %v8061_v34, %v17574_v40  ;;  %8185 = vadd.xlane.f32.xlu2 %v8184_v53 }
 0xb36   : > { %v16531_v27 = vsub.f32 %v16371_v41, %v8097_v45  ;;  %v16534_v17 = vsub.f32 %v16367_v43, %v8097_v45 }
 0xb38   : > { %v8150_v8 = vmul.f32 %v16531_v27, %v16531_v27  ;;  %v8151_v28 = vmul.f32 %v16534_v17, %v16534_v17 }
 0xb3a   : > { %v8187_v58 = vadd.f32 %v8151_v28, %v8150_v8 }
 0xb3b   : > { %v8064_v23 = vpop.xlane.xlu0 %8063 }
 0xb3c   : > { %v8098_v49 = vmul.f32 %v8064_v23, %v17574_v40  ;;  %8188 = vadd.xlane.f32.xlu0 %v8187_v58 }
 0xb3e   : > { %v16542_v51 = vsub.f32 %v16378_v39, %v8098_v49  ;;  %v16545_v41 = vsub.f32 %v16381_v42, %v8098_v49 }
 0xb40   : > { %v8152_v43 = vmul.f32 %v16542_v51, %v16542_v51  ;;  %v8153_v4 = vmul.f32 %v16545_v41, %v16545_v41 }
 0xb42   : > { %v8190_v13 = vadd.f32 %v8153_v4, %v8152_v43 }
 0xb43   : > { %v8067_v26 = vpop.xlane.xlu1 %8066 }
 0xb44   : > { %v8099_v21 = vmul.f32 %v8067_v26, %v17574_v40  ;;  %8191 = vadd.xlane.f32.xlu1 %v8190_v13 }
 0xb46   : > { %v16553_v29 = vsub.f32 %v16391_v10, %v8099_v21  ;;  %v16556_v39 = vsub.f32 %v16387_v63, %v8099_v21 }
 0xb48   : > { %v8154_v42 = vmul.f32 %v16553_v29, %v16553_v29  ;;  %v8155_v2 = vmul.f32 %v16556_v39, %v16556_v39 }
 0xb4a   : > { %v8193_v38 = vadd.f32 %v8155_v2, %v8154_v42 }
 0xb4b   : > { %v8070_v24 = vpop.xlane.xlu2 %8069 }
 0xb4c   : > { %v8100_v3 = vmul.f32 %v8070_v24, %v17574_v40  ;;  %8194 = vadd.xlane.f32.xlu2 %v8193_v38 }
 0xb4e   : > { %v16564_v47 = vsub.f32 %v16398_v15, %v8100_v3  ;;  %v16567_v10 = vsub.f32 %v16401_v12, %v8100_v3 }
 0xb50   : > { %v8156_v63 = vmul.f32 %v16564_v47, %v16564_v47  ;;  %v8157_v36 = vmul.f32 %v16567_v10, %v16567_v10 }
 0xb52   : > { %v8196_v0 = vadd.f32 %v8157_v36, %v8156_v63 }
 0xb53   : > { %v8073_v7 = vpop.xlane.xlu0 %8072 }
 0xb54   : > { %v8101_v14 = vmul.f32 %v8073_v7, %v17574_v40  ;;  %8197 = vadd.xlane.f32.xlu0 %v8196_v0 }
 0xb56   : > { %v16575_v55 = vsub.f32 %v16411_v30, %v8101_v14  ;;  %v16578_v15 = vsub.f32 %v16407_v16, %v8101_v14 }
 0xb58   : > { %v8158_v12 = vmul.f32 %v16575_v55, %v16575_v55  ;;  %v8159_v32 = vmul.f32 %v16578_v15, %v16578_v15 }
 0xb5a   : > { %v8199_v56 = vadd.f32 %v8159_v32, %v8158_v12 }
 0xb5b   : > { %v8076_v35 = vpop.xlane.xlu1 %8075 }
 0xb5c   : > { %v8102_v62 = vmul.f32 %v8076_v35, %v17574_v40  ;;  %8200 = vadd.xlane.f32.xlu1 %v8199_v56 }
 0xb5e   : > { %v16586_v48 = vsub.f32 %v16418_v20, %v8102_v62  ;;  %v16589_v30 = vsub.f32 %v16421_v11, %v8102_v62 }
 0xb60   : > { %v8160_v16 = vmul.f32 %v16586_v48, %v16586_v48  ;;  %v8161_v53 = vmul.f32 %v16589_v30, %v16589_v30 }
 0xb62   : > { %v8202_v34 = vadd.f32 %v8161_v53, %v8160_v16 }
 0xb63   : > { %v8079_v45 = vpop.xlane.xlu2 %8078 }
 0xb64   : > { %v8103_v8 = vmul.f32 %v8079_v45, %v17574_v40  ;;  %8203 = vadd.xlane.f32.xlu2 %v8202_v34 }
 0xb66   : > { %v16597_v28 = vsub.f32 %v16431_v5, %v8103_v8  ;;  %v16600_v20 = vsub.f32 %v16427_v60, %v8103_v8 }
 0xb68   : > { %v8162_v11 = vmul.f32 %v16597_v28, %v16597_v28  ;;  %v8163_v58 = vmul.f32 %v16600_v20, %v16600_v20 }
 0xb6a   : > { %v8205_v23 = vadd.f32 %v8163_v58, %v8162_v11 }
 0xb6b   : > { %v8082_v49 = vpop.xlane.xlu0 %8081 }
 0xb6c   : > { %v8104_v43 = vmul.f32 %v8082_v49, %v17574_v40  ;;  %8206 = vadd.xlane.f32.xlu0 %v8205_v23 }
 0xb6e   : > { %v16608_v4 = vsub.f32 %v16438_v44, %v8104_v43  ;;  %v16611_v5 = vsub.f32 %v16441_v33, %v8104_v43  ;;  %v8042_v43 = vld [vmem:[%s810_s18] sm:$0x3] }
 0xb70   : > { %v8164_v60 = vmul.f32 %v16608_v4, %v16608_v4  ;;  %v8165_v13 = vmul.f32 %v16611_v5, %v16611_v5 }
 0xb72   : > { %v8208_v26 = vadd.f32 %v8165_v13, %v8164_v60 }
 0xb73   : > { %v8085_v21 = vpop.xlane.xlu1 %8084 }
 0xb74   : > { %v8105_v42 = vmul.f32 %v8085_v21, %v17574_v40  ;;  %8209 = vadd.xlane.f32.xlu1 %v8208_v26  ;;  %v8043_v21 = vld [vmem:[%s814_s21] sm:$0x3]  ;;  %s17579_s21 = sld [smem:[#allocation104_spill]] (!%p10756_p1) }
 0xb76   : > { %v16619_v2 = vsub.f32 %v16451_v54, %v8105_v42  ;;  %v16622_v44 = vsub.f32 %v16447_v22, %v8105_v42 }
 0xb78   : > { %v8166_v33 = vmul.f32 %v16619_v2, %v16619_v2  ;;  %v8167_v38 = vmul.f32 %v16622_v44, %v16622_v44 }
 0xb7a   : > { %v8211_v24 = vadd.f32 %v8167_v38, %v8166_v33  ;;  %v16663_v38 = vperm.slane %v8042_v43, 0 }
 0xb7b   : > { %v8088_v3 = vpop.xlane.xlu2 %8087 }
 0xb7c   : > { %v8106_v63 = vmul.f32 %v8088_v3, %v17574_v40  ;;  %8212 = vadd.xlane.f32.xlu2 %v8211_v24  ;;  %v16665_v24 = vperm.slane %v8042_v43, 1 }
 0xb7e   : > { %v16630_v36 = vsub.f32 %v16458_v52, %v8106_v63  ;;  %v16633_v54 = vsub.f32 %v16461_v37, %v8106_v63 }
 0xb80   : > { %v8168_v22 = vmul.f32 %v16630_v36, %v16630_v36  ;;  %v8169_v0 = vmul.f32 %v16633_v54, %v16633_v54 }
 0xb82   : > { %v8214_v7 = vadd.f32 %v8169_v0, %v8168_v22  ;;  %v16667_v22 = vperm.slane %v8043_v21, 0  ;;  %v16669_v0 = vperm.slane %v8043_v21, 1 }
 0xb83   : > { %v8091_v14 = vpop.xlane.xlu0 %8090 }
 0xb84   : > { %v8107_v12 = vmul.f32 %v8091_v14, %v17574_v40  ;;  %8215 = vadd.xlane.f32.xlu0 %v8214_v7 }
 0xb86   : > { %v16641_v32 = vsub.f32 %v16471_v6, %v8107_v12  ;;  %v16644_v52 = vsub.f32 %v16466_v25, %v8107_v12 }
 0xb87   : > { %v8174_v56 = vpop.xlane.xlu1 %8173 }
 0xb88   : > { %v8220_v37 = vmul.f32 %v8174_v56, %v17574_v40  ;;  %v8170_v35 = vmul.f32 %v16641_v32, %v16641_v32  ;;  %v8171_v62 = vmul.f32 %v16644_v52, %v16644_v52 }
 0xb8a   : > { %v8236_v16 = vadd.f32 1e-05, %v8220_v37  ;;  %v8217_v53 = vadd.f32 %v8171_v62, %v8170_v35 }
 0xb8c   : > { %11880 = vrsqrt.f32 %v8236_v16  ;;  %8218 = vadd.xlane.f32.xlu1 %v8217_v53  ;;  %vm8258_vm2 = vweird.f32 %v8236_v16 }
 0xb8f   : > { %v8177_v6 = vpop.xlane.xlu2 %8176 }
 0xb90   : > { %v8221_v34 = vmul.f32 %v8177_v6, %v17574_v40 }
 0xb92   : > { %v11881_v25 = vpop.eup %11880  ;;  %v8237_v45 = vadd.f32 1e-05, %v8221_v34 }
 0xb93   : > { %v8253_v8 = vmul.f32 %v11881_v25, %v8236_v16  ;;  %vm8259_vm1 = vweird.f32 %v11881_v25 }
 0xb94   : > { %11882 = vrsqrt.f32 %v8237_v45  ;;  %vm8260_vm3 = vmor %vm8258_vm2, %vm8259_vm1  ;;  %vm8268_vm5 = vweird.f32 %v8237_v45 }
 0xb95   : > { %v8254_v11 = vmul.f32 %v11881_v25, %v8253_v8 }
 0xb97   : > { %v8255_v58 = vmul.f32 0.5, %v8254_v11  ;;  %v8180_v23 = vpop.xlane.xlu0 %8179 }
 0xb98   : > { %v8222_v49 = vmul.f32 %v8180_v23, %v17574_v40 }
 0xb99   : > { %v8256_v60 = vsub.f32 1.5, %v8255_v58 }
 0xb9a   : > { %v11883_v13 = vpop.eup %11882  ;;  %v8238_v26 = vadd.f32 1e-05, %v8222_v49 }
 0xb9b   : > { %v8257_v42 = vmul.f32 %v11881_v25, %v8256_v60  ;;  %v8263_v33 = vmul.f32 %v11883_v13, %v8237_v45  ;;  %vm8269_vm4 = vweird.f32 %v11883_v13 }
 0xb9c   : > { %11884 = vrsqrt.f32 %v8238_v26  ;;  %vm8270_vm6 = vmor %vm8268_vm5, %vm8269_vm4  ;;  %vm8278_vm8 = vweird.f32 %v8238_v26 }
 0xb9d   : > { %v8261_v3 = vsel %vm8260_vm3, %v11881_v25, %v8257_v42  ;;  %v8264_v63 = vmul.f32 %v11883_v13, %v8263_v33 }
 0xb9e   : > { %v8412_v7 = vmul.f32 %v8261_v3, %v16474_v57  ;;  %v8413_v14 = vmul.f32 %v8261_v3, %v16477_v19 }
 0xb9f   : > { %v8265_v12 = vmul.f32 0.5, %v8264_v63  ;;  %v8183_v56 = vpop.xlane.xlu1 %8182 }
 0xba0   : > { %v8449_v37 = vmul.f32 %v16663_v38, %v8412_v7  ;;  %v8450_v35 = vmul.f32 %v16665_v24, %v8413_v14  ;;  %v8223_v62 = vmul.f32 %v8183_v56, %v17574_v40 }
 0xba1   : > { %v8266_v16 = vsub.f32 1.5, %v8265_v12 }
 0xba2   : > { %v11885_v53 = vpop.eup %11884  ;;  %v16677_v6 = vadd.f32 %v16667_v22, %v8449_v37  ;;  %v16680_v34 = vadd.f32 %v16669_v0, %v8450_v35  ;;  %v8239_v57 = vadd.f32 1e-05, %v8223_v62 }
 0xba3   : > { %v8267_v25 = vmul.f32 %v11883_v13, %v8266_v16  ;;  %v8273_v19 = vmul.f32 %v11885_v53, %v8238_v26  ;;  %vm8279_vm7 = vweird.f32 %v11885_v53 }
 0xba4   : > { %8518 = vst [vmem:[#allocation2 + $0xb0] sm:$0xff] %v16677_v6  ;;  %11886 = vrsqrt.f32 %v8239_v57  ;;  %vm8280_vm9 = vmor %vm8278_vm8, %vm8279_vm7  ;;  %vm8288_vm11 = vweird.f32 %v8239_v57 }
 0xba5   : > { %8519 = vst [vmem:[#allocation2] sm:$0xff] %v16680_v34  ;;  %v8271_v8 = vsel %vm8270_vm6, %v11883_v13, %v8267_v25  ;;  %v8274_v11 = vmul.f32 %v11885_v53, %v8273_v19 }
 0xba6   : > { %v8414_v58 = vmul.f32 %v8271_v8, %v16487_v50  ;;  %v8415_v23 = vmul.f32 %v8271_v8, %v16490_v46 }
 0xba7   : > { %v8275_v49 = vmul.f32 0.5, %v8274_v11  ;;  %v8186_v43 = vpop.xlane.xlu2 %8185 }
 0xba8   : > { %v8451_v60 = vmul.f32 %v16663_v38, %v8414_v58  ;;  %v8452_v21 = vmul.f32 %v16665_v24, %v8415_v23  ;;  %v8224_v45 = vmul.f32 %v8186_v43, %v17574_v40 }
 0xba9   : > { %v8276_v42 = vsub.f32 1.5, %v8275_v49 }
 0xbaa   : > { %v11887_v33 = vpop.eup %11886  ;;  %v8488_v3 = vadd.f32 %v16667_v22, %v8451_v60  ;;  %v8489_v13 = vadd.f32 %v16669_v0, %v8452_v21  ;;  %v8240_v63 = vadd.f32 1e-05, %v8224_v45 }
 0xbab   : > { %v8277_v7 = vmul.f32 %v11885_v53, %v8276_v42  ;;  %v8283_v50 = vmul.f32 %v11887_v33, %v8239_v57  ;;  %vm8289_vm10 = vweird.f32 %v11887_v33 }
 0xbac   : > { %8520 = vst [vmem:[#allocation2 + $0xd8] sm:$0xff] %v8488_v3  ;;  %11888 = vrsqrt.f32 %v8240_v63  ;;  %vm8290_vm12 = vmor %vm8288_vm11, %vm8289_vm10  ;;  %vm8298_vm14 = vweird.f32 %v8240_v63 }
 0xbad   : > { %8521 = vst [vmem:[#allocation2 + $0x18] sm:$0xff] %v8489_v13  ;;  %v8281_v46 = vsel %vm8280_vm9, %v11885_v53, %v8277_v7  ;;  %v8284_v14 = vmul.f32 %v11887_v33, %v8283_v50 }
 0xbae   : > { %v8416_v12 = vmul.f32 %v8281_v46, %v16498_v18  ;;  %v8417_v56 = vmul.f32 %v8281_v46, %v16501_v31 }
 0xbaf   : > { %v8285_v37 = vmul.f32 0.5, %v8284_v14  ;;  %v8189_v35 = vpop.xlane.xlu0 %8188 }
 0xbb0   : > { %v8453_v62 = vmul.f32 %v16663_v38, %v8416_v12  ;;  %v8454_v16 = vmul.f32 %v16665_v24, %v8417_v56  ;;  %v8225_v25 = vmul.f32 %v8189_v35, %v17574_v40 }
 0xbb1   : > { %v8286_v26 = vsub.f32 1.5, %v8285_v37 }
 0xbb2   : > { %v11889_v19 = vpop.eup %11888  ;;  %v8490_v8 = vadd.f32 %v16667_v22, %v8453_v62  ;;  %v8491_v53 = vadd.f32 %v16669_v0, %v8454_v16  ;;  %v8241_v11 = vadd.f32 1e-05, %v8225_v25 }
 0xbb3   : > { %v8287_v58 = vmul.f32 %v11887_v33, %v8286_v26  ;;  %v8293_v18 = vmul.f32 %v11889_v19, %v8240_v63  ;;  %vm8299_vm13 = vweird.f32 %v11889_v19 }
 0xbb4   : > { %8522 = vst [vmem:[#allocation2 + $0x50] sm:$0xff] %v8490_v8  ;;  %11890 = vrsqrt.f32 %v8241_v11  ;;  %vm8300_vm15 = vmor %vm8298_vm14, %vm8299_vm13  ;;  %vm8308_vm1 = vweird.f32 %v8241_v11 }
 0xbb5   : > { %8523 = vst [vmem:[#allocation2 + $0x68] sm:$0xff] %v8491_v53  ;;  %v8291_v31 = vsel %vm8290_vm12, %v11887_v33, %v8287_v58  ;;  %v8294_v23 = vmul.f32 %v11889_v19, %v8293_v18 }
 0xbb6   : > { %v8418_v49 = vmul.f32 %v8291_v31, %v16509_v9  ;;  %v8419_v43 = vmul.f32 %v8291_v31, %v16512_v1 }
 0xbb7   : > { %v8295_v60 = vmul.f32 0.5, %v8294_v23  ;;  %v8192_v21 = vpop.xlane.xlu1 %8191 }
 0xbb8   : > { %v8455_v45 = vmul.f32 %v16663_v38, %v8418_v49  ;;  %v8456_v42 = vmul.f32 %v16665_v24, %v8419_v43  ;;  %v8226_v3 = vmul.f32 %v8192_v21, %v17574_v40 }
 0xbb9   : > { %v8296_v57 = vsub.f32 1.5, %v8295_v60 }
 0xbba   : > { %v11891_v13 = vpop.eup %11890  ;;  %v8492_v7 = vadd.f32 %v16667_v22, %v8455_v45  ;;  %v8493_v33 = vadd.f32 %v16669_v0, %v8456_v42  ;;  %v8242_v50 = vadd.f32 1e-05, %v8226_v3 }
 0xbbb   : > { %v8297_v46 = vmul.f32 %v11889_v19, %v8296_v57  ;;  %v8303_v9 = vmul.f32 %v11891_v13, %v8241_v11  ;;  %vm8309_vm0 = vweird.f32 %v11891_v13 }
 0xbbc   : > { %8524 = vst [vmem:[#allocation2 + $0x30] sm:$0xff] %v8492_v7  ;;  %11892 = vrsqrt.f32 %v8242_v50  ;;  %vm8310_vm2 = vmor %vm8308_vm1, %vm8309_vm0  ;;  %vm8318_vm4 = vweird.f32 %v8242_v50 }
 0xbbd   : > { %8525 = vst [vmem:[#allocation2 + $0x48] sm:$0xff] %v8493_v33  ;;  %v8301_v1 = vsel %vm8300_vm15, %v11889_v19, %v8297_v46  ;;  %v8304_v14 = vmul.f32 %v11891_v13, %v8303_v9 }
 0xbbe   : > { %v8420_v12 = vmul.f32 %v8301_v1, %v16520_v61  ;;  %v8421_v56 = vmul.f32 %v8301_v1, %v16523_v59 }
 0xbbf   : > { %v8305_v37 = vmul.f32 0.5, %v8304_v14  ;;  %v8195_v35 = vpop.xlane.xlu2 %8194 }
 0xbc0   : > { %v8457_v62 = vmul.f32 %v16663_v38, %v8420_v12  ;;  %v8458_v16 = vmul.f32 %v16665_v24, %v8421_v56  ;;  %v8227_v25 = vmul.f32 %v8195_v35, %v17574_v40 }
 0xbc1   : > { %v8306_v63 = vsub.f32 1.5, %v8305_v37 }
 0xbc2   : > { %v11893_v26 = vpop.eup %11892  ;;  %v8494_v8 = vadd.f32 %v16667_v22, %v8457_v62  ;;  %v8495_v19 = vadd.f32 %v16669_v0, %v8458_v16  ;;  %v8243_v53 = vadd.f32 1e-05, %v8227_v25 }
 0xbc3   : > { %v8307_v58 = vmul.f32 %v11891_v13, %v8306_v63  ;;  %v8313_v61 = vmul.f32 %v11893_v26, %v8242_v50  ;;  %vm8319_vm3 = vweird.f32 %v11893_v26 }
 0xbc4   : > { %8526 = vst [vmem:[#allocation2 + $0x80] sm:$0xff] %v8494_v8  ;;  %11894 = vrsqrt.f32 %v8243_v53  ;;  %vm8320_vm5 = vmor %vm8318_vm4, %vm8319_vm3  ;;  %vm8328_vm7 = vweird.f32 %v8243_v53 }
 0xbc5   : > { %8527 = vst [vmem:[#allocation2 + $0x88] sm:$0xff] %v8495_v19  ;;  %v8311_v59 = vsel %vm8310_vm2, %v11891_v13, %v8307_v58  ;;  %v8314_v18 = vmul.f32 %v11893_v26, %v8313_v61 }
 0xbc6   : > { %v8422_v31 = vmul.f32 %v8311_v59, %v16531_v27  ;;  %v8423_v23 = vmul.f32 %v8311_v59, %v16534_v17 }
 0xbc7   : > { %v8315_v49 = vmul.f32 0.5, %v8314_v18  ;;  %v8198_v43 = vpop.xlane.xlu0 %8197 }
 0xbc8   : > { %v8459_v60 = vmul.f32 %v16663_v38, %v8422_v31  ;;  %v8460_v21 = vmul.f32 %v16665_v24, %v8423_v23  ;;  %v8228_v45 = vmul.f32 %v8198_v43, %v17574_v40 }
 0xbc9   : > { %v8316_v11 = vsub.f32 1.5, %v8315_v49 }
 0xbca   : > { %v11895_v42 = vpop.eup %11894  ;;  %v8496_v3 = vadd.f32 %v16667_v22, %v8459_v60  ;;  %v8497_v57 = vadd.f32 %v16669_v0, %v8460_v21  ;;  %v8244_v13 = vadd.f32 1e-05, %v8228_v45 }
 0xbcb   : > { %v8317_v7 = vmul.f32 %v11893_v26, %v8316_v11  ;;  %v8323_v27 = vmul.f32 %v11895_v42, %v8243_v53  ;;  %vm8329_vm6 = vweird.f32 %v11895_v42 }
 0xbcc   : > { %8528 = vst [vmem:[#allocation2 + $0xe8] sm:$0xff] %v8496_v3  ;;  %11896 = vrsqrt.f32 %v8244_v13  ;;  %vm8330_vm8 = vmor %vm8328_vm7, %vm8329_vm6  ;;  %vm8338_vm10 = vweird.f32 %v8244_v13 }
 0xbcd   : > { %8529 = vst [vmem:[#allocation2 + $0xb8] sm:$0xff] %v8497_v57  ;;  %v8321_v17 = vsel %vm8320_vm5, %v11893_v26, %v8317_v7  ;;  %v8324_v33 = vmul.f32 %v11895_v42, %v8323_v27 }
 0xbce   : > { %v8424_v46 = vmul.f32 %v8321_v17, %v16542_v51  ;;  %v8425_v9 = vmul.f32 %v8321_v17, %v16545_v41 }
 0xbcf   : > { %v8325_v1 = vmul.f32 0.5, %v8324_v33  ;;  %v8201_v14 = vpop.xlane.xlu1 %8200 }
 0xbd0   : > { %v8461_v12 = vmul.f32 %v16663_v38, %v8424_v46  ;;  %v8462_v56 = vmul.f32 %v16665_v24, %v8425_v9  ;;  %v8229_v37 = vmul.f32 %v8201_v14, %v17574_v40 }
 0xbd1   : > { %v8326_v50 = vsub.f32 1.5, %v8325_v1 }
 0xbd2   : > { %v11897_v35 = vpop.eup %11896  ;;  %v8498_v62 = vadd.f32 %v16667_v22, %v8461_v12  ;;  %v8499_v16 = vadd.f32 %v16669_v0, %v8462_v56  ;;  %v8245_v25 = vadd.f32 1e-05, %v8229_v37 }
 0xbd3   : > { %v8327_v63 = vmul.f32 %v11895_v42, %v8326_v50  ;;  %v8333_v51 = vmul.f32 %v11897_v35, %v8244_v13  ;;  %vm8339_vm9 = vweird.f32 %v11897_v35 }
 0xbd4   : > { %8530 = vst [vmem:[#allocation2 + $0x60] sm:$0xff] %v8498_v62  ;;  %11898 = vrsqrt.f32 %v8245_v25  ;;  %vm8340_vm11 = vmor %vm8338_vm10, %vm8339_vm9  ;;  %vm8348_vm13 = vweird.f32 %v8245_v25 }
 0xbd5   : > { %8531 = vst [vmem:[#allocation2 + $0xf0] sm:$0xff] %v8499_v16  ;;  %v8331_v41 = vsel %vm8330_vm8, %v11895_v42, %v8327_v63  ;;  %v8334_v26 = vmul.f32 %v11897_v35, %v8333_v51 }
 0xbd6   : > { %v8426_v8 = vmul.f32 %v8331_v41, %v16553_v29  ;;  %v8427_v19 = vmul.f32 %v8331_v41, %v16556_v39 }
 0xbd7   : > { %v8335_v58 = vmul.f32 0.5, %v8334_v26  ;;  %v8204_v61 = vpop.xlane.xlu2 %8203 }
 0xbd8   : > { %v8463_v59 = vmul.f32 %v16663_v38, %v8426_v8  ;;  %v8464_v18 = vmul.f32 %v16665_v24, %v8427_v19  ;;  %v8230_v31 = vmul.f32 %v8204_v61, %v17574_v40 }
 0xbd9   : > { %v8336_v53 = vsub.f32 1.5, %v8335_v58 }
 0xbda   : > { %v11899_v23 = vpop.eup %11898  ;;  %v8500_v49 = vadd.f32 %v16667_v22, %v8463_v59  ;;  %v8501_v43 = vadd.f32 %v16669_v0, %v8464_v18  ;;  %v8246_v60 = vadd.f32 1e-05, %v8230_v31 }
 0xbdb   : > { %v8337_v21 = vmul.f32 %v11897_v35, %v8336_v53  ;;  %v8343_v29 = vmul.f32 %v11899_v23, %v8245_v25  ;;  %vm8349_vm12 = vweird.f32 %v11899_v23 }
 0xbdc   : > { %8532 = vst [vmem:[#allocation2 + $0x8] sm:$0xff] %v8500_v49  ;;  %11900 = vrsqrt.f32 %v8246_v60  ;;  %vm8350_vm14 = vmor %vm8348_vm13, %vm8349_vm12  ;;  %vm8358_vm0 = vweird.f32 %v8246_v60 }
 0xbdd   : > { %8533 = vst [vmem:[#allocation2 + $0x78] sm:$0xff] %v8501_v43  ;;  %v8341_v39 = vsel %vm8340_vm11, %v11897_v35, %v8337_v21  ;;  %v8344_v45 = vmul.f32 %v11899_v23, %v8343_v29 }
 0xbde   : > { %v8428_v11 = vmul.f32 %v8341_v39, %v16564_v47  ;;  %v8429_v42 = vmul.f32 %v8341_v39, %v16567_v10 }
 0xbdf   : > { %v8345_v3 = vmul.f32 0.5, %v8344_v45  ;;  %v8207_v57 = vpop.xlane.xlu0 %8206 }
 0xbe0   : > { %v8465_v7 = vmul.f32 %v16663_v38, %v8428_v11  ;;  %v8466_v27 = vmul.f32 %v16665_v24, %v8429_v42  ;;  %v8231_v17 = vmul.f32 %v8207_v57, %v17574_v40 }
 0xbe1   : > { %v8346_v13 = vsub.f32 1.5, %v8345_v3 }
 0xbe2   : > { %v11901_v33 = vpop.eup %11900  ;;  %v8502_v46 = vadd.f32 %v16667_v22, %v8465_v7  ;;  %v8503_v9 = vadd.f32 %v16669_v0, %v8466_v27  ;;  %v8247_v1 = vadd.f32 1e-05, %v8231_v17 }
 0xbe3   : > { %v8347_v14 = vmul.f32 %v11899_v23, %v8346_v13  ;;  %v8353_v47 = vmul.f32 %v11901_v33, %v8246_v60  ;;  %vm8359_vm15 = vweird.f32 %v11901_v33 }
 0xbe4   : > { %8534 = vst [vmem:[#allocation2 + $0x38] sm:$0xff] %v8502_v46  ;;  %11902 = vrsqrt.f32 %v8247_v1  ;;  %vm8360_vm1 = vmor %vm8358_vm0, %vm8359_vm15  ;;  %vm8368_vm3 = vweird.f32 %v8247_v1 }
 0xbe5   : > { %8535 = vst [vmem:[#allocation2 + $0x58] sm:$0xff] %v8503_v9  ;;  %v8351_v10 = vsel %vm8350_vm14, %v11899_v23, %v8347_v14  ;;  %v8354_v12 = vmul.f32 %v11901_v33, %v8353_v47 }
 0xbe6   : > { %v8430_v56 = vmul.f32 %v8351_v10, %v16575_v55  ;;  %v8431_v37 = vmul.f32 %v8351_v10, %v16578_v15 }
 0xbe7   : > { %v8355_v50 = vmul.f32 0.5, %v8354_v12  ;;  %v8210_v35 = vpop.xlane.xlu1 %8209 }
 0xbe8   : > { %v8467_v62 = vmul.f32 %v16663_v38, %v8430_v56  ;;  %v8468_v16 = vmul.f32 %v16665_v24, %v8431_v37  ;;  %v8232_v63 = vmul.f32 %v8210_v35, %v17574_v40 }
 0xbe9   : > { %v8356_v25 = vsub.f32 1.5, %v8355_v50 }
 0xbea   : > { %v11903_v51 = vpop.eup %11902  ;;  %v8504_v41 = vadd.f32 %v16667_v22, %v8467_v62  ;;  %v8505_v26 = vadd.f32 %v16669_v0, %v8468_v16  ;;  %v8248_v8 = vadd.f32 1e-05, %v8232_v63 }
 0xbeb   : > { %v8357_v19 = vmul.f32 %v11901_v33, %v8356_v25  ;;  %v8363_v55 = vmul.f32 %v11903_v51, %v8247_v1  ;;  %vm8369_vm2 = vweird.f32 %v11903_v51 }
 0xbec   : > { %8536 = vst [vmem:[#allocation2 + $0x40] sm:$0xff] %v8504_v41  ;;  %11904 = vrsqrt.f32 %v8248_v8  ;;  %vm8370_vm4 = vmor %vm8368_vm3, %vm8369_vm2  ;;  %vm8378_vm6 = vweird.f32 %v8248_v8 }
 0xbed   : > { %8537 = vst [vmem:[#allocation2 + $0xc8] sm:$0xff] %v8505_v26  ;;  %v8361_v15 = vsel %vm8360_vm1, %v11901_v33, %v8357_v19  ;;  %v8364_v58 = vmul.f32 %v11903_v51, %v8363_v55 }
 0xbee   : > { %v8432_v61 = vmul.f32 %v8361_v15, %v16586_v48  ;;  %v8433_v59 = vmul.f32 %v8361_v15, %v16589_v30 }
 0xbef   : > { %v8365_v18 = vmul.f32 0.5, %v8364_v58  ;;  %v8213_v31 = vpop.xlane.xlu2 %8212 }
 0xbf0   : > { %v8469_v53 = vmul.f32 %v16663_v38, %v8432_v61  ;;  %v8470_v23 = vmul.f32 %v16665_v24, %v8433_v59  ;;  %v8233_v49 = vmul.f32 %v8213_v31, %v17574_v40 }
 0xbf1   : > { %v8366_v43 = vsub.f32 1.5, %v8365_v18 }
 0xbf2   : > { %v11905_v60 = vpop.eup %11904  ;;  %v8506_v21 = vadd.f32 %v16667_v22, %v8469_v53  ;;  %v8507_v29 = vadd.f32 %v16669_v0, %v8470_v23  ;;  %v8249_v39 = vadd.f32 1e-05, %v8233_v49 }
 0xbf3   : > { %v8367_v45 = vmul.f32 %v11903_v51, %v8366_v43  ;;  %v8373_v48 = vmul.f32 %v11905_v60, %v8248_v8  ;;  %vm8379_vm5 = vweird.f32 %v11905_v60 }
 0xbf4   : > { %8538 = vst [vmem:[#allocation2 + $0xe0] sm:$0xff] %v8506_v21  ;;  %11906 = vrsqrt.f32 %v8249_v39  ;;  %vm8380_vm7 = vmor %vm8378_vm6, %vm8379_vm5  ;;  %vm8388_vm9 = vweird.f32 %v8249_v39 }
 0xbf5   : > { %8539 = vst [vmem:[#allocation2 + $0x90] sm:$0xff] %v8507_v29  ;;  %v8371_v30 = vsel %vm8370_vm4, %v11903_v51, %v8367_v45  ;;  %v8374_v11 = vmul.f32 %v11905_v60, %v8373_v48 }
 0xbf6   : > { %v8434_v42 = vmul.f32 %v8371_v30, %v16597_v28  ;;  %v8435_v3 = vmul.f32 %v8371_v30, %v16600_v20 }
 0xbf7   : > { %v8375_v57 = vmul.f32 0.5, %v8374_v11  ;;  %v8216_v7 = vpop.xlane.xlu0 %8215 }
 0xbf8   : > { %v8471_v27 = vmul.f32 %v16663_v38, %v8434_v42  ;;  %v8472_v17 = vmul.f32 %v16665_v24, %v8435_v3  ;;  %v8234_v13 = vmul.f32 %v8216_v7, %v17574_v40 }
 0xbf9   : > { %v8376_v33 = vsub.f32 1.5, %v8375_v57 }
 0xbfa   : > { %v11907_v46 = vpop.eup %11906  ;;  %v8508_v9 = vadd.f32 %v16667_v22, %v8471_v27  ;;  %v8509_v1 = vadd.f32 %v16669_v0, %v8472_v17  ;;  %v8250_v14 = vadd.f32 1e-05, %v8234_v13 }
 0xbfb   : > { %v8377_v47 = vmul.f32 %v11905_v60, %v8376_v33  ;;  %v8383_v28 = vmul.f32 %v11907_v46, %v8249_v39  ;;  %vm8389_vm8 = vweird.f32 %v11907_v46 }
 0xbfc   : > { %8540 = vst [vmem:[#allocation2 + $0x70] sm:$0xff] %v8508_v9  ;;  %11908 = vrsqrt.f32 %v8250_v14  ;;  %vm8390_vm10 = vmor %vm8388_vm9, %vm8389_vm8  ;;  %vm8398_vm12 = vweird.f32 %v8250_v14 }
 0xbfd   : > { %8541 = vst [vmem:[#allocation2 + $0xc0] sm:$0xff] %v8509_v1  ;;  %v8381_v20 = vsel %vm8380_vm7, %v11905_v60, %v8377_v47  ;;  %v8384_v10 = vmul.f32 %v11907_v46, %v8383_v28 }
 0xbfe   : > { %v8436_v12 = vmul.f32 %v8381_v20, %v16608_v4  ;;  %v8437_v56 = vmul.f32 %v8381_v20, %v16611_v5 }
 0xbff   : > { %v8385_v37 = vmul.f32 0.5, %v8384_v10  ;;  %v8219_v50 = vpop.xlane.xlu1 %8218 }
 0xc00   : > { %v8473_v35 = vmul.f32 %v16663_v38, %v8436_v12  ;;  %v8474_v62 = vmul.f32 %v16665_v24, %v8437_v56  ;;  %v8235_v16 = vmul.f32 %v8219_v50, %v17574_v40 }
 0xc01   : > { %v8386_v63 = vsub.f32 1.5, %v8385_v37 }
 0xc02   : > { %v11909_v25 = vpop.eup %11908  ;;  %v8510_v51 = vadd.f32 %v16667_v22, %v8473_v35  ;;  %v8511_v41 = vadd.f32 %v16669_v0, %v8474_v62  ;;  %v8251_v26 = vadd.f32 1e-05, %v8235_v16 }
 0xc03   : > { %v8387_v8 = vmul.f32 %v11907_v46, %v8386_v63  ;;  %v8393_v4 = vmul.f32 %v11909_v25, %v8250_v14  ;;  %vm8399_vm11 = vweird.f32 %v11909_v25 }
 0xc04   : > { %8542 = vst [vmem:[#allocation2 + $0xa8] sm:$0xff] %v8510_v51  ;;  %11910 = vrsqrt.f32 %v8251_v26  ;;  %vm8400_vm13 = vmor %vm8398_vm12, %vm8399_vm11  ;;  %vm8408_vm15 = vweird.f32 %v8251_v26 }
 0xc05   : > { %8543 = vst [vmem:[#allocation2 + $0xd0] sm:$0xff] %v8511_v41  ;;  %v8391_v5 = vsel %vm8390_vm10, %v11907_v46, %v8387_v8  ;;  %v8394_v19 = vmul.f32 %v11909_v25, %v8393_v4 }
 0xc06   : > { %v8438_v55 = vmul.f32 %v8391_v5, %v16619_v2  ;;  %v8439_v40 = vmul.f32 %v8391_v5, %v16622_v44 }
 0xc07   : > { %v8395_v15 = vmul.f32 0.5, %v8394_v19 }
 0xc08   : > { %v8475_v58 = vmul.f32 %v16663_v38, %v8438_v55  ;;  %v8476_v61 = vmul.f32 %v16665_v24, %v8439_v40 }
 0xc09   : > { %v8396_v59 = vsub.f32 1.5, %v8395_v15 }
 0xc0a   : > { %v11911_v18 = vpop.eup %11910  ;;  %v8512_v31 = vadd.f32 %v16667_v22, %v8475_v58  ;;  %v8513_v53 = vadd.f32 %v16669_v0, %v8476_v61 }
 0xc0b   : > { %v8397_v23 = vmul.f32 %v11909_v25, %v8396_v59  ;;  %v8403_v49 = vmul.f32 %v11911_v18, %v8251_v26  ;;  %vm8409_vm14 = vweird.f32 %v11911_v18 }
 0xc0c   : > { %8544 = vst [vmem:[#allocation2 + $0x10] sm:$0xff] %v8512_v31  ;;  %vm8410_vm0 = vmor %vm8408_vm15, %vm8409_vm14 }
 0xc0d   : > { %8545 = vst [vmem:[#allocation2 + $0x28] sm:$0xff] %v8513_v53  ;;  %v8401_v2 = vsel %vm8400_vm13, %v11909_v25, %v8397_v23  ;;  %v8404_v44 = vmul.f32 %v11911_v18, %v8403_v49 }
 0xc0e   : > { %v8440_v43 = vmul.f32 %v8401_v2, %v16630_v36  ;;  %v8441_v60 = vmul.f32 %v8401_v2, %v16633_v54 }
 0xc0f   : > { %v8405_v21 = vmul.f32 0.5, %v8404_v44 }
 0xc10   : > { %v8477_v29 = vmul.f32 %v16663_v38, %v8440_v43  ;;  %v8478_v39 = vmul.f32 %v16665_v24, %v8441_v60 }
 0xc11   : > { %v8406_v45 = vsub.f32 1.5, %v8405_v21 }
 0xc12   : > { %v8514_v48 = vadd.f32 %v16667_v22, %v8477_v29  ;;  %v8515_v30 = vadd.f32 %v16669_v0, %v8478_v39 }
 0xc13   : > { %v8407_v11 = vmul.f32 %v11911_v18, %v8406_v45 }
 0xc14   : > { %8546 = vst [vmem:[#allocation2 + $0xa0] sm:$0xff] %v8514_v48 }
 0xc15   : > { %8547 = vst [vmem:[#allocation2 + $0xf8] sm:$0xff] %v8515_v30  ;;  %v8411_v42 = vsel %vm8410_vm0, %v11911_v18, %v8407_v11 }
 0xc16   : > { %v8442_v36 = vmul.f32 %v8411_v42, %v16641_v32  ;;  %v8443_v54 = vmul.f32 %v8411_v42, %v16644_v52 }
 0xc18   : > { %v8479_v3 = vmul.f32 %v16663_v38, %v8442_v36  ;;  %v8480_v57 = vmul.f32 %v16665_v24, %v8443_v54 }
 0xc19   : > { %8553 = sbr.rel (%p10756_p1) target bundleno = 3417 (0xd59), region = 100 }
 0xc1a   : > { %v8516_v7 = vadd.f32 %v16667_v22, %v8479_v3  ;;  %v8517_v27 = vadd.f32 %v16669_v0, %v8480_v57 }
 0xc1c   : > { %8548 = vst [vmem:[#allocation2 + $0x20] sm:$0xff] %v8516_v7 }
 0xc1d   : > { %8549 = vst [vmem:[#allocation2 + $0x98] sm:$0xff] %v8517_v27 }
 0xc1e   : > { %v10815_v17 = vld [vmem:[%s17579_s21 + $0x70] sm:$0xf]  ;;  %v11354_v32 = vld [vmem:[%s17579_s21 + $0x74] sm:$0xf0]  ;;  %v11353_v22 = vld [vmem:[%s17579_s21 + $0x74] sm:$0xf] }
 0xc1f   : > { %v10879_v52 = vld [vmem:[%s17579_s21 + $0xf0] sm:$0xf]  ;;  %v10816_v38 = vor.u32 %v11354_v32, %v10815_v17  ;;  %v11370_v24 = vld [vmem:[%s17579_s21 + $0xf4] sm:$0xf0]  ;;  %v10817_v0 = vld [vmem:[%s17579_s21 + $0x78] sm:$0xf0] }
 0xc20   : > { %v10880_v13 = vor.u32 %v11370_v24, %v10879_v52  ;;  %v10820_v33 = vor.u32 %v11353_v22, %v10817_v0  ;;  %v11369_v46 = vld [vmem:[%s17579_s21 + $0xf4] sm:$0xf]  ;;  %v10881_v9 = vld [vmem:[%s17579_s21 + $0xf8] sm:$0xf0]  ;;  %v10807_v1 = vld [vmem:[%s17579_s21 + $0x60] sm:$0xf] }
 0xc21   : > { %8754 = vmatpush.bf16.msra.mxu0 %v10816_v38  ;;  %v10884_v14 = vor.u32 %v11369_v46, %v10881_v9  ;;  %v11352_v47 = vld [vmem:[%s17579_s21 + $0x64] sm:$0xf0]  ;;  %v10871_v28 = vld [vmem:[%s17579_s21 + $0xe0] sm:$0xf]  ;;  %v11351_v56 = vld [vmem:[%s17579_s21 + $0x64] sm:$0xf] }
 0xc22   : > { %v11368_v20 = vld [vmem:[%s17579_s21 + $0xe4] sm:$0xf0]  ;;  %8767 = vmatpush.bf16.msra.mxu1 %v10880_v13  ;;  %8780 = vmatpush.bf16.msra.mxu2 %v10820_v33  ;;  %v10808_v10 = vor.u32 %v11352_v47, %v10807_v1  ;;  %v10809_v37 = vld [vmem:[%s17579_s21 + $0x68] sm:$0xf0]  ;;  %v11367_v50 = vld [vmem:[%s17579_s21 + $0xe4] sm:$0xf] }
 0xc23   : > { %v10872_v12 = vor.u32 %v11368_v20, %v10871_v28  ;;  %8793 = vmatpush.bf16.msra.mxu3 %v10884_v14  ;;  %v10812_v35 = vor.u32 %v11351_v56, %v10809_v37  ;;  %v10873_v62 = vld [vmem:[%s17579_s21 + $0xe8] sm:$0xf0]  ;;  %v10799_v16 = vld [vmem:[%s17579_s21 + $0x50] sm:$0xf]  ;;  %v11350_v63 = vld [vmem:[%s17579_s21 + $0x54] sm:$0xf0] }
 0xc24   : > { %v10876_v25 = vor.u32 %v11367_v50, %v10873_v62  ;;  %v10863_v51 = vld [vmem:[%s17579_s21 + $0xd0] sm:$0xf]  ;;  %v11366_v41 = vld [vmem:[%s17579_s21 + $0xd4] sm:$0xf0]  ;;  %v11349_v26 = vld [vmem:[%s17579_s21 + $0x54] sm:$0xf]  ;;  %v10800_v8 = vor.u32 %v11350_v63, %v10799_v16 }
 0xc25   : > { %8755 = vmatpush.bf16.msra.mxu0 %v10808_v10  ;;  %v10801_v4 = vld [vmem:[%s17579_s21 + $0x58] sm:$0xf0]  ;;  %v11365_v5 = vld [vmem:[%s17579_s21 + $0xd4] sm:$0xf]  ;;  %v10864_v55 = vor.u32 %v11366_v41, %v10863_v51  ;;  %v10791_v15 = vld [vmem:[%s17579_s21 + $0x40] sm:$0xf] }
 0xc26   : > { %v10865_v19 = vld [vmem:[%s17579_s21 + $0xd8] sm:$0xf0]  ;;  %8768 = vmatpush.bf16.msra.mxu1 %v10872_v12  ;;  %8781 = vmatpush.bf16.msra.mxu2 %v10812_v35  ;;  %v10804_v40 = vor.u32 %v11349_v26, %v10801_v4  ;;  %v11348_v58 = vld [vmem:[%s17579_s21 + $0x44] sm:$0xf0]  ;;  %v10855_v61 = vld [vmem:[%s17579_s21 + $0xc0] sm:$0xf] }
 0xc27   : > { %8794 = vmatpush.bf16.msra.mxu3 %v10876_v25  ;;  %v10868_v59 = vor.u32 %v11365_v5, %v10865_v19  ;;  %v11364_v18 = vld [vmem:[%s17579_s21 + $0xc4] sm:$0xf0]  ;;  %v11347_v31 = vld [vmem:[%s17579_s21 + $0x44] sm:$0xf]  ;;  %v10793_v53 = vld [vmem:[%s17579_s21 + $0x48] sm:$0xf0]  ;;  %v10792_v2 = vor.u32 %v11348_v58, %v10791_v15  ;;  %v8587_v15 = vpack.c.bf16 %v16677_v6, %v16677_v6 }
 0xc28   : > { %v11363_v23 = vld [vmem:[%s17579_s21 + $0xc4] sm:$0xf]  ;;  %v10857_v49 = vld [vmem:[%s17579_s21 + $0xc8] sm:$0xf0]  ;;  %v10856_v44 = vor.u32 %v11364_v18, %v10855_v61  ;;  %v10796_v43 = vor.u32 %v11347_v31, %v10793_v53  ;;  %v10783_v60 = vld [vmem:[%s17579_s21 + $0x30] sm:$0xf]  ;;  %v8588_v61 = vpack.c.bf16 %v16680_v34, %v16680_v34 }
 0xc29   : > { %8756 = vmatpush.bf16.msra.mxu0 %v10800_v8  ;;  %v11346_v21 = vld [vmem:[%s17579_s21 + $0x34] sm:$0xf0]  ;;  %v10847_v29 = vld [vmem:[%s17579_s21 + $0xb0] sm:$0xf]  ;;  %v10860_v39 = vor.u32 %v11363_v23, %v10857_v49  ;;  %v11345_v48 = vld [vmem:[%s17579_s21 + $0x34] sm:$0xf] }
 0xc2a   : > { %8769 = vmatpush.bf16.msra.mxu1 %v10864_v55  ;;  %8782 = vmatpush.bf16.msra.mxu2 %v10804_v40  ;;  %v11362_v45 = vld [vmem:[%s17579_s21 + $0xb4] sm:$0xf0]  ;;  %v10785_v30 = vld [vmem:[%s17579_s21 + $0x38] sm:$0xf0]  ;;  %v11361_v11 = vld [vmem:[%s17579_s21 + $0xb4] sm:$0xf]  ;;  %v10784_v36 = vor.u32 %v11346_v21, %v10783_v60 }
 0xc2b   : > { %8795 = vmatpush.bf16.msra.mxu3 %v10868_v59  ;;  %v10849_v42 = vld [vmem:[%s17579_s21 + $0xb8] sm:$0xf0]  ;;  %v10848_v54 = vor.u32 %v11362_v45, %v10847_v29  ;;  %v10788_v3 = vor.u32 %v11345_v48, %v10785_v30  ;;  %v10775_v57 = vld [vmem:[%s17579_s21 + $0x20] sm:$0xf]  ;;  %v11344_v7 = vld [vmem:[%s17579_s21 + $0x24] sm:$0xf0] }
 0xc2c   : > { %v10839_v27 = vld [vmem:[%s17579_s21 + $0xa0] sm:$0xf]  ;;  %v10852_v17 = vor.u32 %v11361_v11, %v10849_v42  ;;  %v11360_v32 = vld [vmem:[%s17579_s21 + $0xa4] sm:$0xf0]  ;;  %v11343_v52 = vld [vmem:[%s17579_s21 + $0x24] sm:$0xf]  ;;  %v10776_v0 = vor.u32 %v11344_v7, %v10775_v57 }
 0xc2d   : > { %8757 = vmatpush.bf16.msra.mxu0 %v10792_v2  ;;  %v10777_v38 = vld [vmem:[%s17579_s21 + $0x28] sm:$0xf0]  ;;  %v11359_v24 = vld [vmem:[%s17579_s21 + $0xa4] sm:$0xf]  ;;  %v10840_v13 = vor.u32 %v11360_v32, %v10839_v27  ;;  %v10767_v46 = vld [vmem:[%s17579_s21 + $0x10] sm:$0xf] }
 0xc2e   : > { %8770 = vmatpush.bf16.msra.mxu1 %v10856_v44  ;;  %8783 = vmatpush.bf16.msra.mxu2 %v10796_v43  ;;  %v10841_v22 = vld [vmem:[%s17579_s21 + $0xa8] sm:$0xf0]  ;;  %v10780_v33 = vor.u32 %v11343_v52, %v10777_v38  ;;  %v11342_v9 = vld [vmem:[%s17579_s21 + $0x14] sm:$0xf0]  ;;  %v10831_v1 = vld [vmem:[%s17579_s21 + $0x90] sm:$0xf] }
 0xc2f   : > { %8796 = vmatpush.bf16.msra.mxu3 %v10860_v39  ;;  %v10844_v14 = vor.u32 %v11359_v24, %v10841_v22  ;;  %v11358_v47 = vld [vmem:[%s17579_s21 + $0x94] sm:$0xf0]  ;;  %v11341_v28 = vld [vmem:[%s17579_s21 + $0x14] sm:$0xf]  ;;  %v10769_v20 = vld [vmem:[%s17579_s21 + $0x18] sm:$0xf0]  ;;  %v10768_v56 = vor.u32 %v11342_v9, %v10767_v46 }
 0xc30   : > { %v11357_v10 = vld [vmem:[%s17579_s21 + $0x94] sm:$0xf]  ;;  %v10833_v12 = vld [vmem:[%s17579_s21 + $0x98] sm:$0xf0]  ;;  %v10832_v37 = vor.u32 %v11358_v47, %v10831_v1  ;;  %v10772_v50 = vor.u32 %v11341_v28, %v10769_v20  ;;  %v10759_v35 = vld [vmem:[%s17579_s21] sm:$0xf] }
 0xc31   : > { %8758 = vmatpush.bf16.msra.mxu0 %v10784_v36  ;;  %v11340_v62 = vld [vmem:[%s17579_s21 + $0x4] sm:$0xf0]  ;;  %v10823_v16 = vld [vmem:[%s17579_s21 + $0x80] sm:$0xf]  ;;  %v10836_v63 = vor.u32 %v11357_v10, %v10833_v12  ;;  %v11339_v51 = vld [vmem:[%s17579_s21 + $0x4] sm:$0xf] }
 0xc32   : > { %8771 = vmatpush.bf16.msra.mxu1 %v10848_v54  ;;  %8784 = vmatpush.bf16.msra.mxu2 %v10788_v3  ;;  %v11356_v25 = vld [vmem:[%s17579_s21 + $0x84] sm:$0xf0]  ;;  %v10761_v41 = vld [vmem:[%s17579_s21 + $0x8] sm:$0xf0]  ;;  %v11355_v26 = vld [vmem:[%s17579_s21 + $0x84] sm:$0xf]  ;;  %v10760_v4 = vor.u32 %v11340_v62, %v10759_v35 }
 0xc33   : > { %8797 = vmatpush.bf16.msra.mxu3 %v10852_v17  ;;  %v10825_v8 = vld [vmem:[%s17579_s21 + $0x88] sm:$0xf0]  ;;  %v10824_v5 = vor.u32 %v11356_v25, %v10823_v16  ;;  %v10764_v19 = vor.u32 %v11339_v51, %v10761_v41  ;;  %v11378_v40 = vld [vmem:[%s17580_s24 + $0x38] sm:$0xff]  ;;  %v11377_v59 = vld [vmem:[%s17580_s24 + $0x30] sm:$0xff] }
 0xc34   : > { %v10828_v55 = vor.u32 %v11355_v26, %v10825_v8  ;;  %v11386_v58 = vld [vmem:[%s17580_s24 + $0x78] sm:$0xff]  ;;  %v11385_v6 = vld [vmem:[%s17580_s24 + $0x70] sm:$0xff]  ;;  %v11376_v34 = vld [vmem:[%s17580_s24 + $0x28] sm:$0xff] }
 0xc35   : > { %8759 = vmatpush.bf16.msra.mxu0 %v10776_v0  ;;  %v11384_v18 = vld [vmem:[%s17580_s24 + $0x68] sm:$0xff]  ;;  %v11375_v31 = vld [vmem:[%s17580_s24 + $0x20] sm:$0xff]  ;;  %v11374_v53 = vld [vmem:[%s17580_s24 + $0x18] sm:$0xff] }
 0xc36   : > { %8772 = vmatpush.bf16.msra.mxu1 %v10840_v13  ;;  %8785 = vmatpush.bf16.msra.mxu2 %v10780_v33  ;;  %v11383_v23 = vld [vmem:[%s17580_s24 + $0x60] sm:$0xff]  ;;  %v11373_v49 = vld [vmem:[%s17580_s24 + $0x10] sm:$0xff]  ;;  %v11382_v2 = vld [vmem:[%s17580_s24 + $0x58] sm:$0xff] }
 0xc37   : > { %8798 = vmatpush.bf16.msra.mxu3 %v10844_v14  ;;  %v11372_v44 = vld [vmem:[%s17580_s24 + $0x8] sm:$0xff]  ;;  %v11381_v43 = vld [vmem:[%s17580_s24 + $0x50] sm:$0xff]  ;;  %v11371_v60 = vld [vmem:[%s17580_s24] sm:$0xff] }
 0xc38   : > { %v11380_v21 = vld [vmem:[%s17580_s24 + $0x48] sm:$0xff]  ;;  %v11379_v29 = vld [vmem:[%s17580_s24 + $0x40] sm:$0xff] }
 0xc39   : > { %8760 = vmatpush.bf16.msra.mxu0 %v10768_v56  ;;  %v8586_v39 = vld [vmem:[%s17581_s0] sm:$0x3] }
 0xc3a   : > { %8773 = vmatpush.bf16.msra.mxu1 %v10832_v37  ;;  %8786 = vmatpush.bf16.msra.mxu2 %v10772_v50  ;;  %v8750_v45 = vperm.slane %v8586_v39, 0  ;;  %v8751_v36 = vperm.slane %v8586_v39, 1  ;;  %v8840_v33 = vld [vmem:[%s17582_s27] sm:$0x1] }
 0xc3b   : > { %8799 = vmatpush.bf16.msra.mxu3 %v10836_v63 }
 0xc3d   : > { %8761 = vmatpush.bf16.msra.mxu0 %v10760_v4 }
 0xc3e   : > { %8774 = vmatpush.bf16.msra.mxu1 %v10824_v5  ;;  %8787 = vmatpush.bf16.msra.mxu2 %v10764_v19 }
 0xc3f   : > { %8800 = vmatpush.bf16.msra.mxu3 %v10828_v55 }
 0xc40   : > { %8762 = vmatmul.bf16.vlgmr.msra.gmra.mxu0 %v8587_v15 }
 0xc41   : > { %8939 = vmatpush.bf16.msrb.mxu0 %v11378_v40  ;;  %8775 = vmatmul.bf16.vlgmr.msra.gmra.mxu1 %v8588_v61 }
 0xc42   : > { %8952 = vmatpush.bf16.msrb.mxu1 %v11386_v58  ;;  %8788 = vmatmul.bf16.vlgmr.msra.gmra.mxu2 %v8587_v15 }
 0xc43   : > { %8801 = vmatmul.bf16.vlgmr.msra.gmra.mxu3 %v8588_v61 }
 0xc45   : > { %8940 = vmatpush.bf16.msrb.mxu0 %v11377_v59 }
 0xc46   : > { %8953 = vmatpush.bf16.msrb.mxu1 %v11385_v6 }
 0xc49   : > { %8941 = vmatpush.bf16.msrb.mxu0 %v11376_v34 }
 0xc4a   : > { %8954 = vmatpush.bf16.msrb.mxu1 %v11384_v18 }
 0xc4d   : > { %8942 = vmatpush.bf16.msrb.mxu0 %v11375_v31 }
 0xc4e   : > { %8955 = vmatpush.bf16.msrb.mxu1 %v11383_v23 }
 0xc51   : > { %8943 = vmatpush.bf16.msrb.mxu0 %v11374_v53 }
 0xc52   : > { %8956 = vmatpush.bf16.msrb.mxu1 %v11382_v2 }
 0xc55   : > { %8944 = vmatpush.bf16.msrb.mxu0 %v11373_v49 }
 0xc56   : > { %8957 = vmatpush.bf16.msrb.mxu1 %v11381_v43 }
 0xc59   : > { %8945 = vmatpush.bf16.msrb.mxu0 %v11372_v44 }
 0xc5a   : > { %8958 = vmatpush.bf16.msrb.mxu1 %v11380_v21 }
 0xc5d   : > { %8946 = vmatpush.bf16.msrb.mxu0 %v11371_v60 }
 0xc5e   : > { %8959 = vmatpush.bf16.msrb.mxu1 %v11379_v29 }
 0xcbd   : > { %v8763_v48 = vpop.f32.mrf.mxu0 }
 0xcbe   : > { %v8764_v30 = vadd.f32 %v8763_v48, %v8750_v45  ;;  %v8776_v11 = vpop.f32.mrf.mxu1 }
 0xcc0   : > { %v8777_v42 = vadd.f32 %v8776_v11, %v8764_v30 }
 0xcc2   : > { %11948 = vtanh.f32 %v8777_v42 }
 0xcc5   : > { %v8789_v54 = vpop.f32.mrf.mxu2  ;;  %v8765_v7 = vpop.f32.mrf.mxu0 }
 0xcc6   : > { %v8790_v3 = vadd.f32 %v8789_v54, %v8751_v36  ;;  %v8802_v57 = vpop.f32.mrf.mxu3  ;;  %v8778_v27 = vpop.f32.mrf.mxu1 }
 0xcc8   : > { %v8803_v17 = vadd.f32 %v8802_v57, %v8790_v3  ;;  %v11949_v32 = vpop.eup %11948 }
 0xcc9   : > { %v8841_v52 = vpack.c.bf16 %v11949_v32, %v11949_v32 }
 0xcca   : > { %11950 = vtanh.f32 %v8803_v17 }
 0xccb   : > { %8947 = vmatmul.bf16.vlgmr.msrb.gmra.mxu0 %v8841_v52 }
 0xccd   : > { %v8791_v38 = vpop.f32.mrf.mxu2 }
 0xcce   : > { %v8804_v24 = vpop.f32.mrf.mxu3 }
 0xcd0   : > { %v11951_v22 = vpop.eup %11950 }
 0xcd1   : > { %v8842_v0 = vpack.c.bf16 %v11951_v22, %v11951_v22 }
 0xcd3   : > { %8960 = vmatmul.bf16.vlgmr.msrb.gmra.mxu1 %v8842_v0 }
 0xd48   : > { %v8948_v13 = vpop.f32.mrf.mxu0 }
 0xd49   : > { %v8949_v46 = vadd.f32 %v8948_v13, %v8840_v33 }
 0xd50   : > { %v8961_v9 = vpop.f32.mrf.mxu1  ;;  %v8950_v14 = vpop.f32.mrf.mxu0 }
 0xd51   : > { %v8962_v1 = vadd.f32 %v8961_v9, %v8949_v46 }
 0xd53   : > { %8965 = vst [vmem:[%s12290_s2] sm:$0x1] %v8962_v1 }
 0xd58   : > { %v8963_v47 = vpop.f32.mrf.mxu1 }
 0xd59 PF: > { %s17583_s18 = sld [smem:[#allocation10_spill]]  ;;  %s8977_s9 = sshll.u32 %s12290_s2, 4  ;;  %s8978_s9 = int_to_ptr.vmem [resolvable:$true] %s8977_s9 }
 0xd5a   : > { %s17584_s4 = sld [smem:[#allocation108_spill]]  ;;  %s17586_s14 = sand.u32 1, %s12022_s28  }
 0xd5b   : > { %s8967_s19 = scalar_lea.sflag [#allocation5], %s17586_s14 }
 0xd60   : > { %s8975_s8 = scalar_lea.hbm %s17584_s4, %s17583_s18  ;;  %s11972_s16 = scalar_lea.hbm %s17584_s4, 2 }
 0xd61   : > { %s8979_s12 = sshll.u32 %s8975_s8, 4  ;;  %s8980_s12 = int_to_ptr.hbm [resolvable:$true] %s8979_s12 }
 0xd62   : > { %s11966_s29 = sshra.s32 %s8980_s12, 4  ;;  %s11967_s29 = int_to_ptr.hbm [resolvable:$true] %s11966_s29 }
 0xd63   : > { %s11968_s15 = scalar_lea.hbm %s11967_s29, 1  ;;  %p11973_p6 = scmp.lt.s32.totalorder %s11967_s29, %s17584_s4 }
 0xd64   : > { %p11969_p2 = scmp.ne.s32.totalorder %s11967_s29, %s11968_s15  ;;  %p11974_p7 = scmp.lt.s32.totalorder %s11972_s16, %s11968_s15 }
 0xd66   : > { %p11970_p4 = pnand %p11969_p2, %p12193_p3  ;;  %p11975_p8 = por %p11974_p7, %p11973_p6 }
 0xd68   : > { %p11971_p5 = pneg %p11970_p4 }
 0xd6a   : > { %p11976_p10 = pnand %p11975_p8, %p11971_p5 }
 0xd6c   : > { %11979 = shalt.err (!%p11976_p10)
}
 0xd6d   : > { %11389 = dma.vmem_to_hbm [thread:$0]  (%p12193_p3), %s8978_s9, 16, %s8980_s12, %s8967_s19  }
 0xd6e PF: > { %s17587_s2 = sld [smem:[#allocation13_spill]] }
 0xd6f   : > { %s17588_s23 = sld [smem:[#allocation7_spill]] }
 0xd74   : > { %p11395_p11 = scmp.ge.s32.totalorder %s17587_s2, 2 }
 0xd75   : > { %s8991_s0 = sand.u32 1, %s17588_s23  }
 0xd76   : > { %p11392_p12 = pnand %p11395_p11, %p12203_p9  ;;  %s8992_s26 = scalar_lea.sflag [#allocation5], %s8991_s0 }
 0xd78   : > { %p11393_p13 = pneg %p11392_p12 }
 0xd7a   : > { %12013 = dma.done.wait (%p11393_p13), %s8992_s26, 16  }
 0xd7b   : > { %12015 = vsyncadd (%p11393_p13), %s8992_s26, 4294967280  ;;  %s31_s20 = sadd.s32 1, %s17587_s2   ;;  %s17590_s1 = sld [smem:[#allocation8_spill]] }
 0xd7c   : > { %p28_p0 = scmp.ge.s32.totalorder %s31_s20, 10   ;;  %s17591_s29 = sld [smem:[#allocation18_spill]] }
 0xd7d   : > { %s17592_s30 = sld [smem:[#allocation11_spill]]  ;;  %s17596_s27 = smov %s12022_s28 }
 0xd7e   : > { %s17593_s0 = sld [smem:[#allocation12_spill]] }
 0xd7f   : > { %s17594_s19 = sld [smem:[#allocation14_spill]] }
 0xd80   : > { %s17595_s18 = sld [smem:[#allocation16_spill]] }
 0xd81   : > { %s17597_s28 = smov %s17590_s1 }
 0xd82   :  { %30 = sbr.rel (!%p28_p0) target bundleno = 21 (0x15), region = 174 }
 0xd86   : > { %s17598_s1 = smov %s17595_s18 }
 0xd87   :  { %8997 = vsyncpa [#allocation5], 1 }
 0xd88   :  { %8999 = vsyncpa [#allocation5 + $0x1], 1 }

</bundles_post_ra>
